<compile_context>
chip_gen: v6e
topology: v6e:2x2x1
jax: 0.10.0
libtpu: 0.0.40
codegen_flags: <defaults>
</compile_context>

<pallas_src>
import functools

import jax
import jax.numpy as jnp
from jax.experimental import pallas as pl
from jax.experimental.pallas import tpu as pltpu


# ------------------------------ fused kernel ---------------------------------
def _fused_cnn_kernel(x_ref, wb1_ref, b1_ref, wb2_ref, b2_ref, wb3_ref, b3_ref,
                      wl1_ref, bl1_ref, wl2_ref, bl2_ref, o_ref, *,
                      batch, cin, h1, h2, h3):
    f32 = jnp.float32

    def conv_banded(a_in, wb_ref, b_ref, h_out):
        # a_in: (Hin, Cin*Win); wb_ref: (3, Cin*Win, Cout*Wout)
        acc = jnp.dot(a_in[0:h_out, :], wb_ref[0], preferred_element_type=f32)
        for dy in range(1, 3):
            acc = acc + jnp.dot(a_in[dy:dy + h_out, :], wb_ref[dy],
                                preferred_element_type=f32)
        return acc + b_ref[...]

    h_rows = []
    for b in range(batch):
        # ---- conv1: NCHW input, banded matmuls split per input channel ------
        acc = None
        for c in range(cin):
            xc = x_ref[b, c]                                      # (H, W)
            for dy in range(3):
                t = jnp.dot(xc[dy:dy + h1, :], wb1_ref[dy, c],
                            preferred_element_type=f32)
                acc = t if acc is None else acc + t
        y1 = acc + b1_ref[...]                                    # (H1, 8*W1)

        # ---- conv2 / conv3 (activation layout stays [row, chan*width]) ------
        y2 = conv_banded(y1, wb2_ref, b2_ref, h2)                 # (H2, 16*W2)
        y3 = conv_banded(y2, wb3_ref, b3_ref, h3)                 # (H3, 32*W3)

        # ---- flatten (PyTorch (C,H,W) order folded into wl1) + linear1 ------
        hacc = jnp.dot(y3[0:1, :], wl1_ref[0], preferred_element_type=f32)
        for i in range(1, h3):
            hacc = hacc + jnp.dot(y3[i:i + 1, :], wl1_ref[i],
                                  preferred_element_type=f32)
        h_rows.append(jnp.maximum(hacc + bl1_ref[...], 0.0))      # (1, 256)

    h = jnp.concatenate(h_rows, axis=0)                           # (B, 256)
    out = jnp.dot(h, wl2_ref[...], preferred_element_type=f32) + bl2_ref[...]
    o_ref[...] = out.astype(o_ref.dtype)


# ------------------------ one-time weight preprocessing -----------------------
def _banded_conv_weight(w_oihw, w_in):
    """PyTorch (Cout, Cin, 3, 3) conv weight -> banded matmul weights.

    Returns (3, Cin, Win, Cout*Wout): for kernel row dy and input channel ci,
    a (Win, Cout*Wout) matrix B with
        B[q, co*Wout + j] = w[co, ci, dy, q - j]   if 0 <= q - j < 3 else 0
    so a 3x3 "valid" conv becomes  sum_dy  act[dy:dy+Hout, :] @ B[dy]  per layer.
    """
    cout, cin, kh, kw = w_oihw.shape
    wo = w_in - kw + 1
    w_t = jnp.transpose(w_oihw, (2, 3, 1, 0)).astype(jnp.float32)   # [dy,dx,ci,co]
    q = jnp.arange(w_in)[:, None, None]
    dx = jnp.arange(kw)[None, :, None]
    j = jnp.arange(wo)[None, None, :]
    band = (q == j + dx).astype(jnp.float32)                        # (Win, kw, Wo)
    wb = jnp.einsum('qxj,yxio->yiqoj', band, w_t)                   # (kh,ci,Win,co,Wo)
    return wb.reshape(kh, cin, w_in, cout * wo)


def preprocess_params(params, width, height):
    """One-time re-layout of PyTorch-style parameters into kernel-ready form."""
    H, W = height, width
    H1, W1 = H - 2, W - 2
    H2, W2 = H - 4, W - 4
    H3, W3 = H - 6, W - 6

    wb1 = _banded_conv_weight(params["w1"], W)                       # (3,3,W,8*W1)
    wb2 = _banded_conv_weight(params["w2"], W1).reshape(3, 8 * W1, 16 * W2)
    wb3 = _banded_conv_weight(params["w3"], W2).reshape(3, 16 * W2, 32 * W3)

    # Fold PyTorch's (C, H, W) flatten ordering into linear1, split per conv3
    # output row i:  wl1_k[i][c*W3 + j, n] == wl1[n, c*H3*W3 + i*W3 + j].
    wl1 = params["wl1"].reshape(256, 32, H3, W3)                     # [n, c, i, j]
    wl1_k = jnp.transpose(wl1, (2, 1, 3, 0)).reshape(H3, 32 * W3, 256)

    return {
        "wb1": wb1, "b1": jnp.repeat(params["b1"], W1)[None, :],
        "wb2": wb2, "b2": jnp.repeat(params["b2"], W2)[None, :],
        "wb3": wb3, "b3": jnp.repeat(params["b3"], W3)[None, :],
        "wl1": wl1_k, "bl1": params["bl1"][None, :],
        "wl2": params["wl2"].T, "bl2": params["bl2"][None, :],
    }


# ------------------------------ model params ----------------------------------
def init_params(width, height, key):
    ks = jax.random.split(key, 10)
    s = 0.05
    size = (width - 6) * (height - 6) * 32
    return {
        "w1": s * jax.random.normal(ks[0], (8, 3, 3, 3), jnp.float32),
        "b1": s * jax.random.normal(ks[1], (8,), jnp.float32),
        "w2": s * jax.random.normal(ks[2], (16, 8, 3, 3), jnp.float32),
        "b2": s * jax.random.normal(ks[3], (16,), jnp.float32),
        "w3": s * jax.random.normal(ks[4], (32, 16, 3, 3), jnp.float32),
        "b3": s * jax.random.normal(ks[5], (32,), jnp.float32),
        "wl1": s * jax.random.normal(ks[6], (256, size), jnp.float32),
        "bl1": s * jax.random.normal(ks[7], (256,), jnp.float32),
        "wl2": s * jax.random.normal(ks[8], (5, 256), jnp.float32),
        "bl2": s * jax.random.normal(ks[9], (5,), jnp.float32),
    }


# -------------------------------- forward -------------------------------------
def cnn_forward(prepared, x_nchw):
    B, Cin, H, W = x_nchw.shape
    H1, W1 = H - 2, W - 2
    H2, W2 = H - 4, W - 4
    H3, W3 = H - 6, W - 6

    args = (x_nchw, prepared["wb1"], prepared["b1"], prepared["wb2"],
            prepared["b2"], prepared["wb3"], prepared["b3"], prepared["wl1"],
            prepared["bl1"], prepared["wl2"], prepared["bl2"])

    # Advisory cost estimate (matmul flops of the banded-conv formulation).
    flops = B * (3 * Cin * 2 * H1 * W * (8 * W1)
                 + 3 * 2 * H2 * (8 * W1) * (16 * W2)
                 + 3 * 2 * H3 * (16 * W2) * (32 * W3)
                 + H3 * 2 * (32 * W3) * 256) + 2 * B * 256 * 5
    bytes_accessed = sum(int(a.size) * a.dtype.itemsize for a in args) + B * 5 * 4

    kernel = functools.partial(_fused_cnn_kernel, batch=B, cin=Cin,
                               h1=H1, h2=H2, h3=H3)
    vmem = pl.BlockSpec(memory_space=pltpu.MemorySpace.VMEM)
    return pl.pallas_call(
        kernel,
        out_shape=jax.ShapeDtypeStruct((B, 5), jnp.float32),
        in_specs=[vmem] * len(args),
        out_specs=vmem,
        compiler_params=pltpu.CompilerParams(vmem_limit_bytes=32 * 1024 * 1024),
        cost_estimate=pl.CostEstimate(flops=flops, transcendentals=0,
                                      bytes_accessed=bytes_accessed),
    )(*args)


# ---------------------------------- main ---------------------------------------
if __name__ == "__main__":
    key = jax.random.PRNGKey(0)
    k_param, k_input = jax.random.split(key)

    width = height = 16
    batch = 2
    params = init_params(width, height, k_param)
    prepared = preprocess_params(params, width, height)   # one-time relayout
    x = jax.random.normal(k_input, (batch, 3, height, width), jnp.float32)

    forward = jax.jit(cnn_forward)
    out = jax.block_until_ready(forward(prepared, x))

    assert out.shape == (batch, 5), out.shape
    assert out.dtype == jnp.float32
    print("KERNEL_OK")
</pallas_src>

<mosaic_0001>
module attributes {stable_mosaic.version = 11 : i64} {
  func.func @_fused_cnn_kernel(%arg0: memref<2x3x16x16xf32, #tpu.memory_space<vmem>>, %arg1: memref<3x3x16x112xf32, #tpu.memory_space<vmem>>, %arg2: memref<1x112xf32, #tpu.memory_space<vmem>>, %arg3: memref<3x112x192xf32, #tpu.memory_space<vmem>>, %arg4: memref<1x192xf32, #tpu.memory_space<vmem>>, %arg5: memref<3x192x320xf32, #tpu.memory_space<vmem>>, %arg6: memref<1x320xf32, #tpu.memory_space<vmem>>, %arg7: memref<10x320x256xf32, #tpu.memory_space<vmem>>, %arg8: memref<1x256xf32, #tpu.memory_space<vmem>>, %arg9: memref<256x5xf32, #tpu.memory_space<vmem>>, %arg10: memref<1x5xf32, #tpu.memory_space<vmem>>, %arg11: memref<2x5xf32, #tpu.memory_space<vmem>>) attributes {dimension_semantics = [], scalar_prefetch = 0 : i64, scratch_operands = 0 : i64, tpu.core_type = #tpu.core_type<tc>} {
    %c0 = arith.constant 0 : index
    %c0_0 = arith.constant 0 : index
    %c0_1 = arith.constant 0 : index
    %c0_2 = arith.constant 0 : index
    %0 = vector.load %arg0[%c0, %c0_0, %c0_1, %c0_2] : memref<2x3x16x16xf32, #tpu.memory_space<vmem>>, vector<1x1x16x16xf32>
    %1 = vector.shape_cast %0 : vector<1x1x16x16xf32> to vector<16x16xf32>
    %2 = vector.extract_strided_slice %1 {offsets = [0, 0], sizes = [14, 16], strides = [1, 1]} : vector<16x16xf32> to vector<14x16xf32>
    %c0_3 = arith.constant 0 : index
    %c0_4 = arith.constant 0 : index
    %c0_5 = arith.constant 0 : index
    %c0_6 = arith.constant 0 : index
    %3 = vector.load %arg1[%c0_3, %c0_4, %c0_5, %c0_6] : memref<3x3x16x112xf32, #tpu.memory_space<vmem>>, vector<1x1x16x112xf32>
    %4 = vector.shape_cast %3 : vector<1x1x16x112xf32> to vector<16x112xf32>
    %cst = arith.constant dense<0.000000e+00> : vector<14x112xf32>
    %5 = tpu.matmul %2, %4, %cst {dimension_numbers = #tpu.dot_dimension_numbers<[1], [0], [0], [1], [0, 0, 1, 1], [], []>} : vector<14x16xf32>, vector<16x112xf32>, vector<14x112xf32> -> vector<14x112xf32>
    %6 = vector.extract_strided_slice %1 {offsets = [1, 0], sizes = [14, 16], strides = [1, 1]} : vector<16x16xf32> to vector<14x16xf32>
    %c1 = arith.constant 1 : index
    %c0_7 = arith.constant 0 : index
    %c0_8 = arith.constant 0 : index
    %c0_9 = arith.constant 0 : index
    %7 = vector.load %arg1[%c1, %c0_7, %c0_8, %c0_9] : memref<3x3x16x112xf32, #tpu.memory_space<vmem>>, vector<1x1x16x112xf32>
    %8 = vector.shape_cast %7 : vector<1x1x16x112xf32> to vector<16x112xf32>
    %cst_10 = arith.constant dense<0.000000e+00> : vector<14x112xf32>
    %9 = tpu.matmul %6, %8, %cst_10 {dimension_numbers = #tpu.dot_dimension_numbers<[1], [0], [0], [1], [0, 0, 1, 1], [], []>} : vector<14x16xf32>, vector<16x112xf32>, vector<14x112xf32> -> vector<14x112xf32>
    %10 = arith.addf %5, %9 : vector<14x112xf32>
    %11 = vector.extract_strided_slice %1 {offsets = [2, 0], sizes = [14, 16], strides = [1, 1]} : vector<16x16xf32> to vector<14x16xf32>
    %c2 = arith.constant 2 : index
    %c0_11 = arith.constant 0 : index
    %c0_12 = arith.constant 0 : index
    %c0_13 = arith.constant 0 : index
    %12 = vector.load %arg1[%c2, %c0_11, %c0_12, %c0_13] : memref<3x3x16x112xf32, #tpu.memory_space<vmem>>, vector<1x1x16x112xf32>
    %13 = vector.shape_cast %12 : vector<1x1x16x112xf32> to vector<16x112xf32>
    %cst_14 = arith.constant dense<0.000000e+00> : vector<14x112xf32>
    %14 = tpu.matmul %11, %13, %cst_14 {dimension_numbers = #tpu.dot_dimension_numbers<[1], [0], [0], [1], [0, 0, 1, 1], [], []>} : vector<14x16xf32>, vector<16x112xf32>, vector<14x112xf32> -> vector<14x112xf32>
    %15 = arith.addf %10, %14 : vector<14x112xf32>
    %c0_15 = arith.constant 0 : index
    %c1_16 = arith.constant 1 : index
    %c0_17 = arith.constant 0 : index
    %c0_18 = arith.constant 0 : index
    %16 = vector.load %arg0[%c0_15, %c1_16, %c0_17, %c0_18] : memref<2x3x16x16xf32, #tpu.memory_space<vmem>>, vector<1x1x16x16xf32>
    %17 = vector.shape_cast %16 : vector<1x1x16x16xf32> to vector<16x16xf32>
    %18 = vector.extract_strided_slice %17 {offsets = [0, 0], sizes = [14, 16], strides = [1, 1]} : vector<16x16xf32> to vector<14x16xf32>
    %c0_19 = arith.constant 0 : index
    %c1_20 = arith.constant 1 : index
    %c0_21 = arith.constant 0 : index
    %c0_22 = arith.constant 0 : index
    %19 = vector.load %arg1[%c0_19, %c1_20, %c0_21, %c0_22] : memref<3x3x16x112xf32, #tpu.memory_space<vmem>>, vector<1x1x16x112xf32>
    %20 = vector.shape_cast %19 : vector<1x1x16x112xf32> to vector<16x112xf32>
    %cst_23 = arith.constant dense<0.000000e+00> : vector<14x112xf32>
    %21 = tpu.matmul %18, %20, %cst_23 {dimension_numbers = #tpu.dot_dimension_numbers<[1], [0], [0], [1], [0, 0, 1, 1], [], []>} : vector<14x16xf32>, vector<16x112xf32>, vector<14x112xf32> -> vector<14x112xf32>
    %22 = arith.addf %15, %21 : vector<14x112xf32>
    %23 = vector.extract_strided_slice %17 {offsets = [1, 0], sizes = [14, 16], strides = [1, 1]} : vector<16x16xf32> to vector<14x16xf32>
    %c1_24 = arith.constant 1 : index
    %c1_25 = arith.constant 1 : index
    %c0_26 = arith.constant 0 : index
    %c0_27 = arith.constant 0 : index
    %24 = vector.load %arg1[%c1_24, %c1_25, %c0_26, %c0_27] : memref<3x3x16x112xf32, #tpu.memory_space<vmem>>, vector<1x1x16x112xf32>
    %25 = vector.shape_cast %24 : vector<1x1x16x112xf32> to vector<16x112xf32>
    %cst_28 = arith.constant dense<0.000000e+00> : vector<14x112xf32>
    %26 = tpu.matmul %23, %25, %cst_28 {dimension_numbers = #tpu.dot_dimension_numbers<[1], [0], [0], [1], [0, 0, 1, 1], [], []>} : vector<14x16xf32>, vector<16x112xf32>, vector<14x112xf32> -> vector<14x112xf32>
    %27 = arith.addf %22, %26 : vector<14x112xf32>
    %28 = vector.extract_strided_slice %17 {offsets = [2, 0], sizes = [14, 16], strides = [1, 1]} : vector<16x16xf32> to vector<14x16xf32>
    %c2_29 = arith.constant 2 : index
    %c1_30 = arith.constant 1 : index
    %c0_31 = arith.constant 0 : index
    %c0_32 = arith.constant 0 : index
    %29 = vector.load %arg1[%c2_29, %c1_30, %c0_31, %c0_32] : memref<3x3x16x112xf32, #tpu.memory_space<vmem>>, vector<1x1x16x112xf32>
    %30 = vector.shape_cast %29 : vector<1x1x16x112xf32> to vector<16x112xf32>
    %cst_33 = arith.constant dense<0.000000e+00> : vector<14x112xf32>
    %31 = tpu.matmul %28, %30, %cst_33 {dimension_numbers = #tpu.dot_dimension_numbers<[1], [0], [0], [1], [0, 0, 1, 1], [], []>} : vector<14x16xf32>, vector<16x112xf32>, vector<14x112xf32> -> vector<14x112xf32>
    %32 = arith.addf %27, %31 : vector<14x112xf32>
    %c0_34 = arith.constant 0 : index
    %c2_35 = arith.constant 2 : index
    %c0_36 = arith.constant 0 : index
    %c0_37 = arith.constant 0 : index
    %33 = vector.load %arg0[%c0_34, %c2_35, %c0_36, %c0_37] : memref<2x3x16x16xf32, #tpu.memory_space<vmem>>, vector<1x1x16x16xf32>
    %34 = vector.shape_cast %33 : vector<1x1x16x16xf32> to vector<16x16xf32>
    %35 = vector.extract_strided_slice %34 {offsets = [0, 0], sizes = [14, 16], strides = [1, 1]} : vector<16x16xf32> to vector<14x16xf32>
    %c0_38 = arith.constant 0 : index
    %c2_39 = arith.constant 2 : index
    %c0_40 = arith.constant 0 : index
    %c0_41 = arith.constant 0 : index
    %36 = vector.load %arg1[%c0_38, %c2_39, %c0_40, %c0_41] : memref<3x3x16x112xf32, #tpu.memory_space<vmem>>, vector<1x1x16x112xf32>
    %37 = vector.shape_cast %36 : vector<1x1x16x112xf32> to vector<16x112xf32>
    %cst_42 = arith.constant dense<0.000000e+00> : vector<14x112xf32>
    %38 = tpu.matmul %35, %37, %cst_42 {dimension_numbers = #tpu.dot_dimension_numbers<[1], [0], [0], [1], [0, 0, 1, 1], [], []>} : vector<14x16xf32>, vector<16x112xf32>, vector<14x112xf32> -> vector<14x112xf32>
    %39 = arith.addf %32, %38 : vector<14x112xf32>
    %40 = vector.extract_strided_slice %34 {offsets = [1, 0], sizes = [14, 16], strides = [1, 1]} : vector<16x16xf32> to vector<14x16xf32>
    %c1_43 = arith.constant 1 : index
    %c2_44 = arith.constant 2 : index
    %c0_45 = arith.constant 0 : index
    %c0_46 = arith.constant 0 : index
    %41 = vector.load %arg1[%c1_43, %c2_44, %c0_45, %c0_46] : memref<3x3x16x112xf32, #tpu.memory_space<vmem>>, vector<1x1x16x112xf32>
    %42 = vector.shape_cast %41 : vector<1x1x16x112xf32> to vector<16x112xf32>
    %cst_47 = arith.constant dense<0.000000e+00> : vector<14x112xf32>
    %43 = tpu.matmul %40, %42, %cst_47 {dimension_numbers = #tpu.dot_dimension_numbers<[1], [0], [0], [1], [0, 0, 1, 1], [], []>} : vector<14x16xf32>, vector<16x112xf32>, vector<14x112xf32> -> vector<14x112xf32>
    %44 = arith.addf %39, %43 : vector<14x112xf32>
    %45 = vector.extract_strided_slice %34 {offsets = [2, 0], sizes = [14, 16], strides = [1, 1]} : vector<16x16xf32> to vector<14x16xf32>
    %c2_48 = arith.constant 2 : index
    %c2_49 = arith.constant 2 : index
    %c0_50 = arith.constant 0 : index
    %c0_51 = arith.constant 0 : index
    %46 = vector.load %arg1[%c2_48, %c2_49, %c0_50, %c0_51] : memref<3x3x16x112xf32, #tpu.memory_space<vmem>>, vector<1x1x16x112xf32>
    %47 = vector.shape_cast %46 : vector<1x1x16x112xf32> to vector<16x112xf32>
    %cst_52 = arith.constant dense<0.000000e+00> : vector<14x112xf32>
    %48 = tpu.matmul %45, %47, %cst_52 {dimension_numbers = #tpu.dot_dimension_numbers<[1], [0], [0], [1], [0, 0, 1, 1], [], []>} : vector<14x16xf32>, vector<16x112xf32>, vector<14x112xf32> -> vector<14x112xf32>
    %49 = arith.addf %44, %48 : vector<14x112xf32>
    %c0_53 = arith.constant 0 : index
    %c0_54 = arith.constant 0 : index
    %50 = vector.load %arg2[%c0_53, %c0_54] : memref<1x112xf32, #tpu.memory_space<vmem>>, vector<1x112xf32>
    %51 = vector.broadcast %50 : vector<1x112xf32> to vector<14x112xf32>
    %52 = arith.addf %49, %51 : vector<14x112xf32>
    %53 = vector.extract_strided_slice %52 {offsets = [0, 0], sizes = [12, 112], strides = [1, 1]} : vector<14x112xf32> to vector<12x112xf32>
    %c0_55 = arith.constant 0 : index
    %c0_56 = arith.constant 0 : index
    %c0_57 = arith.constant 0 : index
    %54 = vector.load %arg3[%c0_55, %c0_56, %c0_57] : memref<3x112x192xf32, #tpu.memory_space<vmem>>, vector<1x112x192xf32>
    %55 = vector.shape_cast %54 : vector<1x112x192xf32> to vector<112x192xf32>
    %cst_58 = arith.constant dense<0.000000e+00> : vector<12x192xf32>
    %56 = tpu.matmul %53, %55, %cst_58 {dimension_numbers = #tpu.dot_dimension_numbers<[1], [0], [0], [1], [0, 0, 1, 1], [], []>} : vector<12x112xf32>, vector<112x192xf32>, vector<12x192xf32> -> vector<12x192xf32>
    %57 = vector.extract_strided_slice %52 {offsets = [1, 0], sizes = [12, 112], strides = [1, 1]} : vector<14x112xf32> to vector<12x112xf32>
    %c1_59 = arith.constant 1 : index
    %c0_60 = arith.constant 0 : index
    %c0_61 = arith.constant 0 : index
    %58 = vector.load %arg3[%c1_59, %c0_60, %c0_61] : memref<3x112x192xf32, #tpu.memory_space<vmem>>, vector<1x112x192xf32>
    %59 = vector.shape_cast %58 : vector<1x112x192xf32> to vector<112x192xf32>
    %cst_62 = arith.constant dense<0.000000e+00> : vector<12x192xf32>
    %60 = tpu.matmul %57, %59, %cst_62 {dimension_numbers = #tpu.dot_dimension_numbers<[1], [0], [0], [1], [0, 0, 1, 1], [], []>} : vector<12x112xf32>, vector<112x192xf32>, vector<12x192xf32> -> vector<12x192xf32>
    %61 = arith.addf %56, %60 : vector<12x192xf32>
    %62 = vector.extract_strided_slice %52 {offsets = [2, 0], sizes = [12, 112], strides = [1, 1]} : vector<14x112xf32> to vector<12x112xf32>
    %c2_63 = arith.constant 2 : index
    %c0_64 = arith.constant 0 : index
    %c0_65 = arith.constant 0 : index
    %63 = vector.load %arg3[%c2_63, %c0_64, %c0_65] : memref<3x112x192xf32, #tpu.memory_space<vmem>>, vector<1x112x192xf32>
    %64 = vector.shape_cast %63 : vector<1x112x192xf32> to vector<112x192xf32>
    %cst_66 = arith.constant dense<0.000000e+00> : vector<12x192xf32>
    %65 = tpu.matmul %62, %64, %cst_66 {dimension_numbers = #tpu.dot_dimension_numbers<[1], [0], [0], [1], [0, 0, 1, 1], [], []>} : vector<12x112xf32>, vector<112x192xf32>, vector<12x192xf32> -> vector<12x192xf32>
    %66 = arith.addf %61, %65 : vector<12x192xf32>
    %c0_67 = arith.constant 0 : index
    %c0_68 = arith.constant 0 : index
    %67 = vector.load %arg4[%c0_67, %c0_68] : memref<1x192xf32, #tpu.memory_space<vmem>>, vector<1x192xf32>
    %68 = vector.broadcast %67 : vector<1x192xf32> to vector<12x192xf32>
    %69 = arith.addf %66, %68 : vector<12x192xf32>
    %70 = vector.extract_strided_slice %69 {offsets = [0, 0], sizes = [10, 192], strides = [1, 1]} : vector<12x192xf32> to vector<10x192xf32>
    %c0_69 = arith.constant 0 : index
    %c0_70 = arith.constant 0 : index
    %c0_71 = arith.constant 0 : index
    %71 = vector.load %arg5[%c0_69, %c0_70, %c0_71] : memref<3x192x320xf32, #tpu.memory_space<vmem>>, vector<1x192x320xf32>
    %72 = vector.shape_cast %71 : vector<1x192x320xf32> to vector<192x320xf32>
    %cst_72 = arith.constant dense<0.000000e+00> : vector<10x320xf32>
    %73 = tpu.matmul %70, %72, %cst_72 {dimension_numbers = #tpu.dot_dimension_numbers<[1], [0], [0], [1], [0, 0, 1, 1], [], []>} : vector<10x192xf32>, vector<192x320xf32>, vector<10x320xf32> -> vector<10x320xf32>
    %74 = vector.extract_strided_slice %69 {offsets = [1, 0], sizes = [10, 192], strides = [1, 1]} : vector<12x192xf32> to vector<10x192xf32>
    %c1_73 = arith.constant 1 : index
    %c0_74 = arith.constant 0 : index
    %c0_75 = arith.constant 0 : index
    %75 = vector.load %arg5[%c1_73, %c0_74, %c0_75] : memref<3x192x320xf32, #tpu.memory_space<vmem>>, vector<1x192x320xf32>
    %76 = vector.shape_cast %75 : vector<1x192x320xf32> to vector<192x320xf32>
    %cst_76 = arith.constant dense<0.000000e+00> : vector<10x320xf32>
    %77 = tpu.matmul %74, %76, %cst_76 {dimension_numbers = #tpu.dot_dimension_numbers<[1], [0], [0], [1], [0, 0, 1, 1], [], []>} : vector<10x192xf32>, vector<192x320xf32>, vector<10x320xf32> -> vector<10x320xf32>
    %78 = arith.addf %73, %77 : vector<10x320xf32>
    %79 = vector.extract_strided_slice %69 {offsets = [2, 0], sizes = [10, 192], strides = [1, 1]} : vector<12x192xf32> to vector<10x192xf32>
    %c2_77 = arith.constant 2 : index
    %c0_78 = arith.constant 0 : index
    %c0_79 = arith.constant 0 : index
    %80 = vector.load %arg5[%c2_77, %c0_78, %c0_79] : memref<3x192x320xf32, #tpu.memory_space<vmem>>, vector<1x192x320xf32>
    %81 = vector.shape_cast %80 : vector<1x192x320xf32> to vector<192x320xf32>
    %cst_80 = arith.constant dense<0.000000e+00> : vector<10x320xf32>
    %82 = tpu.matmul %79, %81, %cst_80 {dimension_numbers = #tpu.dot_dimension_numbers<[1], [0], [0], [1], [0, 0, 1, 1], [], []>} : vector<10x192xf32>, vector<192x320xf32>, vector<10x320xf32> -> vector<10x320xf32>
    %83 = arith.addf %78, %82 : vector<10x320xf32>
    %c0_81 = arith.constant 0 : index
    %c0_82 = arith.constant 0 : index
    %84 = vector.load %arg6[%c0_81, %c0_82] : memref<1x320xf32, #tpu.memory_space<vmem>>, vector<1x320xf32>
    %85 = vector.broadcast %84 : vector<1x320xf32> to vector<10x320xf32>
    %86 = arith.addf %83, %85 : vector<10x320xf32>
    %87 = vector.extract_strided_slice %86 {offsets = [0, 0], sizes = [1, 320], strides = [1, 1]} : vector<10x320xf32> to vector<1x320xf32>
    %c0_83 = arith.constant 0 : index
    %c0_84 = arith.constant 0 : index
    %c0_85 = arith.constant 0 : index
    %88 = vector.load %arg7[%c0_83, %c0_84, %c0_85] : memref<10x320x256xf32, #tpu.memory_space<vmem>>, vector<1x320x256xf32>
    %89 = vector.shape_cast %88 : vector<1x320x256xf32> to vector<320x256xf32>
    %cst_86 = arith.constant dense<0.000000e+00> : vector<1x256xf32>
    %90 = tpu.matmul %87, %89, %cst_86 {dimension_numbers = #tpu.dot_dimension_numbers<[1], [0], [0], [1], [0, 0, 1, 1], [], []>} : vector<1x320xf32>, vector<320x256xf32>, vector<1x256xf32> -> vector<1x256xf32>
    %91 = vector.extract_strided_slice %86 {offsets = [1, 0], sizes = [1, 320], strides = [1, 1]} : vector<10x320xf32> to vector<1x320xf32>
    %c1_87 = arith.constant 1 : index
    %c0_88 = arith.constant 0 : index
    %c0_89 = arith.constant 0 : index
    %92 = vector.load %arg7[%c1_87, %c0_88, %c0_89] : memref<10x320x256xf32, #tpu.memory_space<vmem>>, vector<1x320x256xf32>
    %93 = vector.shape_cast %92 : vector<1x320x256xf32> to vector<320x256xf32>
    %cst_90 = arith.constant dense<0.000000e+00> : vector<1x256xf32>
    %94 = tpu.matmul %91, %93, %cst_90 {dimension_numbers = #tpu.dot_dimension_numbers<[1], [0], [0], [1], [0, 0, 1, 1], [], []>} : vector<1x320xf32>, vector<320x256xf32>, vector<1x256xf32> -> vector<1x256xf32>
    %95 = arith.addf %90, %94 : vector<1x256xf32>
    %96 = vector.extract_strided_slice %86 {offsets = [2, 0], sizes = [1, 320], strides = [1, 1]} : vector<10x320xf32> to vector<1x320xf32>
    %c2_91 = arith.constant 2 : index
    %c0_92 = arith.constant 0 : index
    %c0_93 = arith.constant 0 : index
    %97 = vector.load %arg7[%c2_91, %c0_92, %c0_93] : memref<10x320x256xf32, #tpu.memory_space<vmem>>, vector<1x320x256xf32>
    %98 = vector.shape_cast %97 : vector<1x320x256xf32> to vector<320x256xf32>
    %cst_94 = arith.constant dense<0.000000e+00> : vector<1x256xf32>
    %99 = tpu.matmul %96, %98, %cst_94 {dimension_numbers = #tpu.dot_dimension_numbers<[1], [0], [0], [1], [0, 0, 1, 1], [], []>} : vector<1x320xf32>, vector<320x256xf32>, vector<1x256xf32> -> vector<1x256xf32>
    %100 = arith.addf %95, %99 : vector<1x256xf32>
    %101 = vector.extract_strided_slice %86 {offsets = [3, 0], sizes = [1, 320], strides = [1, 1]} : vector<10x320xf32> to vector<1x320xf32>
    %c3 = arith.constant 3 : index
    %c0_95 = arith.constant 0 : index
    %c0_96 = arith.constant 0 : index
    %102 = vector.load %arg7[%c3, %c0_95, %c0_96] : memref<10x320x256xf32, #tpu.memory_space<vmem>>, vector<1x320x256xf32>
    %103 = vector.shape_cast %102 : vector<1x320x256xf32> to vector<320x256xf32>
    %cst_97 = arith.constant dense<0.000000e+00> : vector<1x256xf32>
    %104 = tpu.matmul %101, %103, %cst_97 {dimension_numbers = #tpu.dot_dimension_numbers<[1], [0], [0], [1], [0, 0, 1, 1], [], []>} : vector<1x320xf32>, vector<320x256xf32>, vector<1x256xf32> -> vector<1x256xf32>
    %105 = arith.addf %100, %104 : vector<1x256xf32>
    %106 = vector.extract_strided_slice %86 {offsets = [4, 0], sizes = [1, 320], strides = [1, 1]} : vector<10x320xf32> to vector<1x320xf32>
    %c4 = arith.constant 4 : index
    %c0_98 = arith.constant 0 : index
    %c0_99 = arith.constant 0 : index
    %107 = vector.load %arg7[%c4, %c0_98, %c0_99] : memref<10x320x256xf32, #tpu.memory_space<vmem>>, vector<1x320x256xf32>
    %108 = vector.shape_cast %107 : vector<1x320x256xf32> to vector<320x256xf32>
    %cst_100 = arith.constant dense<0.000000e+00> : vector<1x256xf32>
    %109 = tpu.matmul %106, %108, %cst_100 {dimension_numbers = #tpu.dot_dimension_numbers<[1], [0], [0], [1], [0, 0, 1, 1], [], []>} : vector<1x320xf32>, vector<320x256xf32>, vector<1x256xf32> -> vector<1x256xf32>
    %110 = arith.addf %105, %109 : vector<1x256xf32>
    %111 = vector.extract_strided_slice %86 {offsets = [5, 0], sizes = [1, 320], strides = [1, 1]} : vector<10x320xf32> to vector<1x320xf32>
    %c5 = arith.constant 5 : index
    %c0_101 = arith.constant 0 : index
    %c0_102 = arith.constant 0 : index
    %112 = vector.load %arg7[%c5, %c0_101, %c0_102] : memref<10x320x256xf32, #tpu.memory_space<vmem>>, vector<1x320x256xf32>
    %113 = vector.shape_cast %112 : vector<1x320x256xf32> to vector<320x256xf32>
    %cst_103 = arith.constant dense<0.000000e+00> : vector<1x256xf32>
    %114 = tpu.matmul %111, %113, %cst_103 {dimension_numbers = #tpu.dot_dimension_numbers<[1], [0], [0], [1], [0, 0, 1, 1], [], []>} : vector<1x320xf32>, vector<320x256xf32>, vector<1x256xf32> -> vector<1x256xf32>
    %115 = arith.addf %110, %114 : vector<1x256xf32>
    %116 = vector.extract_strided_slice %86 {offsets = [6, 0], sizes = [1, 320], strides = [1, 1]} : vector<10x320xf32> to vector<1x320xf32>
    %c6 = arith.constant 6 : index
    %c0_104 = arith.constant 0 : index
    %c0_105 = arith.constant 0 : index
    %117 = vector.load %arg7[%c6, %c0_104, %c0_105] : memref<10x320x256xf32, #tpu.memory_space<vmem>>, vector<1x320x256xf32>
    %118 = vector.shape_cast %117 : vector<1x320x256xf32> to vector<320x256xf32>
    %cst_106 = arith.constant dense<0.000000e+00> : vector<1x256xf32>
    %119 = tpu.matmul %116, %118, %cst_106 {dimension_numbers = #tpu.dot_dimension_numbers<[1], [0], [0], [1], [0, 0, 1, 1], [], []>} : vector<1x320xf32>, vector<320x256xf32>, vector<1x256xf32> -> vector<1x256xf32>
    %120 = arith.addf %115, %119 : vector<1x256xf32>
    %121 = vector.extract_strided_slice %86 {offsets = [7, 0], sizes = [1, 320], strides = [1, 1]} : vector<10x320xf32> to vector<1x320xf32>
    %c7 = arith.constant 7 : index
    %c0_107 = arith.constant 0 : index
    %c0_108 = arith.constant 0 : index
    %122 = vector.load %arg7[%c7, %c0_107, %c0_108] : memref<10x320x256xf32, #tpu.memory_space<vmem>>, vector<1x320x256xf32>
    %123 = vector.shape_cast %122 : vector<1x320x256xf32> to vector<320x256xf32>
    %cst_109 = arith.constant dense<0.000000e+00> : vector<1x256xf32>
    %124 = tpu.matmul %121, %123, %cst_109 {dimension_numbers = #tpu.dot_dimension_numbers<[1], [0], [0], [1], [0, 0, 1, 1], [], []>} : vector<1x320xf32>, vector<320x256xf32>, vector<1x256xf32> -> vector<1x256xf32>
    %125 = arith.addf %120, %124 : vector<1x256xf32>
    %126 = vector.extract_strided_slice %86 {offsets = [8, 0], sizes = [1, 320], strides = [1, 1]} : vector<10x320xf32> to vector<1x320xf32>
    %c8 = arith.constant 8 : index
    %c0_110 = arith.constant 0 : index
    %c0_111 = arith.constant 0 : index
    %127 = vector.load %arg7[%c8, %c0_110, %c0_111] : memref<10x320x256xf32, #tpu.memory_space<vmem>>, vector<1x320x256xf32>
    %128 = vector.shape_cast %127 : vector<1x320x256xf32> to vector<320x256xf32>
    %cst_112 = arith.constant dense<0.000000e+00> : vector<1x256xf32>
    %129 = tpu.matmul %126, %128, %cst_112 {dimension_numbers = #tpu.dot_dimension_numbers<[1], [0], [0], [1], [0, 0, 1, 1], [], []>} : vector<1x320xf32>, vector<320x256xf32>, vector<1x256xf32> -> vector<1x256xf32>
    %130 = arith.addf %125, %129 : vector<1x256xf32>
    %131 = vector.extract_strided_slice %86 {offsets = [9, 0], sizes = [1, 320], strides = [1, 1]} : vector<10x320xf32> to vector<1x320xf32>
    %c9 = arith.constant 9 : index
    %c0_113 = arith.constant 0 : index
    %c0_114 = arith.constant 0 : index
    %132 = vector.load %arg7[%c9, %c0_113, %c0_114] : memref<10x320x256xf32, #tpu.memory_space<vmem>>, vector<1x320x256xf32>
    %133 = vector.shape_cast %132 : vector<1x320x256xf32> to vector<320x256xf32>
    %cst_115 = arith.constant dense<0.000000e+00> : vector<1x256xf32>
    %134 = tpu.matmul %131, %133, %cst_115 {dimension_numbers = #tpu.dot_dimension_numbers<[1], [0], [0], [1], [0, 0, 1, 1], [], []>} : vector<1x320xf32>, vector<320x256xf32>, vector<1x256xf32> -> vector<1x256xf32>
    %135 = arith.addf %130, %134 : vector<1x256xf32>
    %c0_116 = arith.constant 0 : index
    %c0_117 = arith.constant 0 : index
    %136 = vector.load %arg8[%c0_116, %c0_117] : memref<1x256xf32, #tpu.memory_space<vmem>>, vector<1x256xf32>
    %137 = arith.addf %135, %136 : vector<1x256xf32>
    %cst_118 = arith.constant 0.000000e+00 : f32
    %138 = vector.broadcast %cst_118 : f32 to vector<1x256xf32>
    %139 = arith.maximumf %137, %138 : vector<1x256xf32>
    %c1_119 = arith.constant 1 : index
    %c0_120 = arith.constant 0 : index
    %c0_121 = arith.constant 0 : index
    %c0_122 = arith.constant 0 : index
    %140 = vector.load %arg0[%c1_119, %c0_120, %c0_121, %c0_122] : memref<2x3x16x16xf32, #tpu.memory_space<vmem>>, vector<1x1x16x16xf32>
    %141 = vector.shape_cast %140 : vector<1x1x16x16xf32> to vector<16x16xf32>
    %142 = vector.extract_strided_slice %141 {offsets = [0, 0], sizes = [14, 16], strides = [1, 1]} : vector<16x16xf32> to vector<14x16xf32>
    %c0_123 = arith.constant 0 : index
    %c0_124 = arith.constant 0 : index
    %c0_125 = arith.constant 0 : index
    %c0_126 = arith.constant 0 : index
    %143 = vector.load %arg1[%c0_123, %c0_124, %c0_125, %c0_126] : memref<3x3x16x112xf32, #tpu.memory_space<vmem>>, vector<1x1x16x112xf32>
    %144 = vector.shape_cast %143 : vector<1x1x16x112xf32> to vector<16x112xf32>
    %cst_127 = arith.constant dense<0.000000e+00> : vector<14x112xf32>
    %145 = tpu.matmul %142, %144, %cst_127 {dimension_numbers = #tpu.dot_dimension_numbers<[1], [0], [0], [1], [0, 0, 1, 1], [], []>} : vector<14x16xf32>, vector<16x112xf32>, vector<14x112xf32> -> vector<14x112xf32>
    %146 = vector.extract_strided_slice %141 {offsets = [1, 0], sizes = [14, 16], strides = [1, 1]} : vector<16x16xf32> to vector<14x16xf32>
    %c1_128 = arith.constant 1 : index
    %c0_129 = arith.constant 0 : index
    %c0_130 = arith.constant 0 : index
    %c0_131 = arith.constant 0 : index
    %147 = vector.load %arg1[%c1_128, %c0_129, %c0_130, %c0_131] : memref<3x3x16x112xf32, #tpu.memory_space<vmem>>, vector<1x1x16x112xf32>
    %148 = vector.shape_cast %147 : vector<1x1x16x112xf32> to vector<16x112xf32>
    %cst_132 = arith.constant dense<0.000000e+00> : vector<14x112xf32>
    %149 = tpu.matmul %146, %148, %cst_132 {dimension_numbers = #tpu.dot_dimension_numbers<[1], [0], [0], [1], [0, 0, 1, 1], [], []>} : vector<14x16xf32>, vector<16x112xf32>, vector<14x112xf32> -> vector<14x112xf32>
    %150 = arith.addf %145, %149 : vector<14x112xf32>
    %151 = vector.extract_strided_slice %141 {offsets = [2, 0], sizes = [14, 16], strides = [1, 1]} : vector<16x16xf32> to vector<14x16xf32>
    %c2_133 = arith.constant 2 : index
    %c0_134 = arith.constant 0 : index
    %c0_135 = arith.constant 0 : index
    %c0_136 = arith.constant 0 : index
    %152 = vector.load %arg1[%c2_133, %c0_134, %c0_135, %c0_136] : memref<3x3x16x112xf32, #tpu.memory_space<vmem>>, vector<1x1x16x112xf32>
    %153 = vector.shape_cast %152 : vector<1x1x16x112xf32> to vector<16x112xf32>
    %cst_137 = arith.constant dense<0.000000e+00> : vector<14x112xf32>
    %154 = tpu.matmul %151, %153, %cst_137 {dimension_numbers = #tpu.dot_dimension_numbers<[1], [0], [0], [1], [0, 0, 1, 1], [], []>} : vector<14x16xf32>, vector<16x112xf32>, vector<14x112xf32> -> vector<14x112xf32>
    %155 = arith.addf %150, %154 : vector<14x112xf32>
    %c1_138 = arith.constant 1 : index
    %c1_139 = arith.constant 1 : index
    %c0_140 = arith.constant 0 : index
    %c0_141 = arith.constant 0 : index
    %156 = vector.load %arg0[%c1_138, %c1_139, %c0_140, %c0_141] : memref<2x3x16x16xf32, #tpu.memory_space<vmem>>, vector<1x1x16x16xf32>
    %157 = vector.shape_cast %156 : vector<1x1x16x16xf32> to vector<16x16xf32>
    %158 = vector.extract_strided_slice %157 {offsets = [0, 0], sizes = [14, 16], strides = [1, 1]} : vector<16x16xf32> to vector<14x16xf32>
    %c0_142 = arith.constant 0 : index
    %c1_143 = arith.constant 1 : index
    %c0_144 = arith.constant 0 : index
    %c0_145 = arith.constant 0 : index
    %159 = vector.load %arg1[%c0_142, %c1_143, %c0_144, %c0_145] : memref<3x3x16x112xf32, #tpu.memory_space<vmem>>, vector<1x1x16x112xf32>
    %160 = vector.shape_cast %159 : vector<1x1x16x112xf32> to vector<16x112xf32>
    %cst_146 = arith.constant dense<0.000000e+00> : vector<14x112xf32>
    %161 = tpu.matmul %158, %160, %cst_146 {dimension_numbers = #tpu.dot_dimension_numbers<[1], [0], [0], [1], [0, 0, 1, 1], [], []>} : vector<14x16xf32>, vector<16x112xf32>, vector<14x112xf32> -> vector<14x112xf32>
    %162 = arith.addf %155, %161 : vector<14x112xf32>
    %163 = vector.extract_strided_slice %157 {offsets = [1, 0], sizes = [14, 16], strides = [1, 1]} : vector<16x16xf32> to vector<14x16xf32>
    %c1_147 = arith.constant 1 : index
    %c1_148 = arith.constant 1 : index
    %c0_149 = arith.constant 0 : index
    %c0_150 = arith.constant 0 : index
    %164 = vector.load %arg1[%c1_147, %c1_148, %c0_149, %c0_150] : memref<3x3x16x112xf32, #tpu.memory_space<vmem>>, vector<1x1x16x112xf32>
    %165 = vector.shape_cast %164 : vector<1x1x16x112xf32> to vector<16x112xf32>
    %cst_151 = arith.constant dense<0.000000e+00> : vector<14x112xf32>
    %166 = tpu.matmul %163, %165, %cst_151 {dimension_numbers = #tpu.dot_dimension_numbers<[1], [0], [0], [1], [0, 0, 1, 1], [], []>} : vector<14x16xf32>, vector<16x112xf32>, vector<14x112xf32> -> vector<14x112xf32>
    %167 = arith.addf %162, %166 : vector<14x112xf32>
    %168 = vector.extract_strided_slice %157 {offsets = [2, 0], sizes = [14, 16], strides = [1, 1]} : vector<16x16xf32> to vector<14x16xf32>
    %c2_152 = arith.constant 2 : index
    %c1_153 = arith.constant 1 : index
    %c0_154 = arith.constant 0 : index
    %c0_155 = arith.constant 0 : index
    %169 = vector.load %arg1[%c2_152, %c1_153, %c0_154, %c0_155] : memref<3x3x16x112xf32, #tpu.memory_space<vmem>>, vector<1x1x16x112xf32>
    %170 = vector.shape_cast %169 : vector<1x1x16x112xf32> to vector<16x112xf32>
    %cst_156 = arith.constant dense<0.000000e+00> : vector<14x112xf32>
    %171 = tpu.matmul %168, %170, %cst_156 {dimension_numbers = #tpu.dot_dimension_numbers<[1], [0], [0], [1], [0, 0, 1, 1], [], []>} : vector<14x16xf32>, vector<16x112xf32>, vector<14x112xf32> -> vector<14x112xf32>
    %172 = arith.addf %167, %171 : vector<14x112xf32>
    %c1_157 = arith.constant 1 : index
    %c2_158 = arith.constant 2 : index
    %c0_159 = arith.constant 0 : index
    %c0_160 = arith.constant 0 : index
    %173 = vector.load %arg0[%c1_157, %c2_158, %c0_159, %c0_160] : memref<2x3x16x16xf32, #tpu.memory_space<vmem>>, vector<1x1x16x16xf32>
    %174 = vector.shape_cast %173 : vector<1x1x16x16xf32> to vector<16x16xf32>
    %175 = vector.extract_strided_slice %174 {offsets = [0, 0], sizes = [14, 16], strides = [1, 1]} : vector<16x16xf32> to vector<14x16xf32>
    %c0_161 = arith.constant 0 : index
    %c2_162 = arith.constant 2 : index
    %c0_163 = arith.constant 0 : index
    %c0_164 = arith.constant 0 : index
    %176 = vector.load %arg1[%c0_161, %c2_162, %c0_163, %c0_164] : memref<3x3x16x112xf32, #tpu.memory_space<vmem>>, vector<1x1x16x112xf32>
    %177 = vector.shape_cast %176 : vector<1x1x16x112xf32> to vector<16x112xf32>
    %cst_165 = arith.constant dense<0.000000e+00> : vector<14x112xf32>
    %178 = tpu.matmul %175, %177, %cst_165 {dimension_numbers = #tpu.dot_dimension_numbers<[1], [0], [0], [1], [0, 0, 1, 1], [], []>} : vector<14x16xf32>, vector<16x112xf32>, vector<14x112xf32> -> vector<14x112xf32>
    %179 = arith.addf %172, %178 : vector<14x112xf32>
    %180 = vector.extract_strided_slice %174 {offsets = [1, 0], sizes = [14, 16], strides = [1, 1]} : vector<16x16xf32> to vector<14x16xf32>
    %c1_166 = arith.constant 1 : index
    %c2_167 = arith.constant 2 : index
    %c0_168 = arith.constant 0 : index
    %c0_169 = arith.constant 0 : index
    %181 = vector.load %arg1[%c1_166, %c2_167, %c0_168, %c0_169] : memref<3x3x16x112xf32, #tpu.memory_space<vmem>>, vector<1x1x16x112xf32>
    %182 = vector.shape_cast %181 : vector<1x1x16x112xf32> to vector<16x112xf32>
    %cst_170 = arith.constant dense<0.000000e+00> : vector<14x112xf32>
    %183 = tpu.matmul %180, %182, %cst_170 {dimension_numbers = #tpu.dot_dimension_numbers<[1], [0], [0], [1], [0, 0, 1, 1], [], []>} : vector<14x16xf32>, vector<16x112xf32>, vector<14x112xf32> -> vector<14x112xf32>
    %184 = arith.addf %179, %183 : vector<14x112xf32>
    %185 = vector.extract_strided_slice %174 {offsets = [2, 0], sizes = [14, 16], strides = [1, 1]} : vector<16x16xf32> to vector<14x16xf32>
    %c2_171 = arith.constant 2 : index
    %c2_172 = arith.constant 2 : index
    %c0_173 = arith.constant 0 : index
    %c0_174 = arith.constant 0 : index
    %186 = vector.load %arg1[%c2_171, %c2_172, %c0_173, %c0_174] : memref<3x3x16x112xf32, #tpu.memory_space<vmem>>, vector<1x1x16x112xf32>
    %187 = vector.shape_cast %186 : vector<1x1x16x112xf32> to vector<16x112xf32>
    %cst_175 = arith.constant dense<0.000000e+00> : vector<14x112xf32>
    %188 = tpu.matmul %185, %187, %cst_175 {dimension_numbers = #tpu.dot_dimension_numbers<[1], [0], [0], [1], [0, 0, 1, 1], [], []>} : vector<14x16xf32>, vector<16x112xf32>, vector<14x112xf32> -> vector<14x112xf32>
    %189 = arith.addf %184, %188 : vector<14x112xf32>
    %c0_176 = arith.constant 0 : index
    %c0_177 = arith.constant 0 : index
    %190 = vector.load %arg2[%c0_176, %c0_177] : memref<1x112xf32, #tpu.memory_space<vmem>>, vector<1x112xf32>
    %191 = vector.broadcast %190 : vector<1x112xf32> to vector<14x112xf32>
    %192 = arith.addf %189, %191 : vector<14x112xf32>
    %193 = vector.extract_strided_slice %192 {offsets = [0, 0], sizes = [12, 112], strides = [1, 1]} : vector<14x112xf32> to vector<12x112xf32>
    %c0_178 = arith.constant 0 : index
    %c0_179 = arith.constant 0 : index
    %c0_180 = arith.constant 0 : index
    %194 = vector.load %arg3[%c0_178, %c0_179, %c0_180] : memref<3x112x192xf32, #tpu.memory_space<vmem>>, vector<1x112x192xf32>
    %195 = vector.shape_cast %194 : vector<1x112x192xf32> to vector<112x192xf32>
    %cst_181 = arith.constant dense<0.000000e+00> : vector<12x192xf32>
    %196 = tpu.matmul %193, %195, %cst_181 {dimension_numbers = #tpu.dot_dimension_numbers<[1], [0], [0], [1], [0, 0, 1, 1], [], []>} : vector<12x112xf32>, vector<112x192xf32>, vector<12x192xf32> -> vector<12x192xf32>
    %197 = vector.extract_strided_slice %192 {offsets = [1, 0], sizes = [12, 112], strides = [1, 1]} : vector<14x112xf32> to vector<12x112xf32>
    %c1_182 = arith.constant 1 : index
    %c0_183 = arith.constant 0 : index
    %c0_184 = arith.constant 0 : index
    %198 = vector.load %arg3[%c1_182, %c0_183, %c0_184] : memref<3x112x192xf32, #tpu.memory_space<vmem>>, vector<1x112x192xf32>
    %199 = vector.shape_cast %198 : vector<1x112x192xf32> to vector<112x192xf32>
    %cst_185 = arith.constant dense<0.000000e+00> : vector<12x192xf32>
    %200 = tpu.matmul %197, %199, %cst_185 {dimension_numbers = #tpu.dot_dimension_numbers<[1], [0], [0], [1], [0, 0, 1, 1], [], []>} : vector<12x112xf32>, vector<112x192xf32>, vector<12x192xf32> -> vector<12x192xf32>
    %201 = arith.addf %196, %200 : vector<12x192xf32>
    %202 = vector.extract_strided_slice %192 {offsets = [2, 0], sizes = [12, 112], strides = [1, 1]} : vector<14x112xf32> to vector<12x112xf32>
    %c2_186 = arith.constant 2 : index
    %c0_187 = arith.constant 0 : index
    %c0_188 = arith.constant 0 : index
    %203 = vector.load %arg3[%c2_186, %c0_187, %c0_188] : memref<3x112x192xf32, #tpu.memory_space<vmem>>, vector<1x112x192xf32>
    %204 = vector.shape_cast %203 : vector<1x112x192xf32> to vector<112x192xf32>
    %cst_189 = arith.constant dense<0.000000e+00> : vector<12x192xf32>
    %205 = tpu.matmul %202, %204, %cst_189 {dimension_numbers = #tpu.dot_dimension_numbers<[1], [0], [0], [1], [0, 0, 1, 1], [], []>} : vector<12x112xf32>, vector<112x192xf32>, vector<12x192xf32> -> vector<12x192xf32>
    %206 = arith.addf %201, %205 : vector<12x192xf32>
    %c0_190 = arith.constant 0 : index
    %c0_191 = arith.constant 0 : index
    %207 = vector.load %arg4[%c0_190, %c0_191] : memref<1x192xf32, #tpu.memory_space<vmem>>, vector<1x192xf32>
    %208 = vector.broadcast %207 : vector<1x192xf32> to vector<12x192xf32>
    %209 = arith.addf %206, %208 : vector<12x192xf32>
    %210 = vector.extract_strided_slice %209 {offsets = [0, 0], sizes = [10, 192], strides = [1, 1]} : vector<12x192xf32> to vector<10x192xf32>
    %c0_192 = arith.constant 0 : index
    %c0_193 = arith.constant 0 : index
    %c0_194 = arith.constant 0 : index
    %211 = vector.load %arg5[%c0_192, %c0_193, %c0_194] : memref<3x192x320xf32, #tpu.memory_space<vmem>>, vector<1x192x320xf32>
    %212 = vector.shape_cast %211 : vector<1x192x320xf32> to vector<192x320xf32>
    %cst_195 = arith.constant dense<0.000000e+00> : vector<10x320xf32>
    %213 = tpu.matmul %210, %212, %cst_195 {dimension_numbers = #tpu.dot_dimension_numbers<[1], [0], [0], [1], [0, 0, 1, 1], [], []>} : vector<10x192xf32>, vector<192x320xf32>, vector<10x320xf32> -> vector<10x320xf32>
    %214 = vector.extract_strided_slice %209 {offsets = [1, 0], sizes = [10, 192], strides = [1, 1]} : vector<12x192xf32> to vector<10x192xf32>
    %c1_196 = arith.constant 1 : index
    %c0_197 = arith.constant 0 : index
    %c0_198 = arith.constant 0 : index
    %215 = vector.load %arg5[%c1_196, %c0_197, %c0_198] : memref<3x192x320xf32, #tpu.memory_space<vmem>>, vector<1x192x320xf32>
    %216 = vector.shape_cast %215 : vector<1x192x320xf32> to vector<192x320xf32>
    %cst_199 = arith.constant dense<0.000000e+00> : vector<10x320xf32>
    %217 = tpu.matmul %214, %216, %cst_199 {dimension_numbers = #tpu.dot_dimension_numbers<[1], [0], [0], [1], [0, 0, 1, 1], [], []>} : vector<10x192xf32>, vector<192x320xf32>, vector<10x320xf32> -> vector<10x320xf32>
    %218 = arith.addf %213, %217 : vector<10x320xf32>
    %219 = vector.extract_strided_slice %209 {offsets = [2, 0], sizes = [10, 192], strides = [1, 1]} : vector<12x192xf32> to vector<10x192xf32>
    %c2_200 = arith.constant 2 : index
    %c0_201 = arith.constant 0 : index
    %c0_202 = arith.constant 0 : index
    %220 = vector.load %arg5[%c2_200, %c0_201, %c0_202] : memref<3x192x320xf32, #tpu.memory_space<vmem>>, vector<1x192x320xf32>
    %221 = vector.shape_cast %220 : vector<1x192x320xf32> to vector<192x320xf32>
    %cst_203 = arith.constant dense<0.000000e+00> : vector<10x320xf32>
    %222 = tpu.matmul %219, %221, %cst_203 {dimension_numbers = #tpu.dot_dimension_numbers<[1], [0], [0], [1], [0, 0, 1, 1], [], []>} : vector<10x192xf32>, vector<192x320xf32>, vector<10x320xf32> -> vector<10x320xf32>
    %223 = arith.addf %218, %222 : vector<10x320xf32>
    %c0_204 = arith.constant 0 : index
    %c0_205 = arith.constant 0 : index
    %224 = vector.load %arg6[%c0_204, %c0_205] : memref<1x320xf32, #tpu.memory_space<vmem>>, vector<1x320xf32>
    %225 = vector.broadcast %224 : vector<1x320xf32> to vector<10x320xf32>
    %226 = arith.addf %223, %225 : vector<10x320xf32>
    %227 = vector.extract_strided_slice %226 {offsets = [0, 0], sizes = [1, 320], strides = [1, 1]} : vector<10x320xf32> to vector<1x320xf32>
    %c0_206 = arith.constant 0 : index
    %c0_207 = arith.constant 0 : index
    %c0_208 = arith.constant 0 : index
    %228 = vector.load %arg7[%c0_206, %c0_207, %c0_208] : memref<10x320x256xf32, #tpu.memory_space<vmem>>, vector<1x320x256xf32>
    %229 = vector.shape_cast %228 : vector<1x320x256xf32> to vector<320x256xf32>
    %cst_209 = arith.constant dense<0.000000e+00> : vector<1x256xf32>
    %230 = tpu.matmul %227, %229, %cst_209 {dimension_numbers = #tpu.dot_dimension_numbers<[1], [0], [0], [1], [0, 0, 1, 1], [], []>} : vector<1x320xf32>, vector<320x256xf32>, vector<1x256xf32> -> vector<1x256xf32>
    %231 = vector.extract_strided_slice %226 {offsets = [1, 0], sizes = [1, 320], strides = [1, 1]} : vector<10x320xf32> to vector<1x320xf32>
    %c1_210 = arith.constant 1 : index
    %c0_211 = arith.constant 0 : index
    %c0_212 = arith.constant 0 : index
    %232 = vector.load %arg7[%c1_210, %c0_211, %c0_212] : memref<10x320x256xf32, #tpu.memory_space<vmem>>, vector<1x320x256xf32>
    %233 = vector.shape_cast %232 : vector<1x320x256xf32> to vector<320x256xf32>
    %cst_213 = arith.constant dense<0.000000e+00> : vector<1x256xf32>
    %234 = tpu.matmul %231, %233, %cst_213 {dimension_numbers = #tpu.dot_dimension_numbers<[1], [0], [0], [1], [0, 0, 1, 1], [], []>} : vector<1x320xf32>, vector<320x256xf32>, vector<1x256xf32> -> vector<1x256xf32>
    %235 = arith.addf %230, %234 : vector<1x256xf32>
    %236 = vector.extract_strided_slice %226 {offsets = [2, 0], sizes = [1, 320], strides = [1, 1]} : vector<10x320xf32> to vector<1x320xf32>
    %c2_214 = arith.constant 2 : index
    %c0_215 = arith.constant 0 : index
    %c0_216 = arith.constant 0 : index
    %237 = vector.load %arg7[%c2_214, %c0_215, %c0_216] : memref<10x320x256xf32, #tpu.memory_space<vmem>>, vector<1x320x256xf32>
    %238 = vector.shape_cast %237 : vector<1x320x256xf32> to vector<320x256xf32>
    %cst_217 = arith.constant dense<0.000000e+00> : vector<1x256xf32>
    %239 = tpu.matmul %236, %238, %cst_217 {dimension_numbers = #tpu.dot_dimension_numbers<[1], [0], [0], [1], [0, 0, 1, 1], [], []>} : vector<1x320xf32>, vector<320x256xf32>, vector<1x256xf32> -> vector<1x256xf32>
    %240 = arith.addf %235, %239 : vector<1x256xf32>
    %241 = vector.extract_strided_slice %226 {offsets = [3, 0], sizes = [1, 320], strides = [1, 1]} : vector<10x320xf32> to vector<1x320xf32>
    %c3_218 = arith.constant 3 : index
    %c0_219 = arith.constant 0 : index
    %c0_220 = arith.constant 0 : index
    %242 = vector.load %arg7[%c3_218, %c0_219, %c0_220] : memref<10x320x256xf32, #tpu.memory_space<vmem>>, vector<1x320x256xf32>
    %243 = vector.shape_cast %242 : vector<1x320x256xf32> to vector<320x256xf32>
    %cst_221 = arith.constant dense<0.000000e+00> : vector<1x256xf32>
    %244 = tpu.matmul %241, %243, %cst_221 {dimension_numbers = #tpu.dot_dimension_numbers<[1], [0], [0], [1], [0, 0, 1, 1], [], []>} : vector<1x320xf32>, vector<320x256xf32>, vector<1x256xf32> -> vector<1x256xf32>
    %245 = arith.addf %240, %244 : vector<1x256xf32>
    %246 = vector.extract_strided_slice %226 {offsets = [4, 0], sizes = [1, 320], strides = [1, 1]} : vector<10x320xf32> to vector<1x320xf32>
    %c4_222 = arith.constant 4 : index
    %c0_223 = arith.constant 0 : index
    %c0_224 = arith.constant 0 : index
    %247 = vector.load %arg7[%c4_222, %c0_223, %c0_224] : memref<10x320x256xf32, #tpu.memory_space<vmem>>, vector<1x320x256xf32>
    %248 = vector.shape_cast %247 : vector<1x320x256xf32> to vector<320x256xf32>
    %cst_225 = arith.constant dense<0.000000e+00> : vector<1x256xf32>
    %249 = tpu.matmul %246, %248, %cst_225 {dimension_numbers = #tpu.dot_dimension_numbers<[1], [0], [0], [1], [0, 0, 1, 1], [], []>} : vector<1x320xf32>, vector<320x256xf32>, vector<1x256xf32> -> vector<1x256xf32>
    %250 = arith.addf %245, %249 : vector<1x256xf32>
    %251 = vector.extract_strided_slice %226 {offsets = [5, 0], sizes = [1, 320], strides = [1, 1]} : vector<10x320xf32> to vector<1x320xf32>
    %c5_226 = arith.constant 5 : index
    %c0_227 = arith.constant 0 : index
    %c0_228 = arith.constant 0 : index
    %252 = vector.load %arg7[%c5_226, %c0_227, %c0_228] : memref<10x320x256xf32, #tpu.memory_space<vmem>>, vector<1x320x256xf32>
    %253 = vector.shape_cast %252 : vector<1x320x256xf32> to vector<320x256xf32>
    %cst_229 = arith.constant dense<0.000000e+00> : vector<1x256xf32>
    %254 = tpu.matmul %251, %253, %cst_229 {dimension_numbers = #tpu.dot_dimension_numbers<[1], [0], [0], [1], [0, 0, 1, 1], [], []>} : vector<1x320xf32>, vector<320x256xf32>, vector<1x256xf32> -> vector<1x256xf32>
    %255 = arith.addf %250, %254 : vector<1x256xf32>
    %256 = vector.extract_strided_slice %226 {offsets = [6, 0], sizes = [1, 320], strides = [1, 1]} : vector<10x320xf32> to vector<1x320xf32>
    %c6_230 = arith.constant 6 : index
    %c0_231 = arith.constant 0 : index
    %c0_232 = arith.constant 0 : index
    %257 = vector.load %arg7[%c6_230, %c0_231, %c0_232] : memref<10x320x256xf32, #tpu.memory_space<vmem>>, vector<1x320x256xf32>
    %258 = vector.shape_cast %257 : vector<1x320x256xf32> to vector<320x256xf32>
    %cst_233 = arith.constant dense<0.000000e+00> : vector<1x256xf32>
    %259 = tpu.matmul %256, %258, %cst_233 {dimension_numbers = #tpu.dot_dimension_numbers<[1], [0], [0], [1], [0, 0, 1, 1], [], []>} : vector<1x320xf32>, vector<320x256xf32>, vector<1x256xf32> -> vector<1x256xf32>
    %260 = arith.addf %255, %259 : vector<1x256xf32>
    %261 = vector.extract_strided_slice %226 {offsets = [7, 0], sizes = [1, 320], strides = [1, 1]} : vector<10x320xf32> to vector<1x320xf32>
    %c7_234 = arith.constant 7 : index
    %c0_235 = arith.constant 0 : index
    %c0_236 = arith.constant 0 : index
    %262 = vector.load %arg7[%c7_234, %c0_235, %c0_236] : memref<10x320x256xf32, #tpu.memory_space<vmem>>, vector<1x320x256xf32>
    %263 = vector.shape_cast %262 : vector<1x320x256xf32> to vector<320x256xf32>
    %cst_237 = arith.constant dense<0.000000e+00> : vector<1x256xf32>
    %264 = tpu.matmul %261, %263, %cst_237 {dimension_numbers = #tpu.dot_dimension_numbers<[1], [0], [0], [1], [0, 0, 1, 1], [], []>} : vector<1x320xf32>, vector<320x256xf32>, vector<1x256xf32> -> vector<1x256xf32>
    %265 = arith.addf %260, %264 : vector<1x256xf32>
    %266 = vector.extract_strided_slice %226 {offsets = [8, 0], sizes = [1, 320], strides = [1, 1]} : vector<10x320xf32> to vector<1x320xf32>
    %c8_238 = arith.constant 8 : index
    %c0_239 = arith.constant 0 : index
    %c0_240 = arith.constant 0 : index
    %267 = vector.load %arg7[%c8_238, %c0_239, %c0_240] : memref<10x320x256xf32, #tpu.memory_space<vmem>>, vector<1x320x256xf32>
    %268 = vector.shape_cast %267 : vector<1x320x256xf32> to vector<320x256xf32>
    %cst_241 = arith.constant dense<0.000000e+00> : vector<1x256xf32>
    %269 = tpu.matmul %266, %268, %cst_241 {dimension_numbers = #tpu.dot_dimension_numbers<[1], [0], [0], [1], [0, 0, 1, 1], [], []>} : vector<1x320xf32>, vector<320x256xf32>, vector<1x256xf32> -> vector<1x256xf32>
    %270 = arith.addf %265, %269 : vector<1x256xf32>
    %271 = vector.extract_strided_slice %226 {offsets = [9, 0], sizes = [1, 320], strides = [1, 1]} : vector<10x320xf32> to vector<1x320xf32>
    %c9_242 = arith.constant 9 : index
    %c0_243 = arith.constant 0 : index
    %c0_244 = arith.constant 0 : index
    %272 = vector.load %arg7[%c9_242, %c0_243, %c0_244] : memref<10x320x256xf32, #tpu.memory_space<vmem>>, vector<1x320x256xf32>
    %273 = vector.shape_cast %272 : vector<1x320x256xf32> to vector<320x256xf32>
    %cst_245 = arith.constant dense<0.000000e+00> : vector<1x256xf32>
    %274 = tpu.matmul %271, %273, %cst_245 {dimension_numbers = #tpu.dot_dimension_numbers<[1], [0], [0], [1], [0, 0, 1, 1], [], []>} : vector<1x320xf32>, vector<320x256xf32>, vector<1x256xf32> -> vector<1x256xf32>
    %275 = arith.addf %270, %274 : vector<1x256xf32>
    %c0_246 = arith.constant 0 : index
    %c0_247 = arith.constant 0 : index
    %276 = vector.load %arg8[%c0_246, %c0_247] : memref<1x256xf32, #tpu.memory_space<vmem>>, vector<1x256xf32>
    %277 = arith.addf %275, %276 : vector<1x256xf32>
    %cst_248 = arith.constant 0.000000e+00 : f32
    %278 = vector.broadcast %cst_248 : f32 to vector<1x256xf32>
    %279 = arith.maximumf %277, %278 : vector<1x256xf32>
    %280 = tpu.concatenate %139, %279 in 0 : vector<1x256xf32>, vector<1x256xf32> -> vector<2x256xf32>
    %c0_249 = arith.constant 0 : index
    %c0_250 = arith.constant 0 : index
    %281 = vector.load %arg9[%c0_249, %c0_250] : memref<256x5xf32, #tpu.memory_space<vmem>>, vector<256x5xf32>
    %cst_251 = arith.constant dense<0.000000e+00> : vector<2x5xf32>
    %282 = tpu.matmul %280, %281, %cst_251 {dimension_numbers = #tpu.dot_dimension_numbers<[1], [0], [0], [1], [0, 0, 1, 1], [], []>} : vector<2x256xf32>, vector<256x5xf32>, vector<2x5xf32> -> vector<2x5xf32>
    %c0_252 = arith.constant 0 : index
    %c0_253 = arith.constant 0 : index
    %283 = vector.load %arg10[%c0_252, %c0_253] : memref<1x5xf32, #tpu.memory_space<vmem>>, vector<1x5xf32>
    %284 = vector.broadcast %283 : vector<1x5xf32> to vector<2x5xf32>
    %285 = arith.addf %282, %284 : vector<2x5xf32>
    %c0_254 = arith.constant 0 : index
    %c0_255 = arith.constant 0 : index
    %286 = vector.load %arg11[%c0_254, %c0_255] : memref<2x5xf32, #tpu.memory_space<vmem>>, vector<2x5xf32>
    tpu.vector_store %arg11[%c0_254, %c0_255], %285 {strides = array<i32>} : memref<2x5xf32, #tpu.memory_space<vmem>>, vector<2x5xf32>,
    return
  }
}

</mosaic_0001>

<bundles_post_ra>
// kernel: cnn_forward.1
= control target key start
LH: loop header
LB: loop body
LE: loop exit
PB: predicated region body
PF: predicated region fallthrough
CT: control target
= control target key end

     0   :  { %16 = vsyncpa [#allocation3], 0  ;;  %s10564_s0 = inlined_call_operand.hbm [shape: f32[2,3,16,16], index: 0, kind: input, shape index: {}]   ;;  %s10565_s1 = inlined_call_operand.hbm [shape: f32[3,3,16,112], index: 1, kind: input, shape index: {}]   ;;  %s10566_s2 = inlined_call_operand.hbm [shape: f32[1,112], index: 2, kind: input, shape index: {}]   ;;  %s10567_s3 = inlined_call_operand.vmem [shape: f32[3,112,192], index: 3, kind: input, shape index: {}]   ;;  %s10568_s4 = inlined_call_operand.hbm [shape: f32[1,192], index: 4, kind: input, shape index: {}]   ;;  %s10569_s5 = inlined_call_operand.hbm [shape: f32[3,192,320], index: 5, kind: input, shape index: {}]   ;;  %s10570_s6 = inlined_call_operand.hbm [shape: f32[1,320], index: 6, kind: input, shape index: {}]   ;;  %s10571_s7 = inlined_call_operand.hbm [shape: f32[10,320,256], index: 7, kind: input, shape index: {}]   ;;  %s10572_s8 = inlined_call_operand.hbm [shape: f32[1,256], index: 8, kind: input, shape index: {}]   ;;  %s10573_s9 = inlined_call_operand.vmem [shape: f32[256,5], index: 9, kind: input, shape index: {}]   ;;  %s10574_s10 = inlined_call_operand.hbm [shape: f32[1,5], index: 10, kind: input, shape index: {}]   ;;  %s10575_s11 = inlined_call_operand.hbm [shape: f32[2,5], index: 11, kind: output, shape index: {}]  }
   0x1   :  { %17 = vsyncpa [#allocation6], 0 }
   0x2   :  { %18 = vsyncpa [#allocation9], 0 }
   0x3   :  { %19 = vsyncpa [#allocation12], 0 }
   0x4   :  { %20 = vsyncpa [#allocation15], 0 }
   0x5   :  { %21 = vsyncpa [#allocation4], 0  ;;  %s9262_s17 = smov [#allocation5]   ;;  %s9263_s19 = smov [#allocation8]  }
   0x6   :  { %s39_s18 = sshll.u32 %s9262_s17, 4  ;;  %s64_s20 = sshll.u32 %s9263_s19, 4  ;;  %s40_s18 = int_to_ptr.vmem [resolvable:$true] %s39_s18  ;;  %s65_s20 = int_to_ptr.vmem [resolvable:$true] %s64_s20 }
   0x7   :  { %s9058_s21 = scalar_lea.vmem %s40_s18, 2304  ;;  %p9063_p1 = scmp.lt.s32.totalorder %s40_s18, %s40_s18 }
   0x8   :  { %p9059_p0 = scmp.ne.s32.totalorder %s40_s18, %s9058_s21  ;;  %p9064_p2 = scmp.lt.s32.totalorder %s9058_s21, %s9058_s21 }
   0xa   :  { %p9065_p3 = por %p9064_p2, %p9063_p1 }
   0xc   :  { %p9066_p4 = pnand %p9065_p3, %p9059_p0 }
   0xe   :  { %9069 = shalt.err (!%p9066_p4)
}
   0xf   :  { %s9264_s22 = smov 128   ;;  %s9265_s23 = smov 8  }
  0x10   :  { %45 = dma.hbm_to_vmem [thread:$0]  %s10565_s1, 2304, %s40_s18, [#allocation6], %s9264_s22, %s9264_s22, %s9265_s23  }
  0x11   :  { %s9078_s26 = scalar_lea.vmem %s65_s20, 32  ;;  %p9083_p6 = scmp.lt.s32.totalorder %s65_s20, %s65_s20 }
  0x12   :  { %p9079_p5 = scmp.ne.s32.totalorder %s65_s20, %s9078_s26  ;;  %p9084_p7 = scmp.lt.s32.totalorder %s9078_s26, %s9078_s26 }
  0x14   :  { %p9085_p8 = por %p9084_p7, %p9083_p6 }
  0x16   :  { %p9086_p9 = pnand %p9085_p8, %p9079_p5 }
  0x18   :  { %9089 = shalt.err (!%p9086_p9)
}
  0x19   :  { %67 = dma.hbm_to_vmem [thread:$0]  %s10568_s4, 32, %s65_s20, [#allocation9]  }
  0x1a   :  { %s9266_s29 = smov [#allocation11]   ;;  %s9267_s12 = smov [#allocation14]  }
  0x1b   :  { %s86_s30 = sshll.u32 %s9266_s29, 4  ;;  %s108_s13 = sshll.u32 %s9267_s12, 4  ;;  %s87_s30 = int_to_ptr.vmem [resolvable:$true] %s86_s30  ;;  %s109_s13 = int_to_ptr.vmem [resolvable:$true] %s108_s13 }
  0x1c   :  { %s9098_s14 = scalar_lea.vmem %s87_s30, 48  ;;  %s9102_s1 = scalar_lea.vmem %s87_s30, 64 }
  0x1d   :  { %p9099_p10 = scmp.ne.s32.totalorder %s87_s30, %s9098_s14  ;;  %p9103_p11 = scmp.lt.s32.totalorder %s87_s30, %s87_s30 }
  0x1e   :  { %p9104_p12 = scmp.lt.s32.totalorder %s9102_s1, %s9098_s14 }
  0x20   :  { %p9105_p13 = por %p9104_p12, %p9103_p11 }
  0x22   :  { %p9106_p0 = pnand %p9105_p13, %p9099_p10 }
  0x24   :  { %9109 = shalt.err (!%p9106_p0)
}
  0x25   :  { %89 = dma.hbm_to_vmem [thread:$0]  %s10570_s6, 48, %s87_s30, [#allocation12]  }
  0x26   :  { %s9118_s17 = scalar_lea.vmem %s109_s13, 32  ;;  %p9123_p2 = scmp.lt.s32.totalorder %s109_s13, %s109_s13 }
  0x27   :  { %p9119_p1 = scmp.ne.s32.totalorder %s109_s13, %s9118_s17  ;;  %p9124_p3 = scmp.lt.s32.totalorder %s9118_s17, %s9118_s17 }
  0x29   :  { %p9125_p4 = por %p9124_p3, %p9123_p2 }
  0x2b   :  { %p9126_p5 = pnand %p9125_p4, %p9119_p1 }
  0x2d   :  { %9129 = shalt.err (!%p9126_p5)
}
  0x2e   :  { %111 = dma.hbm_to_vmem [thread:$0]  %s10572_s8, 32, %s109_s13, [#allocation15]  }
  0x2f   :  { %s9268_s19 = smov [#allocation2]   ;;  %s9269_s21 = smov [#allocation7]  }
  0x30   :  { %s27_s20 = sshll.u32 %s9268_s19, 4  ;;  %s52_s24 = sshll.u32 %s9269_s21, 4  ;;  %s28_s20 = int_to_ptr.vmem [resolvable:$true] %s27_s20  ;;  %s53_s24 = int_to_ptr.vmem [resolvable:$true] %s52_s24 }
  0x31   :  { %s9138_s25 = scalar_lea.vmem %s28_s20, 1536  ;;  %p9143_p7 = scmp.lt.s32.totalorder %s28_s20, %s28_s20 }
  0x32   :  { %p9139_p6 = scmp.ne.s32.totalorder %s28_s20, %s9138_s25  ;;  %p9144_p8 = scmp.lt.s32.totalorder %s9138_s25, %s9138_s25 }
  0x34   :  { %p9145_p9 = por %p9144_p8, %p9143_p7 }
  0x36   :  { %p9146_p10 = pnand %p9145_p9, %p9139_p6 }
  0x38   :  { %9149 = shalt.err (!%p9146_p10)
}
  0x39   :  { %33 = dma.hbm_to_vmem [thread:$0]  %s10564_s0, 1536, %s28_s20, [#allocation3], %s9264_s22, %s9264_s22, %s9265_s23  }
  0x3a   :  { %s9158_s8 = scalar_lea.vmem %s53_s24, 16  ;;  %s9162_s27 = scalar_lea.vmem %s53_s24, 32 }
  0x3b   :  { %p9159_p11 = scmp.ne.s32.totalorder %s53_s24, %s9158_s8  ;;  %p9163_p12 = scmp.lt.s32.totalorder %s53_s24, %s53_s24 }
  0x3c   :  { %p9164_p13 = scmp.lt.s32.totalorder %s9162_s27, %s9158_s8 }
  0x3e   :  { %p9165_p0 = por %p9164_p13, %p9163_p12 }
  0x40   :  { %p9166_p1 = pnand %p9165_p0, %p9159_p11 }
  0x42   :  { %9169 = shalt.err (!%p9166_p1)
}
  0x43   :  { %55 = dma.hbm_to_vmem [thread:$0]  %s10566_s2, 16, %s53_s24, [#allocation6]  }
  0x44   :  { %s9270_s30 = smov [#allocation10]  }
  0x45   :  { %s73_s12 = sshll.u32 %s9270_s30, 4  ;;  %s74_s12 = int_to_ptr.vmem [resolvable:$true] %s73_s12 }
  0x46   :  { %s9178_s13 = scalar_lea.vmem %s74_s12, 27648  ;;  %p9183_p3 = scmp.lt.s32.totalorder %s74_s12, %s74_s12 }
  0x47   :  { %p9179_p2 = scmp.ne.s32.totalorder %s74_s12, %s9178_s13  ;;  %p9184_p4 = scmp.lt.s32.totalorder %s9178_s13, %s9178_s13 }
  0x49   :  { %p9185_p5 = por %p9184_p4, %p9183_p3 }
  0x4b   :  { %p9186_p6 = pnand %p9185_p5, %p9179_p2 }
  0x4d   :  { %9189 = shalt.err (!%p9186_p6)
}
  0x4e   :  { %s9271_s0 = smov 384   ;;  %s9272_s22 = smov 24  }
  0x4f   :  { %79 = dma.hbm_to_vmem [thread:$0]  %s10569_s5, 27648, %s74_s12, [#allocation9], %s9271_s0, %s9271_s0, %s9272_s22  }
  0x50   :  { %s9273_s1 = smov [#allocation13]  }
  0x51   :  { %s95_s15 = sshll.u32 %s9273_s1, 4  ;;  %s96_s15 = int_to_ptr.vmem [resolvable:$true] %s95_s15 }
  0x52   :  { %s9198_s2 = scalar_lea.vmem %s96_s15, 102400  ;;  %p9203_p8 = scmp.lt.s32.totalorder %s96_s15, %s96_s15 }
  0x53   :  { %p9199_p7 = scmp.ne.s32.totalorder %s96_s15, %s9198_s2  ;;  %p9204_p9 = scmp.lt.s32.totalorder %s9198_s2, %s9198_s2 }
  0x55   :  { %p9205_p10 = por %p9204_p9, %p9203_p8 }
  0x57   :  { %p9206_p11 = pnand %p9205_p10, %p9199_p7 }
  0x59   :  { %9209 = shalt.err (!%p9206_p11)
}
  0x5a   :  { %s9274_s16 = smov 256   ;;  %s9275_s17 = smov 16  }
  0x5b   :  { %101 = dma.hbm_to_vmem [thread:$0]  %s10571_s7, 102400, %s96_s15, [#allocation12], %s9274_s16, %s9274_s16, %s9275_s17  }
  0x5c   :  { %s9276_s19 = smov [#allocation16]  }
  0x5d   :  { %s120_s20 = sshll.u32 %s9276_s19, 4  ;;  %s121_s20 = int_to_ptr.vmem [resolvable:$true] %s120_s20 }
  0x5e   :  { %s9218_s5 = scalar_lea.vmem %s121_s20, 16  ;;  %s9222_s21 = scalar_lea.vmem %s121_s20, 32 }
  0x5f   :  { %p9219_p12 = scmp.ne.s32.totalorder %s121_s20, %s9218_s5  ;;  %p9223_p13 = scmp.lt.s32.totalorder %s121_s20, %s121_s20 }
  0x60   :  { %p9224_p0 = scmp.lt.s32.totalorder %s9222_s21, %s9218_s5 }
  0x62   :  { %p9225_p1 = por %p9224_p0, %p9223_p13 }
  0x64   :  { %p9226_p2 = pnand %p9225_p1, %p9219_p12 }
  0x66   :  { %9229 = shalt.err (!%p9226_p2)
}
  0x67   :  { %123 = dma.hbm_to_vmem [thread:$0]  %s10574_s10, 16, %s121_s20, [#allocation15]  }
  0x68   :  { %9250 = dma.done.wait [#allocation3], 1536  }
  0x69   :  { %9251 = vsyncadd [#allocation3], 4294965760 }
  0x6a   :  { %9252 = dma.done.wait [#allocation6], 2320  }
  0x6b   :  { %9253 = vsyncadd [#allocation6], 4294964976 }
  0x6c   :  { %9254 = dma.done.wait [#allocation9], 27680  }
  0x6d   :  { %9255 = vsyncadd [#allocation9], 4294939616 }
  0x6e   :  { %9256 = dma.done.wait [#allocation12], 102448  }
  0x6f   :  { %9257 = vsyncadd [#allocation12], 4294864848 }
  0x70   :  { %9258 = dma.done.wait [#allocation15], 48  }
  0x71   :  { %9259 = vsyncadd [#allocation15], 4294967248  ;;  %v157_v0 = vld [vmem:[#allocation5 + $0x38] sm:$0xff]  ;;  %v156_v1 = vld [vmem:[#allocation5 + $0x30] sm:$0xff]  ;;  %vm160_vm0 = vcmask 1046528   ;;  %vm164_vm1 = vcmask 130048  }
  0x72   :  { %v151_v2 = vld [vmem:[#allocation2] sm:$0xff]  ;;  %7788 = vmatprep.subr.mxu1 %v157_v0  ;;  %v152_v3 = vld [vmem:[#allocation2 + $0x8] sm:$0xff]  ;;  %vm326_vm2 = vcmask 1045504   ;;  %v412_v14 = vld [vmem:[#allocation2 + $0x10] sm:$0xff]  ;;  %vm1008_vm3 = vcmask 916480   ;;  %vm1461_vm4 = vcmask 523264  }
  0x73   :  { %v161_v4 = vrot.slane %v151_v2, 1  ;;  %v325_v5 = vld [vmem:[#allocation5 + $0x68] sm:$0xff]  ;;  %v327_v6 = vrot.slane %v151_v2, 2  ;;  %7789 = vmatpush3.msra.mxu1 %v157_v0  ;;  %v162_v7 = vrot.slane %v152_v3, 1  ;;  %v324_v9 = vld [vmem:[#allocation5 + $0x60] sm:$0xff]  ;;  %v328_v10 = vrot.slane %v152_v3, 2 }
  0x74   :  { %v154_v8 = vld [vmem:[#allocation5 + $0x8] sm:$0xff]  ;;  %7802 = vmatprep.subr.mxu0 %v325_v5  ;;  %7790 = vmatprep.subr.mxu1 %v156_v1  ;;  %v153_v12 = vld [vmem:[#allocation5] sm:$0xff]  ;;  %v413_v15 = vld [vmem:[#allocation2 + $0x18] sm:$0xff]  ;;  %v503_v18 = vrot.slane %v412_v14, 1  ;;  %v590_v23 = vrot.slane %v412_v14, 2  ;;  %vm7398_vm5 = vcmask 1040384  }
  0x75   :  { %7803 = vmatpush3.msra.mxu0 %v325_v5  ;;  %7791 = vmatpush3.msra.mxu1 %v156_v1  ;;  %v163_v11 = vsel %vm160_vm0, %v161_v4, %v162_v7  ;;  %v329_v13 = vsel %vm326_vm2, %v327_v6, %v328_v10  ;;  %v416_v16 = vld [vmem:[#allocation5 + $0x18] sm:$0xff]  ;;  %v502_v17 = vld [vmem:[#allocation5 + $0x48] sm:$0xff]  ;;  %v504_v19 = vrot.slane %v413_v15, 1  ;;  %v415_v20 = vld [vmem:[#allocation5 + $0x10] sm:$0xff]  ;;  %v591_v25 = vrot.slane %v413_v15, 2 }
  0x76   :  { %7804 = vmatprep.subr.mxu0 %v324_v9  ;;  %7792 = vmatprep.mubr.msk.f32.mxu1 %vm164_vm1, %v163_v11  ;;  %v501_v21 = vld [vmem:[#allocation5 + $0x40] sm:$0xff]  ;;  %v589_v24 = vld [vmem:[#allocation5 + $0x78] sm:$0xff]  ;;  %v679_v26 = vld [vmem:[#allocation5 + $0x28] sm:$0xff]  ;;  %vm7510_vm6 = vcmask 33792  }
  0x77   :  { %7795 = vmatprep.subr.mxu1 %v154_v8  ;;  %7793 = vmatmul.mubr.msk.f32.vlgmr.msra.gmra.mxu1 %vm164_vm1, %v162_v7  ;;  %v505_v22 = vsel %vm160_vm0, %v503_v18, %v504_v19  ;;  %v588_v27 = vld [vmem:[#allocation5 + $0x70] sm:$0xff]  ;;  %v678_v28 = vld [vmem:[#allocation5 + $0x20] sm:$0xff]  ;;  %v676_v30 = vld [vmem:[#allocation2 + $0x28] sm:$0xff]  ;;  %v592_v31 = vsel %vm326_vm2, %v590_v23, %v591_v25 }
  0x78   :  { %7805 = vmatpush3.msra.mxu0 %v324_v9  ;;  %7796 = vmatpush3.msra.mxu1 %v154_v8  ;;  %v675_v29 = vld [vmem:[#allocation2 + $0x20] sm:$0xff]  ;;  %v765_v33 = vld [vmem:[#allocation5 + $0x58] sm:$0xff]  ;;  %v767_v34 = vrot.slane %v676_v30, 1  ;;  %v852_v36 = vld [vmem:[#allocation5 + $0x88] sm:$0xff]  ;;  %v854_v37 = vrot.slane %v676_v30, 2 }
  0x79   :  { %7799 = vmatprep.mubr.msk.f32.mxu1 %vm164_vm1, %v151_v2  ;;  %7797 = vmatprep.subr.mxu1 %v153_v12  ;;  %v766_v32 = vrot.slane %v675_v29, 1  ;;  %v853_v35 = vrot.slane %v675_v29, 2  ;;  %v764_v38 = vld [vmem:[#allocation5 + $0x50] sm:$0xff]  ;;  %v851_v39 = vld [vmem:[#allocation5 + $0x80] sm:$0xff]  ;;  %v973_v42 = vld [vmem:[%s10567_s3 + $0xd8] sm:$0xff] }
  0x7a   :  { %7806 = vmatprep.mubr.msk.f32.mxu0 %vm164_vm1, %v329_v13  ;;  %7798 = vmatpush3.msra.mxu1 %v153_v12  ;;  %v972_v43 = vld [vmem:[%s10567_s3 + $0xd0] sm:$0xff]  ;;  %v7577_v44 = vld [vmem:[%s10567_s3 + $0x1b8] sm:$0xff]  ;;  %v971_v45 = vld [vmem:[%s10567_s3 + $0xc8] sm:$0xff] }
  0x7b   :  { %7807 = vmatmul.mubr.msk.f32.vlgmr.msra.gmra.mxu0 %vm164_vm1, %v328_v10  ;;  %7800 = vmatmul.mubr.msk.f32.vlgmr.msra.gmra.mxu1 %vm164_vm1, %v152_v3  ;;  %v768_v40 = vsel %vm160_vm0, %v766_v32, %v767_v34  ;;  %v855_v41 = vsel %vm326_vm2, %v853_v35, %v854_v37  ;;  %v7576_v46 = vld [vmem:[%s10567_s3 + $0x1b0] sm:$0xff]  ;;  %v970_v47 = vld [vmem:[%s10567_s3 + $0xc0] sm:$0xff]  ;;  %v7575_v48 = vld [vmem:[%s10567_s3 + $0x1a8] sm:$0xff]  ;;  %v9277_v35 = vmov 0.0  }
  0x7c   :  { %7809 = vmatprep.subr.mxu1 %v416_v16  ;;  %7816 = vmatprep.subr.mxu0 %v502_v17  ;;  %v969_v49 = vld [vmem:[%s10567_s3 + $0xb8] sm:$0xff]  ;;  %v7574_v50 = vld [vmem:[%s10567_s3 + $0x1a0] sm:$0xff]  ;;  %v968_v51 = vld [vmem:[%s10567_s3 + $0xb0] sm:$0xff] }
  0x7d   :  { %7810 = vmatpush3.msra.mxu1 %v416_v16  ;;  %7817 = vmatpush3.msra.mxu0 %v502_v17  ;;  %v7573_v52 = vld [vmem:[%s10567_s3 + $0x198] sm:$0xff]  ;;  %v967_v53 = vld [vmem:[%s10567_s3 + $0xa8] sm:$0xff]  ;;  %v7572_v54 = vld [vmem:[%s10567_s3 + $0x190] sm:$0xff] }
  0x7e   :  { %7811 = vmatprep.subr.mxu1 %v415_v20  ;;  %7818 = vmatprep.subr.mxu0 %v501_v21  ;;  %v966_v55 = vld [vmem:[%s10567_s3 + $0xa0] sm:$0xff]  ;;  %v7571_v56 = vld [vmem:[%s10567_s3 + $0x188] sm:$0xff]  ;;  %v965_v57 = vld [vmem:[%s10567_s3 + $0x98] sm:$0xff] }
  0x7f   :  { %7812 = vmatpush3.msra.mxu1 %v415_v20  ;;  %7813 = vmatprep.mubr.msk.f32.mxu1 %vm164_vm1, %v412_v14  ;;  %v7570_v58 = vld [vmem:[%s10567_s3 + $0x180] sm:$0xff]  ;;  %v964_v59 = vld [vmem:[%s10567_s3 + $0x90] sm:$0xff]  ;;  %v7569_v60 = vld [vmem:[%s10567_s3 + $0x178] sm:$0xff] }
  0x80   :  { %7819 = vmatpush3.msra.mxu0 %v501_v21  ;;  %7820 = vmatprep.mubr.msk.f32.mxu0 %vm164_vm1, %v505_v22  ;;  %v963_v61 = vld [vmem:[%s10567_s3 + $0x88] sm:$0xff]  ;;  %v7568_v62 = vld [vmem:[%s10567_s3 + $0x170] sm:$0xff]  ;;  %v962_v63 = vld [vmem:[%s10567_s3 + $0x80] sm:$0xff] }
  0x81   :  { %7814 = vmatmul.mubr.msk.f32.vlgmr.msra.gmra.mxu1 %vm164_vm1, %v413_v15  ;;  %7821 = vmatmul.mubr.msk.f32.vlgmr.msra.gmra.mxu0 %vm164_vm1, %v504_v19  ;;  %v7567_v0 = vld [vmem:[%s10567_s3 + $0x168] sm:$0xff]  ;;  %v961_v1 = vld [vmem:[%s10567_s3 + $0x78] sm:$0xff]  ;;  %v7566_v2 = vld [vmem:[%s10567_s3 + $0x160] sm:$0xff] }
  0x82   :  { %7823 = vmatprep.subr.mxu1 %v589_v24  ;;  %7830 = vmatprep.subr.mxu0 %v679_v26  ;;  %v960_v3 = vld [vmem:[%s10567_s3 + $0x70] sm:$0xff]  ;;  %v7565_v4 = vld [vmem:[%s10567_s3 + $0x158] sm:$0xff]  ;;  %v959_v5 = vld [vmem:[%s10567_s3 + $0x68] sm:$0xff] }
  0x83   :  { %7824 = vmatpush3.msra.mxu1 %v589_v24  ;;  %7831 = vmatpush3.msra.mxu0 %v679_v26  ;;  %v7564_v6 = vld [vmem:[%s10567_s3 + $0x150] sm:$0xff]  ;;  %v958_v7 = vld [vmem:[%s10567_s3 + $0x60] sm:$0xff]  ;;  %v7563_v8 = vld [vmem:[%s10567_s3 + $0x148] sm:$0xff] }
  0x84   :  { %7825 = vmatprep.subr.mxu1 %v588_v27  ;;  %7832 = vmatprep.subr.mxu0 %v678_v28  ;;  %v957_v9 = vld [vmem:[%s10567_s3 + $0x58] sm:$0xff]  ;;  %v7562_v10 = vld [vmem:[%s10567_s3 + $0x140] sm:$0xff]  ;;  %v956_v11 = vld [vmem:[%s10567_s3 + $0x50] sm:$0xff] }
  0x85   :  { %7826 = vmatpush3.msra.mxu1 %v588_v27  ;;  %7827 = vmatprep.mubr.msk.f32.mxu1 %vm164_vm1, %v592_v31  ;;  %v7561_v12 = vld [vmem:[%s10567_s3 + $0x138] sm:$0xff]  ;;  %v955_v13 = vld [vmem:[%s10567_s3 + $0x48] sm:$0xff]  ;;  %v7560_v14 = vld [vmem:[%s10567_s3 + $0x130] sm:$0xff] }
  0x86   :  { %7833 = vmatpush3.msra.mxu0 %v678_v28  ;;  %7834 = vmatprep.mubr.msk.f32.mxu0 %vm164_vm1, %v675_v29  ;;  %v954_v15 = vld [vmem:[%s10567_s3 + $0x40] sm:$0xff]  ;;  %v7559_v16 = vld [vmem:[%s10567_s3 + $0x128] sm:$0xff]  ;;  %v953_v17 = vld [vmem:[%s10567_s3 + $0x38] sm:$0xff] }
  0x87   :  { %7828 = vmatmul.mubr.msk.f32.vlgmr.msra.gmra.mxu1 %vm164_vm1, %v591_v25  ;;  %7835 = vmatmul.mubr.msk.f32.vlgmr.msra.gmra.mxu0 %vm164_vm1, %v676_v30  ;;  %v7558_v18 = vld [vmem:[%s10567_s3 + $0x120] sm:$0xff]  ;;  %v952_v19 = vld [vmem:[%s10567_s3 + $0x30] sm:$0xff]  ;;  %v7557_v20 = vld [vmem:[%s10567_s3 + $0x118] sm:$0xff] }
  0x88   :  { %7837 = vmatprep.subr.mxu1 %v765_v33  ;;  %7844 = vmatprep.subr.mxu0 %v852_v36  ;;  %v951_v21 = vld [vmem:[%s10567_s3 + $0x28] sm:$0xff]  ;;  %v7556_v22 = vld [vmem:[%s10567_s3 + $0x110] sm:$0xff]  ;;  %v950_v23 = vld [vmem:[%s10567_s3 + $0x20] sm:$0xff] }
  0x89   :  { %7838 = vmatpush3.msra.mxu1 %v765_v33  ;;  %7845 = vmatpush3.msra.mxu0 %v852_v36  ;;  %v7555_v24 = vld [vmem:[%s10567_s3 + $0x108] sm:$0xff]  ;;  %v949_v25 = vld [vmem:[%s10567_s3 + $0x18] sm:$0xff]  ;;  %v7554_v26 = vld [vmem:[%s10567_s3 + $0x100] sm:$0xff] }
  0x8a   :  { %7839 = vmatprep.subr.mxu1 %v764_v38  ;;  %7846 = vmatprep.subr.mxu0 %v851_v39  ;;  %v948_v27 = vld [vmem:[%s10567_s3 + $0x10] sm:$0xff]  ;;  %v7553_v28 = vld [vmem:[%s10567_s3 + $0xf8] sm:$0xff]  ;;  %v947_v29 = vld [vmem:[%s10567_s3 + $0x8] sm:$0xff] }
  0x8b   :  { %7840 = vmatpush3.msra.mxu1 %v764_v38  ;;  %7841 = vmatprep.mubr.msk.f32.mxu1 %vm164_vm1, %v768_v40  ;;  %v7552_v30 = vld [vmem:[%s10567_s3 + $0xf0] sm:$0xff]  ;;  %v946_v31 = vld [vmem:[%s10567_s3] sm:$0xff]  ;;  %v7551_v32 = vld [vmem:[%s10567_s3 + $0xe8] sm:$0xff] }
  0x8c   :  { %7847 = vmatpush3.msra.mxu0 %v851_v39  ;;  %7848 = vmatprep.mubr.msk.f32.mxu0 %vm164_vm1, %v855_v41  ;;  %v7550_v33 = vld [vmem:[%s10567_s3 + $0xe0] sm:$0xff] }
  0x8d   :  { %7842 = vmatmul.mubr.msk.f32.vlgmr.msra.gmra.mxu1 %vm164_vm1, %v767_v34  ;;  %7849 = vmatmul.mubr.msk.f32.vlgmr.msra.gmra.mxu0 %vm164_vm1, %v854_v37  ;;  %v7609_v34 = vld [vmem:[%s10567_s3 + $0x298] sm:$0xff]  ;;  %v1423_v36 = vld [vmem:[#allocation10 + $0x3b0] sm:$0xff] }
  0x8e   :  { %1098 = vmatprep.subr.mxu0 %v973_v42  ;;  %1017 = vmatprep.subr.mxu1 %v7577_v44 }
  0x8f   :  { %1099 = vmatpush1.msra.mxu0 %v972_v43  ;;  %1018 = vmatpush1.msra.mxu1 %v7576_v46 }
  0x90   :  { %1100 = vmatprep.subr.mxu0 %v971_v45  ;;  %1019 = vmatprep.subr.mxu1 %v7575_v48 }
  0x91   :  { %1101 = vmatpush1.msra.mxu0 %v970_v47  ;;  %1020 = vmatpush1.msra.mxu1 %v7574_v50 }
  0x92   :  { %1102 = vmatprep.subr.mxu0 %v969_v49  ;;  %1021 = vmatprep.subr.mxu1 %v7573_v52 }
  0x93   :  { %1103 = vmatpush1.msra.mxu0 %v968_v51  ;;  %1022 = vmatpush1.msra.mxu1 %v7572_v54 }
  0x94   :  { %1104 = vmatprep.subr.mxu0 %v967_v53  ;;  %1023 = vmatprep.subr.mxu1 %v7571_v56 }
  0x95   :  { %1105 = vmatpush1.msra.mxu0 %v966_v55  ;;  %1024 = vmatpush1.msra.mxu1 %v7570_v58 }
  0x96   :  { %1106 = vmatprep.subr.mxu0 %v965_v57  ;;  %1025 = vmatprep.subr.mxu1 %v7569_v60 }
  0x97   :  { %1107 = vmatpush1.msra.mxu0 %v964_v59  ;;  %1026 = vmatpush1.msra.mxu1 %v7568_v62 }
  0x98   :  { %1108 = vmatprep.subr.mxu0 %v963_v61  ;;  %1027 = vmatprep.subr.mxu1 %v7567_v0 }
  0x99   :  { %1109 = vmatpush1.msra.mxu0 %v962_v63  ;;  %1028 = vmatpush1.msra.mxu1 %v7566_v2  ;;  %v7549_v2 = vld [vmem:[#allocation7] ss:$0 sm:$0xff] }
  0x9a   :  { %1110 = vmatprep.subr.mxu0 %v961_v1  ;;  %1029 = vmatprep.subr.mxu1 %v7565_v4 }
  0x9b   :  { %1111 = vmatpush1.msra.mxu0 %v960_v3  ;;  %1030 = vmatpush1.msra.mxu1 %v7564_v6 }
  0x9c   :  { %1112 = vmatprep.subr.mxu0 %v959_v5  ;;  %1031 = vmatprep.subr.mxu1 %v7563_v8 }
  0x9d   :  { %1113 = vmatpush1.msra.mxu0 %v958_v7  ;;  %1032 = vmatpush1.msra.mxu1 %v7562_v10  ;;  %v1422_v10 = vld [vmem:[#allocation10 + $0x3a8] sm:$0xff] }
  0x9e   :  { %1114 = vmatprep.subr.mxu0 %v957_v9  ;;  %1033 = vmatprep.subr.mxu1 %v7561_v12 }
  0x9f   :  { %1115 = vmatpush1.msra.mxu0 %v956_v11  ;;  %1034 = vmatpush1.msra.mxu1 %v7560_v14  ;;  %v1420_v11 = vld [vmem:[#allocation10 + $0x398] sm:$0xff]  ;;  %v1419_v14 = vld [vmem:[#allocation10 + $0x390] sm:$0xff] }
  0xa0   :  { %1116 = vmatprep.subr.mxu0 %v955_v13  ;;  %1035 = vmatprep.subr.mxu1 %v7559_v16 }
  0xa1   :  { %1117 = vmatpush1.msra.mxu0 %v954_v15  ;;  %1036 = vmatpush1.msra.mxu1 %v7558_v18  ;;  %v7608_v15 = vld [vmem:[%s10567_s3 + $0x290] sm:$0xff]  ;;  %v7606_v18 = vld [vmem:[%s10567_s3 + $0x280] sm:$0xff] }
  0xa2   :  { %1118 = vmatprep.subr.mxu0 %v953_v17  ;;  %1037 = vmatprep.subr.mxu1 %v7557_v20  ;;  %v7607_v17 = vld [vmem:[%s10567_s3 + $0x288] sm:$0xff]  ;;  %v7604_v20 = vld [vmem:[%s10567_s3 + $0x270] sm:$0xff] }
  0xa3   :  { %1119 = vmatpush1.msra.mxu0 %v952_v19  ;;  %1038 = vmatpush1.msra.mxu1 %v7556_v22  ;;  %v7605_v19 = vld [vmem:[%s10567_s3 + $0x278] sm:$0xff]  ;;  %v7602_v22 = vld [vmem:[%s10567_s3 + $0x260] sm:$0xff] }
  0xa4   :  { %1120 = vmatprep.subr.mxu0 %v951_v21  ;;  %1039 = vmatprep.subr.mxu1 %v7555_v24  ;;  %v7603_v21 = vld [vmem:[%s10567_s3 + $0x268] sm:$0xff]  ;;  %v7600_v24 = vld [vmem:[%s10567_s3 + $0x250] sm:$0xff] }
  0xa5   :  { %1121 = vmatpush1.msra.mxu0 %v950_v23  ;;  %1040 = vmatpush1.msra.mxu1 %v7554_v26  ;;  %v7601_v23 = vld [vmem:[%s10567_s3 + $0x258] sm:$0xff]  ;;  %v7598_v26 = vld [vmem:[%s10567_s3 + $0x240] sm:$0xff] }
  0xa6   :  { %1122 = vmatprep.subr.mxu0 %v949_v25  ;;  %1041 = vmatprep.subr.mxu1 %v7553_v28  ;;  %v7599_v25 = vld [vmem:[%s10567_s3 + $0x248] sm:$0xff]  ;;  %v7596_v28 = vld [vmem:[%s10567_s3 + $0x230] sm:$0xff] }
  0xa7   :  { %1123 = vmatpush1.msra.mxu0 %v948_v27  ;;  %1042 = vmatpush1.msra.mxu1 %v7552_v30  ;;  %v7597_v27 = vld [vmem:[%s10567_s3 + $0x238] sm:$0xff]  ;;  %v7594_v30 = vld [vmem:[%s10567_s3 + $0x220] sm:$0xff] }
  0xa8   :  { %1124 = vmatprep.subr.mxu0 %v947_v29  ;;  %1158 = vmatprep.mubr.f32.mxu0 %v9277_v35  ;;  %v7595_v29 = vld [vmem:[%s10567_s3 + $0x228] sm:$0xff] }
  0xa9   :  { %1125 = vmatpush1.msra.mxu0 %v946_v31  ;;  %1043 = vmatprep.subr.mxu1 %v7551_v32  ;;  %v7593_v31 = vld [vmem:[%s10567_s3 + $0x218] sm:$0xff]  ;;  %v7592_v32 = vld [vmem:[%s10567_s3 + $0x210] sm:$0xff] }
  0xaa   :  { %1044 = vmatpush1.msra.mxu1 %v7550_v33  ;;  %1077 = vmatprep.mubr.f32.mxu1 %v9277_v35  ;;  %v7591_v33 = vld [vmem:[%s10567_s3 + $0x208] sm:$0xff] }
  0xab   :  { %1211 = vmatprep.subr.mxu1 %v7609_v34  ;;  %1466 = vmatprep.subr.mxu0 %v1423_v36  ;;  %v7590_v34 = vld [vmem:[%s10567_s3 + $0x200] sm:$0xff]  ;;  %v7589_v36 = vld [vmem:[%s10567_s3 + $0x1f8] sm:$0xff] }
 0x137   :  { %v7794_v37 = vpop.f32.mrf.mxu1 }
 0x139   :  { %v235_v38 = vpop.f32.mrf.mxu1 }
 0x13b   :  { %v7808_v39 = vpop.f32.mrf.mxu0  ;;  %v7801_v40 = vpop.f32.mrf.mxu1 }
 0x13c   :  { %v320_v41 = vadd.f32 %v7801_v40, %v7794_v37  ;;  %v7588_v37 = vld [vmem:[%s10567_s3 + $0x1f0] sm:$0xff]  ;;  %v7585_v40 = vld [vmem:[%s10567_s3 + $0x1d8] sm:$0xff] }
 0x13d   :  { %v314_v42 = vpop.f32.mrf.mxu1  ;;  %v400_v43 = vpop.f32.mrf.mxu0 }
 0x13e   :  { %v410_v44 = vadd.f32 %v7808_v39, %v320_v41  ;;  %v315_v45 = vadd.f32 %v314_v42, %v235_v38  ;;  %v7587_v38 = vld [vmem:[%s10567_s3 + $0x1e8] sm:$0xff]  ;;  %v7586_v39 = vld [vmem:[%s10567_s3 + $0x1e0] sm:$0xff]  ;;  %v7584_v41 = vld [vmem:[%s10567_s3 + $0x1d0] sm:$0xff] }
 0x140   :  { %v409_v46 = vadd.f32 %v400_v43, %v315_v45  ;;  %v7583_v43 = vld [vmem:[%s10567_s3 + $0x1c8] sm:$0xff] }
 0x141   :  { %v7815_v47 = vpop.f32.mrf.mxu1  ;;  %v7822_v49 = vpop.f32.mrf.mxu0 }
 0x142   :  { %v499_v48 = vadd.f32 %v7815_v47, %v410_v44  ;;  %v7582_v44 = vld [vmem:[%s10567_s3 + $0x1c0] sm:$0xff] }
 0x143   :  { %v489_v50 = vpop.f32.mrf.mxu1  ;;  %v576_v53 = vpop.f32.mrf.mxu0 }
 0x144   :  { %v586_v51 = vadd.f32 %v7822_v49, %v499_v48  ;;  %v498_v52 = vadd.f32 %v489_v50, %v409_v46  ;;  %v1424_v46 = vld [vmem:[#allocation10 + $0x3b8] sm:$0xff]  ;;  %v1421_v48 = vld [vmem:[#allocation10 + $0x3a0] sm:$0xff] }
 0x145   :  { %v1417_v49 = vld [vmem:[#allocation10 + $0x380] sm:$0xff]  ;;  %v1416_v50 = vld [vmem:[#allocation10 + $0x378] sm:$0xff] }
 0x146   :  { %v585_v54 = vadd.f32 %v576_v53, %v498_v52  ;;  %v1414_v52 = vld [vmem:[#allocation10 + $0x368] sm:$0xff]  ;;  %v1413_v53 = vld [vmem:[#allocation10 + $0x360] sm:$0xff] }
 0x147   :  { %v7829_v55 = vpop.f32.mrf.mxu1  ;;  %v7836_v57 = vpop.f32.mrf.mxu0 }
 0x148   :  { %v673_v56 = vadd.f32 %v7829_v55, %v586_v51  ;;  %v1418_v51 = vld [vmem:[#allocation10 + $0x388] sm:$0xff]  ;;  %v1411_v55 = vld [vmem:[#allocation10 + $0x350] sm:$0xff] }
 0x149   :  { %v663_v58 = vpop.f32.mrf.mxu1  ;;  %v752_v61 = vpop.f32.mrf.mxu0 }
 0x14a   :  { %v762_v59 = vadd.f32 %v7836_v57, %v673_v56  ;;  %v672_v60 = vadd.f32 %v663_v58, %v585_v54  ;;  %v1415_v54 = vld [vmem:[#allocation10 + $0x370] sm:$0xff]  ;;  %v1410_v56 = vld [vmem:[#allocation10 + $0x348] sm:$0xff]  ;;  %v1412_v57 = vld [vmem:[#allocation10 + $0x358] sm:$0xff] }
 0x14b   :  { %v1408_v58 = vld [vmem:[#allocation10 + $0x338] sm:$0xff] }
 0x14c   :  { %v761_v62 = vadd.f32 %v752_v61, %v672_v60  ;;  %v1409_v60 = vld [vmem:[#allocation10 + $0x340] sm:$0xff] }
 0x14d   :  { %v7843_v63 = vpop.f32.mrf.mxu1  ;;  %v7850_v1 = vpop.f32.mrf.mxu0  ;;  %v1405_v61 = vld [vmem:[#allocation10 + $0x320] sm:$0xff] }
 0x14e   :  { %v849_v0 = vadd.f32 %v7843_v63, %v762_v59  ;;  %v1407_v59 = vld [vmem:[#allocation10 + $0x330] sm:$0xff]  ;;  %v1406_v63 = vld [vmem:[#allocation10 + $0x328] sm:$0xff] }
 0x14f   :  { %v839_v3 = vpop.f32.mrf.mxu1  ;;  %v926_v6 = vpop.f32.mrf.mxu0 }
 0x150   :  { %v936_v4 = vadd.f32 %v7850_v1, %v849_v0  ;;  %v848_v5 = vadd.f32 %v839_v3, %v761_v62  ;;  %v1404_v62 = vld [vmem:[#allocation10 + $0x318] sm:$0xff]  ;;  %v1402_v0 = vld [vmem:[#allocation10 + $0x308] sm:$0xff]  ;;  %v1401_v1 = vld [vmem:[#allocation10 + $0x300] sm:$0xff] }
 0x151   :  { %v1399_v3 = vld [vmem:[#allocation10 + $0x2f0] sm:$0xff] }
 0x152   :  { %v9569_v7 = vadd.f32 %v7549_v2, %v936_v4  ;;  %v935_v8 = vadd.f32 %v926_v6, %v848_v5  ;;  %v1398_v4 = vld [vmem:[#allocation10 + $0x2e8] sm:$0xff]  ;;  %v1400_v5 = vld [vmem:[#allocation10 + $0x2f8] sm:$0xff] }
 0x153   :  { %v1396_v6 = vld [vmem:[#allocation10 + $0x2d8] sm:$0xff] }
 0x154   :  { %v9571_v9 = vadd.f32 %v7549_v2, %v935_v8  ;;  %v1006_v12 = vrot.slane %v9569_v7, 1  ;;  %v1201_v45 = vrot.slane %v9569_v7, 2  ;;  %v1403_v2 = vld [vmem:[#allocation10 + $0x310] sm:$0xff]  ;;  %v1397_v8 = vld [vmem:[#allocation10 + $0x2e0] sm:$0xff] }
 0x156   :  { %v1005_v13 = vrot.slane %v9571_v9, 1  ;;  %7580 = vmatmul.mubr.msk.f32.vlgmr.msra.gmra.mxu0 %vm1008_vm3, %v9571_v9  ;;  %v1200_v42 = vrot.slane %v9571_v9, 2  ;;  %v1393_v9 = vld [vmem:[#allocation10 + $0x2c0] sm:$0xff] }
 0x157   :  { %1164 = vmatprep.mubr.f32.mxu0 %v9277_v35  ;;  %1467 = vmatpush1.msra.mxu0 %v1422_v10  ;;  %v1392_v10 = vld [vmem:[#allocation10 + $0x2b8] sm:$0xff] }
 0x158   :  { %v1007_v16 = vsel %vm160_vm0, %v1005_v13, %v1006_v12  ;;  %1468 = vmatprep.subr.mxu0 %v1420_v11  ;;  %v1202_v47 = vsel %vm326_vm2, %v1200_v42, %v1201_v45  ;;  %v1394_v11 = vld [vmem:[#allocation10 + $0x2c8] sm:$0xff]  ;;  %v1389_v13 = vld [vmem:[#allocation10 + $0x2a0] sm:$0xff]  ;;  %v1436_v42 = vld [vmem:[#allocation10 + $0x418] sm:$0xff] }
 0x159   :  { %7578 = vmatmul.mubr.msk.f32.vlgmr.msra.gmra.mxu1 %vm1008_vm3, %v1007_v16  ;;  %1469 = vmatpush1.msra.mxu0 %v1419_v14  ;;  %v1391_v14 = vld [vmem:[#allocation10 + $0x2b0] sm:$0xff]  ;;  %v1386_v16 = vld [vmem:[#allocation10 + $0x288] sm:$0xff] }
 0x15a   :  { %1212 = vmatpush1.msra.mxu1 %v7608_v15  ;;  %7581 = vmatmul.mubr.msk.f32.gmra.mxu0 %vm1008_vm3, %v9569_v7  ;;  %v1395_v7 = vld [vmem:[#allocation10 + $0x2d0] sm:$0xff] }
 0x15b   :  { %1213 = vmatprep.subr.mxu1 %v7607_v17  ;;  %1083 = vmatprep.mubr.f32.mxu1 %v9277_v35  ;;  %v1387_v15 = vld [vmem:[#allocation10 + $0x290] sm:$0xff]  ;;  %v1388_v17 = vld [vmem:[#allocation10 + $0x298] sm:$0xff] }
 0x15c   :  { %1214 = vmatpush1.msra.mxu1 %v7606_v18  ;;  %1470 = vmatprep.subr.mxu0 %v1417_v49  ;;  %v1384_v18 = vld [vmem:[#allocation10 + $0x278] sm:$0xff]  ;;  %v1426_v49 = vld [vmem:[#allocation10 + $0x3c8] sm:$0xff] }
 0x15d   :  { %1215 = vmatprep.subr.mxu1 %v7605_v19  ;;  %7579 = vmatmul.mubr.msk.f32.gmra.mxu1 %vm1008_vm3, %v1006_v12  ;;  %v1390_v12 = vld [vmem:[#allocation10 + $0x2a8] sm:$0xff]  ;;  %v1383_v19 = vld [vmem:[#allocation10 + $0x270] sm:$0xff] }
 0x15e   :  { %1216 = vmatpush1.msra.mxu1 %v7604_v20  ;;  %1271 = vmatprep.mubr.f32.mxu1 %v9277_v35  ;;  %v1385_v20 = vld [vmem:[#allocation10 + $0x280] sm:$0xff] }
 0x15f   :  { %1217 = vmatprep.subr.mxu1 %v7603_v21  ;;  %1471 = vmatpush1.msra.mxu0 %v1416_v50  ;;  %v1381_v21 = vld [vmem:[#allocation10 + $0x260] sm:$0xff] }
 0x160   :  { %1218 = vmatpush1.msra.mxu1 %v7602_v22  ;;  %1472 = vmatprep.subr.mxu0 %v1414_v52  ;;  %v1380_v22 = vld [vmem:[#allocation10 + $0x258] sm:$0xff]  ;;  %v1425_v50 = vld [vmem:[#allocation10 + $0x3c0] sm:$0xff]  ;;  %v1350_v52 = vld [vmem:[#allocation10 + $0x170] sm:$0xff] }
 0x161   :  { %1219 = vmatprep.subr.mxu1 %v7601_v23  ;;  %1473 = vmatpush1.msra.mxu0 %v1413_v53  ;;  %v1382_v23 = vld [vmem:[#allocation10 + $0x268] sm:$0xff] }
 0x162   :  { %1220 = vmatpush1.msra.mxu1 %v7600_v24  ;;  %1474 = vmatprep.subr.mxu0 %v1411_v55  ;;  %v1378_v24 = vld [vmem:[#allocation10 + $0x248] sm:$0xff] }
 0x163   :  { %1221 = vmatprep.subr.mxu1 %v7599_v25  ;;  %1475 = vmatpush1.msra.mxu0 %v1410_v56  ;;  %v1377_v25 = vld [vmem:[#allocation10 + $0x240] sm:$0xff] }
 0x164   :  { %1222 = vmatpush1.msra.mxu1 %v7598_v26  ;;  %1476 = vmatprep.subr.mxu0 %v1408_v58  ;;  %v1379_v26 = vld [vmem:[#allocation10 + $0x250] sm:$0xff] }
 0x165   :  { %1223 = vmatprep.subr.mxu1 %v7597_v27  ;;  %1477 = vmatpush1.msra.mxu0 %v1407_v59  ;;  %v1447_v27 = vld [vmem:[#allocation10 + $0x470] sm:$0xff] }
 0x166   :  { %1224 = vmatpush1.msra.mxu1 %v7596_v28  ;;  %1478 = vmatprep.subr.mxu0 %v1405_v61  ;;  %v1446_v28 = vld [vmem:[#allocation10 + $0x468] sm:$0xff] }
 0x167   :  { %1225 = vmatprep.subr.mxu1 %v7595_v29  ;;  %1479 = vmatpush1.msra.mxu0 %v1404_v62  ;;  %v1448_v29 = vld [vmem:[#allocation10 + $0x478] sm:$0xff] }
 0x168   :  { %1226 = vmatpush1.msra.mxu1 %v7594_v30  ;;  %1480 = vmatprep.subr.mxu0 %v1402_v0  ;;  %v1444_v30 = vld [vmem:[#allocation10 + $0x458] sm:$0xff] }
 0x169   :  { %1227 = vmatprep.subr.mxu1 %v7593_v31  ;;  %1481 = vmatpush1.msra.mxu0 %v1401_v1  ;;  %v1443_v31 = vld [vmem:[#allocation10 + $0x450] sm:$0xff]  ;;  %v1288_v62 = vld [vmem:[#allocation8] sm:$0x3] }
 0x16a   :  { %1228 = vmatpush1.msra.mxu1 %v7592_v32  ;;  %1482 = vmatprep.subr.mxu0 %v1399_v3  ;;  %v1445_v32 = vld [vmem:[#allocation10 + $0x460] sm:$0xff] }
 0x16b   :  { %1229 = vmatprep.subr.mxu1 %v7591_v33  ;;  %1483 = vmatpush1.msra.mxu0 %v1398_v4  ;;  %v1441_v33 = vld [vmem:[#allocation10 + $0x440] sm:$0xff] }
 0x16c   :  { %1230 = vmatpush1.msra.mxu1 %v7590_v34  ;;  %1484 = vmatprep.subr.mxu0 %v1396_v6  ;;  %v1440_v34 = vld [vmem:[#allocation10 + $0x438] sm:$0xff] }
 0x16d   :  { %1231 = vmatprep.subr.mxu1 %v7589_v36  ;;  %1485 = vmatpush1.msra.mxu0 %v1395_v7  ;;  %v1442_v36 = vld [vmem:[#allocation10 + $0x448] sm:$0xff] }
 0x16e   :  { %1232 = vmatpush1.msra.mxu1 %v7588_v37  ;;  %1486 = vmatprep.subr.mxu0 %v1393_v9  ;;  %v1438_v37 = vld [vmem:[#allocation10 + $0x428] sm:$0xff] }
 0x16f   :  { %1233 = vmatprep.subr.mxu1 %v7587_v38  ;;  %1487 = vmatpush1.msra.mxu0 %v1392_v10  ;;  %v1437_v38 = vld [vmem:[#allocation10 + $0x420] sm:$0xff] }
 0x170   :  { %1234 = vmatpush1.msra.mxu1 %v7586_v39  ;;  %1488 = vmatprep.subr.mxu0 %v1390_v12  ;;  %v1439_v39 = vld [vmem:[#allocation10 + $0x430] sm:$0xff] }
 0x171   :  { %1235 = vmatprep.subr.mxu1 %v7585_v40  ;;  %1489 = vmatpush1.msra.mxu0 %v1389_v13  ;;  %v1435_v40 = vld [vmem:[#allocation10 + $0x410] sm:$0xff] }
 0x172   :  { %1236 = vmatpush1.msra.mxu1 %v7584_v41  ;;  %1490 = vmatprep.subr.mxu0 %v1387_v15  ;;  %v1434_v41 = vld [vmem:[#allocation10 + $0x408] sm:$0xff] }
 0x173   :  { %1237 = vmatprep.subr.mxu1 %v7583_v43  ;;  %1491 = vmatpush1.msra.mxu0 %v1386_v16  ;;  %v1432_v43 = vld [vmem:[#allocation10 + $0x3f8] sm:$0xff] }
 0x174   :  { %1238 = vmatpush1.msra.mxu1 %v7582_v44  ;;  %1492 = vmatprep.subr.mxu0 %v1384_v18  ;;  %v1431_v44 = vld [vmem:[#allocation10 + $0x3f0] sm:$0xff] }
 0x175   :  { %7610 = vmatmul.mubr.msk.f32.vlgmr.msra.gmra.mxu1 %vm1008_vm3, %v1202_v47  ;;  %1543 = vmatprep.subr.mxu1 %v9277_v35  ;;  %v1428_v47 = vld [vmem:[#allocation10 + $0x3d8] sm:$0xff] }
 0x176   :  { %1277 = vmatprep.mubr.f32.mxu1 %v9277_v35  ;;  %1544 = vmatpush1.msra.mxu1 %v1424_v46  ;;  %v1429_v46 = vld [vmem:[#allocation10 + $0x3e0] sm:$0xff] }
 0x177   :  { %1545 = vmatprep.subr.mxu1 %v9277_v35  ;;  %1493 = vmatpush1.msra.mxu0 %v1383_v19 }
 0x178   :  { %1546 = vmatpush1.msra.mxu1 %v1421_v48  ;;  %1494 = vmatprep.subr.mxu0 %v1381_v21  ;;  %v1430_v48 = vld [vmem:[#allocation10 + $0x3e8] sm:$0xff] }
 0x179   :  { %7611 = vmatmul.mubr.msk.f32.gmra.mxu1 %vm1008_vm3, %v1201_v45  ;;  %1547 = vmatprep.subr.mxu1 %v9277_v35  ;;  %v1433_v45 = vld [vmem:[#allocation10 + $0x400] sm:$0xff] }
 0x17a   :  { %1548 = vmatpush1.msra.mxu1 %v1418_v51  ;;  %1495 = vmatpush1.msra.mxu0 %v1380_v22  ;;  %v1427_v51 = vld [vmem:[#allocation10 + $0x3d0] sm:$0xff] }
 0x17b   :  { %1549 = vmatprep.subr.mxu1 %v9277_v35  ;;  %1496 = vmatprep.subr.mxu0 %v1378_v24 }
 0x17c   :  { %1550 = vmatpush1.msra.mxu1 %v1415_v54  ;;  %1497 = vmatpush1.msra.mxu0 %v1377_v25  ;;  %v1290_v54 = vlaneseq }
 0x17d   :  { %1551 = vmatprep.subr.mxu1 %v9277_v35  ;;  %1514 = vmatprep.subr.mxu0 %v1447_v27 }
 0x17e   :  { %1552 = vmatpush1.msra.mxu1 %v1412_v57  ;;  %1515 = vmatpush2.msra.mxu0 %v1446_v28  ;;  %v9697_v57 = vshrl.u32 %v1290_v54, 7  ;;  %v1349_v28 = vld [vmem:[#allocation10 + $0x168] sm:$0xff] }
 0x17f   :  { %1553 = vmatprep.subr.mxu1 %v9277_v35  ;;  %1516 = vmatprep.subr.mxu0 %v1444_v30  ;;  %v1325_v54 = vld [vmem:[#allocation10 + $0xa8] sm:$0xff] }
 0x180   :  { %1554 = vmatpush1.msra.mxu1 %v1409_v60  ;;  %1517 = vmatpush2.msra.mxu0 %v1443_v31  ;;  %v9700_v60 = vsub.s32 0, %v9697_v57  ;;  %v9703_v0 = vsub.s32 1, %v9697_v57  ;;  %v1347_v31 = vld [vmem:[#allocation10 + $0x158] sm:$0xff] }
 0x181   :  { %1555 = vmatprep.subr.mxu1 %v9277_v35  ;;  %1518 = vmatprep.subr.mxu0 %v1441_v33  ;;  %v1348_v33 = vld [vmem:[#allocation10 + $0x160] sm:$0xff] }
 0x182   :  { %1556 = vmatpush1.msra.mxu1 %v1406_v63  ;;  %1519 = vmatpush2.msra.mxu0 %v1440_v34  ;;  %v9709_v9 = vrot.slane %v1288_v62, %v9703_v0  ;;  %v1344_v34 = vld [vmem:[#allocation10 + $0x140] sm:$0xff] }
 0x183   :  { %1557 = vmatprep.subr.mxu1 %v9277_v35  ;;  %1520 = vmatprep.subr.mxu0 %v1438_v37  ;;  %v1345_v37 = vld [vmem:[#allocation10 + $0x148] sm:$0xff] }
 0x184   :  { %1558 = vmatpush1.msra.mxu1 %v1403_v2  ;;  %1521 = vmatpush2.msra.mxu0 %v1437_v38  ;;  %v1341_v38 = vld [vmem:[#allocation10 + $0x128] sm:$0xff] }
 0x185   :  { %1559 = vmatprep.subr.mxu1 %v9277_v35  ;;  %1522 = vmatprep.subr.mxu0 %v1435_v40  ;;  %v1342_v40 = vld [vmem:[#allocation10 + $0x130] sm:$0xff] }
 0x186   :  { %1560 = vmatpush1.msra.mxu1 %v1400_v5  ;;  %1523 = vmatpush2.msra.mxu0 %v1434_v41  ;;  %v9706_v5 = vrot.slane %v1288_v62, %v9700_v60  ;;  %v1338_v41 = vld [vmem:[#allocation10 + $0x110] sm:$0xff]  ;;  %v1319_v62 = vld [vmem:[#allocation10 + $0x78] sm:$0xff] }
 0x187   :  { %1561 = vmatprep.subr.mxu1 %v9277_v35  ;;  %1524 = vmatprep.subr.mxu0 %v1432_v43  ;;  %v1339_v43 = vld [vmem:[#allocation10 + $0x118] sm:$0xff] }
 0x188   :  { %1562 = vmatpush1.msra.mxu1 %v1397_v8  ;;  %1525 = vmatpush2.msra.mxu0 %v1431_v44  ;;  %v1335_v44 = vld [vmem:[#allocation10 + $0xf8] sm:$0xff] }
 0x189   :  { %1563 = vmatprep.subr.mxu1 %v9277_v35  ;;  %1526 = vmatprep.subr.mxu0 %v1429_v46  ;;  %v1336_v46 = vld [vmem:[#allocation10 + $0x100] sm:$0xff] }
 0x18a   :  { %1564 = vmatpush1.msra.mxu1 %v1394_v11  ;;  %1527 = vmatpush2.msra.mxu0 %v1428_v47  ;;  %v1332_v47 = vld [vmem:[#allocation10 + $0xe0] sm:$0xff] }
 0x18b   :  { %1565 = vmatprep.subr.mxu1 %v9277_v35  ;;  %1528 = vmatprep.subr.mxu0 %v1426_v49  ;;  %v1333_v49 = vld [vmem:[#allocation10 + $0xe8] sm:$0xff] }
 0x18c   :  { %1566 = vmatpush1.msra.mxu1 %v1391_v14  ;;  %1529 = vmatpush2.msra.mxu0 %v1425_v50  ;;  %v1329_v50 = vld [vmem:[#allocation10 + $0xc8] sm:$0xff] }
 0x18d   :  { %1567 = vmatprep.subr.mxu1 %v9277_v35  ;;  %1622 = vmatprep.subr.mxu0 %v1350_v52  ;;  %v1330_v52 = vld [vmem:[#allocation10 + $0xd0] sm:$0xff] }
 0x18e   :  { %1568 = vmatpush1.msra.mxu1 %v1388_v17 }
 0x18f   :  { %1569 = vmatprep.subr.mxu1 %v9277_v35 }
 0x190   :  { %1570 = vmatpush1.msra.mxu1 %v1385_v20 }
 0x191   :  { %1571 = vmatprep.subr.mxu1 %v9277_v35 }
 0x192   :  { %1572 = vmatpush1.msra.mxu1 %v1382_v23 }
 0x193   :  { %1573 = vmatprep.subr.mxu1 %v9277_v35 }
 0x194   :  { %1574 = vmatpush1.msra.mxu1 %v1379_v26 }
 0x195   :  { %1591 = vmatprep.subr.mxu1 %v9277_v35 }
 0x196   :  { %1592 = vmatpush2.msra.mxu1 %v1448_v29  ;;  %v1351_v29 = vld [vmem:[#allocation10 + $0x178] sm:$0xff] }
 0x197   :  { %1593 = vmatprep.subr.mxu1 %v9277_v35 }
 0x198   :  { %1594 = vmatpush2.msra.mxu1 %v1445_v32  ;;  %v1346_v32 = vld [vmem:[#allocation10 + $0x150] sm:$0xff] }
 0x199   :  { %1595 = vmatprep.subr.mxu1 %v9277_v35 }
 0x19a   :  { %1596 = vmatpush2.msra.mxu1 %v1442_v36  ;;  %v1343_v36 = vld [vmem:[#allocation10 + $0x138] sm:$0xff] }
 0x19b   :  { %1597 = vmatprep.subr.mxu1 %v9277_v35 }
 0x19c   :  { %1598 = vmatpush2.msra.mxu1 %v1439_v39  ;;  %v1340_v39 = vld [vmem:[#allocation10 + $0x120] sm:$0xff] }
 0x19d   :  { %1599 = vmatprep.subr.mxu1 %v9277_v35 }
 0x19e   :  { %1600 = vmatpush2.msra.mxu1 %v1436_v42  ;;  %v1337_v42 = vld [vmem:[#allocation10 + $0x108] sm:$0xff] }
 0x19f   :  { %1601 = vmatprep.subr.mxu1 %v9277_v35 }
 0x1a0   :  { %1602 = vmatpush2.msra.mxu1 %v1433_v45  ;;  %v1334_v45 = vld [vmem:[#allocation10 + $0xf0] sm:$0xff] }
 0x1a1   :  { %1603 = vmatprep.subr.mxu1 %v9277_v35 }
 0x1a2   :  { %1604 = vmatpush2.msra.mxu1 %v1430_v48  ;;  %v1331_v48 = vld [vmem:[#allocation10 + $0xd8] sm:$0xff] }
 0x1a3   :  { %1605 = vmatprep.subr.mxu1 %v9277_v35 }
 0x1a4   :  { %1606 = vmatpush2.msra.mxu1 %v1427_v51  ;;  %v1328_v51 = vld [vmem:[#allocation10 + $0xc0] sm:$0xff] }
 0x1a5   :  { %1699 = vmatprep.subr.mxu1 %v9277_v35 }
 0x216   :  { %v1160_v56 = vpop.f32.mrf.mxu0 }
 0x218   :  { %v1162_v59 = vpop.f32.mrf.mxu0 }
 0x219   :  { %v1079_v53 = vpop.f32.mrf.mxu1 }
 0x21a   :  { %v1161_v63 = vadd.f32 %v1160_v56, %v1079_v53  ;;  %v1166_v1 = vpop.f32.mrf.mxu0  ;;  %v1326_v53 = vld [vmem:[#allocation10 + $0xb0] sm:$0xff]  ;;  %v1323_v56 = vld [vmem:[#allocation10 + $0x98] sm:$0xff] }
 0x21b   :  { %v1081_v55 = vpop.f32.mrf.mxu1 }
 0x21c   :  { %v1163_v3 = vadd.f32 %v1162_v59, %v1081_v55  ;;  %v1168_v10 = vpop.f32.mrf.mxu0  ;;  %v1327_v55 = vld [vmem:[#allocation10 + $0xb8] sm:$0xff]  ;;  %v1324_v59 = vld [vmem:[#allocation10 + $0xa0] sm:$0xff] }
 0x21d   :  { %v1085_v58 = vpop.f32.mrf.mxu1 }
 0x21e   :  { %v1167_v7 = vadd.f32 %v1166_v1, %v1085_v58  ;;  %v1322_v58 = vld [vmem:[#allocation10 + $0x90] sm:$0xff]  ;;  %v1317_v1 = vld [vmem:[#allocation10 + $0x68] sm:$0xff] }
 0x21f   :  { %v1087_v61 = vpop.f32.mrf.mxu1 }
 0x220   :  { %v1169_v12 = vadd.f32 %v1168_v10, %v1087_v61  ;;  %v1320_v61 = vld [vmem:[#allocation10 + $0x80] sm:$0xff]  ;;  %v1310_v10 = vld [vmem:[#allocation10 + $0x30] sm:$0xff] }
 0x235   :  { %v1273_v2 = vpop.f32.mrf.mxu1 }
 0x236   :  { %v1284_v4 = vadd.f32 %v1273_v2, %v1161_v63  ;;  %v1321_v63 = vld [vmem:[#allocation10 + $0x88] sm:$0xff]  ;;  %v1316_v2 = vld [vmem:[#allocation10 + $0x60] sm:$0xff] }
 0x237   :  { %v1275_v6 = vpop.f32.mrf.mxu1 }
 0x238   :  { %v1285_v8 = vadd.f32 %v1275_v6, %v1163_v3  ;;  %v9712_v13 = vadd.f32 %v9706_v5, %v1284_v4  ;;  %v1318_v3 = vld [vmem:[#allocation10 + $0x70] sm:$0xff]  ;;  %v1313_v6 = vld [vmem:[#allocation10 + $0x48] sm:$0xff] }
 0x239   :  { %v1279_v11 = vpop.f32.mrf.mxu1  ;;  %v1314_v4 = vld [vmem:[#allocation10 + $0x50] sm:$0xff] }
 0x23a   :  { %v1286_v14 = vadd.f32 %v1279_v11, %v1167_v7  ;;  %v9715_v16 = vadd.f32 %v9709_v9, %v1285_v8  ;;  %v1847_v20 = vrot.slane %v9712_v13, 2  ;;  %v1453_v26 = vrot.slane %v9712_v13, 1  ;;  %v1315_v7 = vld [vmem:[#allocation10 + $0x58] sm:$0xff]  ;;  %v1312_v11 = vld [vmem:[#allocation10 + $0x40] sm:$0xff] }
 0x23b   :  { %v1281_v15 = vpop.f32.mrf.mxu1  ;;  %v1311_v8 = vld [vmem:[#allocation10 + $0x38] sm:$0xff] }
 0x23c   :  { %v9718_v17 = vadd.f32 %v9706_v5, %v1286_v14  ;;  %v1287_v18 = vadd.f32 %v1281_v15, %v1169_v12  ;;  %v1456_v23 = vrot.slane %v9715_v16, 1  ;;  %v1308_v12 = vld [vmem:[#allocation10 + $0x20] sm:$0xff]  ;;  %v1307_v14 = vld [vmem:[#allocation10 + $0x18] sm:$0xff]  ;;  %v1309_v15 = vld [vmem:[#allocation10 + $0x28] sm:$0xff] }
 0x23e   :  { %v9721_v19 = vadd.f32 %v9709_v9, %v1287_v18  ;;  %v9725_v21 = vrot.slane %v9718_v17, 2  ;;  %v1454_v22 = vrot.slane %v9718_v17, 1  ;;  %v1305_v18 = vld [vmem:[#allocation10 + $0x8] sm:$0xff] }
 0x240   :  { %v1457_v24 = vrot.slane %v9721_v19, 1  ;;  %v9732_v25 = vsel %vm326_vm2, %v1847_v20, %v9725_v21  ;;  %v1455_v30 = vsel %vm160_vm0, %v1453_v26, %v1454_v22  ;;  %v1304_v20 = vld [vmem:[#allocation10] sm:$0xff]  ;;  %v1375_v26 = vld [vmem:[#allocation10 + $0x238] sm:$0xff] }
 0x242   :  { %v1458_v27 = vsel %vm160_vm0, %v1456_v23, %v1457_v24  ;;  %v1374_v23 = vld [vmem:[#allocation10 + $0x230] sm:$0xff] }
 0x243   :  { %7612 = vmatprep.mubr.msk.f32.mxu0 %vm1461_vm4, %v1458_v27  ;;  %7614 = vmatprep.mubr.msk.f32.mxu1 %vm1461_vm4, %v1458_v27  ;;  %v1371_v27 = vld [vmem:[#allocation10 + $0x218] sm:$0xff] }
 0x244   :  { %1531 = vmatmul.mubr.f32.vlgmr.msra.gmra.mxu0 %v1455_v30  ;;  %1608 = vmatmul.mubr.f32.vlgmr.msra.gmra.mxu1 %v1455_v30  ;;  %v1368_v30 = vld [vmem:[#allocation10 + $0x200] sm:$0xff] }
 0x245   :  { %1623 = vmatpush1.msra.mxu0 %v1349_v28  ;;  %1700 = vmatpush1.msra.mxu1 %v1351_v29  ;;  %v1370_v28 = vld [vmem:[#allocation10 + $0x210] sm:$0xff]  ;;  %v1372_v29 = vld [vmem:[#allocation10 + $0x220] sm:$0xff] }
 0x246   :  { %7613 = vmatprep.mubr.msk.f32.mxu0 %vm1461_vm4, %v1457_v24  ;;  %7615 = vmatprep.mubr.msk.f32.mxu1 %vm1461_vm4, %v1457_v24  ;;  %v1373_v24 = vld [vmem:[#allocation10 + $0x228] sm:$0xff] }
 0x247   :  { %1624 = vmatprep.subr.mxu0 %v1347_v31  ;;  %1701 = vmatprep.subr.mxu1 %v9277_v35  ;;  %v1367_v31 = vld [vmem:[#allocation10 + $0x1f8] sm:$0xff] }
 0x248   :  { %1625 = vmatpush1.msra.mxu0 %v1346_v32  ;;  %1702 = vmatpush1.msra.mxu1 %v1348_v33  ;;  %v1369_v32 = vld [vmem:[#allocation10 + $0x208] sm:$0xff] }
 0x249   :  { %1626 = vmatprep.subr.mxu0 %v1344_v34  ;;  %1703 = vmatprep.subr.mxu1 %v9277_v35  ;;  %v1365_v33 = vld [vmem:[#allocation10 + $0x1e8] sm:$0xff]  ;;  %v1364_v34 = vld [vmem:[#allocation10 + $0x1e0] sm:$0xff] }
 0x24a   :  { %1537 = vmatmul.mubr.f32.gmra.mxu0 %v1454_v22  ;;  %1613 = vmatmul.mubr.f32.gmra.mxu1 %v1454_v22  ;;  %v1306_v22 = vld [vmem:[#allocation10 + $0x10] sm:$0xff] }
 0x24b   :  { %1627 = vmatpush1.msra.mxu0 %v1343_v36  ;;  %1704 = vmatpush1.msra.mxu1 %v1345_v37  ;;  %v1366_v36 = vld [vmem:[#allocation10 + $0x1f0] sm:$0xff] }
 0x24c   :  { %1628 = vmatprep.subr.mxu0 %v1341_v38  ;;  %7616 = vmatprep.mubr.msk.f32.mxu0 %vm1461_vm4, %v9715_v16  ;;  %v1362_v37 = vld [vmem:[#allocation10 + $0x1d0] sm:$0xff]  ;;  %v1361_v38 = vld [vmem:[#allocation10 + $0x1c8] sm:$0xff] }
 0x24d   :  { %1705 = vmatprep.subr.mxu1 %v9277_v35  ;;  %7618 = vmatprep.mubr.msk.f32.mxu1 %vm1461_vm4, %v9715_v16 }
 0x24e   :  { %1629 = vmatpush1.msra.mxu0 %v1340_v39  ;;  %1706 = vmatpush1.msra.mxu1 %v1342_v40  ;;  %v1363_v39 = vld [vmem:[#allocation10 + $0x1d8] sm:$0xff] }
 0x24f   :  { %1630 = vmatprep.subr.mxu0 %v1338_v41  ;;  %1707 = vmatprep.subr.mxu1 %v9277_v35  ;;  %v1359_v40 = vld [vmem:[#allocation10 + $0x1b8] sm:$0xff]  ;;  %v1358_v41 = vld [vmem:[#allocation10 + $0x1b0] sm:$0xff] }
 0x250   :  { %1631 = vmatpush1.msra.mxu0 %v1337_v42  ;;  %1708 = vmatpush1.msra.mxu1 %v1339_v43  ;;  %v1360_v42 = vld [vmem:[#allocation10 + $0x1c0] sm:$0xff] }
 0x251   :  { %1632 = vmatprep.subr.mxu0 %v1335_v44  ;;  %1709 = vmatprep.subr.mxu1 %v9277_v35  ;;  %v1356_v43 = vld [vmem:[#allocation10 + $0x1a0] sm:$0xff]  ;;  %v1355_v44 = vld [vmem:[#allocation10 + $0x198] sm:$0xff] }
 0x252   :  { %1633 = vmatpush1.msra.mxu0 %v1334_v45  ;;  %1710 = vmatpush1.msra.mxu1 %v1336_v46  ;;  %v1357_v45 = vld [vmem:[#allocation10 + $0x1a8] sm:$0xff] }
 0x253   :  { %1634 = vmatprep.subr.mxu0 %v1332_v47  ;;  %1711 = vmatprep.subr.mxu1 %v9277_v35  ;;  %v1353_v46 = vld [vmem:[#allocation10 + $0x188] sm:$0xff]  ;;  %v1352_v47 = vld [vmem:[#allocation10 + $0x180] sm:$0xff] }
 0x254   :  { %1635 = vmatpush1.msra.mxu0 %v1331_v48  ;;  %1712 = vmatpush1.msra.mxu1 %v1333_v49  ;;  %v1354_v48 = vld [vmem:[#allocation10 + $0x190] sm:$0xff] }
 0x255   :  { %1636 = vmatprep.subr.mxu0 %v1329_v50  ;;  %1713 = vmatprep.subr.mxu1 %v9277_v35  ;;  %v1821_v49 = vld [vmem:[#allocation10 + $0x5f0] sm:$0xff]  ;;  %v1820_v50 = vld [vmem:[#allocation10 + $0x5e8] sm:$0xff] }
 0x256   :  { %1637 = vmatpush1.msra.mxu0 %v1328_v51  ;;  %1714 = vmatpush1.msra.mxu1 %v1330_v52  ;;  %v1822_v51 = vld [vmem:[#allocation10 + $0x5f8] sm:$0xff] }
 0x257   :  { %1638 = vmatprep.subr.mxu0 %v1326_v53  ;;  %1715 = vmatprep.subr.mxu1 %v9277_v35  ;;  %v1818_v52 = vld [vmem:[#allocation10 + $0x5d8] sm:$0xff]  ;;  %v1817_v53 = vld [vmem:[#allocation10 + $0x5d0] sm:$0xff] }
 0x258   :  { %1639 = vmatpush1.msra.mxu0 %v1325_v54  ;;  %1716 = vmatpush1.msra.mxu1 %v1327_v55  ;;  %v1819_v54 = vld [vmem:[#allocation10 + $0x5e0] sm:$0xff]  ;;  %v9776_v55 = vrot.slane %v9721_v19, 2 }
 0x259   :  { %1640 = vmatprep.subr.mxu0 %v1323_v56  ;;  %1717 = vmatprep.subr.mxu1 %v9277_v35  ;;  %v1814_v56 = vld [vmem:[#allocation10 + $0x5b8] sm:$0xff] }
 0x25a   :  { %1641 = vmatpush1.msra.mxu0 %v1322_v58  ;;  %1718 = vmatpush1.msra.mxu1 %v1324_v59  ;;  %v1850_v58 = vrot.slane %v9715_v16, 2  ;;  %v1816_v59 = vld [vmem:[#allocation10 + $0x5c8] sm:$0xff]  ;;  %v1809_v16 = vld [vmem:[#allocation10 + $0x590] sm:$0xff] }
 0x25b   :  { %1642 = vmatprep.subr.mxu0 %v1320_v61  ;;  %1719 = vmatprep.subr.mxu1 %v9277_v35  ;;  %v1812_v61 = vld [vmem:[#allocation10 + $0x5a8] sm:$0xff] }
 0x25c   :  { %1643 = vmatpush1.msra.mxu0 %v1319_v62  ;;  %1720 = vmatpush1.msra.mxu1 %v1321_v63  ;;  %v1811_v62 = vld [vmem:[#allocation10 + $0x5a0] sm:$0xff]  ;;  %v1813_v63 = vld [vmem:[#allocation10 + $0x5b0] sm:$0xff] }
 0x25d   :  { %1644 = vmatprep.subr.mxu0 %v1317_v1  ;;  %1721 = vmatprep.subr.mxu1 %v9277_v35  ;;  %v1810_v1 = vld [vmem:[#allocation10 + $0x598] sm:$0xff] }
 0x25e   :  { %1645 = vmatpush1.msra.mxu0 %v1316_v2  ;;  %1722 = vmatpush1.msra.mxu1 %v1318_v3  ;;  %v1806_v2 = vld [vmem:[#allocation10 + $0x578] sm:$0xff]  ;;  %v1805_v3 = vld [vmem:[#allocation10 + $0x570] sm:$0xff] }
 0x25f   :  { %1646 = vmatprep.subr.mxu0 %v1314_v4  ;;  %1723 = vmatprep.subr.mxu1 %v9277_v35  ;;  %v1807_v4 = vld [vmem:[#allocation10 + $0x580] sm:$0xff] }
 0x260   :  { %1647 = vmatpush1.msra.mxu0 %v1313_v6  ;;  %1724 = vmatpush1.msra.mxu1 %v1315_v7  ;;  %v1803_v6 = vld [vmem:[#allocation10 + $0x560] sm:$0xff]  ;;  %v1802_v7 = vld [vmem:[#allocation10 + $0x558] sm:$0xff] }
 0x261   :  { %1648 = vmatprep.subr.mxu0 %v1311_v8  ;;  %1725 = vmatprep.subr.mxu1 %v9277_v35  ;;  %v1804_v8 = vld [vmem:[#allocation10 + $0x568] sm:$0xff] }
 0x262   :  { %1649 = vmatpush1.msra.mxu0 %v1310_v10  ;;  %1726 = vmatpush1.msra.mxu1 %v1312_v11  ;;  %v1800_v10 = vld [vmem:[#allocation10 + $0x548] sm:$0xff]  ;;  %v1799_v11 = vld [vmem:[#allocation10 + $0x540] sm:$0xff] }
 0x263   :  { %1650 = vmatprep.subr.mxu0 %v1308_v12  ;;  %1727 = vmatprep.subr.mxu1 %v9277_v35  ;;  %v1801_v12 = vld [vmem:[#allocation10 + $0x550] sm:$0xff] }
 0x264   :  { %1651 = vmatpush1.msra.mxu0 %v1307_v14  ;;  %1728 = vmatpush1.msra.mxu1 %v1309_v15  ;;  %v1797_v14 = vld [vmem:[#allocation10 + $0x530] sm:$0xff]  ;;  %v1796_v15 = vld [vmem:[#allocation10 + $0x528] sm:$0xff] }
 0x265   :  { %1652 = vmatprep.subr.mxu0 %v1305_v18  ;;  %1729 = vmatprep.subr.mxu1 %v9277_v35  ;;  %v1798_v18 = vld [vmem:[#allocation10 + $0x538] sm:$0xff] }
 0x266   :  { %1653 = vmatpush1.msra.mxu0 %v1304_v20  ;;  %1730 = vmatpush1.msra.mxu1 %v1306_v22  ;;  %v1794_v20 = vld [vmem:[#allocation10 + $0x518] sm:$0xff]  ;;  %v1793_v22 = vld [vmem:[#allocation10 + $0x510] sm:$0xff] }
 0x267   :  { %1670 = vmatprep.subr.mxu0 %v1374_v23  ;;  %1747 = vmatprep.subr.mxu1 %v9277_v35  ;;  %v1795_v23 = vld [vmem:[#allocation10 + $0x520] sm:$0xff] }
 0x268   :  { %1671 = vmatpush2.msra.mxu0 %v1373_v24  ;;  %1748 = vmatpush2.msra.mxu1 %v1375_v26  ;;  %v1791_v24 = vld [vmem:[#allocation10 + $0x500] sm:$0xff]  ;;  %v1790_v26 = vld [vmem:[#allocation10 + $0x4f8] sm:$0xff] }
 0x269   :  { %1672 = vmatprep.subr.mxu0 %v1371_v27  ;;  %1749 = vmatprep.subr.mxu1 %v9277_v35  ;;  %v1792_v27 = vld [vmem:[#allocation10 + $0x508] sm:$0xff] }
 0x26a   :  { %1673 = vmatpush2.msra.mxu0 %v1370_v28  ;;  %1750 = vmatpush2.msra.mxu1 %v1372_v29  ;;  %v1788_v28 = vld [vmem:[#allocation10 + $0x4e8] sm:$0xff]  ;;  %v1787_v29 = vld [vmem:[#allocation10 + $0x4e0] sm:$0xff] }
 0x26b   :  { %1674 = vmatprep.subr.mxu0 %v1368_v30  ;;  %1751 = vmatprep.subr.mxu1 %v9277_v35  ;;  %v1789_v30 = vld [vmem:[#allocation10 + $0x4f0] sm:$0xff] }
 0x26c   :  { %1675 = vmatpush2.msra.mxu0 %v1367_v31  ;;  %1752 = vmatpush2.msra.mxu1 %v1369_v32  ;;  %v1785_v31 = vld [vmem:[#allocation10 + $0x4d0] sm:$0xff]  ;;  %v1784_v32 = vld [vmem:[#allocation10 + $0x4c8] sm:$0xff] }
 0x26d   :  { %1676 = vmatprep.subr.mxu0 %v1365_v33  ;;  %1753 = vmatprep.subr.mxu1 %v9277_v35  ;;  %v1786_v33 = vld [vmem:[#allocation10 + $0x4d8] sm:$0xff] }
 0x26e   :  { %1677 = vmatpush2.msra.mxu0 %v1364_v34  ;;  %1754 = vmatpush2.msra.mxu1 %v1366_v36  ;;  %v1782_v34 = vld [vmem:[#allocation10 + $0x4b8] sm:$0xff]  ;;  %v1781_v36 = vld [vmem:[#allocation10 + $0x4b0] sm:$0xff] }
 0x26f   :  { %1678 = vmatprep.subr.mxu0 %v1362_v37  ;;  %1755 = vmatprep.subr.mxu1 %v9277_v35  ;;  %v1783_v37 = vld [vmem:[#allocation10 + $0x4c0] sm:$0xff] }
 0x270   :  { %1679 = vmatpush2.msra.mxu0 %v1361_v38  ;;  %1756 = vmatpush2.msra.mxu1 %v1363_v39  ;;  %v1779_v38 = vld [vmem:[#allocation10 + $0x4a0] sm:$0xff]  ;;  %v1778_v39 = vld [vmem:[#allocation10 + $0x498] sm:$0xff] }
 0x271   :  { %1680 = vmatprep.subr.mxu0 %v1359_v40  ;;  %1757 = vmatprep.subr.mxu1 %v9277_v35  ;;  %v1780_v40 = vld [vmem:[#allocation10 + $0x4a8] sm:$0xff] }
 0x272   :  { %1681 = vmatpush2.msra.mxu0 %v1358_v41  ;;  %1758 = vmatpush2.msra.mxu1 %v1360_v42  ;;  %v1776_v41 = vld [vmem:[#allocation10 + $0x488] sm:$0xff]  ;;  %v1775_v42 = vld [vmem:[#allocation10 + $0x480] sm:$0xff] }
 0x273   :  { %1682 = vmatprep.subr.mxu0 %v1356_v43  ;;  %1759 = vmatprep.subr.mxu1 %v9277_v35  ;;  %v1777_v43 = vld [vmem:[#allocation10 + $0x490] sm:$0xff] }
 0x274   :  { %1683 = vmatpush2.msra.mxu0 %v1355_v44  ;;  %1760 = vmatpush2.msra.mxu1 %v1357_v45  ;;  %v1845_v44 = vld [vmem:[#allocation10 + $0x6b0] sm:$0xff]  ;;  %v1844_v45 = vld [vmem:[#allocation10 + $0x6a8] sm:$0xff] }
 0x275   :  { %1684 = vmatprep.subr.mxu0 %v1353_v46  ;;  %1761 = vmatprep.subr.mxu1 %v9277_v35  ;;  %v1846_v46 = vld [vmem:[#allocation10 + $0x6b8] sm:$0xff] }
 0x276   :  { %1685 = vmatpush2.msra.mxu0 %v1352_v47  ;;  %1762 = vmatpush2.msra.mxu1 %v1354_v48  ;;  %v1842_v47 = vld [vmem:[#allocation10 + $0x698] sm:$0xff]  ;;  %v1841_v48 = vld [vmem:[#allocation10 + $0x690] sm:$0xff] }
 0x277   :  { %1687 = vmatmul.mubr.f32.vlgmr.msra.gmra.mxu0 %v9712_v13  ;;  %1764 = vmatmul.mubr.f32.vlgmr.msra.gmra.mxu1 %v9712_v13  ;;  %v1815_v13 = vld [vmem:[#allocation10 + $0x5c0] sm:$0xff] }
 0x278   :  { %1859 = vmatprep.subr.mxu0 %v1821_v49  ;;  %1936 = vmatprep.subr.mxu1 %v9277_v35  ;;  %v1843_v49 = vld [vmem:[#allocation10 + $0x6a0] sm:$0xff] }
 0x279   :  { %7617 = vmatprep.mubr.msk.f32.mxu0 %vm1461_vm4, %v9721_v19  ;;  %7619 = vmatprep.mubr.msk.f32.mxu1 %vm1461_vm4, %v9721_v19  ;;  %v1852_v19 = vsel %vm326_vm2, %v1850_v58, %v9776_v55  ;;  %v1832_v58 = vld [vmem:[#allocation10 + $0x648] sm:$0xff] }
 0x27a   :  { %1860 = vmatpush1.msra.mxu0 %v1820_v50  ;;  %1937 = vmatpush1.msra.mxu1 %v1822_v51  ;;  %v1839_v50 = vld [vmem:[#allocation10 + $0x680] sm:$0xff]  ;;  %v1838_v51 = vld [vmem:[#allocation10 + $0x678] sm:$0xff] }
 0x27b   :  { %1861 = vmatprep.subr.mxu0 %v1818_v52  ;;  %1938 = vmatprep.subr.mxu1 %v9277_v35  ;;  %v1840_v52 = vld [vmem:[#allocation10 + $0x688] sm:$0xff] }
 0x27c   :  { %1862 = vmatpush1.msra.mxu0 %v1817_v53  ;;  %1939 = vmatpush1.msra.mxu1 %v1819_v54  ;;  %v1836_v53 = vld [vmem:[#allocation10 + $0x668] sm:$0xff]  ;;  %v1835_v54 = vld [vmem:[#allocation10 + $0x660] sm:$0xff] }
 0x27d   :  { %1693 = vmatmul.mubr.f32.gmra.mxu0 %v9718_v17  ;;  %1769 = vmatmul.mubr.f32.gmra.mxu1 %v9718_v17  ;;  %v1808_v17 = vld [vmem:[#allocation10 + $0x588] sm:$0xff] }
 0x27e   :  { %1863 = vmatprep.subr.mxu0 %v1815_v13  ;;  %1940 = vmatprep.subr.mxu1 %v9277_v35  ;;  %v1837_v13 = vld [vmem:[#allocation10 + $0x670] sm:$0xff] }
 0x27f   :  { %1864 = vmatpush1.msra.mxu0 %v1814_v56  ;;  %7620 = vmatprep.mubr.msk.f32.mxu0 %vm1461_vm4, %v1852_v19  ;;  %v1833_v56 = vld [vmem:[#allocation10 + $0x650] sm:$0xff] }
 0x280   :  { %1941 = vmatpush1.msra.mxu1 %v1816_v59  ;;  %7622 = vmatprep.mubr.msk.f32.mxu1 %vm1461_vm4, %v1852_v19  ;;  %v1834_v59 = vld [vmem:[#allocation10 + $0x658] sm:$0xff] }
 0x281   :  { %1865 = vmatprep.subr.mxu0 %v1812_v61  ;;  %1942 = vmatprep.subr.mxu1 %v9277_v35  ;;  %v1830_v19 = vld [vmem:[#allocation10 + $0x638] sm:$0xff]  ;;  %v1829_v61 = vld [vmem:[#allocation10 + $0x630] sm:$0xff] }
 0x282   :  { %1866 = vmatpush1.msra.mxu0 %v1811_v62  ;;  %1943 = vmatpush1.msra.mxu1 %v1813_v63  ;;  %v1831_v62 = vld [vmem:[#allocation10 + $0x640] sm:$0xff] }
 0x283   :  { %1867 = vmatprep.subr.mxu0 %v1809_v16  ;;  %1944 = vmatprep.subr.mxu1 %v9277_v35  ;;  %v1827_v63 = vld [vmem:[#allocation10 + $0x620] sm:$0xff]  ;;  %v1826_v16 = vld [vmem:[#allocation10 + $0x618] sm:$0xff] }
 0x284   :  { %1868 = vmatpush1.msra.mxu0 %v1808_v17  ;;  %1945 = vmatpush1.msra.mxu1 %v1810_v1  ;;  %v1828_v17 = vld [vmem:[#allocation10 + $0x628] sm:$0xff] }
 0x285   :  { %1869 = vmatprep.subr.mxu0 %v1806_v2  ;;  %1946 = vmatprep.subr.mxu1 %v9277_v35  ;;  %v1824_v1 = vld [vmem:[#allocation10 + $0x608] sm:$0xff]  ;;  %v1823_v2 = vld [vmem:[#allocation10 + $0x600] sm:$0xff] }
 0x286   :  { %1870 = vmatpush1.msra.mxu0 %v1805_v3  ;;  %1947 = vmatpush1.msra.mxu1 %v1807_v4  ;;  %v1825_v3 = vld [vmem:[#allocation10 + $0x610] sm:$0xff]  ;;  %v2152_v4 = vld [vmem:[#allocation13 + $0x378] sm:$0xff] }
 0x287   :  { %1871 = vmatprep.subr.mxu0 %v1803_v6  ;;  %1948 = vmatprep.subr.mxu1 %v9277_v35  ;;  %v2151_v6 = vld [vmem:[#allocation13 + $0x370] sm:$0xff] }
 0x288   :  { %1872 = vmatpush1.msra.mxu0 %v1802_v7  ;;  %1949 = vmatpush1.msra.mxu1 %v1804_v8  ;;  %v2150_v7 = vld [vmem:[#allocation13 + $0x368] sm:$0xff]  ;;  %v2149_v8 = vld [vmem:[#allocation13 + $0x360] sm:$0xff] }
 0x289   :  { %1873 = vmatprep.subr.mxu0 %v1800_v10  ;;  %1950 = vmatprep.subr.mxu1 %v9277_v35  ;;  %v2148_v10 = vld [vmem:[#allocation13 + $0x358] sm:$0xff] }
 0x28a   :  { %1874 = vmatpush1.msra.mxu0 %v1799_v11  ;;  %1951 = vmatpush1.msra.mxu1 %v1801_v12  ;;  %v2147_v11 = vld [vmem:[#allocation13 + $0x350] sm:$0xff]  ;;  %v2145_v12 = vld [vmem:[#allocation13 + $0x340] sm:$0xff] }
 0x28b   :  { %1875 = vmatprep.subr.mxu0 %v1797_v14  ;;  %1952 = vmatprep.subr.mxu1 %v9277_v35  ;;  %v2143_v14 = vld [vmem:[#allocation13 + $0x330] sm:$0xff] }
 0x28c   :  { %1876 = vmatpush1.msra.mxu0 %v1796_v15  ;;  %1953 = vmatpush1.msra.mxu1 %v1798_v18  ;;  %v2142_v15 = vld [vmem:[#allocation13 + $0x328] sm:$0xff]  ;;  %v2141_v18 = vld [vmem:[#allocation13 + $0x320] sm:$0xff] }
 0x28d   :  { %1877 = vmatprep.subr.mxu0 %v1794_v20  ;;  %1954 = vmatprep.subr.mxu1 %v9277_v35  ;;  %v2139_v20 = vld [vmem:[#allocation13 + $0x310] sm:$0xff] }
 0x28e   :  { %1878 = vmatpush1.msra.mxu0 %v1793_v22  ;;  %1955 = vmatpush1.msra.mxu1 %v1795_v23  ;;  %v2138_v22 = vld [vmem:[#allocation13 + $0x308] sm:$0xff]  ;;  %v2137_v23 = vld [vmem:[#allocation13 + $0x300] sm:$0xff] }
 0x28f   :  { %1879 = vmatprep.subr.mxu0 %v1791_v24  ;;  %1956 = vmatprep.subr.mxu1 %v9277_v35  ;;  %v2136_v24 = vld [vmem:[#allocation13 + $0x2f8] sm:$0xff] }
 0x290   :  { %1880 = vmatpush1.msra.mxu0 %v1790_v26  ;;  %1957 = vmatpush1.msra.mxu1 %v1792_v27  ;;  %v2135_v26 = vld [vmem:[#allocation13 + $0x2f0] sm:$0xff]  ;;  %v2134_v27 = vld [vmem:[#allocation13 + $0x2e8] sm:$0xff] }
 0x291   :  { %1881 = vmatprep.subr.mxu0 %v1788_v28  ;;  %1958 = vmatprep.subr.mxu1 %v9277_v35  ;;  %v2133_v28 = vld [vmem:[#allocation13 + $0x2e0] sm:$0xff] }
 0x292   :  { %1882 = vmatpush1.msra.mxu0 %v1787_v29  ;;  %1959 = vmatpush1.msra.mxu1 %v1789_v30  ;;  %v2132_v29 = vld [vmem:[#allocation13 + $0x2d8] sm:$0xff]  ;;  %v2131_v30 = vld [vmem:[#allocation13 + $0x2d0] sm:$0xff] }
 0x293   :  { %1883 = vmatprep.subr.mxu0 %v1785_v31  ;;  %1960 = vmatprep.subr.mxu1 %v9277_v35  ;;  %v2130_v31 = vld [vmem:[#allocation13 + $0x2c8] sm:$0xff] }
 0x294   :  { %1884 = vmatpush1.msra.mxu0 %v1784_v32  ;;  %1961 = vmatpush1.msra.mxu1 %v1786_v33  ;;  %v2129_v32 = vld [vmem:[#allocation13 + $0x2c0] sm:$0xff]  ;;  %v2128_v33 = vld [vmem:[#allocation13 + $0x2b8] sm:$0xff] }
 0x295   :  { %1885 = vmatprep.subr.mxu0 %v1782_v34  ;;  %1962 = vmatprep.subr.mxu1 %v9277_v35  ;;  %v2127_v34 = vld [vmem:[#allocation13 + $0x2b0] sm:$0xff] }
 0x296   :  { %1886 = vmatpush1.msra.mxu0 %v1781_v36  ;;  %1963 = vmatpush1.msra.mxu1 %v1783_v37  ;;  %v2126_v36 = vld [vmem:[#allocation13 + $0x2a8] sm:$0xff]  ;;  %v2200_v37 = vld [vmem:[#allocation13 + $0x4f8] sm:$0xff] }
 0x297   :  { %1887 = vmatprep.subr.mxu0 %v1779_v38  ;;  %1964 = vmatprep.subr.mxu1 %v9277_v35  ;;  %v2199_v38 = vld [vmem:[#allocation13 + $0x4f0] sm:$0xff] }
 0x298   :  { %1888 = vmatpush1.msra.mxu0 %v1778_v39  ;;  %1965 = vmatpush1.msra.mxu1 %v1780_v40  ;;  %v2125_v39 = vld [vmem:[#allocation13 + $0x2a0] sm:$0xff]  ;;  %v2198_v40 = vld [vmem:[#allocation13 + $0x4e8] sm:$0xff] }
 0x299   :  { %1889 = vmatprep.subr.mxu0 %v1776_v41  ;;  %1966 = vmatprep.subr.mxu1 %v9277_v35  ;;  %v2124_v41 = vld [vmem:[#allocation13 + $0x298] sm:$0xff] }
 0x29a   :  { %1890 = vmatpush1.msra.mxu0 %v1775_v42  ;;  %1967 = vmatpush1.msra.mxu1 %v1777_v43  ;;  %v2197_v42 = vld [vmem:[#allocation13 + $0x4e0] sm:$0xff]  ;;  %v2196_v43 = vld [vmem:[#allocation13 + $0x4d8] sm:$0xff] }
 0x29b   :  { %1907 = vmatprep.subr.mxu0 %v1845_v44  ;;  %1984 = vmatprep.subr.mxu1 %v9277_v35  ;;  %v2123_v44 = vld [vmem:[#allocation13 + $0x290] sm:$0xff] }
 0x29c   :  { %1908 = vmatpush2.msra.mxu0 %v1844_v45  ;;  %1985 = vmatpush2.msra.mxu1 %v1846_v46  ;;  %v2195_v45 = vld [vmem:[#allocation13 + $0x4d0] sm:$0xff]  ;;  %v2122_v46 = vld [vmem:[#allocation13 + $0x288] sm:$0xff] }
 0x29d   :  { %1909 = vmatprep.subr.mxu0 %v1842_v47  ;;  %1986 = vmatprep.subr.mxu1 %v9277_v35  ;;  %v2194_v47 = vld [vmem:[#allocation13 + $0x4c8] sm:$0xff] }
 0x29e   :  { %1910 = vmatpush2.msra.mxu0 %v1841_v48  ;;  %1987 = vmatpush2.msra.mxu1 %v1843_v49  ;;  %v2121_v48 = vld [vmem:[#allocation13 + $0x280] sm:$0xff] }
 0x29f   :  { %1911 = vmatprep.subr.mxu0 %v1839_v50  ;;  %1988 = vmatprep.subr.mxu1 %v9277_v35  ;;  %v2193_v49 = vld [vmem:[#allocation13 + $0x4c0] sm:$0xff]  ;;  %v2184_v50 = vld [vmem:[#allocation13 + $0x478] sm:$0xff] }
 0x2a0   :  { %1912 = vmatpush2.msra.mxu0 %v1838_v51  ;;  %1989 = vmatpush2.msra.mxu1 %v1840_v52  ;;  %v2192_v51 = vld [vmem:[#allocation13 + $0x4b8] sm:$0xff]  ;;  %v2183_v52 = vld [vmem:[#allocation13 + $0x470] sm:$0xff] }
 0x2a1   :  { %1913 = vmatprep.subr.mxu0 %v1836_v53  ;;  %1990 = vmatprep.subr.mxu1 %v9277_v35  ;;  %v2191_v53 = vld [vmem:[#allocation13 + $0x4b0] sm:$0xff] }
 0x2a2   :  { %1914 = vmatpush2.msra.mxu0 %v1835_v54  ;;  %1991 = vmatpush2.msra.mxu1 %v1837_v13  ;;  %v2182_v54 = vld [vmem:[#allocation13 + $0x468] sm:$0xff]  ;;  %v2181_v13 = vld [vmem:[#allocation13 + $0x460] sm:$0xff] }
 0x2a3   :  { %1915 = vmatprep.subr.mxu0 %v1833_v56  ;;  %1992 = vmatprep.subr.mxu1 %v9277_v35  ;;  %v2180_v56 = vld [vmem:[#allocation13 + $0x458] sm:$0xff] }
 0x2a4   :  { %1916 = vmatpush2.msra.mxu0 %v1832_v58  ;;  %1993 = vmatpush2.msra.mxu1 %v1834_v59  ;;  %v2179_v58 = vld [vmem:[#allocation13 + $0x450] sm:$0xff]  ;;  %v2178_v59 = vld [vmem:[#allocation13 + $0x448] sm:$0xff] }
 0x2a5   :  { %1917 = vmatprep.subr.mxu0 %v1830_v19  ;;  %1994 = vmatprep.subr.mxu1 %v9277_v35  ;;  %v2177_v19 = vld [vmem:[#allocation13 + $0x440] sm:$0xff] }
 0x2a6   :  { %1918 = vmatpush2.msra.mxu0 %v1829_v61  ;;  %1995 = vmatpush2.msra.mxu1 %v1831_v62  ;;  %v2176_v61 = vld [vmem:[#allocation13 + $0x438] sm:$0xff]  ;;  %v2175_v62 = vld [vmem:[#allocation13 + $0x430] sm:$0xff] }
 0x2a7   :  { %1919 = vmatprep.subr.mxu0 %v1827_v63  ;;  %1996 = vmatprep.subr.mxu1 %v9277_v35  ;;  %v2174_v63 = vld [vmem:[#allocation13 + $0x428] sm:$0xff] }
 0x2a8   :  { %1920 = vmatpush2.msra.mxu0 %v1826_v16  ;;  %1997 = vmatpush2.msra.mxu1 %v1828_v17  ;;  %v2173_v16 = vld [vmem:[#allocation13 + $0x420] sm:$0xff]  ;;  %v2172_v17 = vld [vmem:[#allocation13 + $0x418] sm:$0xff] }
 0x2a9   :  { %1921 = vmatprep.subr.mxu0 %v1824_v1  ;;  %1998 = vmatprep.subr.mxu1 %v9277_v35  ;;  %v2171_v1 = vld [vmem:[#allocation13 + $0x410] sm:$0xff] }
 0x2aa   :  { %1922 = vmatpush2.msra.mxu0 %v1823_v2  ;;  %1999 = vmatpush2.msra.mxu1 %v1825_v3  ;;  %v2170_v2 = vld [vmem:[#allocation13 + $0x408] sm:$0xff]  ;;  %v2169_v3 = vld [vmem:[#allocation13 + $0x400] sm:$0xff] }
 0x2ab   :  { %1924 = vmatmul.mubr.f32.vlgmr.msra.gmra.mxu0 %v9732_v25  ;;  %2001 = vmatmul.mubr.f32.vlgmr.msra.gmra.mxu1 %v9732_v25  ;;  %v2146_v25 = vld [vmem:[#allocation13 + $0x348] sm:$0xff] }
 0x2ac   :  { %7621 = vmatprep.mubr.msk.f32.mxu0 %vm1461_vm4, %v9776_v55  ;;  %7623 = vmatprep.mubr.msk.f32.mxu1 %vm1461_vm4, %v9776_v55  ;;  %v2144_v55 = vld [vmem:[#allocation13 + $0x338] sm:$0xff] }
 0x2ad   :  { %2211 = vmatprep.subr.mxu0 %v2152_v4  ;;  %2298 = vmatprep.subr.mxu1 %v2200_v37  ;;  %v2168_v4 = vld [vmem:[#allocation13 + $0x3f8] sm:$0xff] }
 0x2ae   :  { %2212 = vmatpush1.msra.mxu0 %v2151_v6  ;;  %2299 = vmatpush1.msra.mxu1 %v2199_v38  ;;  %v2167_v6 = vld [vmem:[#allocation13 + $0x3f0] sm:$0xff] }
 0x2af   :  { %1930 = vmatmul.mubr.f32.gmra.mxu0 %v9725_v21  ;;  %2006 = vmatmul.mubr.f32.gmra.mxu1 %v9725_v21  ;;  %v2140_v21 = vld [vmem:[#allocation13 + $0x318] sm:$0xff] }
 0x2b0   :  { %2213 = vmatprep.subr.mxu0 %v2150_v7  ;;  %2346 = vmatprep.mubr.f32.mxu1 %v9277_v35  ;;  %v2166_v7 = vld [vmem:[#allocation13 + $0x3e8] sm:$0xff] }
 0x2b1   :  { %2214 = vmatpush1.msra.mxu0 %v2149_v8  ;;  %2300 = vmatprep.subr.mxu1 %v2198_v40  ;;  %v2165_v8 = vld [vmem:[#allocation13 + $0x3e0] sm:$0xff] }
 0x2b2   :  { %2215 = vmatprep.subr.mxu0 %v2148_v10  ;;  %2301 = vmatpush1.msra.mxu1 %v2197_v42  ;;  %v2164_v10 = vld [vmem:[#allocation13 + $0x3d8] sm:$0xff] }
 0x2b3   :  { %2216 = vmatpush1.msra.mxu0 %v2147_v11  ;;  %2302 = vmatprep.subr.mxu1 %v2196_v43  ;;  %v2163_v11 = vld [vmem:[#allocation13 + $0x3d0] sm:$0xff] }
 0x2b4   :  { %2217 = vmatprep.subr.mxu0 %v2146_v25  ;;  %2303 = vmatpush1.msra.mxu1 %v2195_v45  ;;  %v2162_v25 = vld [vmem:[#allocation13 + $0x3c8] sm:$0xff] }
 0x2b5   :  { %2218 = vmatpush1.msra.mxu0 %v2145_v12  ;;  %2304 = vmatprep.subr.mxu1 %v2194_v47  ;;  %v2161_v12 = vld [vmem:[#allocation13 + $0x3c0] sm:$0xff] }
 0x2b6   :  { %2219 = vmatprep.subr.mxu0 %v2144_v55  ;;  %2305 = vmatpush1.msra.mxu1 %v2193_v49  ;;  %v2190_v55 = vld [vmem:[#allocation13 + $0x4a8] sm:$0xff] }
 0x2b7   :  { %2220 = vmatpush1.msra.mxu0 %v2143_v14  ;;  %2306 = vmatprep.subr.mxu1 %v2192_v51  ;;  %v2160_v14 = vld [vmem:[#allocation13 + $0x3b8] sm:$0xff] }
 0x2b8   :  { %2221 = vmatprep.subr.mxu0 %v2142_v15  ;;  %2307 = vmatpush1.msra.mxu1 %v2191_v53  ;;  %v2189_v15 = vld [vmem:[#allocation13 + $0x4a0] sm:$0xff]  ;;  %v2029_v53 = vsub.s32 2, %v9697_v57 }
 0x2b9   :  { %2222 = vmatpush1.msra.mxu0 %v2141_v18  ;;  %2308 = vmatprep.subr.mxu1 %v2190_v55  ;;  %v2159_v18 = vld [vmem:[#allocation13 + $0x3b0] sm:$0xff] }
 0x2ba   :  { %2223 = vmatprep.subr.mxu0 %v2140_v21  ;;  %2309 = vmatpush1.msra.mxu1 %v2189_v15  ;;  %v2188_v21 = vld [vmem:[#allocation13 + $0x498] sm:$0xff] }
 0x2bb   :  { %2224 = vmatpush1.msra.mxu0 %v2139_v20  ;;  %2310 = vmatprep.subr.mxu1 %v2188_v21  ;;  %v2158_v20 = vld [vmem:[#allocation13 + $0x3a8] sm:$0xff] }
 0x2bc   :  { %2225 = vmatprep.subr.mxu0 %v2138_v22  ;;  %v2187_v22 = vld [vmem:[#allocation13 + $0x490] sm:$0xff] }
 0x2bd   :  { %2226 = vmatpush1.msra.mxu0 %v2137_v23  ;;  %2311 = vmatpush1.msra.mxu1 %v2187_v22  ;;  %v2157_v23 = vld [vmem:[#allocation13 + $0x3a0] sm:$0xff]  ;;  %v2118_v22 = vld [vmem:[#allocation13 + $0x270] sm:$0xff] }
 0x2be   :  { %2227 = vmatprep.subr.mxu0 %v2136_v24  ;;  %v2186_v24 = vld [vmem:[#allocation13 + $0x488] sm:$0xff] }
 0x2bf   :  { %2228 = vmatpush1.msra.mxu0 %v2135_v26  ;;  %2312 = vmatprep.subr.mxu1 %v2186_v24  ;;  %v2156_v26 = vld [vmem:[#allocation13 + $0x398] sm:$0xff]  ;;  %v2117_v24 = vld [vmem:[#allocation13 + $0x268] sm:$0xff] }
 0x2c0   :  { %2229 = vmatprep.subr.mxu0 %v2134_v27  ;;  %v2185_v27 = vld [vmem:[#allocation13 + $0x480] sm:$0xff] }
 0x2c1   :  { %2230 = vmatpush1.msra.mxu0 %v2133_v28  ;;  %2313 = vmatpush1.msra.mxu1 %v2185_v27  ;;  %v2155_v28 = vld [vmem:[#allocation13 + $0x390] sm:$0xff]  ;;  %v2116_v27 = vld [vmem:[#allocation13 + $0x260] sm:$0xff] }
 0x2c2   :  { %2231 = vmatprep.subr.mxu0 %v2132_v29  ;;  %v2071_v29 = vld [vmem:[#allocation13 + $0xf8] sm:$0xff] }
 0x2c3   :  { %2232 = vmatpush1.msra.mxu0 %v2131_v30  ;;  %2355 = vmatprep.subr.mxu1 %v2071_v29  ;;  %v2154_v30 = vld [vmem:[#allocation13 + $0x388] sm:$0xff]  ;;  %v2115_v29 = vld [vmem:[#allocation13 + $0x258] sm:$0xff] }
 0x2c4   :  { %2233 = vmatprep.subr.mxu0 %v2130_v31  ;;  %v2153_v31 = vld [vmem:[#allocation13 + $0x380] sm:$0xff] }
 0x2c5   :  { %2234 = vmatpush1.msra.mxu0 %v2129_v32  ;;  %v2119_v32 = vld [vmem:[#allocation13 + $0x278] sm:$0xff] }
 0x2c6   :  { %2235 = vmatprep.subr.mxu0 %v2128_v33 }
 0x2c7   :  { %2236 = vmatpush1.msra.mxu0 %v2127_v34 }
 0x2c8   :  { %2237 = vmatprep.subr.mxu0 %v2126_v36 }
 0x2c9   :  { %2238 = vmatpush1.msra.mxu0 %v2125_v39 }
 0x2ca   :  { %2239 = vmatprep.subr.mxu0 %v2124_v41 }
 0x2cb   :  { %2240 = vmatpush1.msra.mxu0 %v2123_v44 }
 0x2cc   :  { %2241 = vmatprep.subr.mxu0 %v2122_v46 }
 0x2cd   :  { %2242 = vmatpush1.msra.mxu0 %v2121_v48 }
 0x2ce   :  { %2243 = vmatprep.subr.mxu0 %v2184_v50 }
 0x2cf   :  { %2244 = vmatpush2.msra.mxu0 %v2183_v52 }
 0x2d0   :  { %2245 = vmatprep.subr.mxu0 %v2182_v54  ;;  %v2017_v54 = vld [vmem:[#allocation11] sm:$0x7] }
 0x2d1   :  { %2246 = vmatpush2.msra.mxu0 %v2181_v13 }
 0x2d2   :  { %2247 = vmatprep.subr.mxu0 %v2180_v56 }
 0x2d3   :  { %2248 = vmatpush2.msra.mxu0 %v2179_v58  ;;  %v9820_v58 = vrot.slane %v2017_v54, %v2029_v53  ;;  %v2104_v53 = vld [vmem:[#allocation13 + $0x200] sm:$0xff] }
 0x2d4   :  { %2249 = vmatprep.subr.mxu0 %v2178_v59 }
 0x2d5   :  { %2250 = vmatpush2.msra.mxu0 %v2177_v19  ;;  %v9823_v19 = vrot.slane %v2017_v54, %v9700_v60 }
 0x2d6   :  { %2251 = vmatprep.subr.mxu0 %v2176_v61 }
 0x2d7   :  { %2252 = vmatpush2.msra.mxu0 %v2175_v62 }
 0x2d8   :  { %2253 = vmatprep.subr.mxu0 %v2174_v63 }
 0x2d9   :  { %2254 = vmatpush2.msra.mxu0 %v2173_v16 }
 0x2da   :  { %2255 = vmatprep.subr.mxu0 %v2172_v17  ;;  %v9826_v17 = vrot.slane %v2017_v54, %v9703_v0  ;;  %v2052_v54 = vld [vmem:[#allocation13 + $0x60] sm:$0xff] }
 0x2db   :  { %2256 = vmatpush2.msra.mxu0 %v2171_v1 }
 0x2dc   :  { %2257 = vmatprep.subr.mxu0 %v2170_v2 }
 0x2dd   :  { %2258 = vmatpush2.msra.mxu0 %v2169_v3 }
 0x2de   :  { %2259 = vmatprep.subr.mxu0 %v2168_v4 }
 0x2df   :  { %2260 = vmatpush2.msra.mxu0 %v2167_v6 }
 0x2e0   :  { %2261 = vmatprep.subr.mxu0 %v2166_v7 }
 0x2e1   :  { %2262 = vmatpush2.msra.mxu0 %v2165_v8 }
 0x2e2   :  { %2263 = vmatprep.subr.mxu0 %v2164_v10 }
 0x2e3   :  { %2264 = vmatpush2.msra.mxu0 %v2163_v11 }
 0x2e4   :  { %2265 = vmatprep.subr.mxu0 %v2162_v25 }
 0x2e5   :  { %2266 = vmatpush2.msra.mxu0 %v2161_v12  ;;  %v2070_v12 = vld [vmem:[#allocation13 + $0xf0] sm:$0xff] }
 0x2e6   :  { %2267 = vmatprep.subr.mxu0 %v2160_v14  ;;  %v2069_v14 = vld [vmem:[#allocation13 + $0xe8] sm:$0xff] }
 0x2e7   :  { %2268 = vmatpush2.msra.mxu0 %v2159_v18  ;;  %v2068_v18 = vld [vmem:[#allocation13 + $0xe0] sm:$0xff] }
 0x2e8   :  { %2269 = vmatprep.subr.mxu0 %v2158_v20  ;;  %v2067_v20 = vld [vmem:[#allocation13 + $0xd8] sm:$0xff] }
 0x2e9   :  { %2270 = vmatpush2.msra.mxu0 %v2157_v23  ;;  %v2066_v23 = vld [vmem:[#allocation13 + $0xd0] sm:$0xff] }
 0x2ea   :  { %2271 = vmatprep.subr.mxu0 %v2156_v26  ;;  %v2065_v26 = vld [vmem:[#allocation13 + $0xc8] sm:$0xff] }
 0x2eb   :  { %2272 = vmatpush2.msra.mxu0 %v2155_v28  ;;  %v2064_v28 = vld [vmem:[#allocation13 + $0xc0] sm:$0xff] }
 0x2ec   :  { %2273 = vmatprep.subr.mxu0 %v2154_v30  ;;  %v2063_v30 = vld [vmem:[#allocation13 + $0xb8] sm:$0xff] }
 0x2ed   :  { %2274 = vmatpush2.msra.mxu0 %v2153_v31  ;;  %v2114_v31 = vld [vmem:[#allocation13 + $0x250] sm:$0xff] }
 0x2ee   :  { %2442 = vmatprep.subr.mxu0 %v2119_v32  ;;  %v2062_v32 = vld [vmem:[#allocation13 + $0xb0] sm:$0xff] }
 0x304   :  { %v1609_v33 = vpop.f32.mrf.mxu1  ;;  %v1532_v38 = vpop.f32.mrf.mxu0 }
 0x306   :  { %v1611_v34 = vpop.f32.mrf.mxu1  ;;  %v1534_v39 = vpop.f32.mrf.mxu0 }
 0x307   :  { %v2061_v34 = vld [vmem:[#allocation13 + $0xa8] sm:$0xff] }
 0x30a   :  { %v1614_v36 = vpop.f32.mrf.mxu1  ;;  %v1538_v40 = vpop.f32.mrf.mxu0 }
 0x30c   :  { %v1616_v37 = vpop.f32.mrf.mxu1  ;;  %v1540_v41 = vpop.f32.mrf.mxu0 }
 0x30d   :  { %v2060_v37 = vld [vmem:[#allocation13 + $0xa0] sm:$0xff] }
 0x337   :  { %v1688_v42 = vpop.f32.mrf.mxu0  ;;  %v1765_v43 = vpop.f32.mrf.mxu1 }
 0x338   :  { %v1689_v13 = vadd.f32 %v1688_v42, %v1532_v38  ;;  %v1766_v56 = vadd.f32 %v1765_v43, %v1609_v33  ;;  %v2113_v33 = vld [vmem:[#allocation13 + $0x248] sm:$0xff]  ;;  %v2111_v38 = vld [vmem:[#allocation13 + $0x238] sm:$0xff] }
 0x339   :  { %v1690_v44 = vpop.f32.mrf.mxu0  ;;  %v1767_v45 = vpop.f32.mrf.mxu1  ;;  %v2109_v42 = vld [vmem:[#allocation13 + $0x228] sm:$0xff] }
 0x33a   :  { %v1691_v62 = vadd.f32 %v1690_v44, %v1534_v39  ;;  %v2059_v39 = vld [vmem:[#allocation13 + $0x98] sm:$0xff]  ;;  %v2057_v43 = vld [vmem:[#allocation13 + $0x88] sm:$0xff]  ;;  %v2108_v44 = vld [vmem:[#allocation13 + $0x220] sm:$0xff] }
 0x33b   :  { %v2056_v45 = vld [vmem:[#allocation13 + $0x80] sm:$0xff] }
 0x33d   :  { %v1694_v46 = vpop.f32.mrf.mxu0  ;;  %v1770_v47 = vpop.f32.mrf.mxu1 }
 0x33e   :  { %v1695_v48 = vadd.f32 %v1694_v46, %v1538_v40  ;;  %v1771_v49 = vadd.f32 %v1770_v47, %v1614_v36  ;;  %v2112_v36 = vld [vmem:[#allocation13 + $0x240] sm:$0xff]  ;;  %v2110_v40 = vld [vmem:[#allocation13 + $0x230] sm:$0xff]  ;;  %v2107_v46 = vld [vmem:[#allocation13 + $0x218] sm:$0xff] }
 0x33f   :  { %v1696_v50 = vpop.f32.mrf.mxu0  ;;  %v1772_v51 = vpop.f32.mrf.mxu1  ;;  %v2055_v47 = vld [vmem:[#allocation13 + $0x78] sm:$0xff] }
 0x340   :  { %v9817_v52 = vadd.f32 %v1696_v50, %v1540_v41  ;;  %v2058_v41 = vld [vmem:[#allocation13 + $0x90] sm:$0xff]  ;;  %v2105_v50 = vld [vmem:[#allocation13 + $0x208] sm:$0xff] }
 0x341   :  { %v2053_v51 = vld [vmem:[#allocation13 + $0x68] sm:$0xff] }
 0x36b   :  { %v1925_v59 = vpop.f32.mrf.mxu0  ;;  %v2002_v61 = vpop.f32.mrf.mxu1 }
 0x36c   :  { %v2011_v63 = vadd.f32 %v1925_v59, %v1689_v13  ;;  %v2013_v16 = vadd.f32 %v2002_v61, %v1766_v56  ;;  %v2529_v13 = vld [vmem:[#allocation13 + $0x5f8] sm:$0xff]  ;;  %v2528_v59 = vld [vmem:[#allocation13 + $0x5f0] sm:$0xff] }
 0x36d   :  { %v1927_v1 = vpop.f32.mrf.mxu0  ;;  %v2004_v2 = vpop.f32.mrf.mxu1  ;;  %v2051_v56 = vld [vmem:[#allocation13 + $0x58] sm:$0xff]  ;;  %v2050_v61 = vld [vmem:[#allocation13 + $0x50] sm:$0xff] }
 0x36e   :  { %v9829_v57 = vadd.f32 %v9820_v58, %v2013_v16  ;;  %v2012_v3 = vadd.f32 %v1927_v1, %v1691_v62  ;;  %v9832_v4 = vadd.f32 %v9823_v19, %v2011_v63  ;;  %v2527_v63 = vld [vmem:[#allocation13 + $0x5e8] sm:$0xff]  ;;  %v2526_v1 = vld [vmem:[#allocation13 + $0x5e0] sm:$0xff] }
 0x36f   :  { %v1931_v6 = vpop.f32.mrf.mxu0  ;;  %v2007_v7 = vpop.f32.mrf.mxu1  ;;  %v2049_v16 = vld [vmem:[#allocation13 + $0x48] sm:$0xff]  ;;  %v2048_v2 = vld [vmem:[#allocation13 + $0x40] sm:$0xff] }
 0x370   :  { %v9835_v8 = vadd.f32 %v9826_v17, %v2012_v3  ;;  %v9837_v10 = vadd.f32 %v1931_v6, %v1695_v48  ;;  %v9839_v11 = vadd.f32 %v2007_v7, %v1771_v49  ;;  %v2206_v25 = vrot.slane %v9829_v57, 1  ;;  %v2106_v48 = vld [vmem:[#allocation13 + $0x210] sm:$0xff]  ;;  %v2525_v3 = vld [vmem:[#allocation13 + $0x5d8] sm:$0xff] }
 0x371   :  { %v2009_v55 = vpop.f32.mrf.mxu1  ;;  %v2204_v21 = vrot.slane %v9832_v4, 1  ;;  %v2054_v49 = vld [vmem:[#allocation13 + $0x70] sm:$0xff]  ;;  %v2047_v6 = vld [vmem:[#allocation13 + $0x38] sm:$0xff] }
 0x372   :  { %7624 = vmatmul.mubr.msk.f32.vlgmr.msra.gmra.mxu1 %vm1461_vm4, %v2206_v25  ;;  %v2205_v15 = vrot.slane %v9835_v8, 1  ;;  %v2579_v62 = vrot.slane %v9835_v8, 2  ;;  %v2524_v7 = vld [vmem:[#allocation13 + $0x5d0] sm:$0xff]  ;;  %v2045_v55 = vld [vmem:[#allocation13 + $0x28] sm:$0xff] }
 0x373   :  { %2356 = vmatpush1.msra.mxu1 %v2070_v12  ;;  %2419 = vmatprep.mubr.f32.mxu1 %v9835_v8  ;;  %v2046_v25 = vld [vmem:[#allocation13 + $0x30] sm:$0xff]  ;;  %v2523_v12 = vld [vmem:[#allocation13 + $0x5c8] sm:$0xff] }
 0x374   :  { %2357 = vmatprep.subr.mxu1 %v2069_v14  ;;  %2275 = vmatprep.mubr.f32.mxu0 %v2205_v15  ;;  %v2522_v14 = vld [vmem:[#allocation13 + $0x5c0] sm:$0xff] }
 0x375   :  { %2358 = vmatpush1.msra.mxu1 %v2068_v18  ;;  %2276 = vmatmul.mubr.f32.vlgmr.msra.gmra.mxu0 %v2204_v21  ;;  %v2044_v15 = vld [vmem:[#allocation13 + $0x20] sm:$0xff]  ;;  %v2521_v18 = vld [vmem:[#allocation13 + $0x5b8] sm:$0xff] }
 0x376   :  { %2359 = vmatprep.subr.mxu1 %v2067_v20  ;;  %2443 = vmatpush1.msra.mxu0 %v2118_v22  ;;  %v2043_v21 = vld [vmem:[#allocation13 + $0x18] sm:$0xff]  ;;  %v2520_v20 = vld [vmem:[#allocation13 + $0x5b0] sm:$0xff] }
 0x377   :  { %2360 = vmatpush1.msra.mxu1 %v2066_v23  ;;  %2444 = vmatprep.subr.mxu0 %v2117_v24  ;;  %v2042_v22 = vld [vmem:[#allocation13 + $0x10] sm:$0xff]  ;;  %v2519_v23 = vld [vmem:[#allocation13 + $0x5a8] sm:$0xff] }
 0x378   :  { %2361 = vmatprep.subr.mxu1 %v2065_v26  ;;  %2445 = vmatpush1.msra.mxu0 %v2116_v27  ;;  %v2041_v24 = vld [vmem:[#allocation13 + $0x8] sm:$0xff]  ;;  %v2518_v26 = vld [vmem:[#allocation13 + $0x5a0] sm:$0xff] }
 0x379   :  { %2362 = vmatpush1.msra.mxu1 %v2064_v28  ;;  %2446 = vmatprep.subr.mxu0 %v2115_v29  ;;  %v2040_v27 = vld [vmem:[#allocation13] sm:$0xff]  ;;  %v2517_v28 = vld [vmem:[#allocation13 + $0x598] sm:$0xff] }
 0x37a   :  { %2363 = vmatprep.subr.mxu1 %v2063_v30  ;;  %2447 = vmatpush1.msra.mxu0 %v2114_v31  ;;  %v2103_v29 = vld [vmem:[#allocation13 + $0x1f8] sm:$0xff]  ;;  %v2516_v30 = vld [vmem:[#allocation13 + $0x590] sm:$0xff] }
 0x37b   :  { %2364 = vmatpush1.msra.mxu1 %v2062_v32  ;;  %2448 = vmatprep.subr.mxu0 %v2113_v33  ;;  %v2102_v31 = vld [vmem:[#allocation13 + $0x1f0] sm:$0xff]  ;;  %v2515_v32 = vld [vmem:[#allocation13 + $0x588] sm:$0xff] }
 0x37c   :  { %2365 = vmatprep.subr.mxu1 %v2061_v34  ;;  %2449 = vmatpush1.msra.mxu0 %v2112_v36  ;;  %v2101_v33 = vld [vmem:[#allocation13 + $0x1e8] sm:$0xff]  ;;  %v2514_v34 = vld [vmem:[#allocation13 + $0x580] sm:$0xff] }
 0x37d   :  { %2366 = vmatpush1.msra.mxu1 %v2060_v37  ;;  %2450 = vmatprep.subr.mxu0 %v2111_v38  ;;  %v2100_v36 = vld [vmem:[#allocation13 + $0x1e0] sm:$0xff]  ;;  %v2513_v37 = vld [vmem:[#allocation13 + $0x578] sm:$0xff] }
 0x37e   :  { %2367 = vmatprep.subr.mxu1 %v2059_v39  ;;  %2451 = vmatpush1.msra.mxu0 %v2110_v40  ;;  %v2099_v38 = vld [vmem:[#allocation13 + $0x1d8] sm:$0xff]  ;;  %v2512_v39 = vld [vmem:[#allocation13 + $0x570] sm:$0xff] }
 0x37f   :  { %2368 = vmatpush1.msra.mxu1 %v2058_v41  ;;  %2452 = vmatprep.subr.mxu0 %v2109_v42  ;;  %v2098_v40 = vld [vmem:[#allocation13 + $0x1d0] sm:$0xff]  ;;  %v2511_v41 = vld [vmem:[#allocation13 + $0x568] sm:$0xff] }
 0x380   :  { %2369 = vmatprep.subr.mxu1 %v2057_v43  ;;  %2453 = vmatpush1.msra.mxu0 %v2108_v44  ;;  %v2097_v42 = vld [vmem:[#allocation13 + $0x1c8] sm:$0xff]  ;;  %v2510_v43 = vld [vmem:[#allocation13 + $0x560] sm:$0xff] }
 0x381   :  { %2370 = vmatpush1.msra.mxu1 %v2056_v45  ;;  %2454 = vmatprep.subr.mxu0 %v2107_v46  ;;  %v2096_v44 = vld [vmem:[#allocation13 + $0x1c0] sm:$0xff]  ;;  %v2509_v45 = vld [vmem:[#allocation13 + $0x558] sm:$0xff] }
 0x382   :  { %2371 = vmatprep.subr.mxu1 %v2055_v47  ;;  %2455 = vmatpush1.msra.mxu0 %v2106_v48  ;;  %v2095_v46 = vld [vmem:[#allocation13 + $0x1b8] sm:$0xff]  ;;  %v2508_v47 = vld [vmem:[#allocation13 + $0x550] sm:$0xff] }
 0x383   :  { %2372 = vmatpush1.msra.mxu1 %v2054_v49  ;;  %2456 = vmatprep.subr.mxu0 %v2105_v50  ;;  %v2094_v48 = vld [vmem:[#allocation13 + $0x1b0] sm:$0xff]  ;;  %v2507_v49 = vld [vmem:[#allocation13 + $0x548] sm:$0xff] }
 0x384   :  { %2373 = vmatprep.subr.mxu1 %v2053_v51  ;;  %2457 = vmatpush1.msra.mxu0 %v2104_v53  ;;  %v2093_v50 = vld [vmem:[#allocation13 + $0x1a8] sm:$0xff]  ;;  %v2506_v51 = vld [vmem:[#allocation13 + $0x540] sm:$0xff] }
 0x385   :  { %2490 = vmatprep.mubr.f32.mxu0 %v9277_v35  ;;  %2374 = vmatpush1.msra.mxu1 %v2052_v54  ;;  %v2092_v53 = vld [vmem:[#allocation13 + $0x1a0] sm:$0xff]  ;;  %v2505_v54 = vld [vmem:[#allocation13 + $0x538] sm:$0xff] }
 0x386   :  { %7625 = vmatmul.mubr.msk.f32.vlgmr.msra.gmra.mxu0 %vm1461_vm4, %v9829_v57  ;;  %2585 = vmatprep.subr.mxu0 %v2529_v13  ;;  %v2091_v13 = vld [vmem:[#allocation13 + $0x198] sm:$0xff] }
 0x387   :  { %2375 = vmatprep.subr.mxu1 %v2051_v56  ;;  %2586 = vmatpush1.msra.mxu0 %v2528_v59  ;;  %v2504_v56 = vld [vmem:[#allocation13 + $0x530] sm:$0xff] }
 0x388   :  { %2649 = vmatprep.mubr.f32.mxu0 %v2579_v62  ;;  %2376 = vmatpush1.msra.mxu1 %v2050_v61  ;;  %v2090_v59 = vld [vmem:[#allocation13 + $0x190] sm:$0xff]  ;;  %v2503_v61 = vld [vmem:[#allocation13 + $0x528] sm:$0xff] }
 0x389   :  { %2587 = vmatprep.subr.mxu0 %v2527_v63  ;;  %2377 = vmatprep.subr.mxu1 %v2049_v16  ;;  %v2089_v62 = vld [vmem:[#allocation13 + $0x188] sm:$0xff]  ;;  %v2502_v63 = vld [vmem:[#allocation13 + $0x520] sm:$0xff] }
 0x38a   :  { %2588 = vmatpush1.msra.mxu0 %v2526_v1  ;;  %2378 = vmatpush1.msra.mxu1 %v2048_v2  ;;  %v2088_v16 = vld [vmem:[#allocation13 + $0x180] sm:$0xff]  ;;  %v2501_v1 = vld [vmem:[#allocation13 + $0x518] sm:$0xff] }
 0x38b   :  { %2589 = vmatprep.subr.mxu0 %v2525_v3  ;;  %2379 = vmatprep.subr.mxu1 %v2047_v6  ;;  %v2087_v2 = vld [vmem:[#allocation13 + $0x178] sm:$0xff]  ;;  %v2500_v3 = vld [vmem:[#allocation13 + $0x510] sm:$0xff] }
 0x38c   :  { %2590 = vmatpush1.msra.mxu0 %v2524_v7  ;;  %2380 = vmatpush1.msra.mxu1 %v2046_v25  ;;  %v2086_v6 = vld [vmem:[#allocation13 + $0x170] sm:$0xff]  ;;  %v2499_v7 = vld [vmem:[#allocation13 + $0x508] sm:$0xff] }
 0x38d   :  { %2591 = vmatprep.subr.mxu0 %v2523_v12  ;;  %2381 = vmatprep.subr.mxu1 %v2045_v55  ;;  %v2085_v25 = vld [vmem:[#allocation13 + $0x168] sm:$0xff]  ;;  %v2498_v12 = vld [vmem:[#allocation13 + $0x500] sm:$0xff] }
 0x38e   :  { %2592 = vmatpush1.msra.mxu0 %v2522_v14  ;;  %2382 = vmatpush1.msra.mxu1 %v2044_v15  ;;  %v2084_v55 = vld [vmem:[#allocation13 + $0x160] sm:$0xff]  ;;  %v2561_v14 = vld [vmem:[#allocation13 + $0x6f8] sm:$0xff] }
 0x38f   :  { %2593 = vmatprep.subr.mxu0 %v2521_v18  ;;  %2383 = vmatprep.subr.mxu1 %v2043_v21  ;;  %v2083_v15 = vld [vmem:[#allocation13 + $0x158] sm:$0xff]  ;;  %v2560_v18 = vld [vmem:[#allocation13 + $0x6f0] sm:$0xff] }
 0x390   :  { %2594 = vmatpush1.msra.mxu0 %v2520_v20  ;;  %2384 = vmatpush1.msra.mxu1 %v2042_v22  ;;  %v2082_v21 = vld [vmem:[#allocation13 + $0x150] sm:$0xff]  ;;  %v2559_v20 = vld [vmem:[#allocation13 + $0x6e8] sm:$0xff] }
 0x391   :  { %2595 = vmatprep.subr.mxu0 %v2519_v23  ;;  %2385 = vmatprep.subr.mxu1 %v2041_v24  ;;  %v2081_v22 = vld [vmem:[#allocation13 + $0x148] sm:$0xff]  ;;  %v2558_v23 = vld [vmem:[#allocation13 + $0x6e0] sm:$0xff] }
 0x392   :  { %2596 = vmatpush1.msra.mxu0 %v2518_v26  ;;  %2386 = vmatpush1.msra.mxu1 %v2040_v27  ;;  %v2080_v24 = vld [vmem:[#allocation13 + $0x140] sm:$0xff]  ;;  %v2557_v26 = vld [vmem:[#allocation13 + $0x6d8] sm:$0xff] }
 0x393   :  { %2597 = vmatprep.subr.mxu0 %v2517_v28  ;;  %2387 = vmatprep.subr.mxu1 %v2103_v29  ;;  %v2079_v27 = vld [vmem:[#allocation13 + $0x138] sm:$0xff]  ;;  %v2556_v28 = vld [vmem:[#allocation13 + $0x6d0] sm:$0xff] }
 0x394   :  { %2598 = vmatpush1.msra.mxu0 %v2516_v30  ;;  %2388 = vmatpush2.msra.mxu1 %v2102_v31  ;;  %v2078_v29 = vld [vmem:[#allocation13 + $0x130] sm:$0xff]  ;;  %v2555_v30 = vld [vmem:[#allocation13 + $0x6c8] sm:$0xff] }
 0x395   :  { %2599 = vmatprep.subr.mxu0 %v2515_v32  ;;  %2389 = vmatprep.subr.mxu1 %v2101_v33  ;;  %v2077_v31 = vld [vmem:[#allocation13 + $0x128] sm:$0xff]  ;;  %v2554_v32 = vld [vmem:[#allocation13 + $0x6c0] sm:$0xff] }
 0x396   :  { %2600 = vmatpush1.msra.mxu0 %v2514_v34  ;;  %2390 = vmatpush2.msra.mxu1 %v2100_v36  ;;  %v2076_v33 = vld [vmem:[#allocation13 + $0x120] sm:$0xff]  ;;  %v2553_v34 = vld [vmem:[#allocation13 + $0x6b8] sm:$0xff] }
 0x397   :  { %2601 = vmatprep.subr.mxu0 %v2513_v37  ;;  %2391 = vmatprep.subr.mxu1 %v2099_v38  ;;  %v2075_v36 = vld [vmem:[#allocation13 + $0x118] sm:$0xff]  ;;  %v2552_v37 = vld [vmem:[#allocation13 + $0x6b0] sm:$0xff] }
 0x398   :  { %2602 = vmatpush1.msra.mxu0 %v2512_v39  ;;  %2392 = vmatpush2.msra.mxu1 %v2098_v40  ;;  %v2074_v38 = vld [vmem:[#allocation13 + $0x110] sm:$0xff]  ;;  %v2551_v39 = vld [vmem:[#allocation13 + $0x6a8] sm:$0xff] }
 0x399   :  { %2603 = vmatprep.subr.mxu0 %v2511_v41  ;;  %2393 = vmatprep.subr.mxu1 %v2097_v42  ;;  %v2073_v40 = vld [vmem:[#allocation13 + $0x108] sm:$0xff]  ;;  %v2550_v41 = vld [vmem:[#allocation13 + $0x6a0] sm:$0xff] }
 0x39a   :  { %2604 = vmatpush1.msra.mxu0 %v2510_v43  ;;  %2394 = vmatpush2.msra.mxu1 %v2096_v44  ;;  %v2072_v42 = vld [vmem:[#allocation13 + $0x100] sm:$0xff]  ;;  %v2549_v43 = vld [vmem:[#allocation13 + $0x698] sm:$0xff]  ;;  %v2548_v44 = vld [vmem:[#allocation13 + $0x690] sm:$0xff] }
 0x39b   :  { %2605 = vmatprep.subr.mxu0 %v2509_v45  ;;  %2395 = vmatprep.subr.mxu1 %v2095_v46  ;;  %v2577_v45 = vld [vmem:[#allocation13 + $0x778] sm:$0xff]  ;;  %v2547_v46 = vld [vmem:[#allocation13 + $0x688] sm:$0xff] }
 0x39c   :  { %2606 = vmatpush1.msra.mxu0 %v2508_v47  ;;  %2396 = vmatpush2.msra.mxu1 %v2094_v48  ;;  %v2576_v47 = vld [vmem:[#allocation13 + $0x770] sm:$0xff]  ;;  %v2546_v48 = vld [vmem:[#allocation13 + $0x680] sm:$0xff] }
 0x39d   :  { %2607 = vmatprep.subr.mxu0 %v2507_v49  ;;  %2397 = vmatprep.subr.mxu1 %v2093_v50  ;;  %v2575_v49 = vld [vmem:[#allocation13 + $0x768] sm:$0xff]  ;;  %v2545_v50 = vld [vmem:[#allocation13 + $0x678] sm:$0xff] }
 0x39e   :  { %2608 = vmatpush1.msra.mxu0 %v2506_v51  ;;  %2398 = vmatpush2.msra.mxu1 %v2092_v53  ;;  %v2574_v51 = vld [vmem:[#allocation13 + $0x760] sm:$0xff]  ;;  %v2544_v53 = vld [vmem:[#allocation13 + $0x670] sm:$0xff] }
 0x39f   :  { %2609 = vmatprep.subr.mxu0 %v2505_v54  ;;  %2399 = vmatprep.subr.mxu1 %v2091_v13  ;;  %v2573_v54 = vld [vmem:[#allocation13 + $0x758] sm:$0xff]  ;;  %v2543_v13 = vld [vmem:[#allocation13 + $0x668] sm:$0xff] }
 0x3a0   :  { %2610 = vmatpush1.msra.mxu0 %v2504_v56  ;;  %2400 = vmatpush2.msra.mxu1 %v2090_v59  ;;  %v2572_v56 = vld [vmem:[#allocation13 + $0x750] sm:$0xff]  ;;  %v2542_v59 = vld [vmem:[#allocation13 + $0x660] sm:$0xff] }
 0x3a1   :  { %2611 = vmatprep.subr.mxu0 %v2503_v61  ;;  %2401 = vmatprep.subr.mxu1 %v2089_v62  ;;  %v2571_v61 = vld [vmem:[#allocation13 + $0x748] sm:$0xff]  ;;  %v2541_v62 = vld [vmem:[#allocation13 + $0x658] sm:$0xff] }
 0x3a2   :  { %2612 = vmatpush1.msra.mxu0 %v2502_v63  ;;  %2402 = vmatpush2.msra.mxu1 %v2088_v16  ;;  %v2570_v63 = vld [vmem:[#allocation13 + $0x740] sm:$0xff]  ;;  %v2540_v16 = vld [vmem:[#allocation13 + $0x650] sm:$0xff] }
 0x3a3   :  { %2613 = vmatprep.subr.mxu0 %v2501_v1  ;;  %2403 = vmatprep.subr.mxu1 %v2087_v2  ;;  %v2569_v1 = vld [vmem:[#allocation13 + $0x738] sm:$0xff]  ;;  %v2539_v2 = vld [vmem:[#allocation13 + $0x648] sm:$0xff] }
 0x3a4   :  { %2614 = vmatpush1.msra.mxu0 %v2500_v3  ;;  %2404 = vmatpush2.msra.mxu1 %v2086_v6  ;;  %v2568_v3 = vld [vmem:[#allocation13 + $0x730] sm:$0xff]  ;;  %v2538_v6 = vld [vmem:[#allocation13 + $0x640] sm:$0xff] }
 0x3a5   :  { %2615 = vmatprep.subr.mxu0 %v2499_v7  ;;  %2405 = vmatprep.subr.mxu1 %v2085_v25  ;;  %v2567_v7 = vld [vmem:[#allocation13 + $0x728] sm:$0xff]  ;;  %v2537_v25 = vld [vmem:[#allocation13 + $0x638] sm:$0xff] }
 0x3a6   :  { %2616 = vmatpush1.msra.mxu0 %v2498_v12  ;;  %2406 = vmatpush2.msra.mxu1 %v2084_v55  ;;  %v2566_v12 = vld [vmem:[#allocation13 + $0x720] sm:$0xff]  ;;  %v2536_v55 = vld [vmem:[#allocation13 + $0x630] sm:$0xff] }
 0x3a7   :  { %2617 = vmatprep.subr.mxu0 %v2561_v14  ;;  %2407 = vmatprep.subr.mxu1 %v2083_v15  ;;  %v2565_v14 = vld [vmem:[#allocation13 + $0x718] sm:$0xff]  ;;  %v2535_v15 = vld [vmem:[#allocation13 + $0x628] sm:$0xff] }
 0x3a8   :  { %2618 = vmatpush2.msra.mxu0 %v2560_v18  ;;  %2408 = vmatpush2.msra.mxu1 %v2082_v21  ;;  %v2564_v18 = vld [vmem:[#allocation13 + $0x710] sm:$0xff]  ;;  %v2534_v21 = vld [vmem:[#allocation13 + $0x620] sm:$0xff] }
 0x3a9   :  { %2619 = vmatprep.subr.mxu0 %v2559_v20  ;;  %2409 = vmatprep.subr.mxu1 %v2081_v22  ;;  %v2563_v20 = vld [vmem:[#allocation13 + $0x708] sm:$0xff]  ;;  %v2533_v22 = vld [vmem:[#allocation13 + $0x618] sm:$0xff] }
 0x3aa   :  { %2620 = vmatpush2.msra.mxu0 %v2558_v23  ;;  %2410 = vmatpush2.msra.mxu1 %v2080_v24  ;;  %v2562_v23 = vld [vmem:[#allocation13 + $0x700] sm:$0xff]  ;;  %v2532_v24 = vld [vmem:[#allocation13 + $0x610] sm:$0xff] }
 0x3ab   :  { %2621 = vmatprep.subr.mxu0 %v2557_v26  ;;  %2411 = vmatprep.subr.mxu1 %v2079_v27  ;;  %v2761_v26 = vld [vmem:[#allocation13 + $0x878] sm:$0xff]  ;;  %v2580_v27 = vrot.slane %v9829_v57, 2 }
 0x3ac   :  { %2622 = vmatpush2.msra.mxu0 %v2556_v28  ;;  %2412 = vmatpush2.msra.mxu1 %v2078_v29  ;;  %v2531_v28 = vld [vmem:[#allocation13 + $0x608] sm:$0xff]  ;;  %v2760_v29 = vld [vmem:[#allocation13 + $0x870] sm:$0xff] }
 0x3ad   :  { %2623 = vmatprep.subr.mxu0 %v2555_v30  ;;  %2413 = vmatprep.subr.mxu1 %v2077_v31  ;;  %v2530_v30 = vld [vmem:[#allocation13 + $0x600] sm:$0xff]  ;;  %v2811_v31 = vrot.slane %v9835_v8, 3 }
 0x3ae   :  { %2624 = vmatpush2.msra.mxu0 %v2554_v32  ;;  %2414 = vmatpush2.msra.mxu1 %v2076_v33  ;;  %v2759_v32 = vld [vmem:[#allocation13 + $0x868] sm:$0xff]  ;;  %v2578_v33 = vrot.slane %v9832_v4, 2 }
 0x3af   :  { %2625 = vmatprep.subr.mxu0 %v2553_v34  ;;  %2415 = vmatprep.subr.mxu1 %v2075_v36  ;;  %v2758_v34 = vld [vmem:[#allocation13 + $0x860] sm:$0xff]  ;;  %v2809_v36 = vld [vmem:[#allocation13 + $0x9f8] sm:$0xff] }
 0x3b0   :  { %2626 = vmatpush2.msra.mxu0 %v2552_v37  ;;  %2416 = vmatpush2.msra.mxu1 %v2074_v38  ;;  %v2757_v37 = vld [vmem:[#allocation13 + $0x858] sm:$0xff]  ;;  %v2808_v38 = vld [vmem:[#allocation13 + $0x9f0] sm:$0xff] }
 0x3b1   :  { %2627 = vmatprep.subr.mxu0 %v2551_v39  ;;  %2417 = vmatprep.subr.mxu1 %v2073_v40  ;;  %v2756_v39 = vld [vmem:[#allocation13 + $0x850] sm:$0xff]  ;;  %v2807_v40 = vld [vmem:[#allocation13 + $0x9e8] sm:$0xff] }
 0x3b2   :  { %2628 = vmatpush2.msra.mxu0 %v2550_v41  ;;  %2418 = vmatpush2.msra.mxu1 %v2072_v42  ;;  %v2755_v41 = vld [vmem:[#allocation13 + $0x848] sm:$0xff]  ;;  %v2806_v42 = vld [vmem:[#allocation13 + $0x9e0] sm:$0xff] }
 0x3b3   :  { %2629 = vmatprep.subr.mxu0 %v2549_v43  ;;  %2420 = vmatmul.mubr.f32.vlgmr.msra.gmra.mxu1 %v9832_v4  ;;  %v2754_v43 = vld [vmem:[#allocation13 + $0x840] sm:$0xff] }
 0x3b4   :  { %2630 = vmatpush2.msra.mxu0 %v2548_v44  ;;  %2672 = vmatprep.subr.mxu1 %v2577_v45  ;;  %v2805_v44 = vld [vmem:[#allocation13 + $0x9d8] sm:$0xff] }
 0x3b5   :  { %2631 = vmatprep.subr.mxu0 %v2547_v46  ;;  %2673 = vmatpush1.msra.mxu1 %v2576_v47  ;;  %v2753_v45 = vld [vmem:[#allocation13 + $0x838] sm:$0xff]  ;;  %v2804_v46 = vld [vmem:[#allocation13 + $0x9d0] sm:$0xff] }
 0x3b6   :  { %2632 = vmatpush2.msra.mxu0 %v2546_v48  ;;  %2674 = vmatprep.subr.mxu1 %v2575_v49  ;;  %v2752_v47 = vld [vmem:[#allocation13 + $0x830] sm:$0xff]  ;;  %v2803_v48 = vld [vmem:[#allocation13 + $0x9c8] sm:$0xff] }
 0x3b7   :  { %2633 = vmatprep.subr.mxu0 %v2545_v50  ;;  %2675 = vmatpush1.msra.mxu1 %v2574_v51  ;;  %v2751_v49 = vld [vmem:[#allocation13 + $0x828] sm:$0xff]  ;;  %v2802_v50 = vld [vmem:[#allocation13 + $0x9c0] sm:$0xff] }
 0x3b8   :  { %2634 = vmatpush2.msra.mxu0 %v2544_v53  ;;  %2676 = vmatprep.subr.mxu1 %v2573_v54  ;;  %v2750_v51 = vld [vmem:[#allocation13 + $0x820] sm:$0xff]  ;;  %v2801_v53 = vld [vmem:[#allocation13 + $0x9b8] sm:$0xff] }
 0x3b9   :  { %2635 = vmatprep.subr.mxu0 %v2543_v13  ;;  %2677 = vmatpush1.msra.mxu1 %v2572_v56  ;;  %v2749_v54 = vld [vmem:[#allocation13 + $0x818] sm:$0xff]  ;;  %v2800_v13 = vld [vmem:[#allocation13 + $0x9b0] sm:$0xff] }
 0x3ba   :  { %2636 = vmatpush2.msra.mxu0 %v2542_v59  ;;  %2678 = vmatprep.subr.mxu1 %v2571_v61  ;;  %v2748_v56 = vld [vmem:[#allocation13 + $0x810] sm:$0xff]  ;;  %v2799_v59 = vld [vmem:[#allocation13 + $0x9a8] sm:$0xff] }
 0x3bb   :  { %2637 = vmatprep.subr.mxu0 %v2541_v62  ;;  %2679 = vmatpush1.msra.mxu1 %v2570_v63  ;;  %v2747_v61 = vld [vmem:[#allocation13 + $0x808] sm:$0xff]  ;;  %v2798_v62 = vld [vmem:[#allocation13 + $0x9a0] sm:$0xff] }
 0x3bc   :  { %2638 = vmatpush2.msra.mxu0 %v2540_v16  ;;  %2680 = vmatprep.subr.mxu1 %v2569_v1  ;;  %v2746_v63 = vld [vmem:[#allocation13 + $0x800] sm:$0xff]  ;;  %v2797_v16 = vld [vmem:[#allocation13 + $0x998] sm:$0xff] }
 0x3bd   :  { %2639 = vmatprep.subr.mxu0 %v2539_v2  ;;  %2681 = vmatpush1.msra.mxu1 %v2568_v3  ;;  %v2745_v1 = vld [vmem:[#allocation13 + $0x7f8] sm:$0xff]  ;;  %v2796_v2 = vld [vmem:[#allocation13 + $0x990] sm:$0xff] }
 0x3be   :  { %2640 = vmatpush2.msra.mxu0 %v2538_v6  ;;  %2682 = vmatprep.subr.mxu1 %v2567_v7  ;;  %v2744_v3 = vld [vmem:[#allocation13 + $0x7f0] sm:$0xff]  ;;  %v2795_v6 = vld [vmem:[#allocation13 + $0x988] sm:$0xff] }
 0x3bf   :  { %2641 = vmatprep.subr.mxu0 %v2537_v25  ;;  %2683 = vmatpush1.msra.mxu1 %v2566_v12  ;;  %v2743_v7 = vld [vmem:[#allocation13 + $0x7e8] sm:$0xff]  ;;  %v2794_v25 = vld [vmem:[#allocation13 + $0x980] sm:$0xff] }
 0x3c0   :  { %2642 = vmatpush2.msra.mxu0 %v2536_v55  ;;  %2684 = vmatprep.subr.mxu1 %v2565_v14  ;;  %v2742_v12 = vld [vmem:[#allocation13 + $0x7e0] sm:$0xff]  ;;  %v2993_v55 = vld [vmem:[#allocation13 + $0xaf8] sm:$0xff]  ;;  %v2812_v14 = vrot.slane %v9829_v57, 3 }
 0x3c1   :  { %2643 = vmatprep.subr.mxu0 %v2535_v15  ;;  %2685 = vmatpush1.msra.mxu1 %v2564_v18  ;;  %v2741_v15 = vld [vmem:[#allocation13 + $0x7d8] sm:$0xff]  ;;  %v2992_v18 = vld [vmem:[#allocation13 + $0xaf0] sm:$0xff] }
 0x3c2   :  { %2644 = vmatpush2.msra.mxu0 %v2534_v21  ;;  %2686 = vmatprep.subr.mxu1 %v2563_v20  ;;  %v2740_v21 = vld [vmem:[#allocation13 + $0x7d0] sm:$0xff]  ;;  %v3043_v20 = vrot.slane %v9835_v8, 4 }
 0x3c3   :  { %2645 = vmatprep.subr.mxu0 %v2533_v22  ;;  %2687 = vmatpush1.msra.mxu1 %v2562_v23  ;;  %v2991_v22 = vld [vmem:[#allocation13 + $0xae8] sm:$0xff] }
 0x3c4   :  { %2720 = vmatprep.mubr.f32.mxu1 %v9277_v35  ;;  %2646 = vmatpush2.msra.mxu0 %v2532_v24  ;;  %v2739_v23 = vld [vmem:[#allocation13 + $0x7c8] sm:$0xff]  ;;  %v2990_v24 = vld [vmem:[#allocation13 + $0xae0] sm:$0xff] }
 0x3c5   :  { %7626 = vmatmul.mubr.msk.f32.vlgmr.msra.gmra.mxu1 %vm1461_vm4, %v2580_v27  ;;  %2817 = vmatprep.subr.mxu1 %v2761_v26  ;;  %v2738_v26 = vld [vmem:[#allocation13 + $0x7c0] sm:$0xff]  ;;  %v2989_v27 = vld [vmem:[#allocation13 + $0xad8] sm:$0xff] }
 0x3c6   :  { %2647 = vmatprep.subr.mxu0 %v2531_v28  ;;  %2818 = vmatpush1.msra.mxu1 %v2760_v29  ;;  %v2737_v28 = vld [vmem:[#allocation13 + $0x7b8] sm:$0xff]  ;;  %v2988_v29 = vld [vmem:[#allocation13 + $0xad0] sm:$0xff] }
 0x3c7   :  { %2881 = vmatprep.mubr.f32.mxu1 %v2811_v31  ;;  %2648 = vmatpush2.msra.mxu0 %v2530_v30  ;;  %v2736_v30 = vld [vmem:[#allocation13 + $0x7b0] sm:$0xff]  ;;  %v2987_v31 = vld [vmem:[#allocation13 + $0xac8] sm:$0xff] }
 0x3c8   :  { %2819 = vmatprep.subr.mxu1 %v2759_v32  ;;  %2650 = vmatmul.mubr.f32.vlgmr.msra.gmra.mxu0 %v2578_v33  ;;  %v2735_v32 = vld [vmem:[#allocation13 + $0x7a8] sm:$0xff]  ;;  %v2986_v33 = vld [vmem:[#allocation13 + $0xac0] sm:$0xff] }
 0x3c9   :  { %2820 = vmatpush1.msra.mxu1 %v2758_v34  ;;  %2904 = vmatprep.subr.mxu0 %v2809_v36  ;;  %v2734_v34 = vld [vmem:[#allocation13 + $0x7a0] sm:$0xff]  ;;  %v2985_v36 = vld [vmem:[#allocation13 + $0xab8] sm:$0xff] }
 0x3ca   :  { %2821 = vmatprep.subr.mxu1 %v2757_v37  ;;  %2905 = vmatpush1.msra.mxu0 %v2808_v38  ;;  %v2733_v37 = vld [vmem:[#allocation13 + $0x798] sm:$0xff]  ;;  %v2984_v38 = vld [vmem:[#allocation13 + $0xab0] sm:$0xff] }
 0x3cb   :  { %2822 = vmatpush1.msra.mxu1 %v2756_v39  ;;  %2906 = vmatprep.subr.mxu0 %v2807_v40  ;;  %v2732_v39 = vld [vmem:[#allocation13 + $0x790] sm:$0xff]  ;;  %v2983_v40 = vld [vmem:[#allocation13 + $0xaa8] sm:$0xff] }
 0x3cc   :  { %2823 = vmatprep.subr.mxu1 %v2755_v41  ;;  %2907 = vmatpush1.msra.mxu0 %v2806_v42  ;;  %v2731_v41 = vld [vmem:[#allocation13 + $0x788] sm:$0xff]  ;;  %v2982_v42 = vld [vmem:[#allocation13 + $0xaa0] sm:$0xff] }
 0x3cd   :  { %2824 = vmatpush1.msra.mxu1 %v2754_v43  ;;  %2908 = vmatprep.subr.mxu0 %v2805_v44  ;;  %v2730_v43 = vld [vmem:[#allocation13 + $0x780] sm:$0xff]  ;;  %v2981_v44 = vld [vmem:[#allocation13 + $0xa98] sm:$0xff] }
 0x3ce   :  { %2825 = vmatprep.subr.mxu1 %v2753_v45  ;;  %2909 = vmatpush1.msra.mxu0 %v2804_v46  ;;  %v2793_v45 = vld [vmem:[#allocation13 + $0x978] sm:$0xff]  ;;  %v2980_v46 = vld [vmem:[#allocation13 + $0xa90] sm:$0xff] }
 0x3cf   :  { %2826 = vmatpush1.msra.mxu1 %v2752_v47  ;;  %2910 = vmatprep.subr.mxu0 %v2803_v48  ;;  %v2792_v47 = vld [vmem:[#allocation13 + $0x970] sm:$0xff]  ;;  %v2979_v48 = vld [vmem:[#allocation13 + $0xa88] sm:$0xff] }
 0x3d0   :  { %2827 = vmatprep.subr.mxu1 %v2751_v49  ;;  %2911 = vmatpush1.msra.mxu0 %v2802_v50  ;;  %v2791_v49 = vld [vmem:[#allocation13 + $0x968] sm:$0xff]  ;;  %v2978_v50 = vld [vmem:[#allocation13 + $0xa80] sm:$0xff] }
 0x3d1   :  { %2828 = vmatpush1.msra.mxu1 %v2750_v51  ;;  %2912 = vmatprep.subr.mxu0 %v2801_v53  ;;  %v2790_v51 = vld [vmem:[#allocation13 + $0x960] sm:$0xff]  ;;  %v2977_v53 = vld [vmem:[#allocation13 + $0xa78] sm:$0xff] }
 0x3d2   :  { %2829 = vmatprep.subr.mxu1 %v2749_v54  ;;  %2913 = vmatpush1.msra.mxu0 %v2800_v13  ;;  %v2789_v54 = vld [vmem:[#allocation13 + $0x958] sm:$0xff]  ;;  %v2976_v13 = vld [vmem:[#allocation13 + $0xa70] sm:$0xff] }
 0x3d3   :  { %2830 = vmatpush1.msra.mxu1 %v2748_v56  ;;  %2914 = vmatprep.subr.mxu0 %v2799_v59  ;;  %v2788_v56 = vld [vmem:[#allocation13 + $0x950] sm:$0xff]  ;;  %v2975_v59 = vld [vmem:[#allocation13 + $0xa68] sm:$0xff] }
 0x3d4   :  { %2831 = vmatprep.subr.mxu1 %v2747_v61  ;;  %2915 = vmatpush1.msra.mxu0 %v2798_v62  ;;  %v2787_v61 = vld [vmem:[#allocation13 + $0x948] sm:$0xff]  ;;  %v2974_v62 = vld [vmem:[#allocation13 + $0xa60] sm:$0xff] }
 0x3d5   :  { %2832 = vmatpush1.msra.mxu1 %v2746_v63  ;;  %2916 = vmatprep.subr.mxu0 %v2797_v16  ;;  %v2786_v63 = vld [vmem:[#allocation13 + $0x940] sm:$0xff]  ;;  %v2973_v16 = vld [vmem:[#allocation13 + $0xa58] sm:$0xff] }
 0x3d6   :  { %2833 = vmatprep.subr.mxu1 %v2745_v1  ;;  %2917 = vmatpush1.msra.mxu0 %v2796_v2  ;;  %v2785_v1 = vld [vmem:[#allocation13 + $0x938] sm:$0xff]  ;;  %v2972_v2 = vld [vmem:[#allocation13 + $0xa50] sm:$0xff] }
 0x3d7   :  { %2834 = vmatpush1.msra.mxu1 %v2744_v3  ;;  %2918 = vmatprep.subr.mxu0 %v2795_v6  ;;  %v2784_v3 = vld [vmem:[#allocation13 + $0x930] sm:$0xff]  ;;  %v2971_v6 = vld [vmem:[#allocation13 + $0xa48] sm:$0xff] }
 0x3d8   :  { %2835 = vmatprep.subr.mxu1 %v2743_v7  ;;  %2919 = vmatpush1.msra.mxu0 %v2794_v25  ;;  %v2783_v7 = vld [vmem:[#allocation13 + $0x928] sm:$0xff]  ;;  %v2970_v25 = vld [vmem:[#allocation13 + $0xa40] sm:$0xff] }
 0x3d9   :  { %2952 = vmatprep.mubr.f32.mxu0 %v9277_v35  ;;  %2836 = vmatpush1.msra.mxu1 %v2742_v12  ;;  %v2782_v12 = vld [vmem:[#allocation13 + $0x920] sm:$0xff] }
 0x3da   :  { %7627 = vmatmul.mubr.msk.f32.vlgmr.msra.gmra.mxu0 %vm1461_vm4, %v2812_v14  ;;  %3049 = vmatprep.subr.mxu0 %v2993_v55  ;;  %v2969_v55 = vld [vmem:[#allocation13 + $0xa38] sm:$0xff] }
 0x3db   :  { %2837 = vmatprep.subr.mxu1 %v2741_v15  ;;  %3050 = vmatpush1.msra.mxu0 %v2992_v18  ;;  %v2781_v14 = vld [vmem:[#allocation13 + $0x918] sm:$0xff]  ;;  %v2968_v15 = vld [vmem:[#allocation13 + $0xa30] sm:$0xff] }
 0x3dc   :  { %3113 = vmatprep.mubr.f32.mxu0 %v3043_v20  ;;  %2838 = vmatpush1.msra.mxu1 %v2740_v21  ;;  %v2780_v18 = vld [vmem:[#allocation13 + $0x910] sm:$0xff]  ;;  %v2967_v21 = vld [vmem:[#allocation13 + $0xa28] sm:$0xff] }
 0x3dd   :  { %3051 = vmatprep.subr.mxu0 %v2991_v22  ;;  %2839 = vmatprep.subr.mxu1 %v2739_v23  ;;  %v2779_v20 = vld [vmem:[#allocation13 + $0x908] sm:$0xff]  ;;  %v2966_v22 = vld [vmem:[#allocation13 + $0xa20] sm:$0xff] }
 0x3de   :  { %3052 = vmatpush1.msra.mxu0 %v2990_v24  ;;  %2840 = vmatpush1.msra.mxu1 %v2738_v26  ;;  %v2778_v23 = vld [vmem:[#allocation13 + $0x900] sm:$0xff]  ;;  %v2965_v24 = vld [vmem:[#allocation13 + $0xa18] sm:$0xff] }
 0x3df   :  { %3053 = vmatprep.subr.mxu0 %v2989_v27  ;;  %2841 = vmatprep.subr.mxu1 %v2737_v28  ;;  %v2777_v26 = vld [vmem:[#allocation13 + $0x8f8] sm:$0xff]  ;;  %v2964_v27 = vld [vmem:[#allocation13 + $0xa10] sm:$0xff] }
 0x3e0   :  { %3054 = vmatpush1.msra.mxu0 %v2988_v29  ;;  %2842 = vmatpush1.msra.mxu1 %v2736_v30  ;;  %v2776_v28 = vld [vmem:[#allocation13 + $0x8f0] sm:$0xff]  ;;  %v2963_v29 = vld [vmem:[#allocation13 + $0xa08] sm:$0xff] }
 0x3e1   :  { %3055 = vmatprep.subr.mxu0 %v2987_v31  ;;  %2843 = vmatprep.subr.mxu1 %v2735_v32  ;;  %v2775_v30 = vld [vmem:[#allocation13 + $0x8e8] sm:$0xff]  ;;  %v2962_v31 = vld [vmem:[#allocation13 + $0xa00] sm:$0xff] }
 0x3e2   :  { %3056 = vmatpush1.msra.mxu0 %v2986_v33  ;;  %2844 = vmatpush1.msra.mxu1 %v2734_v34  ;;  %v2774_v32 = vld [vmem:[#allocation13 + $0x8e0] sm:$0xff]  ;;  %v3025_v33 = vld [vmem:[#allocation13 + $0xbf8] sm:$0xff] }
 0x3e3   :  { %3057 = vmatprep.subr.mxu0 %v2985_v36  ;;  %2845 = vmatprep.subr.mxu1 %v2733_v37  ;;  %v2773_v34 = vld [vmem:[#allocation13 + $0x8d8] sm:$0xff]  ;;  %v3024_v36 = vld [vmem:[#allocation13 + $0xbf0] sm:$0xff] }
 0x3e4   :  { %3058 = vmatpush1.msra.mxu0 %v2984_v38  ;;  %2846 = vmatpush1.msra.mxu1 %v2732_v39  ;;  %v2772_v37 = vld [vmem:[#allocation13 + $0x8d0] sm:$0xff]  ;;  %v3023_v38 = vld [vmem:[#allocation13 + $0xbe8] sm:$0xff] }
 0x3e5   :  { %3059 = vmatprep.subr.mxu0 %v2983_v40  ;;  %2847 = vmatprep.subr.mxu1 %v2731_v41  ;;  %v2771_v39 = vld [vmem:[#allocation13 + $0x8c8] sm:$0xff]  ;;  %v3022_v40 = vld [vmem:[#allocation13 + $0xbe0] sm:$0xff] }
 0x3e6   :  { %3060 = vmatpush1.msra.mxu0 %v2982_v42  ;;  %2848 = vmatpush1.msra.mxu1 %v2730_v43  ;;  %v2770_v41 = vld [vmem:[#allocation13 + $0x8c0] sm:$0xff]  ;;  %v3021_v42 = vld [vmem:[#allocation13 + $0xbd8] sm:$0xff] }
 0x3e7   :  { %3061 = vmatprep.subr.mxu0 %v2981_v44  ;;  %2849 = vmatprep.subr.mxu1 %v2793_v45  ;;  %v2769_v43 = vld [vmem:[#allocation13 + $0x8b8] sm:$0xff]  ;;  %v3020_v44 = vld [vmem:[#allocation13 + $0xbd0] sm:$0xff] }
 0x3e8   :  { %3062 = vmatpush1.msra.mxu0 %v2980_v46  ;;  %2850 = vmatpush2.msra.mxu1 %v2792_v47  ;;  %v2768_v45 = vld [vmem:[#allocation13 + $0x8b0] sm:$0xff]  ;;  %v3019_v46 = vld [vmem:[#allocation13 + $0xbc8] sm:$0xff] }
 0x3e9   :  { %3063 = vmatprep.subr.mxu0 %v2979_v48  ;;  %2851 = vmatprep.subr.mxu1 %v2791_v49  ;;  %v2767_v47 = vld [vmem:[#allocation13 + $0x8a8] sm:$0xff]  ;;  %v3018_v48 = vld [vmem:[#allocation13 + $0xbc0] sm:$0xff] }
 0x3ea   :  { %3064 = vmatpush1.msra.mxu0 %v2978_v50  ;;  %2852 = vmatpush2.msra.mxu1 %v2790_v51  ;;  %v2766_v49 = vld [vmem:[#allocation13 + $0x8a0] sm:$0xff]  ;;  %v3017_v50 = vld [vmem:[#allocation13 + $0xbb8] sm:$0xff] }
 0x3eb   :  { %3065 = vmatprep.subr.mxu0 %v2977_v53  ;;  %2853 = vmatprep.subr.mxu1 %v2789_v54  ;;  %v2765_v51 = vld [vmem:[#allocation13 + $0x898] sm:$0xff]  ;;  %v3016_v53 = vld [vmem:[#allocation13 + $0xbb0] sm:$0xff] }
 0x3ec   :  { %3066 = vmatpush1.msra.mxu0 %v2976_v13  ;;  %2854 = vmatpush2.msra.mxu1 %v2788_v56  ;;  %v2764_v54 = vld [vmem:[#allocation13 + $0x890] sm:$0xff]  ;;  %v3015_v13 = vld [vmem:[#allocation13 + $0xba8] sm:$0xff] }
 0x3ed   :  { %3067 = vmatprep.subr.mxu0 %v2975_v59  ;;  %2855 = vmatprep.subr.mxu1 %v2787_v61  ;;  %v2763_v56 = vld [vmem:[#allocation13 + $0x888] sm:$0xff]  ;;  %v3014_v59 = vld [vmem:[#allocation13 + $0xba0] sm:$0xff] }
 0x3ee   :  { %3068 = vmatpush1.msra.mxu0 %v2974_v62  ;;  %2856 = vmatpush2.msra.mxu1 %v2786_v63  ;;  %v2762_v61 = vld [vmem:[#allocation13 + $0x880] sm:$0xff]  ;;  %v3013_v62 = vld [vmem:[#allocation13 + $0xb98] sm:$0xff]  ;;  %v2810_v63 = vrot.slane %v9832_v4, 3 }
 0x3ef   :  { %3069 = vmatprep.subr.mxu0 %v2973_v16  ;;  %2857 = vmatprep.subr.mxu1 %v2785_v1  ;;  %v3012_v16 = vld [vmem:[#allocation13 + $0xb90] sm:$0xff]  ;;  %v3041_v1 = vld [vmem:[#allocation13 + $0xc78] sm:$0xff] }
 0x3f0   :  { %3070 = vmatpush1.msra.mxu0 %v2972_v2  ;;  %2858 = vmatpush2.msra.mxu1 %v2784_v3  ;;  %v3011_v2 = vld [vmem:[#allocation13 + $0xb88] sm:$0xff]  ;;  %v3040_v3 = vld [vmem:[#allocation13 + $0xc70] sm:$0xff] }
 0x3f1   :  { %3071 = vmatprep.subr.mxu0 %v2971_v6  ;;  %2859 = vmatprep.subr.mxu1 %v2783_v7  ;;  %v3010_v6 = vld [vmem:[#allocation13 + $0xb80] sm:$0xff]  ;;  %v3039_v7 = vld [vmem:[#allocation13 + $0xc68] sm:$0xff] }
 0x3f2   :  { %3072 = vmatpush1.msra.mxu0 %v2970_v25  ;;  %2860 = vmatpush2.msra.mxu1 %v2782_v12  ;;  %v3009_v25 = vld [vmem:[#allocation13 + $0xb78] sm:$0xff]  ;;  %v3038_v12 = vld [vmem:[#allocation13 + $0xc60] sm:$0xff] }
 0x3f3   :  { %3073 = vmatprep.subr.mxu0 %v2969_v55  ;;  %2861 = vmatprep.subr.mxu1 %v2781_v14  ;;  %v3008_v55 = vld [vmem:[#allocation13 + $0xb70] sm:$0xff]  ;;  %v3037_v14 = vld [vmem:[#allocation13 + $0xc58] sm:$0xff] }
 0x3f4   :  { %3074 = vmatpush1.msra.mxu0 %v2968_v15  ;;  %2862 = vmatpush2.msra.mxu1 %v2780_v18  ;;  %v3007_v15 = vld [vmem:[#allocation13 + $0xb68] sm:$0xff]  ;;  %v3036_v18 = vld [vmem:[#allocation13 + $0xc50] sm:$0xff] }
 0x3f5   :  { %3075 = vmatprep.subr.mxu0 %v2967_v21  ;;  %2863 = vmatprep.subr.mxu1 %v2779_v20  ;;  %v3006_v21 = vld [vmem:[#allocation13 + $0xb60] sm:$0xff]  ;;  %v3035_v20 = vld [vmem:[#allocation13 + $0xc48] sm:$0xff] }
 0x3f6   :  { %3076 = vmatpush1.msra.mxu0 %v2966_v22  ;;  %2864 = vmatpush2.msra.mxu1 %v2778_v23  ;;  %v3005_v22 = vld [vmem:[#allocation13 + $0xb58] sm:$0xff]  ;;  %v3034_v23 = vld [vmem:[#allocation13 + $0xc40] sm:$0xff] }
 0x3f7   :  { %3077 = vmatprep.subr.mxu0 %v2965_v24  ;;  %2865 = vmatprep.subr.mxu1 %v2777_v26  ;;  %v3004_v24 = vld [vmem:[#allocation13 + $0xb50] sm:$0xff]  ;;  %v3033_v26 = vld [vmem:[#allocation13 + $0xc38] sm:$0xff] }
 0x3f8   :  { %3078 = vmatpush1.msra.mxu0 %v2964_v27  ;;  %2866 = vmatpush2.msra.mxu1 %v2776_v28  ;;  %v3003_v27 = vld [vmem:[#allocation13 + $0xb48] sm:$0xff]  ;;  %v3032_v28 = vld [vmem:[#allocation13 + $0xc30] sm:$0xff] }
 0x3f9   :  { %3079 = vmatprep.subr.mxu0 %v2963_v29  ;;  %2867 = vmatprep.subr.mxu1 %v2775_v30  ;;  %v3002_v29 = vld [vmem:[#allocation13 + $0xb40] sm:$0xff]  ;;  %v3031_v30 = vld [vmem:[#allocation13 + $0xc28] sm:$0xff] }
 0x3fa   :  { %3080 = vmatpush1.msra.mxu0 %v2962_v31  ;;  %2868 = vmatpush2.msra.mxu1 %v2774_v32  ;;  %v3001_v31 = vld [vmem:[#allocation13 + $0xb38] sm:$0xff]  ;;  %v3030_v32 = vld [vmem:[#allocation13 + $0xc20] sm:$0xff] }
 0x3fb   :  { %3081 = vmatprep.subr.mxu0 %v3025_v33  ;;  %2869 = vmatprep.subr.mxu1 %v2773_v34  ;;  %v3000_v33 = vld [vmem:[#allocation13 + $0xb30] sm:$0xff]  ;;  %v3029_v34 = vld [vmem:[#allocation13 + $0xc18] sm:$0xff] }
 0x3fc   :  { %3082 = vmatpush2.msra.mxu0 %v3024_v36  ;;  %2870 = vmatpush2.msra.mxu1 %v2772_v37  ;;  %v2999_v36 = vld [vmem:[#allocation13 + $0xb28] sm:$0xff]  ;;  %v3028_v37 = vld [vmem:[#allocation13 + $0xc10] sm:$0xff] }
 0x3fd   :  { %3083 = vmatprep.subr.mxu0 %v3023_v38  ;;  %2871 = vmatprep.subr.mxu1 %v2771_v39  ;;  %v2998_v38 = vld [vmem:[#allocation13 + $0xb20] sm:$0xff]  ;;  %v3027_v39 = vld [vmem:[#allocation13 + $0xc08] sm:$0xff] }
 0x3fe   :  { %3084 = vmatpush2.msra.mxu0 %v3022_v40  ;;  %2872 = vmatpush2.msra.mxu1 %v2770_v41  ;;  %v2997_v40 = vld [vmem:[#allocation13 + $0xb18] sm:$0xff]  ;;  %v3026_v41 = vld [vmem:[#allocation13 + $0xc00] sm:$0xff] }
 0x3ff   :  { %3085 = vmatprep.subr.mxu0 %v3021_v42  ;;  %2873 = vmatprep.subr.mxu1 %v2769_v43  ;;  %v2996_v42 = vld [vmem:[#allocation13 + $0xb10] sm:$0xff]  ;;  %v3225_v43 = vld [vmem:[#allocation13 + $0xd78] sm:$0xff] }
 0x400   :  { %3086 = vmatpush2.msra.mxu0 %v3020_v44  ;;  %2874 = vmatpush2.msra.mxu1 %v2768_v45  ;;  %v3044_v44 = vrot.slane %v9829_v57, 4  ;;  %v2995_v45 = vld [vmem:[#allocation13 + $0xb08] sm:$0xff] }
 0x401   :  { %3087 = vmatprep.subr.mxu0 %v3019_v46  ;;  %2875 = vmatprep.subr.mxu1 %v2767_v47  ;;  %v3224_v46 = vld [vmem:[#allocation13 + $0xd70] sm:$0xff]  ;;  %v2994_v47 = vld [vmem:[#allocation13 + $0xb00] sm:$0xff] }
 0x402   :  { %3088 = vmatpush2.msra.mxu0 %v3018_v48  ;;  %2876 = vmatpush2.msra.mxu1 %v2766_v49  ;;  %v3275_v48 = vrot.slane %v9835_v8, 5  ;;  %v3223_v49 = vld [vmem:[#allocation13 + $0xd68] sm:$0xff] }
 0x403   :  { %3089 = vmatprep.subr.mxu0 %v3017_v50  ;;  %2877 = vmatprep.subr.mxu1 %v2765_v51  ;;  %v3042_v50 = vrot.slane %v9832_v4, 4  ;;  %v3222_v51 = vld [vmem:[#allocation13 + $0xd60] sm:$0xff] }
 0x404   :  { %3090 = vmatpush2.msra.mxu0 %v3016_v53  ;;  %2878 = vmatpush2.msra.mxu1 %v2764_v54  ;;  %v3273_v53 = vld [vmem:[#allocation13 + $0xef8] sm:$0xff] }
 0x405   :  { %3091 = vmatprep.subr.mxu0 %v3015_v13  ;;  %2879 = vmatprep.subr.mxu1 %v2763_v56  ;;  %v3221_v54 = vld [vmem:[#allocation13 + $0xd58] sm:$0xff]  ;;  %v3272_v13 = vld [vmem:[#allocation13 + $0xef0] sm:$0xff] }
 0x406   :  { %3092 = vmatpush2.msra.mxu0 %v3014_v59  ;;  %2880 = vmatpush2.msra.mxu1 %v2762_v61  ;;  %v3220_v56 = vld [vmem:[#allocation13 + $0xd50] sm:$0xff]  ;;  %v3271_v59 = vld [vmem:[#allocation13 + $0xee8] sm:$0xff] }
 0x407   :  { %3093 = vmatprep.subr.mxu0 %v3013_v62  ;;  %2882 = vmatmul.mubr.f32.vlgmr.msra.gmra.mxu1 %v2810_v63  ;;  %v3219_v61 = vld [vmem:[#allocation13 + $0xd48] sm:$0xff]  ;;  %v3270_v62 = vld [vmem:[#allocation13 + $0xee0] sm:$0xff] }
 0x408   :  { %3094 = vmatpush2.msra.mxu0 %v3012_v16  ;;  %3136 = vmatprep.subr.mxu1 %v3041_v1  ;;  %v3218_v63 = vld [vmem:[#allocation13 + $0xd40] sm:$0xff]  ;;  %v3269_v16 = vld [vmem:[#allocation13 + $0xed8] sm:$0xff] }
 0x409   :  { %3095 = vmatprep.subr.mxu0 %v3011_v2  ;;  %3137 = vmatpush1.msra.mxu1 %v3040_v3  ;;  %v3217_v1 = vld [vmem:[#allocation13 + $0xd38] sm:$0xff]  ;;  %v3268_v2 = vld [vmem:[#allocation13 + $0xed0] sm:$0xff] }
 0x40a   :  { %3096 = vmatpush2.msra.mxu0 %v3010_v6  ;;  %3138 = vmatprep.subr.mxu1 %v3039_v7  ;;  %v3216_v3 = vld [vmem:[#allocation13 + $0xd30] sm:$0xff]  ;;  %v3267_v6 = vld [vmem:[#allocation13 + $0xec8] sm:$0xff] }
 0x40b   :  { %3097 = vmatprep.subr.mxu0 %v3009_v25  ;;  %3139 = vmatpush1.msra.mxu1 %v3038_v12  ;;  %v3215_v7 = vld [vmem:[#allocation13 + $0xd28] sm:$0xff]  ;;  %v3266_v25 = vld [vmem:[#allocation13 + $0xec0] sm:$0xff] }
 0x40c   :  { %3098 = vmatpush2.msra.mxu0 %v3008_v55  ;;  %3140 = vmatprep.subr.mxu1 %v3037_v14  ;;  %v3214_v12 = vld [vmem:[#allocation13 + $0xd20] sm:$0xff]  ;;  %v3265_v55 = vld [vmem:[#allocation13 + $0xeb8] sm:$0xff] }
 0x40d   :  { %3099 = vmatprep.subr.mxu0 %v3007_v15  ;;  %3141 = vmatpush1.msra.mxu1 %v3036_v18  ;;  %v3213_v14 = vld [vmem:[#allocation13 + $0xd18] sm:$0xff]  ;;  %v3264_v15 = vld [vmem:[#allocation13 + $0xeb0] sm:$0xff] }
 0x40e   :  { %3100 = vmatpush2.msra.mxu0 %v3006_v21  ;;  %3142 = vmatprep.subr.mxu1 %v3035_v20  ;;  %v3212_v18 = vld [vmem:[#allocation13 + $0xd10] sm:$0xff]  ;;  %v3263_v21 = vld [vmem:[#allocation13 + $0xea8] sm:$0xff] }
 0x40f   :  { %3101 = vmatprep.subr.mxu0 %v3005_v22  ;;  %3143 = vmatpush1.msra.mxu1 %v3034_v23  ;;  %v3211_v20 = vld [vmem:[#allocation13 + $0xd08] sm:$0xff]  ;;  %v3262_v22 = vld [vmem:[#allocation13 + $0xea0] sm:$0xff] }
 0x410   :  { %3102 = vmatpush2.msra.mxu0 %v3004_v24  ;;  %3144 = vmatprep.subr.mxu1 %v3033_v26  ;;  %v3210_v23 = vld [vmem:[#allocation13 + $0xd00] sm:$0xff]  ;;  %v3261_v24 = vld [vmem:[#allocation13 + $0xe98] sm:$0xff] }
 0x411   :  { %3103 = vmatprep.subr.mxu0 %v3003_v27  ;;  %3145 = vmatpush1.msra.mxu1 %v3032_v28  ;;  %v3209_v26 = vld [vmem:[#allocation13 + $0xcf8] sm:$0xff]  ;;  %v3260_v27 = vld [vmem:[#allocation13 + $0xe90] sm:$0xff] }
 0x412   :  { %3104 = vmatpush2.msra.mxu0 %v3002_v29  ;;  %3146 = vmatprep.subr.mxu1 %v3031_v30  ;;  %v3208_v28 = vld [vmem:[#allocation13 + $0xcf0] sm:$0xff]  ;;  %v3259_v29 = vld [vmem:[#allocation13 + $0xe88] sm:$0xff] }
 0x413   :  { %3105 = vmatprep.subr.mxu0 %v3001_v31  ;;  %3147 = vmatpush1.msra.mxu1 %v3030_v32  ;;  %v3207_v30 = vld [vmem:[#allocation13 + $0xce8] sm:$0xff]  ;;  %v3258_v31 = vld [vmem:[#allocation13 + $0xe80] sm:$0xff] }
 0x414   :  { %3106 = vmatpush2.msra.mxu0 %v3000_v33  ;;  %3148 = vmatprep.subr.mxu1 %v3029_v34  ;;  %v3206_v32 = vld [vmem:[#allocation13 + $0xce0] sm:$0xff]  ;;  %v3457_v33 = vld [vmem:[#allocation13 + $0xff8] sm:$0xff]  ;;  %v3276_v34 = vrot.slane %v9829_v57, 5 }
 0x415   :  { %3107 = vmatprep.subr.mxu0 %v2999_v36  ;;  %3149 = vmatpush1.msra.mxu1 %v3028_v37  ;;  %v3205_v36 = vld [vmem:[#allocation13 + $0xcd8] sm:$0xff]  ;;  %v3456_v37 = vld [vmem:[#allocation13 + $0xff0] sm:$0xff] }
 0x416   :  { %3108 = vmatpush2.msra.mxu0 %v2998_v38  ;;  %3150 = vmatprep.subr.mxu1 %v3027_v39  ;;  %v3204_v38 = vld [vmem:[#allocation13 + $0xcd0] sm:$0xff]  ;;  %v3507_v39 = vrot.slane %v9835_v8, 6 }
 0x417   :  { %3109 = vmatprep.subr.mxu0 %v2997_v40  ;;  %3151 = vmatpush1.msra.mxu1 %v3026_v41  ;;  %v3455_v40 = vld [vmem:[#allocation13 + $0xfe8] sm:$0xff] }
 0x418   :  { %3184 = vmatprep.mubr.f32.mxu1 %v9277_v35  ;;  %3110 = vmatpush2.msra.mxu0 %v2996_v42  ;;  %v3203_v41 = vld [vmem:[#allocation13 + $0xcc8] sm:$0xff]  ;;  %v3454_v42 = vld [vmem:[#allocation13 + $0xfe0] sm:$0xff] }
 0x419   :  { %7628 = vmatmul.mubr.msk.f32.vlgmr.msra.gmra.mxu1 %vm1461_vm4, %v3044_v44  ;;  %3281 = vmatprep.subr.mxu1 %v3225_v43  ;;  %v3202_v43 = vld [vmem:[#allocation13 + $0xcc0] sm:$0xff]  ;;  %v3453_v44 = vld [vmem:[#allocation13 + $0xfd8] sm:$0xff] }
 0x41a   :  { %3111 = vmatprep.subr.mxu0 %v2995_v45  ;;  %3282 = vmatpush1.msra.mxu1 %v3224_v46  ;;  %v3201_v45 = vld [vmem:[#allocation13 + $0xcb8] sm:$0xff]  ;;  %v3452_v46 = vld [vmem:[#allocation13 + $0xfd0] sm:$0xff] }
 0x41b   :  { %3345 = vmatprep.mubr.f32.mxu1 %v3275_v48  ;;  %3112 = vmatpush2.msra.mxu0 %v2994_v47  ;;  %v3200_v47 = vld [vmem:[#allocation13 + $0xcb0] sm:$0xff]  ;;  %v3451_v48 = vld [vmem:[#allocation13 + $0xfc8] sm:$0xff] }
 0x41c   :  { %3283 = vmatprep.subr.mxu1 %v3223_v49  ;;  %3114 = vmatmul.mubr.f32.vlgmr.msra.gmra.mxu0 %v3042_v50  ;;  %v3199_v49 = vld [vmem:[#allocation13 + $0xca8] sm:$0xff]  ;;  %v9870_v50 = vpop.f32.mrf.mxu0 }
 0x41d   :  { %3284 = vmatpush1.msra.mxu1 %v3222_v51  ;;  %3368 = vmatprep.subr.mxu0 %v3273_v53  ;;  %v3450_v51 = vld [vmem:[#allocation13 + $0xfc0] sm:$0xff] }
 0x41e   :  { %3285 = vmatprep.subr.mxu1 %v3221_v54  ;;  %3369 = vmatpush1.msra.mxu0 %v3272_v13  ;;  %v3198_v53 = vld [vmem:[#allocation13 + $0xca0] sm:$0xff]  ;;  %v3449_v13 = vld [vmem:[#allocation13 + $0xfb8] sm:$0xff] }
 0x41f   :  { %3286 = vmatpush1.msra.mxu1 %v3220_v56  ;;  %3370 = vmatprep.subr.mxu0 %v3271_v59  ;;  %v3197_v56 = vld [vmem:[#allocation13 + $0xc98] sm:$0xff]  ;;  %v3448_v59 = vld [vmem:[#allocation13 + $0xfb0] sm:$0xff] }
 0x420   :  { %3287 = vmatprep.subr.mxu1 %v3219_v61  ;;  %3371 = vmatpush1.msra.mxu0 %v3270_v62  ;;  %v3196_v61 = vld [vmem:[#allocation13 + $0xc90] sm:$0xff] }
 0x421   :  { %3288 = vmatpush1.msra.mxu1 %v3218_v63  ;;  %3372 = vmatprep.subr.mxu0 %v3269_v16  ;;  %v3447_v63 = vld [vmem:[#allocation13 + $0xfa8] sm:$0xff] }
 0x422   :  { %3289 = vmatprep.subr.mxu1 %v3217_v1  ;;  %3373 = vmatpush1.msra.mxu0 %v3268_v2  ;;  %v3195_v16 = vld [vmem:[#allocation13 + $0xc88] sm:$0xff]  ;;  %v3446_v2 = vld [vmem:[#allocation13 + $0xfa0] sm:$0xff] }
 0x423   :  { %3290 = vmatpush1.msra.mxu1 %v3216_v3  ;;  %3374 = vmatprep.subr.mxu0 %v3267_v6  ;;  %v3194_v3 = vld [vmem:[#allocation13 + $0xc80] sm:$0xff] }
 0x424   :  { %3291 = vmatprep.subr.mxu1 %v3215_v7  ;;  %3375 = vmatpush1.msra.mxu0 %v3266_v25  ;;  %v3445_v25 = vld [vmem:[#allocation13 + $0xf98] sm:$0xff] }
 0x425   :  { %3292 = vmatpush1.msra.mxu1 %v3214_v12  ;;  %3376 = vmatprep.subr.mxu0 %v3265_v55  ;;  %v3257_v12 = vld [vmem:[#allocation13 + $0xe78] sm:$0xff] }
 0x426   :  { %3293 = vmatprep.subr.mxu1 %v3213_v14  ;;  %3377 = vmatpush1.msra.mxu0 %v3264_v15  ;;  %v3444_v14 = vld [vmem:[#allocation13 + $0xf90] sm:$0xff] }
 0x427   :  { %3294 = vmatpush1.msra.mxu1 %v3212_v18  ;;  %3378 = vmatprep.subr.mxu0 %v3263_v21  ;;  %v3256_v15 = vld [vmem:[#allocation13 + $0xe70] sm:$0xff]  ;;  %v3443_v18 = vld [vmem:[#allocation13 + $0xf88] sm:$0xff] }
 0x428   :  { %3295 = vmatprep.subr.mxu1 %v3211_v20  ;;  %3379 = vmatpush1.msra.mxu0 %v3262_v22  ;;  %v3255_v21 = vld [vmem:[#allocation13 + $0xe68] sm:$0xff]  ;;  %v3442_v20 = vld [vmem:[#allocation13 + $0xf80] sm:$0xff] }
 0x429   :  { %3296 = vmatpush1.msra.mxu1 %v3210_v23  ;;  %3380 = vmatprep.subr.mxu0 %v3261_v24  ;;  %v3254_v22 = vld [vmem:[#allocation13 + $0xe60] sm:$0xff]  ;;  %v3441_v23 = vld [vmem:[#allocation13 + $0xf78] sm:$0xff] }
 0x42a   :  { %3297 = vmatprep.subr.mxu1 %v3209_v26  ;;  %3381 = vmatpush1.msra.mxu0 %v3260_v27  ;;  %v3253_v24 = vld [vmem:[#allocation13 + $0xe58] sm:$0xff]  ;;  %v3440_v26 = vld [vmem:[#allocation13 + $0xf70] sm:$0xff] }
 0x42b   :  { %3298 = vmatpush1.msra.mxu1 %v3208_v28  ;;  %3382 = vmatprep.subr.mxu0 %v3259_v29  ;;  %v3252_v27 = vld [vmem:[#allocation13 + $0xe50] sm:$0xff]  ;;  %v3439_v28 = vld [vmem:[#allocation13 + $0xf68] sm:$0xff] }
 0x42c   :  { %3299 = vmatprep.subr.mxu1 %v3207_v30  ;;  %3383 = vmatpush1.msra.mxu0 %v3258_v31  ;;  %v3251_v29 = vld [vmem:[#allocation13 + $0xe48] sm:$0xff]  ;;  %v3438_v30 = vld [vmem:[#allocation13 + $0xf60] sm:$0xff] }
 0x42d   :  { %3416 = vmatprep.mubr.f32.mxu0 %v9277_v35  ;;  %3300 = vmatpush1.msra.mxu1 %v3206_v32  ;;  %v3250_v31 = vld [vmem:[#allocation13 + $0xe40] sm:$0xff]  ;;  %v3437_v32 = vld [vmem:[#allocation13 + $0xf58] sm:$0xff] }
 0x42e   :  { %7629 = vmatmul.mubr.msk.f32.vlgmr.msra.gmra.mxu0 %vm1461_vm4, %v3276_v34  ;;  %3513 = vmatprep.subr.mxu0 %v3457_v33  ;;  %v3249_v33 = vld [vmem:[#allocation13 + $0xe38] sm:$0xff]  ;;  %v3436_v34 = vld [vmem:[#allocation13 + $0xf50] sm:$0xff] }
 0x42f   :  { %3301 = vmatprep.subr.mxu1 %v3205_v36  ;;  %3514 = vmatpush1.msra.mxu0 %v3456_v37  ;;  %v3248_v36 = vld [vmem:[#allocation13 + $0xe30] sm:$0xff]  ;;  %v3435_v37 = vld [vmem:[#allocation13 + $0xf48] sm:$0xff] }
 0x430   :  { %3577 = vmatprep.mubr.f32.mxu0 %v3507_v39  ;;  %3302 = vmatpush1.msra.mxu1 %v3204_v38  ;;  %v3247_v38 = vld [vmem:[#allocation13 + $0xe28] sm:$0xff]  ;;  %v3434_v39 = vld [vmem:[#allocation13 + $0xf40] sm:$0xff] }
 0x431   :  { %3515 = vmatprep.subr.mxu0 %v3455_v40  ;;  %3303 = vmatprep.subr.mxu1 %v3203_v41  ;;  %v3246_v40 = vld [vmem:[#allocation13 + $0xe20] sm:$0xff]  ;;  %v3433_v41 = vld [vmem:[#allocation13 + $0xf38] sm:$0xff] }
 0x432   :  { %3516 = vmatpush1.msra.mxu0 %v3454_v42  ;;  %3304 = vmatpush1.msra.mxu1 %v3202_v43  ;;  %v2348_v54 = vpop.f32.mrf.mxu1  ;;  %v3245_v42 = vld [vmem:[#allocation13 + $0xe18] sm:$0xff]  ;;  %v3432_v43 = vld [vmem:[#allocation13 + $0xf30] sm:$0xff] }
 0x433   :  { %3517 = vmatprep.subr.mxu0 %v3453_v44  ;;  %3305 = vmatprep.subr.mxu1 %v3201_v45  ;;  %v3244_v44 = vld [vmem:[#allocation13 + $0xe10] sm:$0xff]  ;;  %v3431_v45 = vld [vmem:[#allocation13 + $0xf28] sm:$0xff] }
 0x434   :  { %3518 = vmatpush1.msra.mxu0 %v3452_v46  ;;  %3306 = vmatpush1.msra.mxu1 %v3200_v47  ;;  %v2350_v6 = vpop.f32.mrf.mxu1  ;;  %v3243_v46 = vld [vmem:[#allocation13 + $0xe08] sm:$0xff]  ;;  %v3430_v47 = vld [vmem:[#allocation13 + $0xf20] sm:$0xff] }
 0x435   :  { %3519 = vmatprep.subr.mxu0 %v3451_v48  ;;  %3307 = vmatprep.subr.mxu1 %v3199_v49  ;;  %v2277_v62 = vpop.f32.mrf.mxu0  ;;  %v3242_v48 = vld [vmem:[#allocation13 + $0xe00] sm:$0xff]  ;;  %v3429_v49 = vld [vmem:[#allocation13 + $0xf18] sm:$0xff] }
 0x436   :  { %3520 = vmatpush1.msra.mxu0 %v3450_v51  ;;  %3308 = vmatpush1.msra.mxu1 %v3198_v53  ;;  %v9872_v1 = vadd.f32 %v2348_v54, %v2277_v62  ;;  %v3241_v51 = vld [vmem:[#allocation13 + $0xdf8] sm:$0xff]  ;;  %v3428_v53 = vld [vmem:[#allocation13 + $0xf10] sm:$0xff] }
 0x437   :  { %3521 = vmatprep.subr.mxu0 %v3449_v13  ;;  %3309 = vmatprep.subr.mxu1 %v3197_v56  ;;  %v2279_v7 = vpop.f32.mrf.mxu0  ;;  %v3240_v54 = vld [vmem:[#allocation13 + $0xdf0] sm:$0xff]  ;;  %v3427_v13 = vld [vmem:[#allocation13 + $0xf08] sm:$0xff]  ;;  %v3489_v62 = vld [vmem:[#allocation13 + $0x10f8] sm:$0xff] }
 0x438   :  { %3522 = vmatpush1.msra.mxu0 %v3448_v59  ;;  %3310 = vmatpush1.msra.mxu1 %v3196_v61  ;;  %v9874_v55 = vadd.f32 %v2350_v6, %v2279_v7  ;;  %v3239_v56 = vld [vmem:[#allocation13 + $0xde8] sm:$0xff]  ;;  %v3426_v59 = vld [vmem:[#allocation13 + $0xf00] sm:$0xff] }
 0x439   :  { %3523 = vmatprep.subr.mxu0 %v3447_v63  ;;  %3311 = vmatprep.subr.mxu1 %v3195_v16  ;;  %v3238_v61 = vld [vmem:[#allocation13 + $0xde0] sm:$0xff]  ;;  %v3237_v63 = vld [vmem:[#allocation13 + $0xdd8] sm:$0xff]  ;;  %v3488_v16 = vld [vmem:[#allocation13 + $0x10f0] sm:$0xff] }
 0x43a   :  { %3524 = vmatpush1.msra.mxu0 %v3446_v2  ;;  %3312 = vmatpush1.msra.mxu1 %v3194_v3  ;;  %v3236_v2 = vld [vmem:[#allocation13 + $0xdd0] sm:$0xff]  ;;  %v3487_v3 = vld [vmem:[#allocation13 + $0x10e8] sm:$0xff]  ;;  %v3486_v7 = vld [vmem:[#allocation13 + $0x10e0] sm:$0xff] }
 0x43b   :  { %3525 = vmatprep.subr.mxu0 %v3445_v25  ;;  %3313 = vmatprep.subr.mxu1 %v3257_v12  ;;  %v3235_v6 = vld [vmem:[#allocation13 + $0xdc8] sm:$0xff]  ;;  %v3234_v25 = vld [vmem:[#allocation13 + $0xdc0] sm:$0xff]  ;;  %v3485_v12 = vld [vmem:[#allocation13 + $0x10d8] sm:$0xff] }
 0x43c   :  { %3526 = vmatpush1.msra.mxu0 %v3444_v14  ;;  %3314 = vmatpush2.msra.mxu1 %v3256_v15  ;;  %v3233_v14 = vld [vmem:[#allocation13 + $0xdb8] sm:$0xff]  ;;  %v3484_v15 = vld [vmem:[#allocation13 + $0x10d0] sm:$0xff] }
 0x43d   :  { %3527 = vmatprep.subr.mxu0 %v3443_v18  ;;  %3315 = vmatprep.subr.mxu1 %v3255_v21  ;;  %v3232_v18 = vld [vmem:[#allocation13 + $0xdb0] sm:$0xff]  ;;  %v3483_v21 = vld [vmem:[#allocation13 + $0x10c8] sm:$0xff] }
 0x43e   :  { %3528 = vmatpush1.msra.mxu0 %v3442_v20  ;;  %3316 = vmatpush2.msra.mxu1 %v3254_v22  ;;  %v3231_v20 = vld [vmem:[#allocation13 + $0xda8] sm:$0xff]  ;;  %v3482_v22 = vld [vmem:[#allocation13 + $0x10c0] sm:$0xff] }
 0x43f   :  { %3529 = vmatprep.subr.mxu0 %v3441_v23  ;;  %3317 = vmatprep.subr.mxu1 %v3253_v24  ;;  %v3230_v23 = vld [vmem:[#allocation13 + $0xda0] sm:$0xff]  ;;  %v3481_v24 = vld [vmem:[#allocation13 + $0x10b8] sm:$0xff] }
 0x440   :  { %3530 = vmatpush1.msra.mxu0 %v3440_v26  ;;  %3318 = vmatpush2.msra.mxu1 %v3252_v27  ;;  %v3229_v26 = vld [vmem:[#allocation13 + $0xd98] sm:$0xff]  ;;  %v3480_v27 = vld [vmem:[#allocation13 + $0x10b0] sm:$0xff] }
 0x441   :  { %3531 = vmatprep.subr.mxu0 %v3439_v28  ;;  %3319 = vmatprep.subr.mxu1 %v3251_v29  ;;  %v3228_v28 = vld [vmem:[#allocation13 + $0xd90] sm:$0xff]  ;;  %v3479_v29 = vld [vmem:[#allocation13 + $0x10a8] sm:$0xff] }
 0x442   :  { %3532 = vmatpush1.msra.mxu0 %v3438_v30  ;;  %3320 = vmatpush2.msra.mxu1 %v3250_v31  ;;  %v3227_v30 = vld [vmem:[#allocation13 + $0xd88] sm:$0xff]  ;;  %v3478_v31 = vld [vmem:[#allocation13 + $0x10a0] sm:$0xff] }
 0x443   :  { %3533 = vmatprep.subr.mxu0 %v3437_v32  ;;  %3321 = vmatprep.subr.mxu1 %v3249_v33  ;;  %v3226_v32 = vld [vmem:[#allocation13 + $0xd80] sm:$0xff]  ;;  %v3477_v33 = vld [vmem:[#allocation13 + $0x1098] sm:$0xff] }
 0x444   :  { %3534 = vmatpush1.msra.mxu0 %v3436_v34  ;;  %3322 = vmatpush2.msra.mxu1 %v3248_v36  ;;  %v3274_v34 = vrot.slane %v9832_v4, 5  ;;  %v3476_v36 = vld [vmem:[#allocation13 + $0x1090] sm:$0xff] }
 0x445   :  { %3535 = vmatprep.subr.mxu0 %v3435_v37  ;;  %3323 = vmatprep.subr.mxu1 %v3247_v38  ;;  %v3505_v37 = vld [vmem:[#allocation13 + $0x1178] sm:$0xff]  ;;  %v3475_v38 = vld [vmem:[#allocation13 + $0x1088] sm:$0xff] }
 0x446   :  { %3536 = vmatpush1.msra.mxu0 %v3434_v39  ;;  %3324 = vmatpush2.msra.mxu1 %v3246_v40  ;;  %v3504_v39 = vld [vmem:[#allocation13 + $0x1170] sm:$0xff]  ;;  %v3474_v40 = vld [vmem:[#allocation13 + $0x1080] sm:$0xff] }
 0x447   :  { %3537 = vmatprep.subr.mxu0 %v3433_v41  ;;  %3325 = vmatprep.subr.mxu1 %v3245_v42  ;;  %v3503_v41 = vld [vmem:[#allocation13 + $0x1168] sm:$0xff]  ;;  %v3473_v42 = vld [vmem:[#allocation13 + $0x1078] sm:$0xff] }
 0x448   :  { %3538 = vmatpush1.msra.mxu0 %v3432_v43  ;;  %3326 = vmatpush2.msra.mxu1 %v3244_v44  ;;  %v3502_v43 = vld [vmem:[#allocation13 + $0x1160] sm:$0xff]  ;;  %v3472_v44 = vld [vmem:[#allocation13 + $0x1070] sm:$0xff] }
 0x449   :  { %3539 = vmatprep.subr.mxu0 %v3431_v45  ;;  %3327 = vmatprep.subr.mxu1 %v3243_v46  ;;  %v3501_v45 = vld [vmem:[#allocation13 + $0x1158] sm:$0xff]  ;;  %v3471_v46 = vld [vmem:[#allocation13 + $0x1068] sm:$0xff] }
 0x44a   :  { %3540 = vmatpush1.msra.mxu0 %v3430_v47  ;;  %3328 = vmatpush2.msra.mxu1 %v3242_v48  ;;  %v3500_v47 = vld [vmem:[#allocation13 + $0x1150] sm:$0xff]  ;;  %v3470_v48 = vld [vmem:[#allocation13 + $0x1060] sm:$0xff] }
 0x44b   :  { %3541 = vmatprep.subr.mxu0 %v3429_v49  ;;  %3329 = vmatprep.subr.mxu1 %v3241_v51  ;;  %v3499_v49 = vld [vmem:[#allocation13 + $0x1148] sm:$0xff]  ;;  %v3469_v51 = vld [vmem:[#allocation13 + $0x1058] sm:$0xff] }
 0x44c   :  { %3542 = vmatpush1.msra.mxu0 %v3428_v53  ;;  %3330 = vmatpush2.msra.mxu1 %v3240_v54  ;;  %v3498_v53 = vld [vmem:[#allocation13 + $0x1140] sm:$0xff]  ;;  %v3468_v54 = vld [vmem:[#allocation13 + $0x1050] sm:$0xff] }
 0x44d   :  { %3543 = vmatprep.subr.mxu0 %v3427_v13  ;;  %3331 = vmatprep.subr.mxu1 %v3239_v56  ;;  %v3497_v13 = vld [vmem:[#allocation13 + $0x1138] sm:$0xff]  ;;  %v3467_v56 = vld [vmem:[#allocation13 + $0x1048] sm:$0xff] }
 0x44e   :  { %3544 = vmatpush1.msra.mxu0 %v3426_v59  ;;  %3332 = vmatpush2.msra.mxu1 %v3238_v61  ;;  %v3496_v59 = vld [vmem:[#allocation13 + $0x1130] sm:$0xff]  ;;  %v3466_v61 = vld [vmem:[#allocation13 + $0x1040] sm:$0xff] }
 0x44f   :  { %3545 = vmatprep.subr.mxu0 %v3489_v62  ;;  %3333 = vmatprep.subr.mxu1 %v3237_v63  ;;  %v3495_v62 = vld [vmem:[#allocation13 + $0x1128] sm:$0xff]  ;;  %v3465_v63 = vld [vmem:[#allocation13 + $0x1038] sm:$0xff] }
 0x450   :  { %3546 = vmatpush2.msra.mxu0 %v3488_v16  ;;  %3334 = vmatpush2.msra.mxu1 %v3236_v2  ;;  %v3494_v16 = vld [vmem:[#allocation13 + $0x1120] sm:$0xff]  ;;  %v3464_v2 = vld [vmem:[#allocation13 + $0x1030] sm:$0xff] }
 0x451   :  { %3547 = vmatprep.subr.mxu0 %v3487_v3  ;;  %3335 = vmatprep.subr.mxu1 %v3235_v6  ;;  %v3493_v3 = vld [vmem:[#allocation13 + $0x1118] sm:$0xff]  ;;  %v3463_v6 = vld [vmem:[#allocation13 + $0x1028] sm:$0xff] }
 0x452   :  { %3548 = vmatpush2.msra.mxu0 %v3486_v7  ;;  %3336 = vmatpush2.msra.mxu1 %v3234_v25  ;;  %v3492_v7 = vld [vmem:[#allocation13 + $0x1110] sm:$0xff]  ;;  %v3462_v25 = vld [vmem:[#allocation13 + $0x1020] sm:$0xff] }
 0x453   :  { %3549 = vmatprep.subr.mxu0 %v3485_v12  ;;  %3337 = vmatprep.subr.mxu1 %v3233_v14  ;;  %v3491_v12 = vld [vmem:[#allocation13 + $0x1108] sm:$0xff]  ;;  %v3461_v14 = vld [vmem:[#allocation13 + $0x1018] sm:$0xff] }
 0x454   :  { %3550 = vmatpush2.msra.mxu0 %v3484_v15  ;;  %3338 = vmatpush2.msra.mxu1 %v3232_v18  ;;  %v3490_v15 = vld [vmem:[#allocation13 + $0x1100] sm:$0xff]  ;;  %v3460_v18 = vld [vmem:[#allocation13 + $0x1010] sm:$0xff] }
 0x455   :  { %3551 = vmatprep.subr.mxu0 %v3483_v21  ;;  %3339 = vmatprep.subr.mxu1 %v3231_v20  ;;  %v3689_v21 = vld [vmem:[#allocation13 + $0x1278] sm:$0xff]  ;;  %v3508_v20 = vrot.slane %v9829_v57, 6 }
 0x456   :  { %3552 = vmatpush2.msra.mxu0 %v3482_v22  ;;  %3340 = vmatpush2.msra.mxu1 %v3230_v23  ;;  %v3459_v22 = vld [vmem:[#allocation13 + $0x1008] sm:$0xff]  ;;  %v3688_v23 = vld [vmem:[#allocation13 + $0x1270] sm:$0xff] }
 0x457   :  { %3553 = vmatprep.subr.mxu0 %v3481_v24  ;;  %3341 = vmatprep.subr.mxu1 %v3229_v26  ;;  %v3458_v24 = vld [vmem:[#allocation13 + $0x1000] sm:$0xff]  ;;  %v3739_v26 = vrot.slane %v9835_v8, 7 }
 0x458   :  { %3554 = vmatpush2.msra.mxu0 %v3480_v27  ;;  %3342 = vmatpush2.msra.mxu1 %v3228_v28  ;;  %v3687_v27 = vld [vmem:[#allocation13 + $0x1268] sm:$0xff]  ;;  %v3506_v28 = vrot.slane %v9832_v4, 6  ;;  %v3682_v8 = vld [vmem:[#allocation13 + $0x1240] sm:$0xff] }
 0x459   :  { %3555 = vmatprep.subr.mxu0 %v3479_v29  ;;  %3343 = vmatprep.subr.mxu1 %v3227_v30  ;;  %v3686_v29 = vld [vmem:[#allocation13 + $0x1260] sm:$0xff]  ;;  %v3737_v30 = vld [vmem:[#allocation13 + $0x13f8] sm:$0xff] }
 0x45a   :  { %3556 = vmatpush2.msra.mxu0 %v3478_v31  ;;  %3344 = vmatpush2.msra.mxu1 %v3226_v32  ;;  %v3685_v31 = vld [vmem:[#allocation13 + $0x1258] sm:$0xff]  ;;  %v3736_v32 = vld [vmem:[#allocation13 + $0x13f0] sm:$0xff] }
 0x45b   :  { %3557 = vmatprep.subr.mxu0 %v3477_v33  ;;  %3346 = vmatmul.mubr.f32.vlgmr.msra.gmra.mxu1 %v3274_v34  ;;  %v3684_v33 = vld [vmem:[#allocation13 + $0x1250] sm:$0xff]  ;;  %v3735_v34 = vld [vmem:[#allocation13 + $0x13e8] sm:$0xff] }
 0x45c   :  { %3558 = vmatpush2.msra.mxu0 %v3476_v36  ;;  %3600 = vmatprep.subr.mxu1 %v3505_v37  ;;  %v3683_v36 = vld [vmem:[#allocation13 + $0x1248] sm:$0xff]  ;;  %v3734_v37 = vld [vmem:[#allocation13 + $0x13e0] sm:$0xff] }
 0x45d   :  { %3559 = vmatprep.subr.mxu0 %v3475_v38  ;;  %3601 = vmatpush1.msra.mxu1 %v3504_v39  ;;  %v3733_v38 = vld [vmem:[#allocation13 + $0x13d8] sm:$0xff]  ;;  %v2492_v39 = vpop.f32.mrf.mxu0 }
 0x45e   :  { %3560 = vmatpush2.msra.mxu0 %v3474_v40  ;;  %3602 = vmatprep.subr.mxu1 %v3503_v41  ;;  %v3681_v40 = vld [vmem:[#allocation13 + $0x1238] sm:$0xff]  ;;  %v3732_v41 = vld [vmem:[#allocation13 + $0x13d0] sm:$0xff] }
 0x45f   :  { %3561 = vmatprep.subr.mxu0 %v3473_v42  ;;  %3603 = vmatpush1.msra.mxu1 %v3502_v43  ;;  %v3680_v43 = vld [vmem:[#allocation13 + $0x1230] sm:$0xff] }
 0x460   :  { %3562 = vmatpush2.msra.mxu0 %v3472_v44  ;;  %3604 = vmatprep.subr.mxu1 %v3501_v45  ;;  %v3731_v44 = vld [vmem:[#allocation13 + $0x13c8] sm:$0xff] }
 0x461   :  { %3563 = vmatprep.subr.mxu0 %v3471_v46  ;;  %3605 = vmatpush1.msra.mxu1 %v3500_v47  ;;  %v3679_v46 = vld [vmem:[#allocation13 + $0x1228] sm:$0xff]  ;;  %v3730_v47 = vld [vmem:[#allocation13 + $0x13c0] sm:$0xff] }
 0x462   :  { %3564 = vmatpush2.msra.mxu0 %v3470_v48  ;;  %3606 = vmatprep.subr.mxu1 %v3499_v49  ;;  %v3678_v49 = vld [vmem:[#allocation13 + $0x1220] sm:$0xff] }
 0x463   :  { %3565 = vmatprep.subr.mxu0 %v3469_v51  ;;  %3607 = vmatpush1.msra.mxu1 %v3498_v53  ;;  %v3729_v51 = vld [vmem:[#allocation13 + $0x13b8] sm:$0xff] }
 0x464   :  { %3566 = vmatpush2.msra.mxu0 %v3468_v54  ;;  %3608 = vmatprep.subr.mxu1 %v3497_v13  ;;  %v2494_v13 = vpop.f32.mrf.mxu0 }
 0x465   :  { %3567 = vmatprep.subr.mxu0 %v3467_v56  ;;  %3609 = vmatpush1.msra.mxu1 %v3496_v59  ;;  %v3677_v56 = vld [vmem:[#allocation13 + $0x1218] sm:$0xff]  ;;  %v3728_v59 = vld [vmem:[#allocation13 + $0x13b0] sm:$0xff] }
 0x466   :  { %3568 = vmatpush2.msra.mxu0 %v3466_v61  ;;  %3610 = vmatprep.subr.mxu1 %v3495_v62  ;;  %v3727_v61 = vld [vmem:[#allocation13 + $0x13a8] sm:$0xff] }
 0x467   :  { %3569 = vmatprep.subr.mxu0 %v3465_v63  ;;  %3611 = vmatpush1.msra.mxu1 %v3494_v16  ;;  %v3675_v63 = vld [vmem:[#allocation13 + $0x1208] sm:$0xff]  ;;  %v3726_v16 = vld [vmem:[#allocation13 + $0x13a0] sm:$0xff] }
 0x468   :  { %3570 = vmatpush2.msra.mxu0 %v3464_v2  ;;  %3612 = vmatprep.subr.mxu1 %v3493_v3  ;;  %v3674_v2 = vld [vmem:[#allocation13 + $0x1200] sm:$0xff]  ;;  %v3725_v3 = vld [vmem:[#allocation13 + $0x1398] sm:$0xff] }
 0x469   :  { %3571 = vmatprep.subr.mxu0 %v3463_v6  ;;  %3613 = vmatpush1.msra.mxu1 %v3492_v7  ;;  %v3724_v6 = vld [vmem:[#allocation13 + $0x1390] sm:$0xff] }
 0x46a   :  { %3572 = vmatpush2.msra.mxu0 %v3462_v25  ;;  %3614 = vmatprep.subr.mxu1 %v3491_v12  ;;  %v3672_v7 = vld [vmem:[#allocation13 + $0x11f0] sm:$0xff]  ;;  %v3723_v25 = vld [vmem:[#allocation13 + $0x1388] sm:$0xff] }
 0x46b   :  { %3573 = vmatprep.subr.mxu0 %v3461_v14  ;;  %3615 = vmatpush1.msra.mxu1 %v3490_v15  ;;  %v3671_v12 = vld [vmem:[#allocation13 + $0x11e8] sm:$0xff]  ;;  %v3722_v14 = vld [vmem:[#allocation13 + $0x1380] sm:$0xff]  ;;  %v2015_v15 = vadd.f32 %v9870_v50, %v9817_v52 }
 0x46c   :  { %3648 = vmatprep.mubr.f32.mxu1 %v9277_v35  ;;  %3574 = vmatpush2.msra.mxu0 %v3460_v18  ;;  %v3670_v18 = vld [vmem:[#allocation13 + $0x11e0] sm:$0xff]  ;;  %v3919_v52 = vld [vmem:[#allocation13 + $0x14e8] sm:$0xff] }
 0x46d   :  { %7630 = vmatmul.mubr.msk.f32.vlgmr.msra.gmra.mxu1 %vm1461_vm4, %v3508_v20  ;;  %3745 = vmatprep.subr.mxu1 %v3689_v21  ;;  %v3921_v21 = vld [vmem:[#allocation13 + $0x14f8] sm:$0xff]  ;;  %v3740_v20 = vrot.slane %v9829_v57, 7  ;;  %v3667_v50 = vld [vmem:[#allocation13 + $0x11c8] sm:$0xff] }
 0x46e   :  { %3575 = vmatprep.subr.mxu0 %v3459_v22  ;;  %3746 = vmatpush1.msra.mxu1 %v3688_v23  ;;  %v3669_v22 = vld [vmem:[#allocation13 + $0x11d8] sm:$0xff]  ;;  %v3920_v23 = vld [vmem:[#allocation13 + $0x14f0] sm:$0xff] }
 0x46f   :  { %3809 = vmatprep.mubr.f32.mxu1 %v3739_v26  ;;  %3576 = vmatpush2.msra.mxu0 %v3458_v24  ;;  %v3668_v24 = vld [vmem:[#allocation13 + $0x11d0] sm:$0xff]  ;;  %v9893_v26 = vadd.f32 %v9826_v17, %v2015_v15  ;;  %v3917_v57 = vld [vmem:[#allocation13 + $0x14d8] sm:$0xff] }
 0x470   :  { %3747 = vmatprep.subr.mxu1 %v3687_v27  ;;  %3578 = vmatmul.mubr.f32.vlgmr.msra.gmra.mxu0 %v3506_v28  ;;  %v3918_v27 = vld [vmem:[#allocation13 + $0x14e0] sm:$0xff]  ;;  %v3713_v15 = vld [vmem:[#allocation13 + $0x1338] sm:$0xff] }
 0x471   :  { %3748 = vmatpush1.msra.mxu1 %v3686_v29  ;;  %3832 = vmatprep.subr.mxu0 %v3737_v30  ;;  %v3666_v28 = vld [vmem:[#allocation13 + $0x11c0] sm:$0xff]  ;;  %v3665_v29 = vld [vmem:[#allocation13 + $0x11b8] sm:$0xff]  ;;  %v3916_v30 = vld [vmem:[#allocation13 + $0x14d0] sm:$0xff] }
 0x472   :  { %3749 = vmatprep.subr.mxu1 %v3685_v31  ;;  %3833 = vmatpush1.msra.mxu0 %v3736_v32  ;;  %v3664_v31 = vld [vmem:[#allocation13 + $0x11b0] sm:$0xff]  ;;  %v3915_v32 = vld [vmem:[#allocation13 + $0x14c8] sm:$0xff] }
 0x473   :  { %3750 = vmatpush1.msra.mxu1 %v3684_v33  ;;  %3834 = vmatprep.subr.mxu0 %v3735_v34  ;;  %v2421_v42 = vpop.f32.mrf.mxu1  ;;  %v3663_v33 = vld [vmem:[#allocation13 + $0x11a8] sm:$0xff] }
 0x474   :  { %3751 = vmatprep.subr.mxu1 %v3683_v36  ;;  %3835 = vmatpush1.msra.mxu0 %v3734_v37  ;;  %v2422_v45 = vadd.f32 %v2421_v42, %v9872_v1  ;;  %v3676_v1 = vld [vmem:[#allocation13 + $0x1210] sm:$0xff]  ;;  %v3914_v36 = vld [vmem:[#allocation13 + $0x14c0] sm:$0xff] }
 0x475   :  { %3752 = vmatpush1.msra.mxu1 %v3682_v8  ;;  %3836 = vmatprep.subr.mxu0 %v3733_v38  ;;  %v2423_v48 = vpop.f32.mrf.mxu1  ;;  %v3662_v37 = vld [vmem:[#allocation13 + $0x11a0] sm:$0xff]  ;;  %v3913_v8 = vld [vmem:[#allocation13 + $0x14b8] sm:$0xff] }
 0x476   :  { %3753 = vmatprep.subr.mxu1 %v3681_v40  ;;  %3837 = vmatpush1.msra.mxu0 %v3732_v41  ;;  %v9883_v53 = vadd.f32 %v2492_v39, %v2422_v45  ;;  %v2424_v54 = vadd.f32 %v2423_v48, %v9874_v55  ;;  %v3673_v55 = vld [vmem:[#allocation13 + $0x11f8] sm:$0xff]  ;;  %v3912_v40 = vld [vmem:[#allocation13 + $0x14b0] sm:$0xff]  ;;  %v3658_v48 = vld [vmem:[#allocation13 + $0x1180] sm:$0xff] }
 0x477   :  { %3754 = vmatpush1.msra.mxu1 %v3680_v43  ;;  %3838 = vmatprep.subr.mxu0 %v3731_v44  ;;  %v3661_v38 = vld [vmem:[#allocation13 + $0x1198] sm:$0xff]  ;;  %v3660_v41 = vld [vmem:[#allocation13 + $0x1190] sm:$0xff]  ;;  %v3911_v43 = vld [vmem:[#allocation13 + $0x14a8] sm:$0xff] }
 0x478   :  { %3755 = vmatprep.subr.mxu1 %v3679_v46  ;;  %3839 = vmatpush1.msra.mxu0 %v3730_v47  ;;  %v9886_v62 = vadd.f32 %v2494_v13, %v2424_v54  ;;  %v3659_v44 = vld [vmem:[#allocation13 + $0x1188] sm:$0xff]  ;;  %v3910_v47 = vld [vmem:[#allocation13 + $0x14a0] sm:$0xff]  ;;  %v3909_v54 = vld [vmem:[#allocation13 + $0x1498] sm:$0xff] }
 0x479   :  { %3756 = vmatpush1.msra.mxu1 %v3678_v49  ;;  %3840 = vmatprep.subr.mxu0 %v3729_v51  ;;  %v3721_v13 = vld [vmem:[#allocation13 + $0x1378] sm:$0xff] }
 0x47a   :  { %3757 = vmatprep.subr.mxu1 %v3677_v56  ;;  %3841 = vmatpush1.msra.mxu0 %v3728_v59  ;;  %v3908_v56 = vld [vmem:[#allocation13 + $0x1490] sm:$0xff] }
 0x47b   :  { %3758 = vmatpush1.msra.mxu1 %v3676_v1  ;;  %3842 = vmatprep.subr.mxu0 %v3727_v61  ;;  %v3720_v59 = vld [vmem:[#allocation13 + $0x1370] sm:$0xff]  ;;  %v3907_v61 = vld [vmem:[#allocation13 + $0x1488] sm:$0xff] }
 0x47c   :  { %3759 = vmatprep.subr.mxu1 %v3675_v63  ;;  %3843 = vmatpush1.msra.mxu0 %v3726_v16  ;;  %v3719_v63 = vld [vmem:[#allocation13 + $0x1368] sm:$0xff]  ;;  %v3718_v16 = vld [vmem:[#allocation13 + $0x1360] sm:$0xff] }
 0x47d   :  { %3760 = vmatpush1.msra.mxu1 %v3674_v2  ;;  %3844 = vmatprep.subr.mxu0 %v3725_v3  ;;  %v3905_v2 = vld [vmem:[#allocation13 + $0x1478] sm:$0xff] }
 0x47e   :  { %3761 = vmatprep.subr.mxu1 %v3673_v55  ;;  %3845 = vmatpush1.msra.mxu0 %v3724_v6  ;;  %v3717_v3 = vld [vmem:[#allocation13 + $0x1358] sm:$0xff]  ;;  %v3904_v55 = vld [vmem:[#allocation13 + $0x1470] sm:$0xff] }
 0x47f   :  { %3762 = vmatpush1.msra.mxu1 %v3672_v7  ;;  %3846 = vmatprep.subr.mxu0 %v3723_v25  ;;  %v3716_v6 = vld [vmem:[#allocation13 + $0x1350] sm:$0xff]  ;;  %v3715_v7 = vld [vmem:[#allocation13 + $0x1348] sm:$0xff]  ;;  %v3902_v25 = vld [vmem:[#allocation13 + $0x1460] sm:$0xff] }
 0x480   :  { %3763 = vmatprep.subr.mxu1 %v3671_v12  ;;  %3847 = vmatpush1.msra.mxu0 %v3722_v14  ;;  %v3714_v12 = vld [vmem:[#allocation13 + $0x1340] sm:$0xff]  ;;  %v3901_v14 = vld [vmem:[#allocation13 + $0x1458] sm:$0xff] }
 0x481   :  { %3880 = vmatprep.mubr.f32.mxu0 %v9277_v35  ;;  %3764 = vmatpush1.msra.mxu1 %v3670_v18  ;;  %v3900_v18 = vld [vmem:[#allocation13 + $0x1450] sm:$0xff] }
 0x482   :  { %7631 = vmatmul.mubr.msk.f32.vlgmr.msra.gmra.mxu0 %vm1461_vm4, %v3740_v20  ;;  %3973 = vmatprep.subr.mxu0 %v3921_v21  ;;  %v3712_v21 = vld [vmem:[#allocation13 + $0x1330] sm:$0xff]  ;;  %v3899_v20 = vld [vmem:[#allocation13 + $0x1448] sm:$0xff] }
 0x483   :  { %3765 = vmatprep.subr.mxu1 %v3669_v22  ;;  %3974 = vmatpush1.msra.mxu0 %v3920_v23  ;;  %v3711_v22 = vld [vmem:[#allocation13 + $0x1328] sm:$0xff]  ;;  %v3898_v23 = vld [vmem:[#allocation13 + $0x1440] sm:$0xff] }
 0x484   :  { %4037 = vmatprep.mubr.f32.mxu0 %v9893_v26  ;;  %3766 = vmatpush1.msra.mxu1 %v3668_v24  ;;  %v3710_v24 = vld [vmem:[#allocation13 + $0x1320] sm:$0xff] }
 0x485   :  { %3975 = vmatprep.subr.mxu0 %v3919_v52  ;;  %3767 = vmatprep.subr.mxu1 %v3667_v50  ;;  %v2722_v34 = vpop.f32.mrf.mxu1  ;;  %v3897_v52 = vld [vmem:[#allocation13 + $0x1438] sm:$0xff] }
 0x486   :  { %3976 = vmatpush1.msra.mxu0 %v3918_v27  ;;  %3768 = vmatpush1.msra.mxu1 %v3666_v28  ;;  %v3709_v50 = vld [vmem:[#allocation13 + $0x1318] sm:$0xff]  ;;  %v3896_v27 = vld [vmem:[#allocation13 + $0x1430] sm:$0xff] }
 0x487   :  { %3977 = vmatprep.subr.mxu0 %v3917_v57  ;;  %3769 = vmatprep.subr.mxu1 %v3665_v29  ;;  %v2724_v45 = vpop.f32.mrf.mxu1  ;;  %v3708_v28 = vld [vmem:[#allocation13 + $0x1310] sm:$0xff]  ;;  %v3895_v57 = vld [vmem:[#allocation13 + $0x1428] sm:$0xff] }
 0x488   :  { %3978 = vmatpush1.msra.mxu0 %v3916_v30  ;;  %3770 = vmatpush1.msra.mxu1 %v3664_v31  ;;  %v2651_v39 = vpop.f32.mrf.mxu0  ;;  %v3707_v29 = vld [vmem:[#allocation13 + $0x1308] sm:$0xff]  ;;  %v3894_v30 = vld [vmem:[#allocation13 + $0x1420] sm:$0xff] }
 0x489   :  { %3979 = vmatprep.subr.mxu0 %v3915_v32  ;;  %3771 = vmatprep.subr.mxu1 %v3663_v33  ;;  %v2723_v42 = vadd.f32 %v2722_v34, %v2651_v39  ;;  %v3706_v31 = vld [vmem:[#allocation13 + $0x1300] sm:$0xff]  ;;  %v3893_v32 = vld [vmem:[#allocation13 + $0x1418] sm:$0xff]  ;;  %v3892_v34 = vld [vmem:[#allocation13 + $0x1410] sm:$0xff] }
 0x48a   :  { %3980 = vmatpush1.msra.mxu0 %v3914_v36  ;;  %3772 = vmatpush1.msra.mxu1 %v3662_v37  ;;  %v2653_v46 = vpop.f32.mrf.mxu0  ;;  %v3705_v33 = vld [vmem:[#allocation13 + $0x12f8] sm:$0xff]  ;;  %v3704_v36 = vld [vmem:[#allocation13 + $0x12f0] sm:$0xff]  ;;  %v3891_v37 = vld [vmem:[#allocation13 + $0x1408] sm:$0xff] }
 0x48b   :  { %3981 = vmatprep.subr.mxu0 %v3913_v8  ;;  %3773 = vmatprep.subr.mxu1 %v3661_v38  ;;  %v9898_v49 = vadd.f32 %v2723_v42, %v9883_v53  ;;  %v2725_v51 = vadd.f32 %v2724_v45, %v2653_v46  ;;  %v3906_v53 = vld [vmem:[#allocation13 + $0x1480] sm:$0xff]  ;;  %v3703_v8 = vld [vmem:[#allocation13 + $0x12e8] sm:$0xff]  ;;  %v3952_v42 = vld [vmem:[#allocation13 + $0x15f0] sm:$0xff] }
 0x48c   :  { %3982 = vmatpush1.msra.mxu0 %v3912_v40  ;;  %3774 = vmatpush1.msra.mxu1 %v3660_v41  ;;  %v3890_v38 = vld [vmem:[#allocation13 + $0x1400] sm:$0xff]  ;;  %v3953_v40 = vld [vmem:[#allocation13 + $0x15f8] sm:$0xff]  ;;  %v3699_v45 = vld [vmem:[#allocation13 + $0x12c8] sm:$0xff] }
 0x48d   :  { %3983 = vmatprep.subr.mxu0 %v3911_v43  ;;  %3775 = vmatprep.subr.mxu1 %v3659_v44  ;;  %v9901_v1 = vadd.f32 %v2725_v51, %v9886_v62  ;;  %v3903_v62 = vld [vmem:[#allocation13 + $0x1468] sm:$0xff]  ;;  %v3702_v39 = vld [vmem:[#allocation13 + $0x12e0] sm:$0xff]  ;;  %v3701_v41 = vld [vmem:[#allocation13 + $0x12d8] sm:$0xff] }
 0x48e   :  { %3984 = vmatpush1.msra.mxu0 %v3910_v47  ;;  %3776 = vmatpush1.msra.mxu1 %v3658_v48  ;;  %v3700_v43 = vld [vmem:[#allocation13 + $0x12d0] sm:$0xff]  ;;  %v3951_v44 = vld [vmem:[#allocation13 + $0x15e8] sm:$0xff]  ;;  %v3950_v46 = vld [vmem:[#allocation13 + $0x15e0] sm:$0xff] }
 0x48f   :  { %3985 = vmatprep.subr.mxu0 %v3909_v54  ;;  %3777 = vmatprep.subr.mxu1 %v3721_v13  ;;  %v3698_v47 = vld [vmem:[#allocation13 + $0x12c0] sm:$0xff]  ;;  %v3949_v48 = vld [vmem:[#allocation13 + $0x15d8] sm:$0xff]  ;;  %v3948_v54 = vld [vmem:[#allocation13 + $0x15d0] sm:$0xff] }
 0x490   :  { %3986 = vmatpush1.msra.mxu0 %v3908_v56  ;;  %3778 = vmatpush2.msra.mxu1 %v3720_v59  ;;  %v3697_v51 = vld [vmem:[#allocation13 + $0x12b8] sm:$0xff]  ;;  %v3696_v13 = vld [vmem:[#allocation13 + $0x12b0] sm:$0xff]  ;;  %v3947_v56 = vld [vmem:[#allocation13 + $0x15c8] sm:$0xff] }
 0x491   :  { %3987 = vmatprep.subr.mxu0 %v3907_v61  ;;  %3779 = vmatprep.subr.mxu1 %v3719_v63  ;;  %v3695_v59 = vld [vmem:[#allocation13 + $0x12a8] sm:$0xff]  ;;  %v3946_v61 = vld [vmem:[#allocation13 + $0x15c0] sm:$0xff] }
 0x492   :  { %3988 = vmatpush1.msra.mxu0 %v3906_v53  ;;  %3780 = vmatpush2.msra.mxu1 %v3718_v16  ;;  %v3694_v63 = vld [vmem:[#allocation13 + $0x12a0] sm:$0xff]  ;;  %v3945_v53 = vld [vmem:[#allocation13 + $0x15b8] sm:$0xff] }
 0x493   :  { %3989 = vmatprep.subr.mxu0 %v3905_v2  ;;  %3781 = vmatprep.subr.mxu1 %v3717_v3  ;;  %v3693_v16 = vld [vmem:[#allocation13 + $0x1298] sm:$0xff]  ;;  %v3944_v2 = vld [vmem:[#allocation13 + $0x15b0] sm:$0xff] }
 0x494   :  { %3990 = vmatpush1.msra.mxu0 %v3904_v55  ;;  %3782 = vmatpush2.msra.mxu1 %v3716_v6  ;;  %v3692_v3 = vld [vmem:[#allocation13 + $0x1290] sm:$0xff]  ;;  %v3943_v55 = vld [vmem:[#allocation13 + $0x15a8] sm:$0xff] }
 0x495   :  { %3991 = vmatprep.subr.mxu0 %v3903_v62  ;;  %3783 = vmatprep.subr.mxu1 %v3715_v7  ;;  %v3691_v6 = vld [vmem:[#allocation13 + $0x1288] sm:$0xff]  ;;  %v3942_v62 = vld [vmem:[#allocation13 + $0x15a0] sm:$0xff] }
 0x496   :  { %3992 = vmatpush1.msra.mxu0 %v3902_v25  ;;  %3784 = vmatpush2.msra.mxu1 %v3714_v12  ;;  %v3690_v7 = vld [vmem:[#allocation13 + $0x1280] sm:$0xff]  ;;  %v3941_v25 = vld [vmem:[#allocation13 + $0x1598] sm:$0xff]  ;;  %v3738_v12 = vrot.slane %v9832_v4, 7  ;;  %v3935_v4 = vld [vmem:[#allocation13 + $0x1568] sm:$0xff] }
 0x497   :  { %3993 = vmatprep.subr.mxu0 %v3901_v14  ;;  %3785 = vmatprep.subr.mxu1 %v3713_v15  ;;  %v3940_v14 = vld [vmem:[#allocation13 + $0x1590] sm:$0xff]  ;;  %v3969_v15 = vld [vmem:[#allocation13 + $0x1678] sm:$0xff] }
 0x498   :  { %3994 = vmatpush1.msra.mxu0 %v3900_v18  ;;  %3786 = vmatpush2.msra.mxu1 %v3712_v21  ;;  %v3939_v18 = vld [vmem:[#allocation13 + $0x1588] sm:$0xff]  ;;  %v3968_v21 = vld [vmem:[#allocation13 + $0x1670] sm:$0xff] }
 0x499   :  { %3995 = vmatprep.subr.mxu0 %v3899_v20  ;;  %3787 = vmatprep.subr.mxu1 %v3711_v22  ;;  %v3938_v20 = vld [vmem:[#allocation13 + $0x1580] sm:$0xff]  ;;  %v3967_v22 = vld [vmem:[#allocation13 + $0x1668] sm:$0xff] }
 0x49a   :  { %3996 = vmatpush1.msra.mxu0 %v3898_v23  ;;  %3788 = vmatpush2.msra.mxu1 %v3710_v24  ;;  %v3937_v23 = vld [vmem:[#allocation13 + $0x1578] sm:$0xff]  ;;  %v3966_v24 = vld [vmem:[#allocation13 + $0x1660] sm:$0xff] }
 0x49b   :  { %3997 = vmatprep.subr.mxu0 %v3897_v52  ;;  %3789 = vmatprep.subr.mxu1 %v3709_v50  ;;  %v3936_v52 = vld [vmem:[#allocation13 + $0x1570] sm:$0xff]  ;;  %v3965_v50 = vld [vmem:[#allocation13 + $0x1658] sm:$0xff] }
 0x49c   :  { %3998 = vmatpush1.msra.mxu0 %v3896_v27  ;;  %3790 = vmatpush2.msra.mxu1 %v3708_v28  ;;  %v3964_v27 = vld [vmem:[#allocation13 + $0x1650] sm:$0xff]  ;;  %v3934_v28 = vld [vmem:[#allocation13 + $0x1560] sm:$0xff] }
 0x49d   :  { %3999 = vmatprep.subr.mxu0 %v3895_v57  ;;  %3791 = vmatprep.subr.mxu1 %v3707_v29  ;;  %v3963_v57 = vld [vmem:[#allocation13 + $0x1648] sm:$0xff]  ;;  %v3933_v29 = vld [vmem:[#allocation13 + $0x1558] sm:$0xff] }
 0x49e   :  { %4000 = vmatpush1.msra.mxu0 %v3894_v30  ;;  %3792 = vmatpush2.msra.mxu1 %v3706_v31  ;;  %v3962_v30 = vld [vmem:[#allocation13 + $0x1640] sm:$0xff]  ;;  %v3932_v31 = vld [vmem:[#allocation13 + $0x1550] sm:$0xff] }
 0x49f   :  { %4001 = vmatprep.subr.mxu0 %v3893_v32  ;;  %3793 = vmatprep.subr.mxu1 %v3705_v33  ;;  %v3961_v32 = vld [vmem:[#allocation13 + $0x1638] sm:$0xff]  ;;  %v3931_v33 = vld [vmem:[#allocation13 + $0x1548] sm:$0xff] }
 0x4a0   :  { %4002 = vmatpush1.msra.mxu0 %v3892_v34  ;;  %3794 = vmatpush2.msra.mxu1 %v3704_v36  ;;  %v3960_v34 = vld [vmem:[#allocation13 + $0x1630] sm:$0xff]  ;;  %v3930_v36 = vld [vmem:[#allocation13 + $0x1540] sm:$0xff] }
 0x4a1   :  { %4003 = vmatprep.subr.mxu0 %v3891_v37  ;;  %3795 = vmatprep.subr.mxu1 %v3703_v8  ;;  %v3959_v37 = vld [vmem:[#allocation13 + $0x1628] sm:$0xff]  ;;  %v3929_v8 = vld [vmem:[#allocation13 + $0x1538] sm:$0xff] }
 0x4a2   :  { %4004 = vmatpush1.msra.mxu0 %v3890_v38  ;;  %3796 = vmatpush2.msra.mxu1 %v3702_v39  ;;  %v3958_v38 = vld [vmem:[#allocation13 + $0x1620] sm:$0xff]  ;;  %v3928_v39 = vld [vmem:[#allocation13 + $0x1530] sm:$0xff] }
 0x4a3   :  { %4005 = vmatprep.subr.mxu0 %v3953_v40  ;;  %3797 = vmatprep.subr.mxu1 %v3701_v41  ;;  %v3957_v40 = vld [vmem:[#allocation13 + $0x1618] sm:$0xff]  ;;  %v3927_v41 = vld [vmem:[#allocation13 + $0x1528] sm:$0xff] }
 0x4a4   :  { %4006 = vmatpush2.msra.mxu0 %v3952_v42  ;;  %3798 = vmatpush2.msra.mxu1 %v3700_v43  ;;  %v3956_v42 = vld [vmem:[#allocation13 + $0x1610] sm:$0xff]  ;;  %v3926_v43 = vld [vmem:[#allocation13 + $0x1520] sm:$0xff] }
 0x4a5   :  { %4007 = vmatprep.subr.mxu0 %v3951_v44  ;;  %3799 = vmatprep.subr.mxu1 %v3699_v45  ;;  %v3955_v44 = vld [vmem:[#allocation13 + $0x1608] sm:$0xff]  ;;  %v3925_v45 = vld [vmem:[#allocation13 + $0x1518] sm:$0xff] }
 0x4a6   :  { %4008 = vmatpush2.msra.mxu0 %v3950_v46  ;;  %3800 = vmatpush2.msra.mxu1 %v3698_v47  ;;  %v3954_v46 = vld [vmem:[#allocation13 + $0x1600] sm:$0xff]  ;;  %v3924_v47 = vld [vmem:[#allocation13 + $0x1510] sm:$0xff] }
 0x4a7   :  { %4009 = vmatprep.subr.mxu0 %v3949_v48  ;;  %3801 = vmatprep.subr.mxu1 %v3697_v51  ;;  %v4149_v48 = vld [vmem:[#allocation13 + $0x1778] sm:$0xff]  ;;  %v9906_v51 = vadd.f32 %v9820_v58, %v9839_v11  ;;  %v4146_v11 = vld [vmem:[#allocation13 + $0x1760] sm:$0xff] }
 0x4a8   :  { %4010 = vmatpush2.msra.mxu0 %v3948_v54  ;;  %3802 = vmatpush2.msra.mxu1 %v3696_v13  ;;  %v3923_v54 = vld [vmem:[#allocation13 + $0x1508] sm:$0xff]  ;;  %v4148_v13 = vld [vmem:[#allocation13 + $0x1770] sm:$0xff] }
 0x4a9   :  { %4011 = vmatprep.subr.mxu0 %v3947_v56  ;;  %3803 = vmatprep.subr.mxu1 %v3695_v59  ;;  %v3922_v56 = vld [vmem:[#allocation13 + $0x1500] sm:$0xff]  ;;  %v4201_v59 = vrot.slane %v9893_v26, 1  ;;  %v4143_v26 = vld [vmem:[#allocation13 + $0x1748] sm:$0xff] }
 0x4aa   :  { %4012 = vmatpush2.msra.mxu0 %v3946_v61  ;;  %3804 = vmatpush2.msra.mxu1 %v3694_v63  ;;  %v4147_v61 = vld [vmem:[#allocation13 + $0x1768] sm:$0xff]  ;;  %v9914_v63 = vadd.f32 %v9823_v19, %v9837_v10  ;;  %v4142_v10 = vld [vmem:[#allocation13 + $0x1740] sm:$0xff] }
 0x4ab   :  { %4013 = vmatprep.subr.mxu0 %v3945_v53  ;;  %3805 = vmatprep.subr.mxu1 %v3693_v16  ;;  %v4197_v53 = vld [vmem:[#allocation13 + $0x18f8] sm:$0xff] }
 0x4ac   :  { %4014 = vmatpush2.msra.mxu0 %v3944_v2  ;;  %3806 = vmatpush2.msra.mxu1 %v3692_v3  ;;  %v4145_v16 = vld [vmem:[#allocation13 + $0x1758] sm:$0xff]  ;;  %v4196_v2 = vld [vmem:[#allocation13 + $0x18f0] sm:$0xff] }
 0x4ad   :  { %4015 = vmatprep.subr.mxu0 %v3943_v55  ;;  %3807 = vmatprep.subr.mxu1 %v3691_v6  ;;  %v4144_v3 = vld [vmem:[#allocation13 + $0x1750] sm:$0xff]  ;;  %v4195_v55 = vld [vmem:[#allocation13 + $0x18e8] sm:$0xff]  ;;  %v2954_v6 = vpop.f32.mrf.mxu0 }
 0x4ae   :  { %4016 = vmatpush2.msra.mxu0 %v3942_v62  ;;  %3808 = vmatpush2.msra.mxu1 %v3690_v7  ;;  %v4194_v62 = vld [vmem:[#allocation13 + $0x18e0] sm:$0xff]  ;;  %v4193_v7 = vld [vmem:[#allocation13 + $0x18d8] sm:$0xff] }
 0x4af   :  { %4017 = vmatprep.subr.mxu0 %v3941_v25  ;;  %3810 = vmatmul.mubr.f32.vlgmr.msra.gmra.mxu1 %v3738_v12  ;;  %v4141_v25 = vld [vmem:[#allocation13 + $0x1738] sm:$0xff]  ;;  %v4192_v12 = vld [vmem:[#allocation13 + $0x18d0] sm:$0xff] }
 0x4b0   :  { %4018 = vmatpush2.msra.mxu0 %v3940_v14  ;;  %4060 = vmatprep.subr.mxu1 %v3969_v15  ;;  %v4140_v15 = vld [vmem:[#allocation13 + $0x1730] sm:$0xff] }
 0x4b1   :  { %4019 = vmatprep.subr.mxu0 %v3939_v18  ;;  %4061 = vmatpush1.msra.mxu1 %v3968_v21  ;;  %v4191_v18 = vld [vmem:[#allocation13 + $0x18c8] sm:$0xff] }
 0x4b2   :  { %4020 = vmatpush2.msra.mxu0 %v3938_v20  ;;  %4062 = vmatprep.subr.mxu1 %v3967_v22  ;;  %v2956_v20 = vpop.f32.mrf.mxu0  ;;  %v4139_v22 = vld [vmem:[#allocation13 + $0x1728] sm:$0xff] }
 0x4b3   :  { %4021 = vmatprep.subr.mxu0 %v3937_v23  ;;  %4063 = vmatpush1.msra.mxu1 %v3966_v24  ;;  %v4190_v23 = vld [vmem:[#allocation13 + $0x18c0] sm:$0xff] }
 0x4b4   :  { %4022 = vmatpush2.msra.mxu0 %v3936_v52  ;;  %4064 = vmatprep.subr.mxu1 %v3965_v50  ;;  %v4138_v52 = vld [vmem:[#allocation13 + $0x1720] sm:$0xff]  ;;  %v4189_v50 = vld [vmem:[#allocation13 + $0x18b8] sm:$0xff] }
 0x4b5   :  { %4023 = vmatprep.subr.mxu0 %v3935_v4  ;;  %4065 = vmatpush1.msra.mxu1 %v3964_v27 }
 0x4b6   :  { %4024 = vmatpush2.msra.mxu0 %v3934_v28  ;;  %4066 = vmatprep.subr.mxu1 %v3963_v57  ;;  %v4137_v28 = vld [vmem:[#allocation13 + $0x1718] sm:$0xff]  ;;  %v4188_v57 = vld [vmem:[#allocation13 + $0x18b0] sm:$0xff] }
 0x4b7   :  { %4025 = vmatprep.subr.mxu0 %v3933_v29  ;;  %4067 = vmatpush1.msra.mxu1 %v3962_v30  ;;  %v4136_v29 = vld [vmem:[#allocation13 + $0x1710] sm:$0xff]  ;;  %v4187_v30 = vld [vmem:[#allocation13 + $0x18a8] sm:$0xff] }
 0x4b8   :  { %4026 = vmatpush2.msra.mxu0 %v3932_v31  ;;  %4068 = vmatprep.subr.mxu1 %v3961_v32  ;;  %v4135_v32 = vld [vmem:[#allocation13 + $0x1708] sm:$0xff] }
 0x4b9   :  { %4027 = vmatprep.subr.mxu0 %v3931_v33  ;;  %4069 = vmatpush1.msra.mxu1 %v3960_v34  ;;  %v4186_v33 = vld [vmem:[#allocation13 + $0x18a0] sm:$0xff]  ;;  %v4185_v34 = vld [vmem:[#allocation13 + $0x1898] sm:$0xff] }
 0x4ba   :  { %4028 = vmatpush2.msra.mxu0 %v3930_v36  ;;  %4070 = vmatprep.subr.mxu1 %v3959_v37  ;;  %v4133_v36 = vld [vmem:[#allocation13 + $0x16f8] sm:$0xff]  ;;  %v4184_v37 = vld [vmem:[#allocation13 + $0x1890] sm:$0xff] }
 0x4bb   :  { %4029 = vmatprep.subr.mxu0 %v3929_v8  ;;  %4071 = vmatpush1.msra.mxu1 %v3958_v38  ;;  %v4132_v8 = vld [vmem:[#allocation13 + $0x16f0] sm:$0xff]  ;;  %v4183_v38 = vld [vmem:[#allocation13 + $0x1888] sm:$0xff] }
 0x4bc   :  { %4030 = vmatpush2.msra.mxu0 %v3928_v39  ;;  %4072 = vmatprep.subr.mxu1 %v3957_v40  ;;  %v4131_v39 = vld [vmem:[#allocation13 + $0x16e8] sm:$0xff]  ;;  %v9923_v40 = vld [vmem:[#allocation2 + $0x30] sm:$0xff] }
 0x4bd   :  { %4031 = vmatprep.subr.mxu0 %v3927_v41  ;;  %4073 = vmatpush1.msra.mxu1 %v3956_v42  ;;  %v9925_v41 = vld [vmem:[#allocation2 + $0x38] sm:$0xff] }
 0x4be   :  { %4032 = vmatpush2.msra.mxu0 %v3926_v43  ;;  %4074 = vmatprep.subr.mxu1 %v3955_v44  ;;  %v4130_v42 = vld [vmem:[#allocation13 + $0x16e0] sm:$0xff]  ;;  %v4129_v43 = vld [vmem:[#allocation13 + $0x16d8] sm:$0xff]  ;;  %v4202_v44 = vrot.slane %v9906_v51, 1 }
 0x4bf   :  { %4033 = vmatprep.subr.mxu0 %v3925_v45  ;;  %4075 = vmatpush1.msra.mxu1 %v3954_v46  ;;  %v4128_v45 = vld [vmem:[#allocation13 + $0x16d0] sm:$0xff]  ;;  %v4372_v46 = vrot.slane %v9923_v40, 1 }
 0x4c0   :  { %4108 = vmatprep.mubr.f32.mxu1 %v9277_v35  ;;  %4034 = vmatpush2.msra.mxu0 %v3924_v47  ;;  %v4373_v47 = vrot.slane %v9925_v41, 1 }
 0x4c1   :  { %7632 = vmatmul.mubr.msk.f32.vlgmr.msra.gmra.mxu1 %vm1461_vm4, %v9906_v51  ;;  %4207 = vmatprep.subr.mxu1 %v4149_v48  ;;  %v4127_v48 = vld [vmem:[#allocation13 + $0x16c8] sm:$0xff]  ;;  %v4124_v51 = vld [vmem:[#allocation13 + $0x16b0] sm:$0xff] }
 0x4c2   :  { %4035 = vmatprep.subr.mxu0 %v3923_v54  ;;  %4208 = vmatpush1.msra.mxu1 %v4148_v13  ;;  %v4126_v54 = vld [vmem:[#allocation13 + $0x16c0] sm:$0xff] }
 0x4c3   :  { %4271 = vmatprep.mubr.f32.mxu1 %v4201_v59  ;;  %4036 = vmatpush2.msra.mxu0 %v3922_v56  ;;  %v7931_v13 = vld [vmem:[#allocation5 + $0x38] sm:$0xff]  ;;  %v4125_v56 = vld [vmem:[#allocation13 + $0x16b8] sm:$0xff]  ;;  %v4374_v59 = vsel %vm160_vm0, %v4372_v46, %v4373_v47 }
 0x4c4   :  { %4209 = vmatprep.subr.mxu1 %v4147_v61  ;;  %4038 = vmatmul.mubr.f32.vlgmr.msra.gmra.mxu0 %v9914_v63  ;;  %v7932_v61 = vld [vmem:[#allocation5 + $0x30] sm:$0xff]  ;;  %v7941_v46 = vld [vmem:[#allocation5 + $0x78] sm:$0xff] }
 0x4c5   :  { %4210 = vmatpush1.msra.mxu1 %v4146_v11  ;;  %4294 = vmatprep.subr.mxu0 %v4197_v53  ;;  %v4123_v11 = vld [vmem:[#allocation13 + $0x16a8] sm:$0xff]  ;;  %v4122_v53 = vld [vmem:[#allocation13 + $0x16a0] sm:$0xff] }
 0x4c6   :  { %4211 = vmatprep.subr.mxu1 %v4145_v16  ;;  %4295 = vmatpush1.msra.mxu0 %v4196_v2  ;;  %v4121_v2 = vld [vmem:[#allocation13 + $0x1698] sm:$0xff] }
 0x4c7   :  { %4212 = vmatpush1.msra.mxu1 %v4144_v3  ;;  %4296 = vmatprep.subr.mxu0 %v4195_v55  ;;  %v2883_v14 = vpop.f32.mrf.mxu1  ;;  %v4120_v3 = vld [vmem:[#allocation13 + $0x1690] sm:$0xff] }
 0x4c8   :  { %4213 = vmatprep.subr.mxu1 %v4143_v26  ;;  %4297 = vmatpush1.msra.mxu0 %v4194_v62  ;;  %v2955_v21 = vadd.f32 %v2954_v6, %v2883_v14  ;;  %v7933_v6 = vld [vmem:[#allocation5 + $0x8] sm:$0xff]  ;;  %v4119_v26 = vld [vmem:[#allocation13 + $0x1688] sm:$0xff]  ;;  %v4533_v14 = vrot.slane %v9923_v40, 2 }
 0x4c9   :  { %4214 = vmatpush1.msra.mxu1 %v4142_v10  ;;  %4298 = vmatprep.subr.mxu0 %v4193_v7  ;;  %v2885_v24 = vpop.f32.mrf.mxu1  ;;  %v4118_v10 = vld [vmem:[#allocation13 + $0x1680] sm:$0xff] }
 0x4ca   :  { %4215 = vmatprep.subr.mxu1 %v4141_v25  ;;  %4299 = vmatpush1.msra.mxu0 %v4192_v12  ;;  %v9918_v4 = vadd.f32 %v2955_v21, %v9898_v49  ;;  %v2957_v27 = vadd.f32 %v2956_v20, %v2885_v24  ;;  %v4134_v49 = vld [vmem:[#allocation13 + $0x1700] sm:$0xff]  ;;  %v7934_v12 = vld [vmem:[#allocation5] sm:$0xff]  ;;  %v4181_v20 = vld [vmem:[#allocation13 + $0x1878] sm:$0xff] }
 0x4cb   :  { %4216 = vmatpush1.msra.mxu1 %v4140_v15  ;;  %4300 = vmatprep.subr.mxu0 %v4191_v18  ;;  %v4534_v15 = vrot.slane %v9925_v41, 2  ;;  %v7935_v24 = vld [vmem:[#allocation5 + $0x68] sm:$0xff] }
 0x4cc   :  { %4217 = vmatprep.subr.mxu1 %v4139_v22  ;;  %4301 = vmatpush1.msra.mxu0 %v4190_v23  ;;  %v9921_v31 = vadd.f32 %v2957_v27, %v9901_v1  ;;  %v4182_v1 = vld [vmem:[#allocation13 + $0x1880] sm:$0xff]  ;;  %v4180_v22 = vld [vmem:[#allocation13 + $0x1870] sm:$0xff]  ;;  %v7936_v27 = vld [vmem:[#allocation5 + $0x60] sm:$0xff] }
 0x4cd   :  { %4218 = vmatpush1.msra.mxu1 %v4138_v52  ;;  %4302 = vmatprep.subr.mxu0 %v4189_v50  ;;  %v4179_v52 = vld [vmem:[#allocation13 + $0x1868] sm:$0xff]  ;;  %v4535_v50 = vsel %vm326_vm2, %v4533_v14, %v4534_v15 }
 0x4ce   :  { %4219 = vmatprep.subr.mxu1 %v4137_v28  ;;  %4303 = vmatpush1.msra.mxu0 %v4188_v57  ;;  %v4177_v28 = vld [vmem:[#allocation13 + $0x1858] sm:$0xff]  ;;  %v4176_v57 = vld [vmem:[#allocation13 + $0x1850] sm:$0xff] }
 0x4cf   :  { %4220 = vmatpush1.msra.mxu1 %v4136_v29  ;;  %4304 = vmatprep.subr.mxu0 %v4187_v30  ;;  %v4618_v29 = vld [vmem:[#allocation2 + $0x40] sm:$0xff]  ;;  %v4619_v30 = vld [vmem:[#allocation2 + $0x48] sm:$0xff] }
 0x4d0   :  { %4221 = vmatprep.subr.mxu1 %v4135_v32  ;;  %4305 = vmatpush1.msra.mxu0 %v4186_v33  ;;  %v4175_v32 = vld [vmem:[#allocation13 + $0x1848] sm:$0xff]  ;;  %v4174_v33 = vld [vmem:[#allocation13 + $0x1840] sm:$0xff] }
 0x4d1   :  { %4222 = vmatpush1.msra.mxu1 %v4134_v49  ;;  %4306 = vmatprep.subr.mxu0 %v4185_v34  ;;  %v7938_v49 = vld [vmem:[#allocation5 + $0x10] sm:$0xff]  ;;  %v4703_v34 = vrot.slane %v4618_v29, 1 }
 0x4d2   :  { %4223 = vmatprep.subr.mxu1 %v4133_v36  ;;  %4307 = vmatpush1.msra.mxu0 %v4184_v37  ;;  %v4704_v36 = vrot.slane %v4619_v30, 1  ;;  %v4173_v37 = vld [vmem:[#allocation13 + $0x1838] sm:$0xff] }
 0x4d3   :  { %4224 = vmatpush1.msra.mxu1 %v4132_v8  ;;  %4308 = vmatprep.subr.mxu0 %v4183_v38  ;;  %v4172_v8 = vld [vmem:[#allocation13 + $0x1830] sm:$0xff] }
 0x4d4   :  { %4225 = vmatprep.subr.mxu1 %v4131_v39  ;;  %4309 = vmatpush1.msra.mxu0 %v4182_v1  ;;  %v7939_v38 = vld [vmem:[#allocation5 + $0x48] sm:$0xff]  ;;  %v4171_v39 = vld [vmem:[#allocation13 + $0x1828] sm:$0xff]  ;;  %v4705_v1 = vsel %vm160_vm0, %v4703_v34, %v4704_v36  ;;  %v7954_v34 = vld [vmem:[%s10567_s3 + $0xb0] sm:$0xff] }
 0x4d5   :  { %4342 = vmatprep.mubr.f32.mxu0 %v9277_v35  ;;  %4226 = vmatpush1.msra.mxu1 %v4130_v42  ;;  %v7940_v42 = vld [vmem:[#allocation5 + $0x40] sm:$0xff] }
 0x4d6   :  { %7633 = vmatmul.mubr.msk.f32.vlgmr.msra.gmra.mxu0 %vm1461_vm4, %v4202_v44  ;;  %4227 = vmatprep.subr.mxu1 %v4129_v43  ;;  %v4788_v43 = vrot.slane %v4619_v30, 2  ;;  %v4169_v44 = vld [vmem:[#allocation13 + $0x1818] sm:$0xff] }
 0x4d7   :  { %4228 = vmatpush1.msra.mxu1 %v4128_v45  ;;  %7851 = vmatprep.subr.mxu0 %v7931_v13  ;;  %v4168_v45 = vld [vmem:[#allocation13 + $0x1810] sm:$0xff] }
 0x4d8   :  { %4229 = vmatprep.subr.mxu1 %v4127_v48  ;;  %7852 = vmatpush3.msra.mxu0 %v7931_v13  ;;  %v7942_v13 = vld [vmem:[#allocation5 + $0x70] sm:$0xff] }
 0x4d9   :  { %4230 = vmatpush1.msra.mxu1 %v4126_v54  ;;  %7853 = vmatprep.subr.mxu0 %v7932_v61  ;;  %v3186_v16 = vpop.f32.mrf.mxu1  ;;  %v4166_v54 = vld [vmem:[#allocation13 + $0x1800] sm:$0xff] }
 0x4da   :  { %4231 = vmatprep.subr.mxu1 %v4125_v56  ;;  %7854 = vmatpush3.msra.mxu0 %v7932_v61  ;;  %v4165_v56 = vld [vmem:[#allocation13 + $0x17f8] sm:$0xff]  ;;  %v4163_v61 = vld [vmem:[#allocation13 + $0x17e8] sm:$0xff] }
 0x4db   :  { %4232 = vmatpush1.msra.mxu1 %v4124_v51  ;;  %7855 = vmatprep.mubr.msk.f32.mxu0 %vm164_vm1, %v4374_v59  ;;  %v3188_v7 = vpop.f32.mrf.mxu1  ;;  %v4164_v51 = vld [vmem:[#allocation13 + $0x17f0] sm:$0xff] }
 0x4dc   :  { %4233 = vmatprep.subr.mxu1 %v4123_v11  ;;  %7856 = vmatmul.mubr.msk.f32.vlgmr.msra.gmra.mxu0 %vm164_vm1, %v4373_v47  ;;  %v3115_v55 = vpop.f32.mrf.mxu0  ;;  %v4167_v47 = vld [vmem:[#allocation13 + $0x1808] sm:$0xff]  ;;  %v7943_v59 = vld [vmem:[#allocation5 + $0x28] sm:$0xff]  ;;  %v4872_v11 = vld [vmem:[#allocation2 + $0x50] sm:$0xff] }
 0x4dd   :  { %4234 = vmatpush1.msra.mxu1 %v4122_v53  ;;  %7858 = vmatprep.subr.mxu0 %v7933_v6  ;;  %v3187_v62 = vadd.f32 %v3186_v16, %v3115_v55  ;;  %v4162_v53 = vld [vmem:[#allocation13 + $0x17e0] sm:$0xff]  ;;  %v7944_v16 = vld [vmem:[#allocation5 + $0x20] sm:$0xff]  ;;  %v5041_v55 = vrot.slane %v4872_v11, 2 }
 0x4de   :  { %4235 = vmatprep.subr.mxu1 %v4121_v2  ;;  %7859 = vmatpush3.msra.mxu0 %v7933_v6  ;;  %v3117_v25 = vpop.f32.mrf.mxu0  ;;  %v9958_v2 = vld [vmem:[#allocation2 + $0x58] sm:$0xff]  ;;  %v4160_v6 = vld [vmem:[#allocation13 + $0x17d0] sm:$0xff] }
 0x4df   :  { %4236 = vmatpush1.msra.mxu1 %v4120_v3  ;;  %7860 = vmatprep.subr.mxu0 %v7934_v12  ;;  %v9938_v18 = vadd.f32 %v3187_v62, %v9918_v4  ;;  %v3189_v21 = vadd.f32 %v3188_v7, %v3117_v25  ;;  %v4178_v4 = vld [vmem:[#allocation13 + $0x1860] sm:$0xff]  ;;  %v4161_v3 = vld [vmem:[#allocation13 + $0x17d8] sm:$0xff]  ;;  %v4159_v62 = vld [vmem:[#allocation13 + $0x17c8] sm:$0xff] }
 0x4e0   :  { %4237 = vmatprep.subr.mxu1 %v4119_v26  ;;  %7861 = vmatpush3.msra.mxu0 %v7934_v12  ;;  %v5042_v26 = vrot.slane %v9958_v2, 2  ;;  %v4157_v7 = vld [vmem:[#allocation13 + $0x17b8] sm:$0xff]  ;;  %v7945_v25 = vld [vmem:[#allocation5 + $0x88] sm:$0xff] }
 0x4e1   :  { %7862 = vmatprep.mubr.msk.f32.mxu0 %vm164_vm1, %v9923_v40  ;;  %4238 = vmatpush1.msra.mxu1 %v4118_v10  ;;  %v9943_v23 = vadd.f32 %v3189_v21, %v9921_v31  ;;  %v7937_v31 = vld [vmem:[#allocation5 + $0x18] sm:$0xff]  ;;  %v4156_v12 = vld [vmem:[#allocation13 + $0x17b0] sm:$0xff]  ;;  %v7946_v21 = vld [vmem:[#allocation5 + $0x80] sm:$0xff] }
 0x4e2   :  { %7863 = vmatmul.mubr.msk.f32.vlgmr.msra.gmra.mxu0 %vm164_vm1, %v9925_v41  ;;  %7865 = vmatprep.subr.mxu0 %v7935_v24  ;;  %v4170_v40 = vld [vmem:[#allocation13 + $0x1820] sm:$0xff]  ;;  %v4787_v41 = vrot.slane %v4618_v29, 2  ;;  %v5043_v14 = vsel %vm326_vm2, %v5041_v55, %v5042_v26  ;;  %v7981_v55 = vld [vmem:[%s10567_s3 + $0x150] sm:$0xff] }
 0x4e3   :  { %4239 = vmatprep.subr.mxu1 %v4181_v20  ;;  %7866 = vmatpush3.msra.mxu0 %v7935_v24  ;;  %v4158_v10 = vld [vmem:[#allocation13 + $0x17c0] sm:$0xff]  ;;  %v4957_v24 = vrot.slane %v4872_v11, 1 }
 0x4e4   :  { %4240 = vmatpush2.msra.mxu1 %v4180_v22  ;;  %7867 = vmatprep.subr.mxu0 %v7936_v27  ;;  %v4789_v48 = vsel %vm326_vm2, %v4787_v41, %v4788_v43  ;;  %v4154_v20 = vld [vmem:[#allocation13 + $0x17a0] sm:$0xff]  ;;  %v4153_v22 = vld [vmem:[#allocation13 + $0x1798] sm:$0xff] }
 0x4e5   :  { %4241 = vmatprep.subr.mxu1 %v4179_v52  ;;  %7868 = vmatpush3.msra.mxu0 %v7936_v27  ;;  %v4152_v52 = vld [vmem:[#allocation13 + $0x1790] sm:$0xff]  ;;  %v7947_v27 = vld [vmem:[%s10567_s3 + $0xd8] sm:$0xff]  ;;  %v7962_v41 = vld [vmem:[%s10567_s3 + $0x90] sm:$0xff] }
 0x4e6   :  { %7869 = vmatprep.mubr.msk.f32.mxu0 %vm164_vm1, %v4535_v50  ;;  %4242 = vmatpush2.msra.mxu1 %v4178_v4  ;;  %v4958_v50 = vrot.slane %v9958_v2, 1  ;;  %v4151_v4 = vld [vmem:[#allocation13 + $0x1788] sm:$0xff] }
 0x4e7   :  { %7870 = vmatmul.mubr.msk.f32.vlgmr.msra.gmra.mxu0 %vm164_vm1, %v4534_v15  ;;  %7872 = vmatprep.subr.mxu0 %v7937_v31  ;;  %v4155_v15 = vld [vmem:[#allocation13 + $0x17a8] sm:$0xff] }
 0x4e8   :  { %4243 = vmatprep.subr.mxu1 %v4177_v28  ;;  %7873 = vmatpush3.msra.mxu0 %v7937_v31  ;;  %v4150_v28 = vld [vmem:[#allocation13 + $0x1780] sm:$0xff]  ;;  %v4959_v31 = vsel %vm160_vm0, %v4957_v24, %v4958_v50 }
 0x4e9   :  { %4244 = vmatpush2.msra.mxu1 %v4176_v57  ;;  %7874 = vmatprep.subr.mxu0 %v7938_v49  ;;  %v7948_v57 = vld [vmem:[%s10567_s3 + $0xd0] sm:$0xff] }
 0x4ea   :  { %4245 = vmatprep.subr.mxu1 %v4175_v32  ;;  %7875 = vmatpush3.msra.mxu0 %v7938_v49  ;;  %v7950_v32 = vld [vmem:[%s10567_s3 + $0xc0] sm:$0xff]  ;;  %v7952_v49 = vld [vmem:[#allocation5 + $0x58] sm:$0xff] }
 0x4eb   :  { %7876 = vmatprep.mubr.msk.f32.mxu0 %vm164_vm1, %v4618_v29  ;;  %4246 = vmatpush2.msra.mxu1 %v4174_v33  ;;  %v7949_v29 = vld [vmem:[%s10567_s3 + $0xc8] sm:$0xff]  ;;  %v7951_v33 = vld [vmem:[%s10567_s3 + $0xb8] sm:$0xff] }
 0x4ec   :  { %7877 = vmatmul.mubr.msk.f32.vlgmr.msra.gmra.mxu0 %vm164_vm1, %v4619_v30  ;;  %7879 = vmatprep.subr.mxu0 %v7939_v38  ;;  %v4200_v30 = vrot.slane %v9914_v63, 1  ;;  %v7953_v63 = vld [vmem:[#allocation5 + $0x50] sm:$0xff] }
 0x4ed   :  { %4247 = vmatprep.subr.mxu1 %v4173_v37  ;;  %7880 = vmatpush3.msra.mxu0 %v7939_v38  ;;  %v7956_v37 = vld [vmem:[%s10567_s3 + $0x1b8] sm:$0xff]  ;;  %v7958_v38 = vld [vmem:[%s10567_s3 + $0xa0] sm:$0xff] }
 0x4ee   :  { %4248 = vmatpush2.msra.mxu1 %v4172_v8  ;;  %7881 = vmatprep.subr.mxu0 %v7940_v42  ;;  %v7957_v8 = vld [vmem:[%s10567_s3 + $0x1b0] sm:$0xff] }
 0x4ef   :  { %4249 = vmatprep.subr.mxu1 %v4171_v39  ;;  %7882 = vmatpush3.msra.mxu0 %v7940_v42  ;;  %v7959_v39 = vld [vmem:[%s10567_s3 + $0x1a8] sm:$0xff]  ;;  %v7963_v42 = vld [vmem:[%s10567_s3 + $0x198] sm:$0xff] }
 0x4f0   :  { %7883 = vmatprep.mubr.msk.f32.mxu0 %vm164_vm1, %v4705_v1  ;;  %4250 = vmatpush2.msra.mxu1 %v4170_v40  ;;  %v7960_v1 = vld [vmem:[%s10567_s3 + $0x98] sm:$0xff]  ;;  %v7961_v40 = vld [vmem:[%s10567_s3 + $0x1a0] sm:$0xff] }
 0x4f1   :  { %7884 = vmatmul.mubr.msk.f32.vlgmr.msra.gmra.mxu0 %vm164_vm1, %v4704_v36  ;;  %7886 = vmatprep.subr.mxu0 %v7941_v46  ;;  %v7955_v36 = vld [vmem:[%s10567_s3 + $0xa8] sm:$0xff] }
 0x4f2   :  { %4251 = vmatprep.subr.mxu1 %v4169_v44  ;;  %7887 = vmatpush3.msra.mxu0 %v7941_v46  ;;  %v7965_v44 = vld [vmem:[%s10567_s3 + $0x190] sm:$0xff]  ;;  %v7967_v46 = vld [vmem:[%s10567_s3 + $0x188] sm:$0xff] }
 0x4f3   :  { %4252 = vmatpush2.msra.mxu1 %v4168_v45  ;;  %7888 = vmatprep.subr.mxu0 %v7942_v13  ;;  %v7966_v45 = vld [vmem:[%s10567_s3 + $0x80] sm:$0xff] }
 0x4f4   :  { %4253 = vmatprep.subr.mxu1 %v4167_v47  ;;  %7889 = vmatpush3.msra.mxu0 %v7942_v13  ;;  %v7968_v47 = vld [vmem:[%s10567_s3 + $0x78] sm:$0xff] }
 0x4f5   :  { %7890 = vmatprep.mubr.msk.f32.mxu0 %vm164_vm1, %v4789_v48  ;;  %4254 = vmatpush2.msra.mxu1 %v4166_v54  ;;  %v7969_v48 = vld [vmem:[%s10567_s3 + $0x180] sm:$0xff]  ;;  %v7970_v54 = vld [vmem:[%s10567_s3 + $0x70] sm:$0xff]  ;;  %v7971_v13 = vld [vmem:[%s10567_s3 + $0x178] sm:$0xff] }
 0x4f6   :  { %7891 = vmatmul.mubr.msk.f32.vlgmr.msra.gmra.mxu0 %vm164_vm1, %v4788_v43  ;;  %7893 = vmatprep.subr.mxu0 %v7943_v59  ;;  %v7964_v43 = vld [vmem:[%s10567_s3 + $0x88] sm:$0xff] }
 0x4f7   :  { %4255 = vmatprep.subr.mxu1 %v4165_v56  ;;  %7894 = vmatpush3.msra.mxu0 %v7943_v59  ;;  %v7972_v56 = vld [vmem:[%s10567_s3 + $0x68] sm:$0xff]  ;;  %v7974_v59 = vld [vmem:[%s10567_s3 + $0x60] sm:$0xff] }
 0x4f8   :  { %4256 = vmatpush2.msra.mxu1 %v4164_v51  ;;  %7895 = vmatprep.subr.mxu0 %v7944_v16  ;;  %v7973_v51 = vld [vmem:[%s10567_s3 + $0x170] sm:$0xff] }
 0x4f9   :  { %4257 = vmatprep.subr.mxu1 %v4163_v61  ;;  %7896 = vmatpush3.msra.mxu0 %v7944_v16  ;;  %v7975_v61 = vld [vmem:[%s10567_s3 + $0x168] sm:$0xff]  ;;  %v7978_v16 = vld [vmem:[%s10567_s3 + $0x50] sm:$0xff] }
 0x4fa   :  { %7897 = vmatprep.mubr.msk.f32.mxu0 %vm164_vm1, %v4872_v11  ;;  %4258 = vmatpush2.msra.mxu1 %v4162_v53  ;;  %v7976_v11 = vld [vmem:[%s10567_s3 + $0x58] sm:$0xff]  ;;  %v7977_v53 = vld [vmem:[%s10567_s3 + $0x160] sm:$0xff] }
 0x4fb   :  { %7898 = vmatmul.mubr.msk.f32.vlgmr.msra.gmra.mxu0 %vm164_vm1, %v9958_v2  ;;  %4259 = vmatprep.subr.mxu1 %v4161_v3  ;;  %v7979_v2 = vld [vmem:[%s10567_s3 + $0x158] sm:$0xff]  ;;  %v7980_v3 = vld [vmem:[%s10567_s3 + $0x48] sm:$0xff] }
 0x4fc   :  { %4260 = vmatpush2.msra.mxu1 %v4160_v6  ;;  %7907 = vmatprep.subr.mxu0 %v7945_v25  ;;  %v7982_v6 = vld [vmem:[%s10567_s3 + $0x40] sm:$0xff] }
 0x4fd   :  { %4261 = vmatprep.subr.mxu1 %v4159_v62  ;;  %7908 = vmatpush3.msra.mxu0 %v7945_v25  ;;  %v7983_v62 = vld [vmem:[%s10567_s3 + $0x148] sm:$0xff]  ;;  %v7986_v25 = vld [vmem:[%s10567_s3 + $0x30] sm:$0xff] }
 0x4fe   :  { %4262 = vmatpush2.msra.mxu1 %v4158_v10  ;;  %7909 = vmatprep.subr.mxu0 %v7946_v21  ;;  %v7984_v10 = vld [vmem:[%s10567_s3 + $0x38] sm:$0xff] }
 0x4ff   :  { %4263 = vmatprep.subr.mxu1 %v4157_v7  ;;  %7910 = vmatpush3.msra.mxu0 %v7946_v21  ;;  %v7985_v7 = vld [vmem:[%s10567_s3 + $0x140] sm:$0xff] }
 0x500   :  { %4264 = vmatpush2.msra.mxu1 %v4156_v12  ;;  %7911 = vmatprep.mubr.msk.f32.mxu0 %vm164_vm1, %v5043_v14  ;;  %v7987_v14 = vld [vmem:[%s10567_s3 + $0x138] sm:$0xff] }
 0x501   :  { %4265 = vmatprep.subr.mxu1 %v4155_v15  ;;  %7912 = vmatmul.mubr.msk.f32.vlgmr.msra.gmra.mxu0 %vm164_vm1, %v5042_v26  ;;  %v3418_v26 = vpop.f32.mrf.mxu0  ;;  %v7988_v15 = vld [vmem:[%s10567_s3 + $0x28] sm:$0xff] }
 0x502   :  { %4266 = vmatpush2.msra.mxu1 %v4154_v20  ;;  %5221 = vmatprep.subr.mxu0 %v7947_v27  ;;  %v7989_v20 = vld [vmem:[%s10567_s3 + $0x130] sm:$0xff] }
 0x503   :  { %4267 = vmatprep.subr.mxu1 %v4153_v22  ;;  %5222 = vmatpush1.msra.mxu0 %v7948_v57  ;;  %v7990_v22 = vld [vmem:[%s10567_s3 + $0x20] sm:$0xff]  ;;  %v3420_v24 = vpop.f32.mrf.mxu0 }
 0x504   :  { %4268 = vmatpush2.msra.mxu1 %v4152_v52  ;;  %5223 = vmatprep.subr.mxu0 %v7949_v29  ;;  %v7993_v57 = vld [vmem:[%s10567_s3 + $0x120] sm:$0xff]  ;;  %v7994_v29 = vld [vmem:[%s10567_s3 + $0x10] sm:$0xff] }
 0x505   :  { %4269 = vmatprep.subr.mxu1 %v4151_v4  ;;  %5224 = vmatpush1.msra.mxu0 %v7950_v32  ;;  %v7992_v4 = vld [vmem:[%s10567_s3 + $0x18] sm:$0xff]  ;;  %v7997_v32 = vld [vmem:[%s10567_s3 + $0x110] sm:$0xff] }
 0x506   :  { %4270 = vmatpush2.msra.mxu1 %v4150_v28  ;;  %5225 = vmatprep.subr.mxu0 %v7951_v33  ;;  %v7998_v33 = vld [vmem:[%s10567_s3] sm:$0xff] }
 0x507   :  { %4272 = vmatmul.mubr.f32.vlgmr.msra.gmra.mxu1 %v4200_v30  ;;  %7900 = vmatprep.subr.mxu1 %v7952_v49  ;;  %v7995_v30 = vld [vmem:[%s10567_s3 + $0x118] sm:$0xff] }
 0x508   :  { %7901 = vmatpush3.msra.mxu1 %v7952_v49  ;;  %7904 = vmatprep.mubr.msk.f32.mxu1 %vm164_vm1, %v4959_v31  ;;  %v7999_v49 = vld [vmem:[%s10567_s3 + $0x108] sm:$0xff] }
 0x509   :  { %7902 = vmatprep.subr.mxu1 %v7953_v63  ;;  %5226 = vmatpush1.msra.mxu0 %v7954_v34  ;;  %v8002_v34 = vld [vmem:[#allocation10 + $0x3b0] sm:$0xff] }
 0x50a   :  { %7903 = vmatpush3.msra.mxu1 %v7953_v63  ;;  %5227 = vmatprep.subr.mxu0 %v7955_v36  ;;  %v8001_v63 = vld [vmem:[%s10567_s3 + $0xf8] sm:$0xff]  ;;  %v8003_v36 = vld [vmem:[%s10567_s3 + $0xf0] sm:$0xff] }
 0x50b   :  { %7905 = vmatmul.mubr.msk.f32.vlgmr.msra.gmra.mxu1 %vm164_vm1, %v4958_v50  ;;  %5140 = vmatprep.subr.mxu1 %v7956_v37  ;;  %v7991_v50 = vld [vmem:[%s10567_s3 + $0x128] sm:$0xff] }
 0x50c   :  { %5141 = vmatpush1.msra.mxu1 %v7957_v8  ;;  %5228 = vmatpush1.msra.mxu0 %v7958_v38  ;;  %v8004_v37 = vld [vmem:[%s10567_s3 + $0xe8] sm:$0xff]  ;;  %v8005_v8 = vld [vmem:[%s10567_s3 + $0xe0] sm:$0xff]  ;;  %v8006_v38 = vld [vmem:[%s10567_s3 + $0x298] sm:$0xff] }
 0x50d   :  { %5142 = vmatprep.subr.mxu1 %v7959_v39  ;;  %5229 = vmatprep.subr.mxu0 %v7960_v1 }
 0x50e   :  { %5143 = vmatpush1.msra.mxu1 %v7961_v40  ;;  %5230 = vmatpush1.msra.mxu0 %v7962_v41 }
 0x50f   :  { %5144 = vmatprep.subr.mxu1 %v7963_v42  ;;  %5231 = vmatprep.subr.mxu0 %v7964_v43 }
 0x510   :  { %5145 = vmatpush1.msra.mxu1 %v7965_v44  ;;  %5232 = vmatpush1.msra.mxu0 %v7966_v45 }
 0x511   :  { %5146 = vmatprep.subr.mxu1 %v7967_v46  ;;  %5233 = vmatprep.subr.mxu0 %v7968_v47 }
 0x512   :  { %5147 = vmatpush1.msra.mxu1 %v7969_v48  ;;  %5234 = vmatpush1.msra.mxu0 %v7970_v54 }
 0x513   :  { %5148 = vmatprep.subr.mxu1 %v7971_v13  ;;  %5235 = vmatprep.subr.mxu0 %v7972_v56 }
 0x514   :  { %5149 = vmatpush1.msra.mxu1 %v7973_v51  ;;  %5236 = vmatpush1.msra.mxu0 %v7974_v59 }
 0x515   :  { %5150 = vmatprep.subr.mxu1 %v7975_v61  ;;  %5237 = vmatprep.subr.mxu0 %v7976_v11 }
 0x516   :  { %5151 = vmatpush1.msra.mxu1 %v7977_v53  ;;  %5238 = vmatpush1.msra.mxu0 %v7978_v16 }
 0x517   :  { %5152 = vmatprep.subr.mxu1 %v7979_v2  ;;  %5239 = vmatprep.subr.mxu0 %v7980_v3 }
 0x518   :  { %5153 = vmatpush1.msra.mxu1 %v7981_v55  ;;  %5240 = vmatpush1.msra.mxu0 %v7982_v6 }
 0x519   :  { %5154 = vmatprep.subr.mxu1 %v7983_v62  ;;  %5241 = vmatprep.subr.mxu0 %v7984_v10 }
 0x51a   :  { %5155 = vmatpush1.msra.mxu1 %v7985_v7  ;;  %5242 = vmatpush1.msra.mxu0 %v7986_v25 }
 0x51b   :  { %v3347_v12 = vpop.f32.mrf.mxu1  ;;  %5156 = vmatprep.subr.mxu1 %v7987_v14  ;;  %5243 = vmatprep.subr.mxu0 %v7988_v15 }
 0x51c   :  { %v3419_v21 = vadd.f32 %v3418_v26, %v3347_v12  ;;  %5157 = vmatpush1.msra.mxu1 %v7989_v20  ;;  %5244 = vmatpush1.msra.mxu0 %v7990_v22 }
 0x51d   :  { %v3349_v52 = vpop.f32.mrf.mxu1  ;;  %5158 = vmatprep.subr.mxu1 %v7991_v50  ;;  %5245 = vmatprep.subr.mxu0 %v7992_v4 }
 0x51e   :  { %v3423_v27 = vadd.f32 %v3419_v21, %v9938_v18  ;;  %v3421_v28 = vadd.f32 %v3420_v24, %v3349_v52  ;;  %5159 = vmatpush1.msra.mxu1 %v7993_v57  ;;  %5246 = vmatpush1.msra.mxu0 %v7994_v29  ;;  %v7996_v18 = vld [vmem:[%s10567_s3 + $0x8] sm:$0xff] }
 0x51f   :  { %5160 = vmatprep.subr.mxu1 %v7995_v30  ;;  %5247 = vmatprep.subr.mxu0 %v7996_v18 }
 0x520   :  { %v3424_v31 = vadd.f32 %v3421_v28, %v9943_v23  ;;  %5161 = vmatpush1.msra.mxu1 %v7997_v32  ;;  %5248 = vmatpush1.msra.mxu0 %v7998_v33  ;;  %v8000_v23 = vld [vmem:[%s10567_s3 + $0x100] sm:$0xff] }
 0x521   :  { %5162 = vmatprep.subr.mxu1 %v7999_v49  ;;  %5281 = vmatprep.mubr.f32.mxu0 %v9277_v35 }
 0x522   :  { %5163 = vmatpush1.msra.mxu1 %v8000_v23  ;;  %5200 = vmatprep.mubr.f32.mxu1 %v9277_v35 }
 0x523   :  { %5164 = vmatprep.subr.mxu1 %v8001_v63  ;;  %5402 = vmatprep.subr.mxu0 %v8002_v34 }
 0x524   :  { %5165 = vmatpush1.msra.mxu1 %v8003_v36 }
 0x525   :  { %5166 = vmatprep.subr.mxu1 %v8004_v37 }
 0x526   :  { %5167 = vmatpush1.msra.mxu1 %v8005_v8 }
 0x527   :  { %5305 = vmatprep.subr.mxu1 %v8006_v38 }
 0x52d   :  { %v3650_v39 = vpop.f32.mrf.mxu1 }
 0x52f   :  { %v3652_v41 = vpop.f32.mrf.mxu1 }
 0x530   :  { %v3579_v1 = vpop.f32.mrf.mxu0 }
 0x531   :  { %v3651_v40 = vadd.f32 %v3650_v39, %v3579_v1 }
 0x532   :  { %v3581_v42 = vpop.f32.mrf.mxu0 }
 0x533   :  { %v3655_v43 = vadd.f32 %v3651_v40, %v3423_v27  ;;  %v3653_v44 = vadd.f32 %v3652_v41, %v3581_v42 }
 0x535   :  { %v3656_v45 = vadd.f32 %v3653_v44, %v3424_v31 }
 0x542   :  { %v3882_v46 = vpop.f32.mrf.mxu0 }
 0x544   :  { %v3884_v54 = vpop.f32.mrf.mxu0 }
 0x56f   :  { %v3811_v47 = vpop.f32.mrf.mxu1 }
 0x570   :  { %v3883_v48 = vadd.f32 %v3882_v46, %v3811_v47  ;;  %v8007_v47 = vld [vmem:[#allocation7] ss:$0 sm:$0xff] }
 0x571   :  { %v3813_v13 = vpop.f32.mrf.mxu1 }
 0x572   :  { %v3887_v56 = vadd.f32 %v3883_v48, %v3655_v43  ;;  %v3885_v51 = vadd.f32 %v3884_v54, %v3813_v13 }
 0x574   :  { %v3888_v59 = vadd.f32 %v3885_v51, %v3656_v45 }
 0x581   :  { %v4110_v61 = vpop.f32.mrf.mxu1 }
 0x583   :  { %v4112_v16 = vpop.f32.mrf.mxu1 }
 0x584   :  { %v4039_v11 = vpop.f32.mrf.mxu0 }
 0x585   :  { %v4111_v53 = vadd.f32 %v4110_v61, %v4039_v11  ;;  %v8009_v11 = vld [vmem:[#allocation10 + $0x398] sm:$0xff] }
 0x586   :  { %v4041_v2 = vpop.f32.mrf.mxu0 }
 0x587   :  { %v4115_v3 = vadd.f32 %v4111_v53, %v3887_v56  ;;  %v4113_v55 = vadd.f32 %v4112_v16, %v4041_v2  ;;  %v8010_v53 = vld [vmem:[#allocation10 + $0x390] sm:$0xff]  ;;  %v8011_v16 = vld [vmem:[%s10567_s3 + $0x290] sm:$0xff] }
 0x588   :  { %v8012_v2 = vld [vmem:[%s10567_s3 + $0x288] sm:$0xff] }
 0x589   :  { %v4116_v6 = vadd.f32 %v4113_v55, %v3888_v59  ;;  %v8008_v59 = vld [vmem:[#allocation10 + $0x3a8] sm:$0xff]  ;;  %v8014_v55 = vld [vmem:[#allocation10 + $0x380] sm:$0xff] }
 0x596   :  { %v4344_v26 = vpop.f32.mrf.mxu0 }
 0x598   :  { %v4346_v62 = vpop.f32.mrf.mxu0 }
 0x59c   :  { %v7857_v10 = vpop.f32.mrf.mxu0 }
 0x59e   :  { %v4445_v7 = vpop.f32.mrf.mxu0 }
 0x5a2   :  { %v7864_v25 = vpop.f32.mrf.mxu0 }
 0x5a3   :  { %v4530_v24 = vadd.f32 %v7864_v25, %v7857_v10  ;;  %v8018_v10 = vld [vmem:[#allocation10 + $0x378] sm:$0xff]  ;;  %v8020_v25 = vld [vmem:[#allocation10 + $0x368] sm:$0xff] }
 0x5a4   :  { %v4524_v12 = vpop.f32.mrf.mxu0 }
 0x5a5   :  { %v4525_v52 = vadd.f32 %v4524_v12, %v4445_v7  ;;  %v8019_v7 = vld [vmem:[%s10567_s3 + $0x260] sm:$0xff]  ;;  %v8021_v12 = vld [vmem:[%s10567_s3 + $0x258] sm:$0xff] }
 0x5a7   :  { %v7871_v14 = vpop.f32.mrf.mxu0 }
 0x5a8   :  { %v4616_v4 = vadd.f32 %v7871_v14, %v4530_v24  ;;  %v8022_v14 = vld [vmem:[#allocation10 + $0x360] sm:$0xff]  ;;  %v8027_v24 = vld [vmem:[%s10567_s3 + $0x240] sm:$0xff] }
 0x5a9   :  { %v4606_v15 = vpop.f32.mrf.mxu0 }
 0x5aa   :  { %v4615_v27 = vadd.f32 %v4606_v15, %v4525_v52  ;;  %v8023_v15 = vld [vmem:[%s10567_s3 + $0x250] sm:$0xff] }
 0x5ab   :  { %v8028_v52 = vld [vmem:[#allocation10 + $0x338] sm:$0xff] }
 0x5ac   :  { %v7878_v21 = vpop.f32.mrf.mxu0 }
 0x5ad   :  { %v4702_v57 = vadd.f32 %v7878_v21, %v4616_v4  ;;  %v8024_v21 = vld [vmem:[#allocation10 + $0x350] sm:$0xff] }
 0x5ae   :  { %v4692_v20 = vpop.f32.mrf.mxu0  ;;  %v8030_v4 = vld [vmem:[#allocation10 + $0x330] sm:$0xff] }
 0x5af   :  { %v4701_v29 = vadd.f32 %v4692_v20, %v4615_v27  ;;  %v8025_v20 = vld [vmem:[%s10567_s3 + $0x248] sm:$0xff]  ;;  %v8031_v27 = vld [vmem:[%s10567_s3 + $0x230] sm:$0xff] }
 0x5b1   :  { %v7885_v22 = vpop.f32.mrf.mxu0 }
 0x5b2   :  { %v4786_v18 = vadd.f32 %v7885_v22, %v4702_v57  ;;  %v8026_v22 = vld [vmem:[#allocation10 + $0x348] sm:$0xff]  ;;  %v8033_v57 = vld [vmem:[%s10567_s3 + $0x228] sm:$0xff] }
 0x5b3   :  { %v4776_v50 = vpop.f32.mrf.mxu0 }
 0x5b4   :  { %v4785_v31 = vadd.f32 %v4776_v50, %v4701_v29  ;;  %v8029_v50 = vld [vmem:[%s10567_s3 + $0x238] sm:$0xff]  ;;  %v8034_v29 = vld [vmem:[#allocation10 + $0x318] sm:$0xff] }
 0x5b6   :  { %v7892_v28 = vpop.f32.mrf.mxu0 }
 0x5b7   :  { %v4870_v33 = vadd.f32 %v7892_v28, %v4786_v18  ;;  %v8032_v28 = vld [vmem:[#allocation10 + $0x320] sm:$0xff]  ;;  %v8036_v18 = vld [vmem:[#allocation10 + $0x308] sm:$0xff] }
 0x5b8   :  { %v4860_v30 = vpop.f32.mrf.mxu0 }
 0x5b9   :  { %v4869_v23 = vadd.f32 %v4860_v30, %v4785_v31  ;;  %v8035_v30 = vld [vmem:[%s10567_s3 + $0x220] sm:$0xff]  ;;  %v8037_v31 = vld [vmem:[%s10567_s3 + $0x218] sm:$0xff] }
 0x5bb   :  { %v7899_v32 = vpop.f32.mrf.mxu0 }
 0x5bc   :  { %v4956_v37 = vadd.f32 %v7899_v32, %v4870_v33  ;;  %v8038_v32 = vld [vmem:[#allocation10 + $0x300] sm:$0xff] }
 0x5bd   :  { %v4946_v34 = vpop.f32.mrf.mxu0  ;;  %v8039_v33 = vld [vmem:[%s10567_s3 + $0x210] sm:$0xff] }
 0x5be   :  { %v4955_v40 = vadd.f32 %v4946_v34, %v4869_v23  ;;  %v8041_v23 = vld [vmem:[%s10567_s3 + $0x208] sm:$0xff]  ;;  %v8043_v34 = vld [vmem:[%s10567_s3 + $0x200] sm:$0xff] }
 0x5c1   :  { %v7913_v1 = vpop.f32.mrf.mxu0 }
 0x5c3   :  { %v5114_v46 = vpop.f32.mrf.mxu0 }
 0x5c7   :  { %v4273_v49 = vpop.f32.mrf.mxu1 }
 0x5c8   :  { %v4345_v63 = vadd.f32 %v4344_v26, %v4273_v49  ;;  %v8016_v26 = vld [vmem:[%s10567_s3 + $0x270] sm:$0xff]  ;;  %v8040_v49 = vld [vmem:[#allocation10 + $0x2f0] sm:$0xff] }
 0x5c9   :  { %v4275_v36 = vpop.f32.mrf.mxu1 }
 0x5ca   :  { %v10147_v8 = vadd.f32 %v4345_v63, %v4115_v3  ;;  %v4347_v38 = vadd.f32 %v4346_v62, %v4275_v36  ;;  %v8013_v3 = vld [vmem:[%s10567_s3 + $0x280] sm:$0xff]  ;;  %v8017_v62 = vld [vmem:[%s10567_s3 + $0x268] sm:$0xff] }
 0x5cb   :  { %v7906_v39 = vpop.f32.mrf.mxu1  ;;  %v8042_v63 = vld [vmem:[#allocation10 + $0x2e8] sm:$0xff]  ;;  %v8044_v36 = vld [vmem:[#allocation10 + $0x2d8] sm:$0xff] }
 0x5cc   :  { %v10149_v41 = vadd.f32 %v4347_v38, %v4116_v6  ;;  %v5040_v42 = vadd.f32 %v7906_v39, %v4956_v37  ;;  %v8015_v6 = vld [vmem:[%s10567_s3 + $0x278] sm:$0xff]  ;;  %v8046_v38 = vld [vmem:[#allocation10 + $0x2d0] sm:$0xff]  ;;  %v8047_v39 = vld [vmem:[%s10567_s3 + $0x1f0] sm:$0xff] }
 0x5cd   :  { %v5030_v43 = vpop.f32.mrf.mxu1  ;;  %v8045_v37 = vld [vmem:[%s10567_s3 + $0x1f8] sm:$0xff] }
 0x5ce   :  { %v5124_v44 = vadd.f32 %v7913_v1, %v5040_v42  ;;  %v5039_v45 = vadd.f32 %v5030_v43, %v4955_v40  ;;  %v8048_v1 = vld [vmem:[#allocation10 + $0x2c0] sm:$0xff]  ;;  %v8049_v40 = vld [vmem:[%s10567_s3 + $0x1e8] sm:$0xff] }
 0x5cf   :  { %v8050_v42 = vld [vmem:[#allocation10 + $0x2b8] sm:$0xff] }
 0x5d0   :  { %v10151_v48 = vadd.f32 %v8007_v47, %v5124_v44  ;;  %v5123_v54 = vadd.f32 %v5114_v46, %v5039_v45  ;;  %v8051_v44 = vld [vmem:[%s10567_s3 + $0x1e0] sm:$0xff]  ;;  %v8053_v46 = vld [vmem:[%s10567_s3 + $0x1d8] sm:$0xff] }
 0x5d1   :  { %v8052_v45 = vld [vmem:[#allocation10 + $0x2a8] sm:$0xff] }
 0x5d2   :  { %v10153_v13 = vadd.f32 %v8007_v47, %v5123_v54  ;;  %v5130_v56 = vrot.slane %v10151_v48, 1  ;;  %v8054_v47 = vld [vmem:[#allocation10 + $0x2a0] sm:$0xff]  ;;  %v5295_v54 = vrot.slane %v10151_v48, 2 }
 0x5d4   :  { %v5129_v51 = vrot.slane %v10153_v13, 1  ;;  %7654 = vmatmul.mubr.msk.f32.vlgmr.msra.gmra.mxu0 %vm1008_vm3, %v10153_v13  ;;  %v5294_v43 = vrot.slane %v10153_v13, 2  ;;  %v8055_v13 = vld [vmem:[%s10567_s3 + $0x1d0] sm:$0xff] }
 0x5d5   :  { %5287 = vmatprep.mubr.f32.mxu0 %v9277_v35  ;;  %5403 = vmatpush1.msra.mxu0 %v8008_v59  ;;  %v8058_v59 = vld [vmem:[#allocation10 + $0x288] sm:$0xff] }
 0x5d6   :  { %v5131_v61 = vsel %vm160_vm0, %v5129_v51, %v5130_v56  ;;  %5404 = vmatprep.subr.mxu0 %v8009_v11  ;;  %v8057_v51 = vld [vmem:[%s10567_s3 + $0x1c8] sm:$0xff] }
 0x5d7   :  { %7652 = vmatmul.mubr.msk.f32.vlgmr.msra.gmra.mxu1 %vm1008_vm3, %v5131_v61  ;;  %5405 = vmatpush1.msra.mxu0 %v8010_v53  ;;  %v8059_v61 = vld [vmem:[%s10567_s3 + $0x1c0] sm:$0xff]  ;;  %v8060_v11 = vld [vmem:[#allocation10 + $0x278] sm:$0xff] }
 0x5d8   :  { %5306 = vmatpush1.msra.mxu1 %v8011_v16  ;;  %7655 = vmatmul.mubr.msk.f32.gmra.mxu0 %vm1008_vm3, %v10151_v48  ;;  %v5296_v48 = vsel %vm326_vm2, %v5294_v43, %v5295_v54  ;;  %v8061_v53 = vld [vmem:[#allocation10 + $0x3b8] sm:$0xff]  ;;  %v8062_v16 = vld [vmem:[#allocation10 + $0x270] sm:$0xff] }
 0x5d9   :  { %5307 = vmatprep.subr.mxu1 %v8012_v2  ;;  %5206 = vmatprep.mubr.f32.mxu1 %v9277_v35  ;;  %v8063_v2 = vld [vmem:[#allocation10 + $0x3a0] sm:$0xff]  ;;  %v8102_v43 = vld [vmem:[#allocation10 + $0x430] sm:$0xff] }
 0x5da   :  { %5308 = vmatpush1.msra.mxu1 %v8013_v3  ;;  %5406 = vmatprep.subr.mxu0 %v8014_v55  ;;  %v8064_v3 = vld [vmem:[#allocation10 + $0x260] sm:$0xff]  ;;  %v8065_v55 = vld [vmem:[#allocation10 + $0x388] sm:$0xff] }
 0x5db   :  { %5309 = vmatprep.subr.mxu1 %v8015_v6  ;;  %7653 = vmatmul.mubr.msk.f32.gmra.mxu1 %vm1008_vm3, %v5130_v56  ;;  %v8056_v56 = vld [vmem:[#allocation10 + $0x290] sm:$0xff]  ;;  %v8066_v6 = vld [vmem:[#allocation10 + $0x258] sm:$0xff] }
 0x5dc   :  { %5310 = vmatpush1.msra.mxu1 %v8016_v26  ;;  %5365 = vmatprep.mubr.f32.mxu1 %v9277_v35  ;;  %v8067_v26 = vld [vmem:[#allocation10 + $0x248] sm:$0xff] }
 0x5dd   :  { %5311 = vmatprep.subr.mxu1 %v8017_v62  ;;  %5407 = vmatpush1.msra.mxu0 %v8018_v10  ;;  %v8068_v62 = vld [vmem:[#allocation10 + $0x370] sm:$0xff]  ;;  %v8069_v10 = vld [vmem:[#allocation10 + $0x240] sm:$0xff] }
 0x5de   :  { %5312 = vmatpush1.msra.mxu1 %v8019_v7  ;;  %5408 = vmatprep.subr.mxu0 %v8020_v25  ;;  %v8070_v7 = vld [vmem:[#allocation10 + $0x470] sm:$0xff]  ;;  %v8071_v25 = vld [vmem:[#allocation10 + $0x358] sm:$0xff] }
 0x5df   :  { %5313 = vmatprep.subr.mxu1 %v8021_v12  ;;  %5409 = vmatpush1.msra.mxu0 %v8022_v14  ;;  %v8072_v12 = vld [vmem:[#allocation10 + $0x468] sm:$0xff]  ;;  %v8073_v14 = vld [vmem:[#allocation10 + $0x458] sm:$0xff] }
 0x5e0   :  { %5314 = vmatpush1.msra.mxu1 %v8023_v15  ;;  %5410 = vmatprep.subr.mxu0 %v8024_v21  ;;  %v8074_v15 = vld [vmem:[#allocation10 + $0x340] sm:$0xff]  ;;  %v8075_v21 = vld [vmem:[#allocation10 + $0x450] sm:$0xff] }
 0x5e1   :  { %5315 = vmatprep.subr.mxu1 %v8025_v20  ;;  %5411 = vmatpush1.msra.mxu0 %v8026_v22  ;;  %v8076_v20 = vld [vmem:[#allocation10 + $0x440] sm:$0xff]  ;;  %v8077_v22 = vld [vmem:[#allocation10 + $0x328] sm:$0xff] }
 0x5e2   :  { %5316 = vmatpush1.msra.mxu1 %v8027_v24  ;;  %5412 = vmatprep.subr.mxu0 %v8028_v52  ;;  %v8078_v24 = vld [vmem:[#allocation10 + $0x438] sm:$0xff]  ;;  %v8079_v52 = vld [vmem:[#allocation10 + $0x428] sm:$0xff] }
 0x5e3   :  { %5317 = vmatprep.subr.mxu1 %v8029_v50  ;;  %5413 = vmatpush1.msra.mxu0 %v8030_v4  ;;  %v8080_v50 = vld [vmem:[#allocation10 + $0x310] sm:$0xff]  ;;  %v8081_v4 = vld [vmem:[#allocation10 + $0x420] sm:$0xff] }
 0x5e4   :  { %5318 = vmatpush1.msra.mxu1 %v8031_v27  ;;  %5414 = vmatprep.subr.mxu0 %v8032_v28  ;;  %v8082_v27 = vld [vmem:[#allocation10 + $0x410] sm:$0xff]  ;;  %v8083_v28 = vld [vmem:[#allocation10 + $0x2f8] sm:$0xff] }
 0x5e5   :  { %5319 = vmatprep.subr.mxu1 %v8033_v57  ;;  %5415 = vmatpush1.msra.mxu0 %v8034_v29  ;;  %v8084_v57 = vld [vmem:[#allocation10 + $0x408] sm:$0xff]  ;;  %v8085_v29 = vld [vmem:[#allocation10 + $0x3f8] sm:$0xff] }
 0x5e6   :  { %5320 = vmatpush1.msra.mxu1 %v8035_v30  ;;  %5416 = vmatprep.subr.mxu0 %v8036_v18  ;;  %v8086_v30 = vld [vmem:[#allocation10 + $0x2e0] sm:$0xff]  ;;  %v8087_v18 = vld [vmem:[#allocation10 + $0x3f0] sm:$0xff] }
 0x5e7   :  { %5321 = vmatprep.subr.mxu1 %v8037_v31  ;;  %5417 = vmatpush1.msra.mxu0 %v8038_v32  ;;  %v8088_v31 = vld [vmem:[#allocation10 + $0x3e0] sm:$0xff]  ;;  %v8089_v32 = vld [vmem:[#allocation10 + $0x2c8] sm:$0xff] }
 0x5e8   :  { %5322 = vmatpush1.msra.mxu1 %v8039_v33  ;;  %5418 = vmatprep.subr.mxu0 %v8040_v49  ;;  %v8090_v33 = vld [vmem:[#allocation10 + $0x3d8] sm:$0xff]  ;;  %v8091_v49 = vld [vmem:[#allocation10 + $0x3c8] sm:$0xff] }
 0x5e9   :  { %5323 = vmatprep.subr.mxu1 %v8041_v23  ;;  %5419 = vmatpush1.msra.mxu0 %v8042_v63  ;;  %v8092_v23 = vld [vmem:[#allocation10 + $0x2b0] sm:$0xff]  ;;  %v8093_v63 = vld [vmem:[#allocation10 + $0x3c0] sm:$0xff] }
 0x5ea   :  { %5324 = vmatpush1.msra.mxu1 %v8043_v34  ;;  %5420 = vmatprep.subr.mxu0 %v8044_v36  ;;  %v8094_v34 = vld [vmem:[#allocation10 + $0x170] sm:$0xff]  ;;  %v8095_v36 = vld [vmem:[#allocation10 + $0x298] sm:$0xff] }
 0x5eb   :  { %5325 = vmatprep.subr.mxu1 %v8045_v37  ;;  %5421 = vmatpush1.msra.mxu0 %v8046_v38  ;;  %v8096_v37 = vld [vmem:[#allocation10 + $0x280] sm:$0xff]  ;;  %v8097_v38 = vld [vmem:[#allocation10 + $0x268] sm:$0xff] }
 0x5ec   :  { %5326 = vmatpush1.msra.mxu1 %v8047_v39  ;;  %5422 = vmatprep.subr.mxu0 %v8048_v1  ;;  %v8098_v39 = vld [vmem:[#allocation10 + $0x250] sm:$0xff]  ;;  %v8099_v1 = vld [vmem:[#allocation10 + $0x478] sm:$0xff] }
 0x5ed   :  { %5327 = vmatprep.subr.mxu1 %v8049_v40  ;;  %5423 = vmatpush1.msra.mxu0 %v8050_v42  ;;  %v8100_v40 = vld [vmem:[#allocation10 + $0x460] sm:$0xff]  ;;  %v8101_v42 = vld [vmem:[#allocation10 + $0x448] sm:$0xff] }
 0x5ee   :  { %5328 = vmatpush1.msra.mxu1 %v8051_v44  ;;  %5424 = vmatprep.subr.mxu0 %v8052_v45  ;;  %v8103_v44 = vld [vmem:[#allocation10 + $0x418] sm:$0xff]  ;;  %v8104_v45 = vld [vmem:[#allocation10 + $0x400] sm:$0xff] }
 0x5ef   :  { %5329 = vmatprep.subr.mxu1 %v8053_v46  ;;  %5425 = vmatpush1.msra.mxu0 %v8054_v47  ;;  %v8105_v46 = vld [vmem:[#allocation10 + $0x3e8] sm:$0xff]  ;;  %v8106_v47 = vld [vmem:[#allocation10 + $0x3d0] sm:$0xff] }
 0x5f0   :  { %5330 = vmatpush1.msra.mxu1 %v8055_v13  ;;  %5426 = vmatprep.subr.mxu0 %v8056_v56 }
 0x5f1   :  { %5331 = vmatprep.subr.mxu1 %v8057_v51  ;;  %5427 = vmatpush1.msra.mxu0 %v8058_v59 }
 0x5f2   :  { %5332 = vmatpush1.msra.mxu1 %v8059_v61  ;;  %5428 = vmatprep.subr.mxu0 %v8060_v11 }
 0x5f3   :  { %7656 = vmatmul.mubr.msk.f32.vlgmr.msra.gmra.mxu1 %vm1008_vm3, %v5296_v48  ;;  %5479 = vmatprep.subr.mxu1 %v9277_v35 }
 0x5f4   :  { %5371 = vmatprep.mubr.f32.mxu1 %v9277_v35  ;;  %5480 = vmatpush1.msra.mxu1 %v8061_v53 }
 0x5f5   :  { %5481 = vmatprep.subr.mxu1 %v9277_v35  ;;  %5429 = vmatpush1.msra.mxu0 %v8062_v16 }
 0x5f6   :  { %5482 = vmatpush1.msra.mxu1 %v8063_v2  ;;  %5430 = vmatprep.subr.mxu0 %v8064_v3 }
 0x5f7   :  { %7657 = vmatmul.mubr.msk.f32.gmra.mxu1 %vm1008_vm3, %v5295_v54  ;;  %5483 = vmatprep.subr.mxu1 %v9277_v35 }
 0x5f8   :  { %5484 = vmatpush1.msra.mxu1 %v8065_v55  ;;  %5431 = vmatpush1.msra.mxu0 %v8066_v6 }
 0x5f9   :  { %5485 = vmatprep.subr.mxu1 %v9277_v35  ;;  %5432 = vmatprep.subr.mxu0 %v8067_v26 }
 0x5fa   :  { %5486 = vmatpush1.msra.mxu1 %v8068_v62  ;;  %5433 = vmatpush1.msra.mxu0 %v8069_v10 }
 0x5fb   :  { %5487 = vmatprep.subr.mxu1 %v9277_v35  ;;  %5450 = vmatprep.subr.mxu0 %v8070_v7 }
 0x5fc   :  { %5488 = vmatpush1.msra.mxu1 %v8071_v25  ;;  %5451 = vmatpush2.msra.mxu0 %v8072_v12 }
 0x5fd   :  { %5489 = vmatprep.subr.mxu1 %v9277_v35  ;;  %5452 = vmatprep.subr.mxu0 %v8073_v14 }
 0x5fe   :  { %5490 = vmatpush1.msra.mxu1 %v8074_v15  ;;  %5453 = vmatpush2.msra.mxu0 %v8075_v21 }
 0x5ff   :  { %5491 = vmatprep.subr.mxu1 %v9277_v35  ;;  %5454 = vmatprep.subr.mxu0 %v8076_v20 }
 0x600   :  { %5492 = vmatpush1.msra.mxu1 %v8077_v22  ;;  %5455 = vmatpush2.msra.mxu0 %v8078_v24 }
 0x601   :  { %5493 = vmatprep.subr.mxu1 %v9277_v35  ;;  %5456 = vmatprep.subr.mxu0 %v8079_v52 }
 0x602   :  { %5494 = vmatpush1.msra.mxu1 %v8080_v50  ;;  %5457 = vmatpush2.msra.mxu0 %v8081_v4 }
 0x603   :  { %5495 = vmatprep.subr.mxu1 %v9277_v35  ;;  %5458 = vmatprep.subr.mxu0 %v8082_v27 }
 0x604   :  { %5496 = vmatpush1.msra.mxu1 %v8083_v28  ;;  %5459 = vmatpush2.msra.mxu0 %v8084_v57  ;;  %v8107_v57 = vld [vmem:[#allocation10 + $0x168] sm:$0xff] }
 0x605   :  { %5497 = vmatprep.subr.mxu1 %v9277_v35  ;;  %5460 = vmatprep.subr.mxu0 %v8085_v29  ;;  %v8108_v29 = vld [vmem:[#allocation10 + $0x178] sm:$0xff] }
 0x606   :  { %5498 = vmatpush1.msra.mxu1 %v8086_v30  ;;  %5461 = vmatpush2.msra.mxu0 %v8087_v18  ;;  %v8109_v30 = vld [vmem:[#allocation10 + $0x158] sm:$0xff]  ;;  %v8110_v18 = vld [vmem:[#allocation10 + $0x150] sm:$0xff] }
 0x607   :  { %5499 = vmatprep.subr.mxu1 %v9277_v35  ;;  %5462 = vmatprep.subr.mxu0 %v8088_v31  ;;  %v8111_v31 = vld [vmem:[#allocation10 + $0x160] sm:$0xff] }
 0x608   :  { %5500 = vmatpush1.msra.mxu1 %v8089_v32  ;;  %5463 = vmatpush2.msra.mxu0 %v8090_v33  ;;  %v8112_v32 = vld [vmem:[#allocation10 + $0x140] sm:$0xff]  ;;  %v8113_v33 = vld [vmem:[#allocation10 + $0x138] sm:$0xff] }
 0x609   :  { %5501 = vmatprep.subr.mxu1 %v9277_v35  ;;  %5464 = vmatprep.subr.mxu0 %v8091_v49  ;;  %v8114_v49 = vld [vmem:[#allocation10 + $0x148] sm:$0xff] }
 0x60a   :  { %5502 = vmatpush1.msra.mxu1 %v8092_v23  ;;  %5465 = vmatpush2.msra.mxu0 %v8093_v63  ;;  %v8115_v23 = vld [vmem:[#allocation10 + $0x128] sm:$0xff]  ;;  %v8116_v63 = vld [vmem:[#allocation10 + $0x120] sm:$0xff] }
 0x60b   :  { %5503 = vmatprep.subr.mxu1 %v9277_v35  ;;  %5558 = vmatprep.subr.mxu0 %v8094_v34  ;;  %v8117_v34 = vld [vmem:[#allocation10 + $0x130] sm:$0xff] }
 0x60c   :  { %5504 = vmatpush1.msra.mxu1 %v8095_v36  ;;  %v8118_v36 = vld [vmem:[#allocation10 + $0x110] sm:$0xff] }
 0x60d   :  { %5505 = vmatprep.subr.mxu1 %v9277_v35 }
 0x60e   :  { %5506 = vmatpush1.msra.mxu1 %v8096_v37  ;;  %v8119_v37 = vld [vmem:[#allocation10 + $0x108] sm:$0xff] }
 0x60f   :  { %5507 = vmatprep.subr.mxu1 %v9277_v35 }
 0x610   :  { %5508 = vmatpush1.msra.mxu1 %v8097_v38  ;;  %v8120_v38 = vld [vmem:[#allocation10 + $0x118] sm:$0xff] }
 0x611   :  { %5509 = vmatprep.subr.mxu1 %v9277_v35 }
 0x612   :  { %5510 = vmatpush1.msra.mxu1 %v8098_v39  ;;  %v8121_v39 = vld [vmem:[#allocation10 + $0xf8] sm:$0xff] }
 0x613   :  { %5527 = vmatprep.subr.mxu1 %v9277_v35 }
 0x614   :  { %5528 = vmatpush2.msra.mxu1 %v8099_v1  ;;  %v8122_v1 = vld [vmem:[#allocation10 + $0xf0] sm:$0xff] }
 0x615   :  { %5529 = vmatprep.subr.mxu1 %v9277_v35 }
 0x616   :  { %5530 = vmatpush2.msra.mxu1 %v8100_v40  ;;  %v8123_v40 = vld [vmem:[#allocation10 + $0x100] sm:$0xff] }
 0x617   :  { %5531 = vmatprep.subr.mxu1 %v9277_v35 }
 0x618   :  { %5532 = vmatpush2.msra.mxu1 %v8101_v42  ;;  %v8124_v42 = vld [vmem:[#allocation10 + $0xe0] sm:$0xff] }
 0x619   :  { %5533 = vmatprep.subr.mxu1 %v9277_v35 }
 0x61a   :  { %5534 = vmatpush2.msra.mxu1 %v8102_v43  ;;  %v8125_v43 = vld [vmem:[#allocation10 + $0xd8] sm:$0xff] }
 0x61b   :  { %5535 = vmatprep.subr.mxu1 %v9277_v35 }
 0x61c   :  { %5536 = vmatpush2.msra.mxu1 %v8103_v44  ;;  %v8126_v44 = vld [vmem:[#allocation10 + $0xe8] sm:$0xff] }
 0x61d   :  { %5537 = vmatprep.subr.mxu1 %v9277_v35 }
 0x61e   :  { %5538 = vmatpush2.msra.mxu1 %v8104_v45  ;;  %v8127_v45 = vld [vmem:[#allocation10 + $0xc8] sm:$0xff] }
 0x61f   :  { %5539 = vmatprep.subr.mxu1 %v9277_v35 }
 0x620   :  { %5540 = vmatpush2.msra.mxu1 %v8105_v46  ;;  %v8128_v46 = vld [vmem:[#allocation10 + $0xc0] sm:$0xff] }
 0x621   :  { %5541 = vmatprep.subr.mxu1 %v9277_v35 }
 0x622   :  { %5542 = vmatpush2.msra.mxu1 %v8106_v47  ;;  %v8129_v47 = vld [vmem:[#allocation10 + $0xd0] sm:$0xff] }
 0x623   :  { %5635 = vmatprep.subr.mxu1 %v9277_v35 }
 0x694   :  { %v5283_v56 = vpop.f32.mrf.mxu0 }
 0x696   :  { %v5285_v59 = vpop.f32.mrf.mxu0 }
 0x697   :  { %v5202_v54 = vpop.f32.mrf.mxu1 }
 0x698   :  { %v5284_v48 = vadd.f32 %v5283_v56, %v5202_v54  ;;  %v5289_v11 = vpop.f32.mrf.mxu0  ;;  %v8130_v54 = vld [vmem:[#allocation10 + $0xb0] sm:$0xff]  ;;  %v8132_v56 = vld [vmem:[#allocation10 + $0xb8] sm:$0xff] }
 0x699   :  { %v5204_v13 = vpop.f32.mrf.mxu1 }
 0x69a   :  { %v5286_v16 = vadd.f32 %v5285_v59, %v5204_v13  ;;  %v5291_v26 = vpop.f32.mrf.mxu0  ;;  %v8131_v13 = vld [vmem:[#allocation10 + $0xa8] sm:$0xff]  ;;  %v8134_v59 = vld [vmem:[#allocation10 + $0x90] sm:$0xff] }
 0x69b   :  { %v5208_v51 = vpop.f32.mrf.mxu1 }
 0x69c   :  { %v5290_v55 = vadd.f32 %v5289_v11, %v5208_v51  ;;  %v8133_v51 = vld [vmem:[#allocation10 + $0x98] sm:$0xff] }
 0x69d   :  { %v5210_v61 = vpop.f32.mrf.mxu1  ;;  %v8137_v11 = vld [vmem:[#allocation10 + $0x78] sm:$0xff] }
 0x69e   :  { %v5292_v10 = vadd.f32 %v5291_v26, %v5210_v61  ;;  %v8135_v61 = vld [vmem:[#allocation10 + $0xa0] sm:$0xff]  ;;  %v8144_v26 = vld [vmem:[#allocation10 + $0x58] sm:$0xff] }
 0x6b3   :  { %v5367_v53 = vpop.f32.mrf.mxu1 }
 0x6b4   :  { %v5378_v2 = vadd.f32 %v5367_v53, %v5284_v48  ;;  %v8136_v48 = vld [vmem:[#allocation10 + $0x80] sm:$0xff]  ;;  %v8138_v53 = vld [vmem:[#allocation10 + $0x88] sm:$0xff] }
 0x6b5   :  { %v5369_v3 = vpop.f32.mrf.mxu1 }
 0x6b6   :  { %v5379_v6 = vadd.f32 %v5369_v3, %v5286_v16  ;;  %v10280_v7 = vadd.f32 %v5378_v2, %v9706_v5  ;;  %v8139_v16 = vld [vmem:[#allocation10 + $0x68] sm:$0xff]  ;;  %v8140_v2 = vld [vmem:[#allocation10 + $0x60] sm:$0xff]  ;;  %v8141_v3 = vld [vmem:[#allocation10 + $0x70] sm:$0xff] }
 0x6b7   :  { %v5373_v62 = vpop.f32.mrf.mxu1 }
 0x6b8   :  { %v5380_v25 = vadd.f32 %v5373_v62, %v5290_v55  ;;  %v10283_v14 = vadd.f32 %v5379_v6, %v9709_v9  ;;  %v5710_v22 = vrot.slane %v10280_v7, 2  ;;  %v8142_v55 = vld [vmem:[#allocation10 + $0x50] sm:$0xff]  ;;  %v8143_v6 = vld [vmem:[#allocation10 + $0x48] sm:$0xff]  ;;  %v8145_v62 = vld [vmem:[#allocation10 + $0x38] sm:$0xff] }
 0x6b9   :  { %v5375_v12 = vpop.f32.mrf.mxu1 }
 0x6ba   :  { %v10286_v15 = vadd.f32 %v5380_v25, %v9706_v5  ;;  %v5381_v21 = vadd.f32 %v5375_v12, %v5292_v10  ;;  %v5393_v50 = vrot.slane %v10283_v14, 1  ;;  %v5390_v5 = vrot.slane %v10280_v7, 1  ;;  %v8146_v10 = vld [vmem:[#allocation10 + $0x30] sm:$0xff]  ;;  %v8147_v25 = vld [vmem:[#allocation10 + $0x40] sm:$0xff] }
 0x6bb   :  { %v8148_v12 = vld [vmem:[#allocation10 + $0x20] sm:$0xff] }
 0x6bc   :  { %v10289_v20 = vadd.f32 %v5381_v21, %v9709_v9  ;;  %v10293_v24 = vrot.slane %v10286_v15, 2  ;;  %v5391_v52 = vrot.slane %v10286_v15, 1  ;;  %v8149_v21 = vld [vmem:[#allocation10 + $0x18] sm:$0xff] }
 0x6be   :  { %v5394_v4 = vrot.slane %v10289_v20, 1  ;;  %v10300_v27 = vsel %vm326_vm2, %v5710_v22, %v10293_v24  ;;  %v5392_v28 = vsel %vm160_vm0, %v5390_v5, %v5391_v52  ;;  %v8150_v22 = vld [vmem:[#allocation10 + $0x28] sm:$0xff]  ;;  %v8154_v5 = vld [vmem:[#allocation10 + $0x230] sm:$0xff] }
 0x6c0   :  { %v5395_v9 = vsel %vm160_vm0, %v5393_v50, %v5394_v4  ;;  %v8152_v50 = vld [vmem:[#allocation10] sm:$0xff] }
 0x6c1   :  { %7658 = vmatprep.mubr.msk.f32.mxu0 %vm1461_vm4, %v5395_v9  ;;  %7660 = vmatprep.mubr.msk.f32.mxu1 %vm1461_vm4, %v5395_v9  ;;  %v8155_v9 = vld [vmem:[#allocation10 + $0x228] sm:$0xff] }
 0x6c2   :  { %5467 = vmatmul.mubr.f32.vlgmr.msra.gmra.mxu0 %v5392_v28  ;;  %5544 = vmatmul.mubr.f32.vlgmr.msra.gmra.mxu1 %v5392_v28  ;;  %v8156_v28 = vld [vmem:[#allocation10 + $0x238] sm:$0xff] }
 0x6c3   :  { %5559 = vmatpush1.msra.mxu0 %v8107_v57  ;;  %5636 = vmatpush1.msra.mxu1 %v8108_v29  ;;  %v8157_v57 = vld [vmem:[#allocation10 + $0x218] sm:$0xff]  ;;  %v8158_v29 = vld [vmem:[#allocation10 + $0x210] sm:$0xff] }
 0x6c4   :  { %7659 = vmatprep.mubr.msk.f32.mxu0 %vm1461_vm4, %v5394_v4  ;;  %7661 = vmatprep.mubr.msk.f32.mxu1 %vm1461_vm4, %v5394_v4  ;;  %v8153_v4 = vld [vmem:[#allocation10 + $0x10] sm:$0xff] }
 0x6c5   :  { %5560 = vmatprep.subr.mxu0 %v8109_v30  ;;  %5637 = vmatprep.subr.mxu1 %v9277_v35  ;;  %v8159_v30 = vld [vmem:[#allocation10 + $0x220] sm:$0xff] }
 0x6c6   :  { %5561 = vmatpush1.msra.mxu0 %v8110_v18  ;;  %5638 = vmatpush1.msra.mxu1 %v8111_v31  ;;  %v8160_v18 = vld [vmem:[#allocation10 + $0x200] sm:$0xff]  ;;  %v8161_v31 = vld [vmem:[#allocation10 + $0x1f8] sm:$0xff] }
 0x6c7   :  { %5562 = vmatprep.subr.mxu0 %v8112_v32  ;;  %5639 = vmatprep.subr.mxu1 %v9277_v35  ;;  %v8162_v32 = vld [vmem:[#allocation10 + $0x208] sm:$0xff] }
 0x6c8   :  { %5473 = vmatmul.mubr.f32.gmra.mxu0 %v5391_v52  ;;  %5549 = vmatmul.mubr.f32.gmra.mxu1 %v5391_v52  ;;  %v8151_v52 = vld [vmem:[#allocation10 + $0x8] sm:$0xff] }
 0x6c9   :  { %5563 = vmatpush1.msra.mxu0 %v8113_v33  ;;  %5640 = vmatpush1.msra.mxu1 %v8114_v49  ;;  %v8163_v33 = vld [vmem:[#allocation10 + $0x1e8] sm:$0xff]  ;;  %v8164_v49 = vld [vmem:[#allocation10 + $0x1e0] sm:$0xff] }
 0x6ca   :  { %5564 = vmatprep.subr.mxu0 %v8115_v23  ;;  %7662 = vmatprep.mubr.msk.f32.mxu0 %vm1461_vm4, %v10283_v14  ;;  %v8165_v23 = vld [vmem:[#allocation10 + $0x1f0] sm:$0xff] }
 0x6cb   :  { %5641 = vmatprep.subr.mxu1 %v9277_v35  ;;  %7664 = vmatprep.mubr.msk.f32.mxu1 %vm1461_vm4, %v10283_v14 }
 0x6cc   :  { %5565 = vmatpush1.msra.mxu0 %v8116_v63  ;;  %5642 = vmatpush1.msra.mxu1 %v8117_v34  ;;  %v8166_v63 = vld [vmem:[#allocation10 + $0x1d0] sm:$0xff]  ;;  %v8167_v34 = vld [vmem:[#allocation10 + $0x1c8] sm:$0xff] }
 0x6cd   :  { %5566 = vmatprep.subr.mxu0 %v8118_v36  ;;  %5643 = vmatprep.subr.mxu1 %v9277_v35  ;;  %v8168_v36 = vld [vmem:[#allocation10 + $0x1d8] sm:$0xff] }
 0x6ce   :  { %5567 = vmatpush1.msra.mxu0 %v8119_v37  ;;  %5644 = vmatpush1.msra.mxu1 %v8120_v38  ;;  %v8169_v37 = vld [vmem:[#allocation10 + $0x1b8] sm:$0xff]  ;;  %v8170_v38 = vld [vmem:[#allocation10 + $0x1b0] sm:$0xff] }
 0x6cf   :  { %5568 = vmatprep.subr.mxu0 %v8121_v39  ;;  %5645 = vmatprep.subr.mxu1 %v9277_v35  ;;  %v8171_v39 = vld [vmem:[#allocation10 + $0x1c0] sm:$0xff] }
 0x6d0   :  { %5569 = vmatpush1.msra.mxu0 %v8122_v1  ;;  %5646 = vmatpush1.msra.mxu1 %v8123_v40  ;;  %v8172_v1 = vld [vmem:[#allocation10 + $0x1a0] sm:$0xff]  ;;  %v8173_v40 = vld [vmem:[#allocation10 + $0x198] sm:$0xff] }
 0x6d1   :  { %5570 = vmatprep.subr.mxu0 %v8124_v42  ;;  %5647 = vmatprep.subr.mxu1 %v9277_v35  ;;  %v8174_v42 = vld [vmem:[#allocation10 + $0x1a8] sm:$0xff] }
 0x6d2   :  { %5571 = vmatpush1.msra.mxu0 %v8125_v43  ;;  %5648 = vmatpush1.msra.mxu1 %v8126_v44  ;;  %v8175_v43 = vld [vmem:[#allocation10 + $0x188] sm:$0xff]  ;;  %v8176_v44 = vld [vmem:[#allocation10 + $0x180] sm:$0xff] }
 0x6d3   :  { %5572 = vmatprep.subr.mxu0 %v8127_v45  ;;  %5649 = vmatprep.subr.mxu1 %v9277_v35  ;;  %v8177_v45 = vld [vmem:[#allocation10 + $0x190] sm:$0xff] }
 0x6d4   :  { %5573 = vmatpush1.msra.mxu0 %v8128_v46  ;;  %5650 = vmatpush1.msra.mxu1 %v8129_v47  ;;  %v8178_v46 = vld [vmem:[#allocation10 + $0x5f0] sm:$0xff]  ;;  %v8179_v47 = vld [vmem:[#allocation10 + $0x5e8] sm:$0xff] }
 0x6d5   :  { %5574 = vmatprep.subr.mxu0 %v8130_v54  ;;  %5651 = vmatprep.subr.mxu1 %v9277_v35  ;;  %v8180_v54 = vld [vmem:[#allocation10 + $0x5f8] sm:$0xff] }
 0x6d6   :  { %5575 = vmatpush1.msra.mxu0 %v8131_v13  ;;  %5652 = vmatpush1.msra.mxu1 %v8132_v56  ;;  %v10344_v13 = vrot.slane %v10289_v20, 2  ;;  %v8181_v56 = vld [vmem:[#allocation10 + $0x5d8] sm:$0xff] }
 0x6d7   :  { %5576 = vmatprep.subr.mxu0 %v8133_v51  ;;  %5653 = vmatprep.subr.mxu1 %v9277_v35  ;;  %v8183_v51 = vld [vmem:[#allocation10 + $0x5e0] sm:$0xff] }
 0x6d8   :  { %5577 = vmatpush1.msra.mxu0 %v8134_v59  ;;  %5654 = vmatpush1.msra.mxu1 %v8135_v61  ;;  %v5713_v59 = vrot.slane %v10283_v14, 2  ;;  %v8184_v61 = vld [vmem:[#allocation10 + $0x5c0] sm:$0xff]  ;;  %v8187_v14 = vld [vmem:[#allocation10 + $0x5a8] sm:$0xff] }
 0x6d9   :  { %5578 = vmatprep.subr.mxu0 %v8136_v48  ;;  %5655 = vmatprep.subr.mxu1 %v9277_v35  ;;  %v8185_v48 = vld [vmem:[#allocation10 + $0x5b8] sm:$0xff] }
 0x6da   :  { %5579 = vmatpush1.msra.mxu0 %v8137_v11  ;;  %5656 = vmatpush1.msra.mxu1 %v8138_v53  ;;  %v8186_v11 = vld [vmem:[#allocation10 + $0x5c8] sm:$0xff]  ;;  %v8189_v53 = vld [vmem:[#allocation10 + $0x5b0] sm:$0xff] }
 0x6db   :  { %5580 = vmatprep.subr.mxu0 %v8139_v16  ;;  %5657 = vmatprep.subr.mxu1 %v9277_v35  ;;  %v8190_v16 = vld [vmem:[#allocation10 + $0x590] sm:$0xff] }
 0x6dc   :  { %5581 = vmatpush1.msra.mxu0 %v8140_v2  ;;  %5658 = vmatpush1.msra.mxu1 %v8141_v3  ;;  %v8191_v2 = vld [vmem:[#allocation10 + $0x588] sm:$0xff]  ;;  %v8192_v3 = vld [vmem:[#allocation10 + $0x598] sm:$0xff] }
 0x6dd   :  { %5582 = vmatprep.subr.mxu0 %v8142_v55  ;;  %5659 = vmatprep.subr.mxu1 %v9277_v35  ;;  %v8193_v55 = vld [vmem:[#allocation10 + $0x578] sm:$0xff] }
 0x6de   :  { %5583 = vmatpush1.msra.mxu0 %v8143_v6  ;;  %5660 = vmatpush1.msra.mxu1 %v8144_v26  ;;  %v8194_v6 = vld [vmem:[#allocation10 + $0x570] sm:$0xff]  ;;  %v8195_v26 = vld [vmem:[#allocation10 + $0x580] sm:$0xff] }
 0x6df   :  { %5584 = vmatprep.subr.mxu0 %v8145_v62  ;;  %5661 = vmatprep.subr.mxu1 %v9277_v35  ;;  %v8196_v62 = vld [vmem:[#allocation10 + $0x560] sm:$0xff] }
 0x6e0   :  { %5585 = vmatpush1.msra.mxu0 %v8146_v10  ;;  %5662 = vmatpush1.msra.mxu1 %v8147_v25  ;;  %v8197_v10 = vld [vmem:[#allocation10 + $0x558] sm:$0xff]  ;;  %v8198_v25 = vld [vmem:[#allocation10 + $0x568] sm:$0xff] }
 0x6e1   :  { %5586 = vmatprep.subr.mxu0 %v8148_v12  ;;  %5663 = vmatprep.subr.mxu1 %v9277_v35  ;;  %v8199_v12 = vld [vmem:[#allocation10 + $0x548] sm:$0xff] }
 0x6e2   :  { %5587 = vmatpush1.msra.mxu0 %v8149_v21  ;;  %5664 = vmatpush1.msra.mxu1 %v8150_v22  ;;  %v8200_v21 = vld [vmem:[#allocation10 + $0x540] sm:$0xff]  ;;  %v8201_v22 = vld [vmem:[#allocation10 + $0x550] sm:$0xff] }
 0x6e3   :  { %5588 = vmatprep.subr.mxu0 %v8151_v52  ;;  %5665 = vmatprep.subr.mxu1 %v9277_v35  ;;  %v8202_v52 = vld [vmem:[#allocation10 + $0x530] sm:$0xff] }
 0x6e4   :  { %5589 = vmatpush1.msra.mxu0 %v8152_v50  ;;  %5666 = vmatpush1.msra.mxu1 %v8153_v4  ;;  %v8203_v50 = vld [vmem:[#allocation10 + $0x528] sm:$0xff]  ;;  %v8204_v4 = vld [vmem:[#allocation10 + $0x538] sm:$0xff] }
 0x6e5   :  { %5606 = vmatprep.subr.mxu0 %v8154_v5  ;;  %5683 = vmatprep.subr.mxu1 %v9277_v35  ;;  %v8205_v5 = vld [vmem:[#allocation10 + $0x518] sm:$0xff] }
 0x6e6   :  { %5607 = vmatpush2.msra.mxu0 %v8155_v9  ;;  %5684 = vmatpush2.msra.mxu1 %v8156_v28  ;;  %v8206_v9 = vld [vmem:[#allocation10 + $0x510] sm:$0xff]  ;;  %v8207_v28 = vld [vmem:[#allocation10 + $0x520] sm:$0xff] }
 0x6e7   :  { %5608 = vmatprep.subr.mxu0 %v8157_v57  ;;  %5685 = vmatprep.subr.mxu1 %v9277_v35  ;;  %v8208_v57 = vld [vmem:[#allocation10 + $0x500] sm:$0xff] }
 0x6e8   :  { %5609 = vmatpush2.msra.mxu0 %v8158_v29  ;;  %5686 = vmatpush2.msra.mxu1 %v8159_v30  ;;  %v8209_v29 = vld [vmem:[#allocation10 + $0x4f8] sm:$0xff]  ;;  %v8210_v30 = vld [vmem:[#allocation10 + $0x508] sm:$0xff] }
 0x6e9   :  { %5610 = vmatprep.subr.mxu0 %v8160_v18  ;;  %5687 = vmatprep.subr.mxu1 %v9277_v35  ;;  %v8211_v18 = vld [vmem:[#allocation10 + $0x4e8] sm:$0xff] }
 0x6ea   :  { %5611 = vmatpush2.msra.mxu0 %v8161_v31  ;;  %5688 = vmatpush2.msra.mxu1 %v8162_v32  ;;  %v8212_v31 = vld [vmem:[#allocation10 + $0x4e0] sm:$0xff]  ;;  %v8213_v32 = vld [vmem:[#allocation10 + $0x4f0] sm:$0xff] }
 0x6eb   :  { %5612 = vmatprep.subr.mxu0 %v8163_v33  ;;  %5689 = vmatprep.subr.mxu1 %v9277_v35  ;;  %v8214_v33 = vld [vmem:[#allocation10 + $0x4d0] sm:$0xff] }
 0x6ec   :  { %5613 = vmatpush2.msra.mxu0 %v8164_v49  ;;  %5690 = vmatpush2.msra.mxu1 %v8165_v23  ;;  %v8215_v49 = vld [vmem:[#allocation10 + $0x4c8] sm:$0xff]  ;;  %v8216_v23 = vld [vmem:[#allocation10 + $0x4d8] sm:$0xff] }
 0x6ed   :  { %5614 = vmatprep.subr.mxu0 %v8166_v63  ;;  %5691 = vmatprep.subr.mxu1 %v9277_v35  ;;  %v8217_v63 = vld [vmem:[#allocation10 + $0x4b8] sm:$0xff] }
 0x6ee   :  { %5615 = vmatpush2.msra.mxu0 %v8167_v34  ;;  %5692 = vmatpush2.msra.mxu1 %v8168_v36  ;;  %v8218_v34 = vld [vmem:[#allocation10 + $0x4b0] sm:$0xff]  ;;  %v8219_v36 = vld [vmem:[#allocation10 + $0x4c0] sm:$0xff] }
 0x6ef   :  { %5616 = vmatprep.subr.mxu0 %v8169_v37  ;;  %5693 = vmatprep.subr.mxu1 %v9277_v35  ;;  %v8220_v37 = vld [vmem:[#allocation10 + $0x4a0] sm:$0xff] }
 0x6f0   :  { %5617 = vmatpush2.msra.mxu0 %v8170_v38  ;;  %5694 = vmatpush2.msra.mxu1 %v8171_v39  ;;  %v8221_v38 = vld [vmem:[#allocation10 + $0x498] sm:$0xff]  ;;  %v8222_v39 = vld [vmem:[#allocation10 + $0x4a8] sm:$0xff] }
 0x6f1   :  { %5618 = vmatprep.subr.mxu0 %v8172_v1  ;;  %5695 = vmatprep.subr.mxu1 %v9277_v35  ;;  %v8223_v1 = vld [vmem:[#allocation10 + $0x488] sm:$0xff] }
 0x6f2   :  { %5619 = vmatpush2.msra.mxu0 %v8173_v40  ;;  %5696 = vmatpush2.msra.mxu1 %v8174_v42  ;;  %v8224_v40 = vld [vmem:[#allocation10 + $0x480] sm:$0xff]  ;;  %v8225_v42 = vld [vmem:[#allocation10 + $0x490] sm:$0xff] }
 0x6f3   :  { %5620 = vmatprep.subr.mxu0 %v8175_v43  ;;  %5697 = vmatprep.subr.mxu1 %v9277_v35  ;;  %v8226_v43 = vld [vmem:[#allocation10 + $0x6b0] sm:$0xff] }
 0x6f4   :  { %5621 = vmatpush2.msra.mxu0 %v8176_v44  ;;  %5698 = vmatpush2.msra.mxu1 %v8177_v45  ;;  %v8227_v44 = vld [vmem:[#allocation10 + $0x6a8] sm:$0xff]  ;;  %v8228_v45 = vld [vmem:[#allocation10 + $0x6b8] sm:$0xff] }
 0x6f5   :  { %5623 = vmatmul.mubr.f32.vlgmr.msra.gmra.mxu0 %v10280_v7  ;;  %5700 = vmatmul.mubr.f32.vlgmr.msra.gmra.mxu1 %v10280_v7  ;;  %v8182_v7 = vld [vmem:[#allocation10 + $0x5d0] sm:$0xff] }
 0x6f6   :  { %5722 = vmatprep.subr.mxu0 %v8178_v46  ;;  %5799 = vmatprep.subr.mxu1 %v9277_v35  ;;  %v8229_v46 = vld [vmem:[#allocation10 + $0x698] sm:$0xff] }
 0x6f7   :  { %7663 = vmatprep.mubr.msk.f32.mxu0 %vm1461_vm4, %v10289_v20  ;;  %7665 = vmatprep.mubr.msk.f32.mxu1 %vm1461_vm4, %v10289_v20  ;;  %v5715_v20 = vsel %vm326_vm2, %v5713_v59, %v10344_v13  ;;  %v8235_v59 = vld [vmem:[#allocation10 + $0x668] sm:$0xff] }
 0x6f8   :  { %5723 = vmatpush1.msra.mxu0 %v8179_v47  ;;  %5800 = vmatpush1.msra.mxu1 %v8180_v54  ;;  %v8230_v47 = vld [vmem:[#allocation10 + $0x690] sm:$0xff]  ;;  %v8231_v54 = vld [vmem:[#allocation10 + $0x6a0] sm:$0xff] }
 0x6f9   :  { %5724 = vmatprep.subr.mxu0 %v8181_v56  ;;  %5801 = vmatprep.subr.mxu1 %v9277_v35  ;;  %v8232_v56 = vld [vmem:[#allocation10 + $0x680] sm:$0xff] }
 0x6fa   :  { %5725 = vmatpush1.msra.mxu0 %v8182_v7  ;;  %5802 = vmatpush1.msra.mxu1 %v8183_v51  ;;  %v8233_v7 = vld [vmem:[#allocation10 + $0x678] sm:$0xff]  ;;  %v8234_v51 = vld [vmem:[#allocation10 + $0x688] sm:$0xff] }
 0x6fb   :  { %5629 = vmatmul.mubr.f32.gmra.mxu0 %v10286_v15  ;;  %5705 = vmatmul.mubr.f32.gmra.mxu1 %v10286_v15  ;;  %v8188_v15 = vld [vmem:[#allocation10 + $0x5a0] sm:$0xff] }
 0x6fc   :  { %5726 = vmatprep.subr.mxu0 %v8184_v61  ;;  %5803 = vmatprep.subr.mxu1 %v9277_v35  ;;  %v8236_v61 = vld [vmem:[#allocation10 + $0x660] sm:$0xff] }
 0x6fd   :  { %5727 = vmatpush1.msra.mxu0 %v8185_v48  ;;  %7666 = vmatprep.mubr.msk.f32.mxu0 %vm1461_vm4, %v5715_v20  ;;  %v8238_v48 = vld [vmem:[#allocation10 + $0x650] sm:$0xff] }
 0x6fe   :  { %5804 = vmatpush1.msra.mxu1 %v8186_v11  ;;  %7668 = vmatprep.mubr.msk.f32.mxu1 %vm1461_vm4, %v5715_v20  ;;  %v8237_v20 = vld [vmem:[#allocation10 + $0x670] sm:$0xff]  ;;  %v8239_v11 = vld [vmem:[#allocation10 + $0x648] sm:$0xff] }
 0x6ff   :  { %5728 = vmatprep.subr.mxu0 %v8187_v14  ;;  %5805 = vmatprep.subr.mxu1 %v9277_v35  ;;  %v8240_v14 = vld [vmem:[#allocation10 + $0x658] sm:$0xff] }
 0x700   :  { %5729 = vmatpush1.msra.mxu0 %v8188_v15  ;;  %5806 = vmatpush1.msra.mxu1 %v8189_v53  ;;  %v8241_v15 = vld [vmem:[#allocation10 + $0x638] sm:$0xff]  ;;  %v8242_v53 = vld [vmem:[#allocation10 + $0x630] sm:$0xff] }
 0x701   :  { %5730 = vmatprep.subr.mxu0 %v8190_v16  ;;  %5807 = vmatprep.subr.mxu1 %v9277_v35  ;;  %v8243_v16 = vld [vmem:[#allocation10 + $0x640] sm:$0xff] }
 0x702   :  { %5731 = vmatpush1.msra.mxu0 %v8191_v2  ;;  %5808 = vmatpush1.msra.mxu1 %v8192_v3  ;;  %v8244_v2 = vld [vmem:[#allocation10 + $0x620] sm:$0xff]  ;;  %v8245_v3 = vld [vmem:[#allocation10 + $0x618] sm:$0xff] }
 0x703   :  { %5732 = vmatprep.subr.mxu0 %v8193_v55  ;;  %5809 = vmatprep.subr.mxu1 %v9277_v35  ;;  %v8246_v55 = vld [vmem:[#allocation10 + $0x628] sm:$0xff] }
 0x704   :  { %5733 = vmatpush1.msra.mxu0 %v8194_v6  ;;  %5810 = vmatpush1.msra.mxu1 %v8195_v26  ;;  %v8247_v6 = vld [vmem:[#allocation10 + $0x608] sm:$0xff]  ;;  %v8248_v26 = vld [vmem:[#allocation10 + $0x600] sm:$0xff] }
 0x705   :  { %5734 = vmatprep.subr.mxu0 %v8196_v62  ;;  %5811 = vmatprep.subr.mxu1 %v9277_v35  ;;  %v8249_v62 = vld [vmem:[#allocation10 + $0x610] sm:$0xff] }
 0x706   :  { %5735 = vmatpush1.msra.mxu0 %v8197_v10  ;;  %5812 = vmatpush1.msra.mxu1 %v8198_v25  ;;  %v8250_v10 = vld [vmem:[#allocation13 + $0x378] sm:$0xff] }
 0x707   :  { %5736 = vmatprep.subr.mxu0 %v8199_v12  ;;  %5813 = vmatprep.subr.mxu1 %v9277_v35  ;;  %v8251_v25 = vld [vmem:[#allocation13 + $0x4f8] sm:$0xff]  ;;  %v8252_v12 = vld [vmem:[#allocation13 + $0x370] sm:$0xff] }
 0x708   :  { %5737 = vmatpush1.msra.mxu0 %v8200_v21  ;;  %5814 = vmatpush1.msra.mxu1 %v8201_v22  ;;  %v8253_v21 = vld [vmem:[#allocation13 + $0x4f0] sm:$0xff]  ;;  %v8254_v22 = vld [vmem:[#allocation13 + $0x368] sm:$0xff] }
 0x709   :  { %5738 = vmatprep.subr.mxu0 %v8202_v52  ;;  %5815 = vmatprep.subr.mxu1 %v9277_v35  ;;  %v8256_v52 = vld [vmem:[#allocation13 + $0x360] sm:$0xff] }
 0x70a   :  { %5739 = vmatpush1.msra.mxu0 %v8203_v50  ;;  %5816 = vmatpush1.msra.mxu1 %v8204_v4  ;;  %v8257_v50 = vld [vmem:[#allocation13 + $0x4e0] sm:$0xff]  ;;  %v8259_v4 = vld [vmem:[#allocation13 + $0x4d8] sm:$0xff] }
 0x70b   :  { %5740 = vmatprep.subr.mxu0 %v8205_v5  ;;  %5817 = vmatprep.subr.mxu1 %v9277_v35  ;;  %v8260_v5 = vld [vmem:[#allocation13 + $0x350] sm:$0xff] }
 0x70c   :  { %5741 = vmatpush1.msra.mxu0 %v8206_v9  ;;  %5818 = vmatpush1.msra.mxu1 %v8207_v28  ;;  %v8261_v9 = vld [vmem:[#allocation13 + $0x4d0] sm:$0xff]  ;;  %v8262_v28 = vld [vmem:[#allocation13 + $0x348] sm:$0xff] }
 0x70d   :  { %5742 = vmatprep.subr.mxu0 %v8208_v57  ;;  %5819 = vmatprep.subr.mxu1 %v9277_v35  ;;  %v8263_v57 = vld [vmem:[#allocation13 + $0x4c8] sm:$0xff] }
 0x70e   :  { %5743 = vmatpush1.msra.mxu0 %v8209_v29  ;;  %5820 = vmatpush1.msra.mxu1 %v8210_v30  ;;  %v8265_v29 = vld [vmem:[#allocation13 + $0x4c0] sm:$0xff]  ;;  %v8266_v30 = vld [vmem:[#allocation13 + $0x338] sm:$0xff] }
 0x70f   :  { %5744 = vmatprep.subr.mxu0 %v8211_v18  ;;  %5821 = vmatprep.subr.mxu1 %v9277_v35  ;;  %v8267_v18 = vld [vmem:[#allocation13 + $0x4b8] sm:$0xff] }
 0x710   :  { %5745 = vmatpush1.msra.mxu0 %v8212_v31  ;;  %5822 = vmatpush1.msra.mxu1 %v8213_v32  ;;  %v8268_v31 = vld [vmem:[#allocation13 + $0x330] sm:$0xff] }
 0x711   :  { %5746 = vmatprep.subr.mxu0 %v8214_v33  ;;  %5823 = vmatprep.subr.mxu1 %v9277_v35  ;;  %v8269_v32 = vld [vmem:[#allocation13 + $0x4b0] sm:$0xff]  ;;  %v8270_v33 = vld [vmem:[#allocation13 + $0x328] sm:$0xff] }
 0x712   :  { %5747 = vmatpush1.msra.mxu0 %v8215_v49  ;;  %5824 = vmatpush1.msra.mxu1 %v8216_v23  ;;  %v8271_v49 = vld [vmem:[#allocation13 + $0x4a8] sm:$0xff]  ;;  %v8272_v23 = vld [vmem:[#allocation13 + $0x320] sm:$0xff] }
 0x713   :  { %5748 = vmatprep.subr.mxu0 %v8217_v63  ;;  %5825 = vmatprep.subr.mxu1 %v9277_v35  ;;  %v8273_v63 = vld [vmem:[#allocation13 + $0x4a0] sm:$0xff] }
 0x714   :  { %5749 = vmatpush1.msra.mxu0 %v8218_v34  ;;  %5826 = vmatpush1.msra.mxu1 %v8219_v36  ;;  %v8274_v34 = vld [vmem:[#allocation13 + $0x318] sm:$0xff] }
 0x715   :  { %5750 = vmatprep.subr.mxu0 %v8220_v37  ;;  %5827 = vmatprep.subr.mxu1 %v9277_v35  ;;  %v8275_v36 = vld [vmem:[#allocation13 + $0x498] sm:$0xff]  ;;  %v8276_v37 = vld [vmem:[#allocation13 + $0x310] sm:$0xff] }
 0x716   :  { %5751 = vmatpush1.msra.mxu0 %v8221_v38  ;;  %5828 = vmatpush1.msra.mxu1 %v8222_v39  ;;  %v8277_v38 = vld [vmem:[#allocation13 + $0x490] sm:$0xff]  ;;  %v8278_v39 = vld [vmem:[#allocation13 + $0x308] sm:$0xff] }
 0x717   :  { %5752 = vmatprep.subr.mxu0 %v8223_v1  ;;  %5829 = vmatprep.subr.mxu1 %v9277_v35  ;;  %v8279_v1 = vld [vmem:[#allocation13 + $0x488] sm:$0xff] }
 0x718   :  { %5753 = vmatpush1.msra.mxu0 %v8224_v40  ;;  %5830 = vmatpush1.msra.mxu1 %v8225_v42  ;;  %v8280_v40 = vld [vmem:[#allocation13 + $0x300] sm:$0xff] }
 0x719   :  { %5770 = vmatprep.subr.mxu0 %v8226_v43  ;;  %5847 = vmatprep.subr.mxu1 %v9277_v35  ;;  %v8281_v42 = vld [vmem:[#allocation13 + $0x480] sm:$0xff]  ;;  %v8282_v43 = vld [vmem:[#allocation13 + $0x2f8] sm:$0xff] }
 0x71a   :  { %5771 = vmatpush2.msra.mxu0 %v8227_v44  ;;  %5848 = vmatpush2.msra.mxu1 %v8228_v45  ;;  %v8283_v44 = vld [vmem:[#allocation13 + $0x2f0] sm:$0xff]  ;;  %v8284_v45 = vld [vmem:[#allocation13 + $0xf8] sm:$0xff] }
 0x71b   :  { %5772 = vmatprep.subr.mxu0 %v8229_v46  ;;  %5849 = vmatprep.subr.mxu1 %v9277_v35  ;;  %v8285_v46 = vld [vmem:[#allocation13 + $0x2e8] sm:$0xff] }
 0x71c   :  { %5773 = vmatpush2.msra.mxu0 %v8230_v47  ;;  %5850 = vmatpush2.msra.mxu1 %v8231_v54  ;;  %v8286_v47 = vld [vmem:[#allocation13 + $0x2e0] sm:$0xff]  ;;  %v8287_v54 = vld [vmem:[#allocation13 + $0x2d8] sm:$0xff] }
 0x71d   :  { %5774 = vmatprep.subr.mxu0 %v8232_v56  ;;  %5851 = vmatprep.subr.mxu1 %v9277_v35  ;;  %v8288_v56 = vld [vmem:[#allocation13 + $0x2d0] sm:$0xff] }
 0x71e   :  { %5775 = vmatpush2.msra.mxu0 %v8233_v7  ;;  %5852 = vmatpush2.msra.mxu1 %v8234_v51  ;;  %v8289_v7 = vld [vmem:[#allocation13 + $0x2c8] sm:$0xff]  ;;  %v8290_v51 = vld [vmem:[#allocation13 + $0x2c0] sm:$0xff] }
 0x71f   :  { %5776 = vmatprep.subr.mxu0 %v8235_v59  ;;  %5853 = vmatprep.subr.mxu1 %v9277_v35  ;;  %v8291_v59 = vld [vmem:[#allocation13 + $0x2b8] sm:$0xff] }
 0x720   :  { %5777 = vmatpush2.msra.mxu0 %v8236_v61  ;;  %5854 = vmatpush2.msra.mxu1 %v8237_v20  ;;  %v8292_v61 = vld [vmem:[#allocation13 + $0x2b0] sm:$0xff]  ;;  %v8293_v20 = vld [vmem:[#allocation13 + $0x2a8] sm:$0xff] }
 0x721   :  { %5778 = vmatprep.subr.mxu0 %v8238_v48  ;;  %5855 = vmatprep.subr.mxu1 %v9277_v35  ;;  %v8294_v48 = vld [vmem:[#allocation13 + $0x2a0] sm:$0xff] }
 0x722   :  { %5779 = vmatpush2.msra.mxu0 %v8239_v11  ;;  %5856 = vmatpush2.msra.mxu1 %v8240_v14  ;;  %v8295_v11 = vld [vmem:[#allocation13 + $0x298] sm:$0xff]  ;;  %v8296_v14 = vld [vmem:[#allocation13 + $0x290] sm:$0xff] }
 0x723   :  { %5780 = vmatprep.subr.mxu0 %v8241_v15  ;;  %5857 = vmatprep.subr.mxu1 %v9277_v35  ;;  %v8297_v15 = vld [vmem:[#allocation13 + $0x288] sm:$0xff] }
 0x724   :  { %5781 = vmatpush2.msra.mxu0 %v8242_v53  ;;  %5858 = vmatpush2.msra.mxu1 %v8243_v16  ;;  %v8298_v53 = vld [vmem:[#allocation13 + $0x280] sm:$0xff]  ;;  %v8299_v16 = vld [vmem:[#allocation13 + $0x478] sm:$0xff] }
 0x725   :  { %5782 = vmatprep.subr.mxu0 %v8244_v2  ;;  %5859 = vmatprep.subr.mxu1 %v9277_v35  ;;  %v8300_v2 = vld [vmem:[#allocation13 + $0x470] sm:$0xff] }
 0x726   :  { %5783 = vmatpush2.msra.mxu0 %v8245_v3  ;;  %5860 = vmatpush2.msra.mxu1 %v8246_v55  ;;  %v8301_v3 = vld [vmem:[#allocation13 + $0x468] sm:$0xff]  ;;  %v8302_v55 = vld [vmem:[#allocation13 + $0x460] sm:$0xff] }
 0x727   :  { %5784 = vmatprep.subr.mxu0 %v8247_v6  ;;  %5861 = vmatprep.subr.mxu1 %v9277_v35  ;;  %v8303_v6 = vld [vmem:[#allocation13 + $0x458] sm:$0xff] }
 0x728   :  { %5785 = vmatpush2.msra.mxu0 %v8248_v26  ;;  %5862 = vmatpush2.msra.mxu1 %v8249_v62  ;;  %v8304_v26 = vld [vmem:[#allocation13 + $0x450] sm:$0xff]  ;;  %v8305_v62 = vld [vmem:[#allocation13 + $0x448] sm:$0xff] }
 0x729   :  { %5787 = vmatmul.mubr.f32.vlgmr.msra.gmra.mxu0 %v10300_v27  ;;  %5864 = vmatmul.mubr.f32.vlgmr.msra.gmra.mxu1 %v10300_v27  ;;  %v8255_v27 = vld [vmem:[#allocation13 + $0x4e8] sm:$0xff] }
 0x72a   :  { %7667 = vmatprep.mubr.msk.f32.mxu0 %vm1461_vm4, %v10344_v13  ;;  %7669 = vmatprep.mubr.msk.f32.mxu1 %vm1461_vm4, %v10344_v13  ;;  %v8258_v13 = vld [vmem:[#allocation13 + $0x358] sm:$0xff] }
 0x72b   :  { %5896 = vmatprep.subr.mxu0 %v8250_v10  ;;  %5983 = vmatprep.subr.mxu1 %v8251_v25  ;;  %v8306_v10 = vld [vmem:[#allocation13 + $0x440] sm:$0xff]  ;;  %v8307_v25 = vld [vmem:[#allocation13 + $0x438] sm:$0xff] }
 0x72c   :  { %5897 = vmatpush1.msra.mxu0 %v8252_v12  ;;  %5984 = vmatpush1.msra.mxu1 %v8253_v21  ;;  %v8308_v12 = vld [vmem:[#allocation13 + $0x430] sm:$0xff]  ;;  %v8309_v21 = vld [vmem:[#allocation13 + $0x428] sm:$0xff] }
 0x72d   :  { %5793 = vmatmul.mubr.f32.gmra.mxu0 %v10293_v24  ;;  %5869 = vmatmul.mubr.f32.gmra.mxu1 %v10293_v24  ;;  %v8264_v24 = vld [vmem:[#allocation13 + $0x340] sm:$0xff] }
 0x72e   :  { %5898 = vmatprep.subr.mxu0 %v8254_v22  ;;  %5985 = vmatprep.subr.mxu1 %v8255_v27  ;;  %v8310_v22 = vld [vmem:[#allocation13 + $0x420] sm:$0xff]  ;;  %v8311_v27 = vld [vmem:[#allocation13 + $0x418] sm:$0xff] }
 0x72f   :  { %5899 = vmatpush1.msra.mxu0 %v8256_v52  ;;  %5986 = vmatpush1.msra.mxu1 %v8257_v50  ;;  %v8312_v52 = vld [vmem:[#allocation13 + $0x410] sm:$0xff]  ;;  %v8313_v50 = vld [vmem:[#allocation13 + $0x408] sm:$0xff] }
 0x730   :  { %5900 = vmatprep.subr.mxu0 %v8258_v13  ;;  %5987 = vmatprep.subr.mxu1 %v8259_v4  ;;  %v8314_v13 = vld [vmem:[#allocation13 + $0x400] sm:$0xff]  ;;  %v8315_v4 = vld [vmem:[#allocation13 + $0x3f8] sm:$0xff] }
 0x731   :  { %5901 = vmatpush1.msra.mxu0 %v8260_v5  ;;  %5988 = vmatpush1.msra.mxu1 %v8261_v9  ;;  %v8316_v5 = vld [vmem:[#allocation13 + $0x3f0] sm:$0xff]  ;;  %v8317_v9 = vld [vmem:[#allocation13 + $0x3e8] sm:$0xff] }
 0x732   :  { %5902 = vmatprep.subr.mxu0 %v8262_v28  ;;  %5989 = vmatprep.subr.mxu1 %v8263_v57  ;;  %v8318_v28 = vld [vmem:[#allocation13 + $0x3e0] sm:$0xff]  ;;  %v8319_v57 = vld [vmem:[#allocation13 + $0x3d8] sm:$0xff] }
 0x733   :  { %5903 = vmatpush1.msra.mxu0 %v8264_v24  ;;  %5990 = vmatpush1.msra.mxu1 %v8265_v29  ;;  %v8320_v24 = vld [vmem:[#allocation13 + $0x3d0] sm:$0xff]  ;;  %v8321_v29 = vld [vmem:[#allocation13 + $0x3c8] sm:$0xff] }
 0x734   :  { %5904 = vmatprep.subr.mxu0 %v8266_v30  ;;  %5991 = vmatprep.subr.mxu1 %v8267_v18  ;;  %v8322_v30 = vld [vmem:[#allocation13 + $0x3c0] sm:$0xff]  ;;  %v8323_v18 = vld [vmem:[#allocation13 + $0x3b8] sm:$0xff] }
 0x735   :  { %5905 = vmatpush1.msra.mxu0 %v8268_v31  ;;  %5992 = vmatpush1.msra.mxu1 %v8269_v32  ;;  %v8324_v31 = vld [vmem:[#allocation13 + $0x3b0] sm:$0xff]  ;;  %v8325_v32 = vld [vmem:[#allocation13 + $0x3a8] sm:$0xff] }
 0x736   :  { %5906 = vmatprep.subr.mxu0 %v8270_v33  ;;  %5993 = vmatprep.subr.mxu1 %v8271_v49  ;;  %v8326_v33 = vld [vmem:[#allocation13 + $0x3a0] sm:$0xff]  ;;  %v8327_v49 = vld [vmem:[#allocation13 + $0x398] sm:$0xff] }
 0x737   :  { %5907 = vmatpush1.msra.mxu0 %v8272_v23  ;;  %5994 = vmatpush1.msra.mxu1 %v8273_v63  ;;  %v8328_v23 = vld [vmem:[#allocation13 + $0x390] sm:$0xff]  ;;  %v8329_v63 = vld [vmem:[#allocation13 + $0x388] sm:$0xff] }
 0x738   :  { %5908 = vmatprep.subr.mxu0 %v8274_v34  ;;  %5995 = vmatprep.subr.mxu1 %v8275_v36  ;;  %v8330_v34 = vld [vmem:[#allocation13 + $0x380] sm:$0xff]  ;;  %v8331_v36 = vld [vmem:[#allocation13 + $0x278] sm:$0xff] }
 0x739   :  { %5909 = vmatpush1.msra.mxu0 %v8276_v37  ;;  %5996 = vmatpush1.msra.mxu1 %v8277_v38 }
 0x73a   :  { %5910 = vmatprep.subr.mxu0 %v8278_v39  ;;  %5997 = vmatprep.subr.mxu1 %v8279_v1 }
 0x73b   :  { %5911 = vmatpush1.msra.mxu0 %v8280_v40  ;;  %5998 = vmatpush1.msra.mxu1 %v8281_v42 }
 0x73c   :  { %5912 = vmatprep.subr.mxu0 %v8282_v43  ;;  %6031 = vmatprep.mubr.f32.mxu1 %v9277_v35 }
 0x73d   :  { %5913 = vmatpush1.msra.mxu0 %v8283_v44  ;;  %6040 = vmatprep.subr.mxu1 %v8284_v45 }
 0x73e   :  { %5914 = vmatprep.subr.mxu0 %v8285_v46 }
 0x73f   :  { %5915 = vmatpush1.msra.mxu0 %v8286_v47 }
 0x740   :  { %5916 = vmatprep.subr.mxu0 %v8287_v54 }
 0x741   :  { %5917 = vmatpush1.msra.mxu0 %v8288_v56 }
 0x742   :  { %5918 = vmatprep.subr.mxu0 %v8289_v7 }
 0x743   :  { %5919 = vmatpush1.msra.mxu0 %v8290_v51 }
 0x744   :  { %5920 = vmatprep.subr.mxu0 %v8291_v59 }
 0x745   :  { %5921 = vmatpush1.msra.mxu0 %v8292_v61 }
 0x746   :  { %5922 = vmatprep.subr.mxu0 %v8293_v20 }
 0x747   :  { %5923 = vmatpush1.msra.mxu0 %v8294_v48 }
 0x748   :  { %5924 = vmatprep.subr.mxu0 %v8295_v11 }
 0x749   :  { %5925 = vmatpush1.msra.mxu0 %v8296_v14 }
 0x74a   :  { %5926 = vmatprep.subr.mxu0 %v8297_v15 }
 0x74b   :  { %5927 = vmatpush1.msra.mxu0 %v8298_v53 }
 0x74c   :  { %5928 = vmatprep.subr.mxu0 %v8299_v16 }
 0x74d   :  { %5929 = vmatpush2.msra.mxu0 %v8300_v2 }
 0x74e   :  { %5930 = vmatprep.subr.mxu0 %v8301_v3 }
 0x74f   :  { %5931 = vmatpush2.msra.mxu0 %v8302_v55 }
 0x750   :  { %5932 = vmatprep.subr.mxu0 %v8303_v6 }
 0x751   :  { %5933 = vmatpush2.msra.mxu0 %v8304_v26 }
 0x752   :  { %5934 = vmatprep.subr.mxu0 %v8305_v62 }
 0x753   :  { %5935 = vmatpush2.msra.mxu0 %v8306_v10 }
 0x754   :  { %5936 = vmatprep.subr.mxu0 %v8307_v25 }
 0x755   :  { %5937 = vmatpush2.msra.mxu0 %v8308_v12 }
 0x756   :  { %5938 = vmatprep.subr.mxu0 %v8309_v21 }
 0x757   :  { %5939 = vmatpush2.msra.mxu0 %v8310_v22 }
 0x758   :  { %5940 = vmatprep.subr.mxu0 %v8311_v27 }
 0x759   :  { %5941 = vmatpush2.msra.mxu0 %v8312_v52 }
 0x75a   :  { %5942 = vmatprep.subr.mxu0 %v8313_v50 }
 0x75b   :  { %5943 = vmatpush2.msra.mxu0 %v8314_v13 }
 0x75c   :  { %5944 = vmatprep.subr.mxu0 %v8315_v4  ;;  %v8332_v4 = vld [vmem:[#allocation13 + $0xf0] sm:$0xff] }
 0x75d   :  { %5945 = vmatpush2.msra.mxu0 %v8316_v5 }
 0x75e   :  { %5946 = vmatprep.subr.mxu0 %v8317_v9  ;;  %v8333_v9 = vld [vmem:[#allocation13 + $0xe8] sm:$0xff] }
 0x75f   :  { %5947 = vmatpush2.msra.mxu0 %v8318_v28  ;;  %v8334_v28 = vld [vmem:[#allocation13 + $0xe0] sm:$0xff] }
 0x760   :  { %5948 = vmatprep.subr.mxu0 %v8319_v57  ;;  %v8335_v57 = vld [vmem:[#allocation13 + $0xd8] sm:$0xff] }
 0x761   :  { %5949 = vmatpush2.msra.mxu0 %v8320_v24  ;;  %v8336_v24 = vld [vmem:[#allocation13 + $0x270] sm:$0xff] }
 0x762   :  { %5950 = vmatprep.subr.mxu0 %v8321_v29  ;;  %v8337_v29 = vld [vmem:[#allocation13 + $0xd0] sm:$0xff] }
 0x763   :  { %5951 = vmatpush2.msra.mxu0 %v8322_v30  ;;  %v8338_v30 = vld [vmem:[#allocation13 + $0x268] sm:$0xff] }
 0x764   :  { %5952 = vmatprep.subr.mxu0 %v8323_v18  ;;  %v8339_v18 = vld [vmem:[#allocation13 + $0xc8] sm:$0xff] }
 0x765   :  { %5953 = vmatpush2.msra.mxu0 %v8324_v31  ;;  %v8340_v31 = vld [vmem:[#allocation13 + $0x260] sm:$0xff] }
 0x766   :  { %5954 = vmatprep.subr.mxu0 %v8325_v32  ;;  %v8341_v32 = vld [vmem:[#allocation13 + $0xc0] sm:$0xff] }
 0x767   :  { %5955 = vmatpush2.msra.mxu0 %v8326_v33  ;;  %v8342_v33 = vld [vmem:[#allocation13 + $0x258] sm:$0xff] }
 0x768   :  { %5956 = vmatprep.subr.mxu0 %v8327_v49  ;;  %v8343_v49 = vld [vmem:[#allocation13 + $0xb8] sm:$0xff] }
 0x769   :  { %5957 = vmatpush2.msra.mxu0 %v8328_v23  ;;  %v8344_v23 = vld [vmem:[#allocation13 + $0x250] sm:$0xff] }
 0x76a   :  { %5958 = vmatprep.subr.mxu0 %v8329_v63  ;;  %v8345_v63 = vld [vmem:[#allocation13 + $0xb0] sm:$0xff] }
 0x76b   :  { %5959 = vmatpush2.msra.mxu0 %v8330_v34  ;;  %v8346_v34 = vld [vmem:[#allocation13 + $0x248] sm:$0xff] }
 0x76c   :  { %6127 = vmatprep.subr.mxu0 %v8331_v36  ;;  %v8347_v36 = vld [vmem:[#allocation13 + $0xa8] sm:$0xff] }
 0x782   :  { %v5545_v37 = vpop.f32.mrf.mxu1  ;;  %v5468_v40 = vpop.f32.mrf.mxu0 }
 0x784   :  { %v5547_v38 = vpop.f32.mrf.mxu1  ;;  %v5470_v42 = vpop.f32.mrf.mxu0 }
 0x785   :  { %v8349_v38 = vld [vmem:[#allocation13 + $0xa0] sm:$0xff] }
 0x788   :  { %v5550_v39 = vpop.f32.mrf.mxu1  ;;  %v5474_v43 = vpop.f32.mrf.mxu0 }
 0x78a   :  { %v5552_v1 = vpop.f32.mrf.mxu1  ;;  %v5476_v44 = vpop.f32.mrf.mxu0 }
 0x78b   :  { %v8351_v1 = vld [vmem:[#allocation13 + $0x98] sm:$0xff] }
 0x7b5   :  { %v5624_v45 = vpop.f32.mrf.mxu0  ;;  %v5701_v46 = vpop.f32.mrf.mxu1 }
 0x7b6   :  { %v5625_v11 = vadd.f32 %v5624_v45, %v5468_v40  ;;  %v5702_v14 = vadd.f32 %v5701_v46, %v5545_v37  ;;  %v8348_v37 = vld [vmem:[#allocation13 + $0x240] sm:$0xff]  ;;  %v8352_v40 = vld [vmem:[#allocation13 + $0x230] sm:$0xff] }
 0x7b7   :  { %v5626_v47 = vpop.f32.mrf.mxu0  ;;  %v5703_v54 = vpop.f32.mrf.mxu1  ;;  %v8356_v45 = vld [vmem:[#allocation13 + $0x220] sm:$0xff] }
 0x7b8   :  { %v5627_v16 = vadd.f32 %v5626_v47, %v5470_v42  ;;  %v8353_v42 = vld [vmem:[#allocation13 + $0x90] sm:$0xff]  ;;  %v8357_v46 = vld [vmem:[#allocation13 + $0x80] sm:$0xff]  ;;  %v8358_v47 = vld [vmem:[#allocation13 + $0x218] sm:$0xff] }
 0x7b9   :  { %v8359_v54 = vld [vmem:[#allocation13 + $0x78] sm:$0xff] }
 0x7bb   :  { %v5630_v56 = vpop.f32.mrf.mxu0  ;;  %v5706_v7 = vpop.f32.mrf.mxu1 }
 0x7bc   :  { %v5631_v51 = vadd.f32 %v5630_v56, %v5474_v43  ;;  %v5707_v59 = vadd.f32 %v5706_v7, %v5550_v39  ;;  %v8350_v39 = vld [vmem:[#allocation13 + $0x238] sm:$0xff]  ;;  %v8354_v43 = vld [vmem:[#allocation13 + $0x228] sm:$0xff]  ;;  %v8360_v56 = vld [vmem:[#allocation13 + $0x210] sm:$0xff] }
 0x7bd   :  { %v5632_v61 = vpop.f32.mrf.mxu0  ;;  %v5708_v20 = vpop.f32.mrf.mxu1  ;;  %v8361_v7 = vld [vmem:[#allocation13 + $0x70] sm:$0xff] }
 0x7be   :  { %v10385_v48 = vadd.f32 %v5632_v61, %v5476_v44  ;;  %v8355_v44 = vld [vmem:[#allocation13 + $0x88] sm:$0xff]  ;;  %v8364_v61 = vld [vmem:[#allocation13 + $0x200] sm:$0xff] }
 0x7bf   :  { %v8365_v20 = vld [vmem:[#allocation13 + $0x60] sm:$0xff] }
 0x7e9   :  { %v5788_v15 = vpop.f32.mrf.mxu0  ;;  %v5865_v53 = vpop.f32.mrf.mxu1 }
 0x7ea   :  { %v5874_v2 = vadd.f32 %v5788_v15, %v5625_v11  ;;  %v5876_v3 = vadd.f32 %v5865_v53, %v5702_v14  ;;  %v8366_v11 = vld [vmem:[#allocation13 + $0x5f8] sm:$0xff]  ;;  %v8368_v53 = vld [vmem:[#allocation13 + $0x5f0] sm:$0xff] }
 0x7eb   :  { %v5790_v55 = vpop.f32.mrf.mxu0  ;;  %v5867_v6 = vpop.f32.mrf.mxu1  ;;  %v8367_v15 = vld [vmem:[#allocation13 + $0x58] sm:$0xff] }
 0x7ec   :  { %v10388_v26 = vadd.f32 %v5876_v3, %v9820_v58  ;;  %v5875_v62 = vadd.f32 %v5790_v55, %v5627_v16  ;;  %v10391_v10 = vadd.f32 %v5874_v2, %v9823_v19  ;;  %v8369_v16 = vld [vmem:[#allocation13 + $0x50] sm:$0xff]  ;;  %v8370_v2 = vld [vmem:[#allocation13 + $0x5e8] sm:$0xff]  ;;  %v8372_v55 = vld [vmem:[#allocation13 + $0x5e0] sm:$0xff] }
 0x7ed   :  { %v5794_v25 = vpop.f32.mrf.mxu0  ;;  %v5870_v12 = vpop.f32.mrf.mxu1  ;;  %v8371_v3 = vld [vmem:[#allocation13 + $0x48] sm:$0xff]  ;;  %v8373_v6 = vld [vmem:[#allocation13 + $0x40] sm:$0xff] }
 0x7ee   :  { %v10394_v21 = vadd.f32 %v5875_v62, %v9826_v17  ;;  %v10396_v22 = vadd.f32 %v5794_v25, %v5631_v51  ;;  %v10398_v27 = vadd.f32 %v5870_v12, %v5707_v59  ;;  %v5891_v52 = vrot.slane %v10388_v26, 1  ;;  %v8362_v51 = vld [vmem:[#allocation13 + $0x208] sm:$0xff]  ;;  %v8374_v62 = vld [vmem:[#allocation13 + $0x5d8] sm:$0xff]  ;;  %v8376_v12 = vld [vmem:[#allocation13 + $0x5d0] sm:$0xff] }
 0x7ef   :  { %v5872_v50 = vpop.f32.mrf.mxu1  ;;  %v5889_v5 = vrot.slane %v10391_v10, 1  ;;  %v8363_v59 = vld [vmem:[#allocation13 + $0x68] sm:$0xff]  ;;  %v8375_v25 = vld [vmem:[#allocation13 + $0x38] sm:$0xff] }
 0x7f0   :  { %7670 = vmatmul.mubr.msk.f32.vlgmr.msra.gmra.mxu1 %vm1461_vm4, %v5891_v52  ;;  %v5890_v13 = vrot.slane %v10394_v21, 1  ;;  %v6183_v14 = vrot.slane %v10394_v21, 2  ;;  %v8377_v52 = vld [vmem:[#allocation13 + $0x30] sm:$0xff]  ;;  %v8378_v50 = vld [vmem:[#allocation13 + $0x5c8] sm:$0xff] }
 0x7f1   :  { %6041 = vmatpush1.msra.mxu1 %v8332_v4  ;;  %6104 = vmatprep.mubr.f32.mxu1 %v10394_v21  ;;  %v8380_v4 = vld [vmem:[#allocation13 + $0x5c0] sm:$0xff] }
 0x7f2   :  { %6042 = vmatprep.subr.mxu1 %v8333_v9  ;;  %5960 = vmatprep.mubr.f32.mxu0 %v5890_v13  ;;  %v8379_v13 = vld [vmem:[#allocation13 + $0x28] sm:$0xff]  ;;  %v8382_v9 = vld [vmem:[#allocation13 + $0x5b8] sm:$0xff] }
 0x7f3   :  { %6043 = vmatpush1.msra.mxu1 %v8334_v28  ;;  %5961 = vmatmul.mubr.f32.vlgmr.msra.gmra.mxu0 %v5889_v5  ;;  %v8381_v5 = vld [vmem:[#allocation13 + $0x20] sm:$0xff]  ;;  %v8383_v28 = vld [vmem:[#allocation13 + $0x18] sm:$0xff] }
 0x7f4   :  { %6044 = vmatprep.subr.mxu1 %v8335_v57  ;;  %6128 = vmatpush1.msra.mxu0 %v8336_v24  ;;  %v8384_v57 = vld [vmem:[#allocation13 + $0x5b0] sm:$0xff] }
 0x7f5   :  { %6045 = vmatpush1.msra.mxu1 %v8337_v29  ;;  %6129 = vmatprep.subr.mxu0 %v8338_v30  ;;  %v8385_v24 = vld [vmem:[#allocation13 + $0x10] sm:$0xff]  ;;  %v8386_v29 = vld [vmem:[#allocation13 + $0x5a8] sm:$0xff] }
 0x7f6   :  { %6046 = vmatprep.subr.mxu1 %v8339_v18  ;;  %6130 = vmatpush1.msra.mxu0 %v8340_v31  ;;  %v8387_v30 = vld [vmem:[#allocation13 + $0x8] sm:$0xff]  ;;  %v8388_v18 = vld [vmem:[#allocation13 + $0x5a0] sm:$0xff] }
 0x7f7   :  { %6047 = vmatpush1.msra.mxu1 %v8341_v32  ;;  %6131 = vmatprep.subr.mxu0 %v8342_v33  ;;  %v8389_v31 = vld [vmem:[#allocation13] sm:$0xff]  ;;  %v8390_v32 = vld [vmem:[#allocation13 + $0x598] sm:$0xff] }
 0x7f8   :  { %6048 = vmatprep.subr.mxu1 %v8343_v49  ;;  %6132 = vmatpush1.msra.mxu0 %v8344_v23  ;;  %v8391_v33 = vld [vmem:[#allocation13 + $0x1f8] sm:$0xff]  ;;  %v8392_v49 = vld [vmem:[#allocation13 + $0x590] sm:$0xff] }
 0x7f9   :  { %6049 = vmatpush1.msra.mxu1 %v8345_v63  ;;  %6133 = vmatprep.subr.mxu0 %v8346_v34  ;;  %v8393_v23 = vld [vmem:[#allocation13 + $0x1f0] sm:$0xff]  ;;  %v8394_v63 = vld [vmem:[#allocation13 + $0x588] sm:$0xff] }
 0x7fa   :  { %6050 = vmatprep.subr.mxu1 %v8347_v36  ;;  %6134 = vmatpush1.msra.mxu0 %v8348_v37  ;;  %v8395_v34 = vld [vmem:[#allocation13 + $0x1e8] sm:$0xff]  ;;  %v8396_v36 = vld [vmem:[#allocation13 + $0x580] sm:$0xff] }
 0x7fb   :  { %6051 = vmatpush1.msra.mxu1 %v8349_v38  ;;  %6135 = vmatprep.subr.mxu0 %v8350_v39  ;;  %v8397_v37 = vld [vmem:[#allocation13 + $0x1e0] sm:$0xff]  ;;  %v8398_v38 = vld [vmem:[#allocation13 + $0x578] sm:$0xff] }
 0x7fc   :  { %6052 = vmatprep.subr.mxu1 %v8351_v1  ;;  %6136 = vmatpush1.msra.mxu0 %v8352_v40  ;;  %v8399_v39 = vld [vmem:[#allocation13 + $0x1d8] sm:$0xff]  ;;  %v8400_v1 = vld [vmem:[#allocation13 + $0x570] sm:$0xff] }
 0x7fd   :  { %6053 = vmatpush1.msra.mxu1 %v8353_v42  ;;  %6137 = vmatprep.subr.mxu0 %v8354_v43  ;;  %v8401_v40 = vld [vmem:[#allocation13 + $0x1d0] sm:$0xff]  ;;  %v8402_v42 = vld [vmem:[#allocation13 + $0x568] sm:$0xff] }
 0x7fe   :  { %6054 = vmatprep.subr.mxu1 %v8355_v44  ;;  %6138 = vmatpush1.msra.mxu0 %v8356_v45  ;;  %v8403_v43 = vld [vmem:[#allocation13 + $0x1c8] sm:$0xff]  ;;  %v8404_v44 = vld [vmem:[#allocation13 + $0x560] sm:$0xff] }
 0x7ff   :  { %6055 = vmatpush1.msra.mxu1 %v8357_v46  ;;  %6139 = vmatprep.subr.mxu0 %v8358_v47  ;;  %v8405_v45 = vld [vmem:[#allocation13 + $0x1c0] sm:$0xff]  ;;  %v8406_v46 = vld [vmem:[#allocation13 + $0x558] sm:$0xff] }
 0x800   :  { %6056 = vmatprep.subr.mxu1 %v8359_v54  ;;  %6140 = vmatpush1.msra.mxu0 %v8360_v56  ;;  %v8407_v47 = vld [vmem:[#allocation13 + $0x1b8] sm:$0xff]  ;;  %v8408_v54 = vld [vmem:[#allocation13 + $0x550] sm:$0xff] }
 0x801   :  { %6057 = vmatpush1.msra.mxu1 %v8361_v7  ;;  %6141 = vmatprep.subr.mxu0 %v8362_v51  ;;  %v8409_v56 = vld [vmem:[#allocation13 + $0x1b0] sm:$0xff]  ;;  %v8410_v7 = vld [vmem:[#allocation13 + $0x548] sm:$0xff] }
 0x802   :  { %6058 = vmatprep.subr.mxu1 %v8363_v59  ;;  %6142 = vmatpush1.msra.mxu0 %v8364_v61  ;;  %v8411_v51 = vld [vmem:[#allocation13 + $0x1a8] sm:$0xff]  ;;  %v8412_v59 = vld [vmem:[#allocation13 + $0x540] sm:$0xff] }
 0x803   :  { %6175 = vmatprep.mubr.f32.mxu0 %v9277_v35  ;;  %6059 = vmatpush1.msra.mxu1 %v8365_v20  ;;  %v8413_v61 = vld [vmem:[#allocation13 + $0x1a0] sm:$0xff]  ;;  %v8414_v20 = vld [vmem:[#allocation13 + $0x538] sm:$0xff] }
 0x804   :  { %7671 = vmatmul.mubr.msk.f32.vlgmr.msra.gmra.mxu0 %vm1461_vm4, %v10388_v26  ;;  %6189 = vmatprep.subr.mxu0 %v8366_v11  ;;  %v8415_v11 = vld [vmem:[#allocation13 + $0x198] sm:$0xff] }
 0x805   :  { %6060 = vmatprep.subr.mxu1 %v8367_v15  ;;  %6190 = vmatpush1.msra.mxu0 %v8368_v53  ;;  %v8417_v15 = vld [vmem:[#allocation13 + $0x190] sm:$0xff]  ;;  %v8418_v53 = vld [vmem:[#allocation13 + $0x528] sm:$0xff] }
 0x806   :  { %6253 = vmatprep.mubr.f32.mxu0 %v6183_v14  ;;  %6061 = vmatpush1.msra.mxu1 %v8369_v16  ;;  %v8416_v14 = vld [vmem:[#allocation13 + $0x530] sm:$0xff]  ;;  %v8419_v16 = vld [vmem:[#allocation13 + $0x188] sm:$0xff] }
 0x807   :  { %6191 = vmatprep.subr.mxu0 %v8370_v2  ;;  %6062 = vmatprep.subr.mxu1 %v8371_v3  ;;  %v8420_v2 = vld [vmem:[#allocation13 + $0x520] sm:$0xff] }
 0x808   :  { %6192 = vmatpush1.msra.mxu0 %v8372_v55  ;;  %6063 = vmatpush1.msra.mxu1 %v8373_v6  ;;  %v8421_v3 = vld [vmem:[#allocation13 + $0x180] sm:$0xff]  ;;  %v8422_v55 = vld [vmem:[#allocation13 + $0x518] sm:$0xff] }
 0x809   :  { %6193 = vmatprep.subr.mxu0 %v8374_v62  ;;  %6064 = vmatprep.subr.mxu1 %v8375_v25  ;;  %v8423_v6 = vld [vmem:[#allocation13 + $0x178] sm:$0xff]  ;;  %v8424_v62 = vld [vmem:[#allocation13 + $0x510] sm:$0xff] }
 0x80a   :  { %6194 = vmatpush1.msra.mxu0 %v8376_v12  ;;  %6065 = vmatpush1.msra.mxu1 %v8377_v52  ;;  %v8425_v25 = vld [vmem:[#allocation13 + $0x170] sm:$0xff]  ;;  %v8426_v12 = vld [vmem:[#allocation13 + $0x508] sm:$0xff] }
 0x80b   :  { %6195 = vmatprep.subr.mxu0 %v8378_v50  ;;  %6066 = vmatprep.subr.mxu1 %v8379_v13  ;;  %v8427_v52 = vld [vmem:[#allocation13 + $0x168] sm:$0xff]  ;;  %v8428_v50 = vld [vmem:[#allocation13 + $0x500] sm:$0xff] }
 0x80c   :  { %6196 = vmatpush1.msra.mxu0 %v8380_v4  ;;  %6067 = vmatpush1.msra.mxu1 %v8381_v5  ;;  %v8429_v13 = vld [vmem:[#allocation13 + $0x160] sm:$0xff]  ;;  %v8430_v4 = vld [vmem:[#allocation13 + $0x6f8] sm:$0xff] }
 0x80d   :  { %6197 = vmatprep.subr.mxu0 %v8382_v9  ;;  %6068 = vmatprep.subr.mxu1 %v8383_v28  ;;  %v8431_v5 = vld [vmem:[#allocation13 + $0x158] sm:$0xff]  ;;  %v8432_v9 = vld [vmem:[#allocation13 + $0x6f0] sm:$0xff] }
 0x80e   :  { %6198 = vmatpush1.msra.mxu0 %v8384_v57  ;;  %6069 = vmatpush1.msra.mxu1 %v8385_v24  ;;  %v8433_v28 = vld [vmem:[#allocation13 + $0x150] sm:$0xff]  ;;  %v8434_v57 = vld [vmem:[#allocation13 + $0x6e8] sm:$0xff] }
 0x80f   :  { %6199 = vmatprep.subr.mxu0 %v8386_v29  ;;  %6070 = vmatprep.subr.mxu1 %v8387_v30  ;;  %v8435_v24 = vld [vmem:[#allocation13 + $0x148] sm:$0xff]  ;;  %v8436_v29 = vld [vmem:[#allocation13 + $0x6e0] sm:$0xff] }
 0x810   :  { %6200 = vmatpush1.msra.mxu0 %v8388_v18  ;;  %6071 = vmatpush1.msra.mxu1 %v8389_v31  ;;  %v8437_v30 = vld [vmem:[#allocation13 + $0x140] sm:$0xff]  ;;  %v8438_v18 = vld [vmem:[#allocation13 + $0x6d8] sm:$0xff] }
 0x811   :  { %6201 = vmatprep.subr.mxu0 %v8390_v32  ;;  %6072 = vmatprep.subr.mxu1 %v8391_v33  ;;  %v8439_v31 = vld [vmem:[#allocation13 + $0x138] sm:$0xff]  ;;  %v8440_v32 = vld [vmem:[#allocation13 + $0x6d0] sm:$0xff] }
 0x812   :  { %6202 = vmatpush1.msra.mxu0 %v8392_v49  ;;  %6073 = vmatpush2.msra.mxu1 %v8393_v23  ;;  %v8441_v33 = vld [vmem:[#allocation13 + $0x130] sm:$0xff]  ;;  %v8442_v49 = vld [vmem:[#allocation13 + $0x6c8] sm:$0xff] }
 0x813   :  { %6203 = vmatprep.subr.mxu0 %v8394_v63  ;;  %6074 = vmatprep.subr.mxu1 %v8395_v34  ;;  %v8443_v23 = vld [vmem:[#allocation13 + $0x128] sm:$0xff]  ;;  %v8444_v63 = vld [vmem:[#allocation13 + $0x6c0] sm:$0xff] }
 0x814   :  { %6204 = vmatpush1.msra.mxu0 %v8396_v36  ;;  %6075 = vmatpush2.msra.mxu1 %v8397_v37  ;;  %v8445_v34 = vld [vmem:[#allocation13 + $0x120] sm:$0xff]  ;;  %v8446_v36 = vld [vmem:[#allocation13 + $0x6b8] sm:$0xff] }
 0x815   :  { %6205 = vmatprep.subr.mxu0 %v8398_v38  ;;  %6076 = vmatprep.subr.mxu1 %v8399_v39  ;;  %v8447_v37 = vld [vmem:[#allocation13 + $0x118] sm:$0xff]  ;;  %v8448_v38 = vld [vmem:[#allocation13 + $0x6b0] sm:$0xff] }
 0x816   :  { %6206 = vmatpush1.msra.mxu0 %v8400_v1  ;;  %6077 = vmatpush2.msra.mxu1 %v8401_v40  ;;  %v8449_v39 = vld [vmem:[#allocation13 + $0x110] sm:$0xff]  ;;  %v8450_v1 = vld [vmem:[#allocation13 + $0x6a8] sm:$0xff] }
 0x817   :  { %6207 = vmatprep.subr.mxu0 %v8402_v42  ;;  %6078 = vmatprep.subr.mxu1 %v8403_v43  ;;  %v8451_v40 = vld [vmem:[#allocation13 + $0x108] sm:$0xff]  ;;  %v8452_v42 = vld [vmem:[#allocation13 + $0x6a0] sm:$0xff] }
 0x818   :  { %6208 = vmatpush1.msra.mxu0 %v8404_v44  ;;  %6079 = vmatpush2.msra.mxu1 %v8405_v45  ;;  %v8453_v43 = vld [vmem:[#allocation13 + $0x100] sm:$0xff]  ;;  %v8454_v44 = vld [vmem:[#allocation13 + $0x698] sm:$0xff]  ;;  %v8455_v45 = vld [vmem:[#allocation13 + $0x690] sm:$0xff] }
 0x819   :  { %6209 = vmatprep.subr.mxu0 %v8406_v46  ;;  %6080 = vmatprep.subr.mxu1 %v8407_v47  ;;  %v8456_v46 = vld [vmem:[#allocation13 + $0x778] sm:$0xff]  ;;  %v8457_v47 = vld [vmem:[#allocation13 + $0x688] sm:$0xff] }
 0x81a   :  { %6210 = vmatpush1.msra.mxu0 %v8408_v54  ;;  %6081 = vmatpush2.msra.mxu1 %v8409_v56  ;;  %v8458_v54 = vld [vmem:[#allocation13 + $0x770] sm:$0xff]  ;;  %v8459_v56 = vld [vmem:[#allocation13 + $0x680] sm:$0xff] }
 0x81b   :  { %6211 = vmatprep.subr.mxu0 %v8410_v7  ;;  %6082 = vmatprep.subr.mxu1 %v8411_v51  ;;  %v8460_v7 = vld [vmem:[#allocation13 + $0x768] sm:$0xff]  ;;  %v8461_v51 = vld [vmem:[#allocation13 + $0x678] sm:$0xff] }
 0x81c   :  { %6212 = vmatpush1.msra.mxu0 %v8412_v59  ;;  %6083 = vmatpush2.msra.mxu1 %v8413_v61  ;;  %v8462_v59 = vld [vmem:[#allocation13 + $0x760] sm:$0xff]  ;;  %v8463_v61 = vld [vmem:[#allocation13 + $0x670] sm:$0xff] }
 0x81d   :  { %6213 = vmatprep.subr.mxu0 %v8414_v20  ;;  %6084 = vmatprep.subr.mxu1 %v8415_v11  ;;  %v8464_v20 = vld [vmem:[#allocation13 + $0x758] sm:$0xff]  ;;  %v8465_v11 = vld [vmem:[#allocation13 + $0x668] sm:$0xff] }
 0x81e   :  { %6214 = vmatpush1.msra.mxu0 %v8416_v14  ;;  %6085 = vmatpush2.msra.mxu1 %v8417_v15  ;;  %v8466_v14 = vld [vmem:[#allocation13 + $0x750] sm:$0xff]  ;;  %v8467_v15 = vld [vmem:[#allocation13 + $0x660] sm:$0xff] }
 0x81f   :  { %6215 = vmatprep.subr.mxu0 %v8418_v53  ;;  %6086 = vmatprep.subr.mxu1 %v8419_v16  ;;  %v8468_v53 = vld [vmem:[#allocation13 + $0x748] sm:$0xff]  ;;  %v8469_v16 = vld [vmem:[#allocation13 + $0x658] sm:$0xff] }
 0x820   :  { %6216 = vmatpush1.msra.mxu0 %v8420_v2  ;;  %6087 = vmatpush2.msra.mxu1 %v8421_v3  ;;  %v8470_v2 = vld [vmem:[#allocation13 + $0x740] sm:$0xff]  ;;  %v8471_v3 = vld [vmem:[#allocation13 + $0x650] sm:$0xff] }
 0x821   :  { %6217 = vmatprep.subr.mxu0 %v8422_v55  ;;  %6088 = vmatprep.subr.mxu1 %v8423_v6  ;;  %v8472_v55 = vld [vmem:[#allocation13 + $0x738] sm:$0xff]  ;;  %v8473_v6 = vld [vmem:[#allocation13 + $0x648] sm:$0xff] }
 0x822   :  { %6218 = vmatpush1.msra.mxu0 %v8424_v62  ;;  %6089 = vmatpush2.msra.mxu1 %v8425_v25  ;;  %v8474_v62 = vld [vmem:[#allocation13 + $0x730] sm:$0xff]  ;;  %v8475_v25 = vld [vmem:[#allocation13 + $0x640] sm:$0xff] }
 0x823   :  { %6219 = vmatprep.subr.mxu0 %v8426_v12  ;;  %6090 = vmatprep.subr.mxu1 %v8427_v52  ;;  %v8476_v12 = vld [vmem:[#allocation13 + $0x728] sm:$0xff]  ;;  %v8477_v52 = vld [vmem:[#allocation13 + $0x638] sm:$0xff] }
 0x824   :  { %6220 = vmatpush1.msra.mxu0 %v8428_v50  ;;  %6091 = vmatpush2.msra.mxu1 %v8429_v13  ;;  %v8478_v50 = vld [vmem:[#allocation13 + $0x720] sm:$0xff]  ;;  %v8479_v13 = vld [vmem:[#allocation13 + $0x630] sm:$0xff] }
 0x825   :  { %6221 = vmatprep.subr.mxu0 %v8430_v4  ;;  %6092 = vmatprep.subr.mxu1 %v8431_v5  ;;  %v8480_v4 = vld [vmem:[#allocation13 + $0x718] sm:$0xff]  ;;  %v8481_v5 = vld [vmem:[#allocation13 + $0x628] sm:$0xff] }
 0x826   :  { %6222 = vmatpush2.msra.mxu0 %v8432_v9  ;;  %6093 = vmatpush2.msra.mxu1 %v8433_v28  ;;  %v8482_v9 = vld [vmem:[#allocation13 + $0x710] sm:$0xff]  ;;  %v8483_v28 = vld [vmem:[#allocation13 + $0x620] sm:$0xff] }
 0x827   :  { %6223 = vmatprep.subr.mxu0 %v8434_v57  ;;  %6094 = vmatprep.subr.mxu1 %v8435_v24  ;;  %v8484_v57 = vld [vmem:[#allocation13 + $0x708] sm:$0xff]  ;;  %v8485_v24 = vld [vmem:[#allocation13 + $0x618] sm:$0xff] }
 0x828   :  { %6224 = vmatpush2.msra.mxu0 %v8436_v29  ;;  %6095 = vmatpush2.msra.mxu1 %v8437_v30  ;;  %v8486_v29 = vld [vmem:[#allocation13 + $0x700] sm:$0xff]  ;;  %v6184_v30 = vrot.slane %v10388_v26, 2 }
 0x829   :  { %6225 = vmatprep.subr.mxu0 %v8438_v18  ;;  %6096 = vmatprep.subr.mxu1 %v8439_v31  ;;  %v8487_v18 = vld [vmem:[#allocation13 + $0x610] sm:$0xff]  ;;  %v8488_v31 = vld [vmem:[#allocation13 + $0x878] sm:$0xff] }
 0x82a   :  { %6226 = vmatpush2.msra.mxu0 %v8440_v32  ;;  %6097 = vmatpush2.msra.mxu1 %v8441_v33  ;;  %v6334_v32 = vrot.slane %v10394_v21, 3  ;;  %v8489_v33 = vld [vmem:[#allocation13 + $0x608] sm:$0xff] }
 0x82b   :  { %6227 = vmatprep.subr.mxu0 %v8442_v49  ;;  %6098 = vmatprep.subr.mxu1 %v8443_v23  ;;  %v8490_v49 = vld [vmem:[#allocation13 + $0x870] sm:$0xff]  ;;  %v6182_v23 = vrot.slane %v10391_v10, 2 }
 0x82c   :  { %6228 = vmatpush2.msra.mxu0 %v8444_v63  ;;  %6099 = vmatpush2.msra.mxu1 %v8445_v34  ;;  %v8491_v63 = vld [vmem:[#allocation13 + $0x600] sm:$0xff]  ;;  %v8492_v34 = vld [vmem:[#allocation13 + $0x868] sm:$0xff] }
 0x82d   :  { %6229 = vmatprep.subr.mxu0 %v8446_v36  ;;  %6100 = vmatprep.subr.mxu1 %v8447_v37  ;;  %v8493_v36 = vld [vmem:[#allocation13 + $0x860] sm:$0xff]  ;;  %v8494_v37 = vld [vmem:[#allocation13 + $0x9f8] sm:$0xff] }
 0x82e   :  { %6230 = vmatpush2.msra.mxu0 %v8448_v38  ;;  %6101 = vmatpush2.msra.mxu1 %v8449_v39  ;;  %v8495_v38 = vld [vmem:[#allocation13 + $0x858] sm:$0xff]  ;;  %v8496_v39 = vld [vmem:[#allocation13 + $0x9f0] sm:$0xff] }
 0x82f   :  { %6231 = vmatprep.subr.mxu0 %v8450_v1  ;;  %6102 = vmatprep.subr.mxu1 %v8451_v40  ;;  %v8497_v1 = vld [vmem:[#allocation13 + $0x850] sm:$0xff]  ;;  %v8498_v40 = vld [vmem:[#allocation13 + $0x9e8] sm:$0xff] }
 0x830   :  { %6232 = vmatpush2.msra.mxu0 %v8452_v42  ;;  %6103 = vmatpush2.msra.mxu1 %v8453_v43  ;;  %v8499_v42 = vld [vmem:[#allocation13 + $0x848] sm:$0xff]  ;;  %v8500_v43 = vld [vmem:[#allocation13 + $0x9e0] sm:$0xff] }
 0x831   :  { %6233 = vmatprep.subr.mxu0 %v8454_v44  ;;  %6105 = vmatmul.mubr.f32.vlgmr.msra.gmra.mxu1 %v10391_v10  ;;  %v8501_v44 = vld [vmem:[#allocation13 + $0x840] sm:$0xff] }
 0x832   :  { %6234 = vmatpush2.msra.mxu0 %v8455_v45  ;;  %6276 = vmatprep.subr.mxu1 %v8456_v46  ;;  %v8502_v45 = vld [vmem:[#allocation13 + $0x9d8] sm:$0xff] }
 0x833   :  { %6235 = vmatprep.subr.mxu0 %v8457_v47  ;;  %6277 = vmatpush1.msra.mxu1 %v8458_v54  ;;  %v8503_v46 = vld [vmem:[#allocation13 + $0x838] sm:$0xff]  ;;  %v8504_v47 = vld [vmem:[#allocation13 + $0x9d0] sm:$0xff] }
 0x834   :  { %6236 = vmatpush2.msra.mxu0 %v8459_v56  ;;  %6278 = vmatprep.subr.mxu1 %v8460_v7  ;;  %v8505_v54 = vld [vmem:[#allocation13 + $0x830] sm:$0xff]  ;;  %v8506_v56 = vld [vmem:[#allocation13 + $0x9c8] sm:$0xff] }
 0x835   :  { %6237 = vmatprep.subr.mxu0 %v8461_v51  ;;  %6279 = vmatpush1.msra.mxu1 %v8462_v59  ;;  %v8507_v7 = vld [vmem:[#allocation13 + $0x828] sm:$0xff]  ;;  %v8508_v51 = vld [vmem:[#allocation13 + $0x9c0] sm:$0xff] }
 0x836   :  { %6238 = vmatpush2.msra.mxu0 %v8463_v61  ;;  %6280 = vmatprep.subr.mxu1 %v8464_v20  ;;  %v8509_v59 = vld [vmem:[#allocation13 + $0x820] sm:$0xff]  ;;  %v8510_v61 = vld [vmem:[#allocation13 + $0x9b8] sm:$0xff] }
 0x837   :  { %6239 = vmatprep.subr.mxu0 %v8465_v11  ;;  %6281 = vmatpush1.msra.mxu1 %v8466_v14  ;;  %v8511_v20 = vld [vmem:[#allocation13 + $0x818] sm:$0xff]  ;;  %v8512_v11 = vld [vmem:[#allocation13 + $0x9b0] sm:$0xff] }
 0x838   :  { %6240 = vmatpush2.msra.mxu0 %v8467_v15  ;;  %6282 = vmatprep.subr.mxu1 %v8468_v53  ;;  %v8513_v14 = vld [vmem:[#allocation13 + $0x810] sm:$0xff]  ;;  %v8514_v15 = vld [vmem:[#allocation13 + $0x9a8] sm:$0xff] }
 0x839   :  { %6241 = vmatprep.subr.mxu0 %v8469_v16  ;;  %6283 = vmatpush1.msra.mxu1 %v8470_v2  ;;  %v8515_v53 = vld [vmem:[#allocation13 + $0x808] sm:$0xff]  ;;  %v8516_v16 = vld [vmem:[#allocation13 + $0x9a0] sm:$0xff] }
 0x83a   :  { %6242 = vmatpush2.msra.mxu0 %v8471_v3  ;;  %6284 = vmatprep.subr.mxu1 %v8472_v55  ;;  %v8517_v2 = vld [vmem:[#allocation13 + $0x800] sm:$0xff]  ;;  %v8518_v3 = vld [vmem:[#allocation13 + $0x998] sm:$0xff] }
 0x83b   :  { %6243 = vmatprep.subr.mxu0 %v8473_v6  ;;  %6285 = vmatpush1.msra.mxu1 %v8474_v62  ;;  %v8519_v55 = vld [vmem:[#allocation13 + $0x7f8] sm:$0xff]  ;;  %v8520_v6 = vld [vmem:[#allocation13 + $0x990] sm:$0xff] }
 0x83c   :  { %6244 = vmatpush2.msra.mxu0 %v8475_v25  ;;  %6286 = vmatprep.subr.mxu1 %v8476_v12  ;;  %v8521_v62 = vld [vmem:[#allocation13 + $0x7f0] sm:$0xff]  ;;  %v8522_v25 = vld [vmem:[#allocation13 + $0x988] sm:$0xff] }
 0x83d   :  { %6245 = vmatprep.subr.mxu0 %v8477_v52  ;;  %6287 = vmatpush1.msra.mxu1 %v8478_v50  ;;  %v8523_v12 = vld [vmem:[#allocation13 + $0x7e8] sm:$0xff]  ;;  %v8524_v52 = vld [vmem:[#allocation13 + $0x980] sm:$0xff]  ;;  %v6335_v50 = vrot.slane %v10388_v26, 3 }
 0x83e   :  { %6246 = vmatpush2.msra.mxu0 %v8479_v13  ;;  %6288 = vmatprep.subr.mxu1 %v8480_v4  ;;  %v8525_v13 = vld [vmem:[#allocation13 + $0x7e0] sm:$0xff]  ;;  %v8526_v4 = vld [vmem:[#allocation13 + $0xaf8] sm:$0xff] }
 0x83f   :  { %6247 = vmatprep.subr.mxu0 %v8481_v5  ;;  %6289 = vmatpush1.msra.mxu1 %v8482_v9  ;;  %v6485_v5 = vrot.slane %v10394_v21, 4  ;;  %v8527_v9 = vld [vmem:[#allocation13 + $0x7d8] sm:$0xff] }
 0x840   :  { %6248 = vmatpush2.msra.mxu0 %v8483_v28  ;;  %6290 = vmatprep.subr.mxu1 %v8484_v57  ;;  %v8528_v28 = vld [vmem:[#allocation13 + $0xaf0] sm:$0xff] }
 0x841   :  { %6249 = vmatprep.subr.mxu0 %v8485_v24  ;;  %6291 = vmatpush1.msra.mxu1 %v8486_v29  ;;  %v8529_v57 = vld [vmem:[#allocation13 + $0x7d0] sm:$0xff]  ;;  %v8530_v24 = vld [vmem:[#allocation13 + $0xae8] sm:$0xff] }
 0x842   :  { %6324 = vmatprep.mubr.f32.mxu1 %v9277_v35  ;;  %6250 = vmatpush2.msra.mxu0 %v8487_v18  ;;  %v8531_v29 = vld [vmem:[#allocation13 + $0x7c8] sm:$0xff]  ;;  %v8533_v18 = vld [vmem:[#allocation13 + $0x7c0] sm:$0xff] }
 0x843   :  { %7672 = vmatmul.mubr.msk.f32.vlgmr.msra.gmra.mxu1 %vm1461_vm4, %v6184_v30  ;;  %6340 = vmatprep.subr.mxu1 %v8488_v31  ;;  %v8532_v30 = vld [vmem:[#allocation13 + $0xae0] sm:$0xff]  ;;  %v8534_v31 = vld [vmem:[#allocation13 + $0xad8] sm:$0xff] }
 0x844   :  { %6251 = vmatprep.subr.mxu0 %v8489_v33  ;;  %6341 = vmatpush1.msra.mxu1 %v8490_v49  ;;  %v8536_v33 = vld [vmem:[#allocation13 + $0xad0] sm:$0xff] }
 0x845   :  { %6404 = vmatprep.mubr.f32.mxu1 %v6334_v32  ;;  %6252 = vmatpush2.msra.mxu0 %v8491_v63  ;;  %v8535_v32 = vld [vmem:[#allocation13 + $0x7b8] sm:$0xff]  ;;  %v8537_v49 = vld [vmem:[#allocation13 + $0x7b0] sm:$0xff]  ;;  %v8539_v63 = vld [vmem:[#allocation13 + $0x7a8] sm:$0xff] }
 0x846   :  { %6342 = vmatprep.subr.mxu1 %v8492_v34  ;;  %6254 = vmatmul.mubr.f32.vlgmr.msra.gmra.mxu0 %v6182_v23  ;;  %v8538_v23 = vld [vmem:[#allocation13 + $0xac8] sm:$0xff]  ;;  %v8540_v34 = vld [vmem:[#allocation13 + $0xac0] sm:$0xff] }
 0x847   :  { %6343 = vmatpush1.msra.mxu1 %v8493_v36  ;;  %6427 = vmatprep.subr.mxu0 %v8494_v37  ;;  %v8541_v36 = vld [vmem:[#allocation13 + $0x7a0] sm:$0xff]  ;;  %v8542_v37 = vld [vmem:[#allocation13 + $0xab8] sm:$0xff] }
 0x848   :  { %6344 = vmatprep.subr.mxu1 %v8495_v38  ;;  %6428 = vmatpush1.msra.mxu0 %v8496_v39  ;;  %v8543_v38 = vld [vmem:[#allocation13 + $0x798] sm:$0xff]  ;;  %v8544_v39 = vld [vmem:[#allocation13 + $0xab0] sm:$0xff] }
 0x849   :  { %6345 = vmatpush1.msra.mxu1 %v8497_v1  ;;  %6429 = vmatprep.subr.mxu0 %v8498_v40  ;;  %v8545_v1 = vld [vmem:[#allocation13 + $0x790] sm:$0xff]  ;;  %v8546_v40 = vld [vmem:[#allocation13 + $0xaa8] sm:$0xff] }
 0x84a   :  { %6346 = vmatprep.subr.mxu1 %v8499_v42  ;;  %6430 = vmatpush1.msra.mxu0 %v8500_v43  ;;  %v8547_v42 = vld [vmem:[#allocation13 + $0x788] sm:$0xff]  ;;  %v8548_v43 = vld [vmem:[#allocation13 + $0xaa0] sm:$0xff] }
 0x84b   :  { %6347 = vmatpush1.msra.mxu1 %v8501_v44  ;;  %6431 = vmatprep.subr.mxu0 %v8502_v45  ;;  %v8549_v44 = vld [vmem:[#allocation13 + $0x780] sm:$0xff]  ;;  %v8550_v45 = vld [vmem:[#allocation13 + $0xa98] sm:$0xff] }
 0x84c   :  { %6348 = vmatprep.subr.mxu1 %v8503_v46  ;;  %6432 = vmatpush1.msra.mxu0 %v8504_v47  ;;  %v8551_v46 = vld [vmem:[#allocation13 + $0x978] sm:$0xff]  ;;  %v8552_v47 = vld [vmem:[#allocation13 + $0xa90] sm:$0xff] }
 0x84d   :  { %6349 = vmatpush1.msra.mxu1 %v8505_v54  ;;  %6433 = vmatprep.subr.mxu0 %v8506_v56  ;;  %v8553_v54 = vld [vmem:[#allocation13 + $0x970] sm:$0xff]  ;;  %v8554_v56 = vld [vmem:[#allocation13 + $0xa88] sm:$0xff] }
 0x84e   :  { %6350 = vmatprep.subr.mxu1 %v8507_v7  ;;  %6434 = vmatpush1.msra.mxu0 %v8508_v51  ;;  %v8555_v7 = vld [vmem:[#allocation13 + $0x968] sm:$0xff]  ;;  %v8556_v51 = vld [vmem:[#allocation13 + $0xa80] sm:$0xff] }
 0x84f   :  { %6351 = vmatpush1.msra.mxu1 %v8509_v59  ;;  %6435 = vmatprep.subr.mxu0 %v8510_v61  ;;  %v8557_v59 = vld [vmem:[#allocation13 + $0x960] sm:$0xff]  ;;  %v8558_v61 = vld [vmem:[#allocation13 + $0xa78] sm:$0xff] }
 0x850   :  { %6352 = vmatprep.subr.mxu1 %v8511_v20  ;;  %6436 = vmatpush1.msra.mxu0 %v8512_v11  ;;  %v8559_v20 = vld [vmem:[#allocation13 + $0x958] sm:$0xff]  ;;  %v8560_v11 = vld [vmem:[#allocation13 + $0xa70] sm:$0xff] }
 0x851   :  { %6353 = vmatpush1.msra.mxu1 %v8513_v14  ;;  %6437 = vmatprep.subr.mxu0 %v8514_v15  ;;  %v8561_v14 = vld [vmem:[#allocation13 + $0x950] sm:$0xff]  ;;  %v8562_v15 = vld [vmem:[#allocation13 + $0xa68] sm:$0xff] }
 0x852   :  { %6354 = vmatprep.subr.mxu1 %v8515_v53  ;;  %6438 = vmatpush1.msra.mxu0 %v8516_v16  ;;  %v8563_v53 = vld [vmem:[#allocation13 + $0x948] sm:$0xff]  ;;  %v8564_v16 = vld [vmem:[#allocation13 + $0xa60] sm:$0xff] }
 0x853   :  { %6355 = vmatpush1.msra.mxu1 %v8517_v2  ;;  %6439 = vmatprep.subr.mxu0 %v8518_v3  ;;  %v8565_v2 = vld [vmem:[#allocation13 + $0x940] sm:$0xff]  ;;  %v8566_v3 = vld [vmem:[#allocation13 + $0xa58] sm:$0xff] }
 0x854   :  { %6356 = vmatprep.subr.mxu1 %v8519_v55  ;;  %6440 = vmatpush1.msra.mxu0 %v8520_v6  ;;  %v8567_v55 = vld [vmem:[#allocation13 + $0x938] sm:$0xff]  ;;  %v8568_v6 = vld [vmem:[#allocation13 + $0xa50] sm:$0xff] }
 0x855   :  { %6357 = vmatpush1.msra.mxu1 %v8521_v62  ;;  %6441 = vmatprep.subr.mxu0 %v8522_v25  ;;  %v8569_v62 = vld [vmem:[#allocation13 + $0x930] sm:$0xff]  ;;  %v8570_v25 = vld [vmem:[#allocation13 + $0xa48] sm:$0xff] }
 0x856   :  { %6358 = vmatprep.subr.mxu1 %v8523_v12  ;;  %6442 = vmatpush1.msra.mxu0 %v8524_v52  ;;  %v8571_v12 = vld [vmem:[#allocation13 + $0x928] sm:$0xff]  ;;  %v8572_v52 = vld [vmem:[#allocation13 + $0xa40] sm:$0xff] }
 0x857   :  { %6475 = vmatprep.mubr.f32.mxu0 %v9277_v35  ;;  %6359 = vmatpush1.msra.mxu1 %v8525_v13  ;;  %v8574_v13 = vld [vmem:[#allocation13 + $0xa38] sm:$0xff] }
 0x858   :  { %7673 = vmatmul.mubr.msk.f32.vlgmr.msra.gmra.mxu0 %vm1461_vm4, %v6335_v50  ;;  %6491 = vmatprep.subr.mxu0 %v8526_v4  ;;  %v8573_v50 = vld [vmem:[#allocation13 + $0x920] sm:$0xff]  ;;  %v8575_v4 = vld [vmem:[#allocation13 + $0x918] sm:$0xff] }
 0x859   :  { %6360 = vmatprep.subr.mxu1 %v8527_v9  ;;  %6492 = vmatpush1.msra.mxu0 %v8528_v28  ;;  %v8577_v9 = vld [vmem:[#allocation13 + $0x910] sm:$0xff]  ;;  %v8578_v28 = vld [vmem:[#allocation13 + $0xa28] sm:$0xff] }
 0x85a   :  { %6555 = vmatprep.mubr.f32.mxu0 %v6485_v5  ;;  %6361 = vmatpush1.msra.mxu1 %v8529_v57  ;;  %v8576_v5 = vld [vmem:[#allocation13 + $0xa30] sm:$0xff]  ;;  %v8579_v57 = vld [vmem:[#allocation13 + $0x908] sm:$0xff] }
 0x85b   :  { %6493 = vmatprep.subr.mxu0 %v8530_v24  ;;  %6362 = vmatprep.subr.mxu1 %v8531_v29  ;;  %v8580_v24 = vld [vmem:[#allocation13 + $0xa20] sm:$0xff] }
 0x85c   :  { %6494 = vmatpush1.msra.mxu0 %v8532_v30  ;;  %6363 = vmatpush1.msra.mxu1 %v8533_v18  ;;  %v8581_v29 = vld [vmem:[#allocation13 + $0x900] sm:$0xff]  ;;  %v8582_v30 = vld [vmem:[#allocation13 + $0xa18] sm:$0xff] }
 0x85d   :  { %6495 = vmatprep.subr.mxu0 %v8534_v31  ;;  %6364 = vmatprep.subr.mxu1 %v8535_v32  ;;  %v8583_v18 = vld [vmem:[#allocation13 + $0x8f8] sm:$0xff]  ;;  %v8584_v31 = vld [vmem:[#allocation13 + $0xa10] sm:$0xff] }
 0x85e   :  { %6496 = vmatpush1.msra.mxu0 %v8536_v33  ;;  %6365 = vmatpush1.msra.mxu1 %v8537_v49  ;;  %v8585_v32 = vld [vmem:[#allocation13 + $0x8f0] sm:$0xff]  ;;  %v8586_v33 = vld [vmem:[#allocation13 + $0xa08] sm:$0xff] }
 0x85f   :  { %6497 = vmatprep.subr.mxu0 %v8538_v23  ;;  %6366 = vmatprep.subr.mxu1 %v8539_v63  ;;  %v8587_v49 = vld [vmem:[#allocation13 + $0x8e8] sm:$0xff]  ;;  %v8588_v23 = vld [vmem:[#allocation13 + $0xa00] sm:$0xff] }
 0x860   :  { %6498 = vmatpush1.msra.mxu0 %v8540_v34  ;;  %6367 = vmatpush1.msra.mxu1 %v8541_v36  ;;  %v8589_v63 = vld [vmem:[#allocation13 + $0x8e0] sm:$0xff]  ;;  %v8590_v34 = vld [vmem:[#allocation13 + $0xbf8] sm:$0xff] }
 0x861   :  { %6499 = vmatprep.subr.mxu0 %v8542_v37  ;;  %6368 = vmatprep.subr.mxu1 %v8543_v38  ;;  %v8591_v36 = vld [vmem:[#allocation13 + $0x8d8] sm:$0xff]  ;;  %v8592_v37 = vld [vmem:[#allocation13 + $0xbf0] sm:$0xff] }
 0x862   :  { %6500 = vmatpush1.msra.mxu0 %v8544_v39  ;;  %6369 = vmatpush1.msra.mxu1 %v8545_v1  ;;  %v8593_v38 = vld [vmem:[#allocation13 + $0x8d0] sm:$0xff]  ;;  %v8594_v39 = vld [vmem:[#allocation13 + $0xbe8] sm:$0xff] }
 0x863   :  { %6501 = vmatprep.subr.mxu0 %v8546_v40  ;;  %6370 = vmatprep.subr.mxu1 %v8547_v42  ;;  %v8595_v1 = vld [vmem:[#allocation13 + $0x8c8] sm:$0xff]  ;;  %v8596_v40 = vld [vmem:[#allocation13 + $0xbe0] sm:$0xff] }
 0x864   :  { %6502 = vmatpush1.msra.mxu0 %v8548_v43  ;;  %6371 = vmatpush1.msra.mxu1 %v8549_v44  ;;  %v8597_v42 = vld [vmem:[#allocation13 + $0x8c0] sm:$0xff]  ;;  %v8598_v43 = vld [vmem:[#allocation13 + $0xbd8] sm:$0xff] }
 0x865   :  { %6503 = vmatprep.subr.mxu0 %v8550_v45  ;;  %6372 = vmatprep.subr.mxu1 %v8551_v46  ;;  %v8599_v44 = vld [vmem:[#allocation13 + $0x8b8] sm:$0xff]  ;;  %v8600_v45 = vld [vmem:[#allocation13 + $0xbd0] sm:$0xff] }
 0x866   :  { %6504 = vmatpush1.msra.mxu0 %v8552_v47  ;;  %6373 = vmatpush2.msra.mxu1 %v8553_v54  ;;  %v8601_v46 = vld [vmem:[#allocation13 + $0x8b0] sm:$0xff]  ;;  %v8602_v47 = vld [vmem:[#allocation13 + $0xbc8] sm:$0xff] }
 0x867   :  { %6505 = vmatprep.subr.mxu0 %v8554_v56  ;;  %6374 = vmatprep.subr.mxu1 %v8555_v7  ;;  %v8603_v54 = vld [vmem:[#allocation13 + $0x8a8] sm:$0xff]  ;;  %v8604_v56 = vld [vmem:[#allocation13 + $0xbc0] sm:$0xff] }
 0x868   :  { %6506 = vmatpush1.msra.mxu0 %v8556_v51  ;;  %6375 = vmatpush2.msra.mxu1 %v8557_v59  ;;  %v8605_v7 = vld [vmem:[#allocation13 + $0x8a0] sm:$0xff]  ;;  %v8606_v51 = vld [vmem:[#allocation13 + $0xbb8] sm:$0xff] }
 0x869   :  { %6507 = vmatprep.subr.mxu0 %v8558_v61  ;;  %6376 = vmatprep.subr.mxu1 %v8559_v20  ;;  %v8607_v59 = vld [vmem:[#allocation13 + $0x898] sm:$0xff]  ;;  %v8608_v61 = vld [vmem:[#allocation13 + $0xbb0] sm:$0xff] }
 0x86a   :  { %6508 = vmatpush1.msra.mxu0 %v8560_v11  ;;  %6377 = vmatpush2.msra.mxu1 %v8561_v14  ;;  %v8609_v20 = vld [vmem:[#allocation13 + $0x890] sm:$0xff]  ;;  %v8610_v11 = vld [vmem:[#allocation13 + $0xba8] sm:$0xff] }
 0x86b   :  { %6509 = vmatprep.subr.mxu0 %v8562_v15  ;;  %6378 = vmatprep.subr.mxu1 %v8563_v53  ;;  %v8611_v14 = vld [vmem:[#allocation13 + $0x888] sm:$0xff]  ;;  %v6333_v15 = vrot.slane %v10391_v10, 3  ;;  %v8612_v53 = vld [vmem:[#allocation13 + $0xba0] sm:$0xff] }
 0x86c   :  { %6510 = vmatpush1.msra.mxu0 %v8564_v16  ;;  %6379 = vmatpush2.msra.mxu1 %v8565_v2  ;;  %v8613_v16 = vld [vmem:[#allocation13 + $0x880] sm:$0xff]  ;;  %v8614_v2 = vld [vmem:[#allocation13 + $0xb98] sm:$0xff] }
 0x86d   :  { %6511 = vmatprep.subr.mxu0 %v8566_v3  ;;  %6380 = vmatprep.subr.mxu1 %v8567_v55  ;;  %v8615_v3 = vld [vmem:[#allocation13 + $0xb90] sm:$0xff]  ;;  %v8616_v55 = vld [vmem:[#allocation13 + $0xc78] sm:$0xff] }
 0x86e   :  { %6512 = vmatpush1.msra.mxu0 %v8568_v6  ;;  %6381 = vmatpush2.msra.mxu1 %v8569_v62  ;;  %v8617_v6 = vld [vmem:[#allocation13 + $0xb88] sm:$0xff]  ;;  %v8618_v62 = vld [vmem:[#allocation13 + $0xc70] sm:$0xff] }
 0x86f   :  { %6513 = vmatprep.subr.mxu0 %v8570_v25  ;;  %6382 = vmatprep.subr.mxu1 %v8571_v12  ;;  %v8619_v25 = vld [vmem:[#allocation13 + $0xb80] sm:$0xff]  ;;  %v8620_v12 = vld [vmem:[#allocation13 + $0xc68] sm:$0xff] }
 0x870   :  { %6514 = vmatpush1.msra.mxu0 %v8572_v52  ;;  %6383 = vmatpush2.msra.mxu1 %v8573_v50  ;;  %v8621_v52 = vld [vmem:[#allocation13 + $0xb78] sm:$0xff]  ;;  %v8622_v50 = vld [vmem:[#allocation13 + $0xc60] sm:$0xff] }
 0x871   :  { %6515 = vmatprep.subr.mxu0 %v8574_v13  ;;  %6384 = vmatprep.subr.mxu1 %v8575_v4  ;;  %v8623_v13 = vld [vmem:[#allocation13 + $0xb70] sm:$0xff]  ;;  %v8624_v4 = vld [vmem:[#allocation13 + $0xc58] sm:$0xff] }
 0x872   :  { %6516 = vmatpush1.msra.mxu0 %v8576_v5  ;;  %6385 = vmatpush2.msra.mxu1 %v8577_v9  ;;  %v8625_v5 = vld [vmem:[#allocation13 + $0xb68] sm:$0xff]  ;;  %v8626_v9 = vld [vmem:[#allocation13 + $0xc50] sm:$0xff] }
 0x873   :  { %6517 = vmatprep.subr.mxu0 %v8578_v28  ;;  %6386 = vmatprep.subr.mxu1 %v8579_v57  ;;  %v8627_v28 = vld [vmem:[#allocation13 + $0xb60] sm:$0xff]  ;;  %v8628_v57 = vld [vmem:[#allocation13 + $0xc48] sm:$0xff] }
 0x874   :  { %6518 = vmatpush1.msra.mxu0 %v8580_v24  ;;  %6387 = vmatpush2.msra.mxu1 %v8581_v29  ;;  %v8629_v24 = vld [vmem:[#allocation13 + $0xb58] sm:$0xff]  ;;  %v8630_v29 = vld [vmem:[#allocation13 + $0xc40] sm:$0xff] }
 0x875   :  { %6519 = vmatprep.subr.mxu0 %v8582_v30  ;;  %6388 = vmatprep.subr.mxu1 %v8583_v18  ;;  %v8631_v30 = vld [vmem:[#allocation13 + $0xb50] sm:$0xff]  ;;  %v8632_v18 = vld [vmem:[#allocation13 + $0xc38] sm:$0xff] }
 0x876   :  { %6520 = vmatpush1.msra.mxu0 %v8584_v31  ;;  %6389 = vmatpush2.msra.mxu1 %v8585_v32  ;;  %v8633_v31 = vld [vmem:[#allocation13 + $0xb48] sm:$0xff]  ;;  %v8634_v32 = vld [vmem:[#allocation13 + $0xc30] sm:$0xff] }
 0x877   :  { %6521 = vmatprep.subr.mxu0 %v8586_v33  ;;  %6390 = vmatprep.subr.mxu1 %v8587_v49  ;;  %v8635_v33 = vld [vmem:[#allocation13 + $0xb40] sm:$0xff]  ;;  %v8636_v49 = vld [vmem:[#allocation13 + $0xc28] sm:$0xff] }
 0x878   :  { %6522 = vmatpush1.msra.mxu0 %v8588_v23  ;;  %6391 = vmatpush2.msra.mxu1 %v8589_v63  ;;  %v8637_v23 = vld [vmem:[#allocation13 + $0xb38] sm:$0xff]  ;;  %v8638_v63 = vld [vmem:[#allocation13 + $0xc20] sm:$0xff] }
 0x879   :  { %6523 = vmatprep.subr.mxu0 %v8590_v34  ;;  %6392 = vmatprep.subr.mxu1 %v8591_v36  ;;  %v8639_v34 = vld [vmem:[#allocation13 + $0xb30] sm:$0xff]  ;;  %v8640_v36 = vld [vmem:[#allocation13 + $0xc18] sm:$0xff] }
 0x87a   :  { %6524 = vmatpush2.msra.mxu0 %v8592_v37  ;;  %6393 = vmatpush2.msra.mxu1 %v8593_v38  ;;  %v8641_v37 = vld [vmem:[#allocation13 + $0xb28] sm:$0xff]  ;;  %v8642_v38 = vld [vmem:[#allocation13 + $0xc10] sm:$0xff] }
 0x87b   :  { %6525 = vmatprep.subr.mxu0 %v8594_v39  ;;  %6394 = vmatprep.subr.mxu1 %v8595_v1  ;;  %v8643_v39 = vld [vmem:[#allocation13 + $0xb20] sm:$0xff]  ;;  %v8644_v1 = vld [vmem:[#allocation13 + $0xc08] sm:$0xff] }
 0x87c   :  { %6526 = vmatpush2.msra.mxu0 %v8596_v40  ;;  %6395 = vmatpush2.msra.mxu1 %v8597_v42  ;;  %v8645_v40 = vld [vmem:[#allocation13 + $0xb18] sm:$0xff]  ;;  %v8646_v42 = vld [vmem:[#allocation13 + $0xc00] sm:$0xff] }
 0x87d   :  { %6527 = vmatprep.subr.mxu0 %v8598_v43  ;;  %6396 = vmatprep.subr.mxu1 %v8599_v44  ;;  %v6486_v43 = vrot.slane %v10388_v26, 4  ;;  %v8647_v44 = vld [vmem:[#allocation13 + $0xb10] sm:$0xff] }
 0x87e   :  { %6528 = vmatpush2.msra.mxu0 %v8600_v45  ;;  %6397 = vmatpush2.msra.mxu1 %v8601_v46  ;;  %v8648_v45 = vld [vmem:[#allocation13 + $0xd78] sm:$0xff]  ;;  %v6636_v46 = vrot.slane %v10394_v21, 5 }
 0x87f   :  { %6529 = vmatprep.subr.mxu0 %v8602_v47  ;;  %6398 = vmatprep.subr.mxu1 %v8603_v54  ;;  %v8649_v47 = vld [vmem:[#allocation13 + $0xb08] sm:$0xff]  ;;  %v8650_v54 = vld [vmem:[#allocation13 + $0xd70] sm:$0xff] }
 0x880   :  { %6530 = vmatpush2.msra.mxu0 %v8604_v56  ;;  %6399 = vmatpush2.msra.mxu1 %v8605_v7  ;;  %v6484_v56 = vrot.slane %v10391_v10, 4  ;;  %v8651_v7 = vld [vmem:[#allocation13 + $0xb00] sm:$0xff] }
 0x881   :  { %6531 = vmatprep.subr.mxu0 %v8606_v51  ;;  %6400 = vmatprep.subr.mxu1 %v8607_v59  ;;  %v8652_v51 = vld [vmem:[#allocation13 + $0xd68] sm:$0xff]  ;;  %v8653_v59 = vld [vmem:[#allocation13 + $0xd60] sm:$0xff] }
 0x882   :  { %6532 = vmatpush2.msra.mxu0 %v8608_v61  ;;  %6401 = vmatpush2.msra.mxu1 %v8609_v20  ;;  %v8654_v61 = vld [vmem:[#allocation13 + $0xef8] sm:$0xff] }
 0x883   :  { %6533 = vmatprep.subr.mxu0 %v8610_v11  ;;  %6402 = vmatprep.subr.mxu1 %v8611_v14  ;;  %v8655_v20 = vld [vmem:[#allocation13 + $0xd58] sm:$0xff]  ;;  %v8656_v11 = vld [vmem:[#allocation13 + $0xef0] sm:$0xff] }
 0x884   :  { %6534 = vmatpush2.msra.mxu0 %v8612_v53  ;;  %6403 = vmatpush2.msra.mxu1 %v8613_v16  ;;  %v8657_v14 = vld [vmem:[#allocation13 + $0xd50] sm:$0xff]  ;;  %v8659_v53 = vld [vmem:[#allocation13 + $0xd48] sm:$0xff]  ;;  %v8660_v16 = vld [vmem:[#allocation13 + $0xee0] sm:$0xff] }
 0x885   :  { %6535 = vmatprep.subr.mxu0 %v8614_v2  ;;  %6405 = vmatmul.mubr.f32.vlgmr.msra.gmra.mxu1 %v6333_v15  ;;  %v8658_v15 = vld [vmem:[#allocation13 + $0xee8] sm:$0xff]  ;;  %v8661_v2 = vld [vmem:[#allocation13 + $0xd40] sm:$0xff] }
 0x886   :  { %6536 = vmatpush2.msra.mxu0 %v8615_v3  ;;  %6578 = vmatprep.subr.mxu1 %v8616_v55  ;;  %v8662_v3 = vld [vmem:[#allocation13 + $0xed8] sm:$0xff] }
 0x887   :  { %6537 = vmatprep.subr.mxu0 %v8617_v6  ;;  %6579 = vmatpush1.msra.mxu1 %v8618_v62  ;;  %v8663_v55 = vld [vmem:[#allocation13 + $0xd38] sm:$0xff]  ;;  %v8664_v6 = vld [vmem:[#allocation13 + $0xed0] sm:$0xff] }
 0x888   :  { %6538 = vmatpush2.msra.mxu0 %v8619_v25  ;;  %6580 = vmatprep.subr.mxu1 %v8620_v12  ;;  %v8665_v62 = vld [vmem:[#allocation13 + $0xd30] sm:$0xff]  ;;  %v8666_v25 = vld [vmem:[#allocation13 + $0xec8] sm:$0xff] }
 0x889   :  { %6539 = vmatprep.subr.mxu0 %v8621_v52  ;;  %6581 = vmatpush1.msra.mxu1 %v8622_v50  ;;  %v8667_v12 = vld [vmem:[#allocation13 + $0xd28] sm:$0xff]  ;;  %v8668_v52 = vld [vmem:[#allocation13 + $0xec0] sm:$0xff] }
 0x88a   :  { %6540 = vmatpush2.msra.mxu0 %v8623_v13  ;;  %6582 = vmatprep.subr.mxu1 %v8624_v4  ;;  %v8669_v50 = vld [vmem:[#allocation13 + $0xd20] sm:$0xff]  ;;  %v8670_v13 = vld [vmem:[#allocation13 + $0xeb8] sm:$0xff] }
 0x88b   :  { %6541 = vmatprep.subr.mxu0 %v8625_v5  ;;  %6583 = vmatpush1.msra.mxu1 %v8626_v9  ;;  %v8671_v4 = vld [vmem:[#allocation13 + $0xd18] sm:$0xff]  ;;  %v8672_v5 = vld [vmem:[#allocation13 + $0xeb0] sm:$0xff] }
 0x88c   :  { %6542 = vmatpush2.msra.mxu0 %v8627_v28  ;;  %6584 = vmatprep.subr.mxu1 %v8628_v57  ;;  %v8673_v9 = vld [vmem:[#allocation13 + $0xd10] sm:$0xff]  ;;  %v8674_v28 = vld [vmem:[#allocation13 + $0xea8] sm:$0xff] }
 0x88d   :  { %6543 = vmatprep.subr.mxu0 %v8629_v24  ;;  %6585 = vmatpush1.msra.mxu1 %v8630_v29  ;;  %v8675_v57 = vld [vmem:[#allocation13 + $0xd08] sm:$0xff]  ;;  %v8676_v24 = vld [vmem:[#allocation13 + $0xea0] sm:$0xff] }
 0x88e   :  { %6544 = vmatpush2.msra.mxu0 %v8631_v30  ;;  %6586 = vmatprep.subr.mxu1 %v8632_v18  ;;  %v8677_v29 = vld [vmem:[#allocation13 + $0xd00] sm:$0xff]  ;;  %v8678_v30 = vld [vmem:[#allocation13 + $0xe98] sm:$0xff] }
 0x88f   :  { %6545 = vmatprep.subr.mxu0 %v8633_v31  ;;  %6587 = vmatpush1.msra.mxu1 %v8634_v32  ;;  %v8679_v18 = vld [vmem:[#allocation13 + $0xcf8] sm:$0xff]  ;;  %v8680_v31 = vld [vmem:[#allocation13 + $0xe90] sm:$0xff] }
 0x890   :  { %6546 = vmatpush2.msra.mxu0 %v8635_v33  ;;  %6588 = vmatprep.subr.mxu1 %v8636_v49  ;;  %v8681_v32 = vld [vmem:[#allocation13 + $0xcf0] sm:$0xff]  ;;  %v8682_v33 = vld [vmem:[#allocation13 + $0xe88] sm:$0xff] }
 0x891   :  { %6547 = vmatprep.subr.mxu0 %v8637_v23  ;;  %6589 = vmatpush1.msra.mxu1 %v8638_v63  ;;  %v8683_v49 = vld [vmem:[#allocation13 + $0xce8] sm:$0xff]  ;;  %v8684_v23 = vld [vmem:[#allocation13 + $0xe80] sm:$0xff]  ;;  %v6637_v63 = vrot.slane %v10388_v26, 5 }
 0x892   :  { %6548 = vmatpush2.msra.mxu0 %v8639_v34  ;;  %6590 = vmatprep.subr.mxu1 %v8640_v36  ;;  %v8685_v34 = vld [vmem:[#allocation13 + $0xce0] sm:$0xff]  ;;  %v8686_v36 = vld [vmem:[#allocation13 + $0xff8] sm:$0xff] }
 0x893   :  { %6549 = vmatprep.subr.mxu0 %v8641_v37  ;;  %6591 = vmatpush1.msra.mxu1 %v8642_v38  ;;  %v6787_v37 = vrot.slane %v10394_v21, 6  ;;  %v8687_v38 = vld [vmem:[#allocation13 + $0xcd8] sm:$0xff] }
 0x894   :  { %6550 = vmatpush2.msra.mxu0 %v8643_v39  ;;  %6592 = vmatprep.subr.mxu1 %v8644_v1  ;;  %v8688_v39 = vld [vmem:[#allocation13 + $0xff0] sm:$0xff] }
 0x895   :  { %6551 = vmatprep.subr.mxu0 %v8645_v40  ;;  %6593 = vmatpush1.msra.mxu1 %v8646_v42  ;;  %v8689_v1 = vld [vmem:[#allocation13 + $0xcd0] sm:$0xff]  ;;  %v8690_v40 = vld [vmem:[#allocation13 + $0xfe8] sm:$0xff] }
 0x896   :  { %6626 = vmatprep.mubr.f32.mxu1 %v9277_v35  ;;  %6552 = vmatpush2.msra.mxu0 %v8647_v44  ;;  %v8691_v42 = vld [vmem:[#allocation13 + $0xcc8] sm:$0xff]  ;;  %v8693_v44 = vld [vmem:[#allocation13 + $0xcc0] sm:$0xff] }
 0x897   :  { %7674 = vmatmul.mubr.msk.f32.vlgmr.msra.gmra.mxu1 %vm1461_vm4, %v6486_v43  ;;  %6642 = vmatprep.subr.mxu1 %v8648_v45  ;;  %v8692_v43 = vld [vmem:[#allocation13 + $0xfe0] sm:$0xff]  ;;  %v8694_v45 = vld [vmem:[#allocation13 + $0xfd8] sm:$0xff] }
 0x898   :  { %6553 = vmatprep.subr.mxu0 %v8649_v47  ;;  %6643 = vmatpush1.msra.mxu1 %v8650_v54  ;;  %v8696_v47 = vld [vmem:[#allocation13 + $0xfd0] sm:$0xff] }
 0x899   :  { %6706 = vmatprep.mubr.f32.mxu1 %v6636_v46  ;;  %6554 = vmatpush2.msra.mxu0 %v8651_v7  ;;  %v8695_v46 = vld [vmem:[#allocation13 + $0xcb8] sm:$0xff]  ;;  %v8697_v54 = vld [vmem:[#allocation13 + $0xcb0] sm:$0xff]  ;;  %v8699_v7 = vld [vmem:[#allocation13 + $0xca8] sm:$0xff] }
 0x89a   :  { %6644 = vmatprep.subr.mxu1 %v8652_v51  ;;  %6556 = vmatmul.mubr.f32.vlgmr.msra.gmra.mxu0 %v6484_v56  ;;  %v8698_v56 = vld [vmem:[#allocation13 + $0xfc8] sm:$0xff]  ;;  %v8700_v51 = vld [vmem:[#allocation13 + $0xfc0] sm:$0xff] }
 0x89b   :  { %6645 = vmatpush1.msra.mxu1 %v8653_v59  ;;  %6729 = vmatprep.subr.mxu0 %v8654_v61  ;;  %v8701_v59 = vld [vmem:[#allocation13 + $0xca0] sm:$0xff]  ;;  %v8702_v61 = vld [vmem:[#allocation13 + $0xfb8] sm:$0xff] }
 0x89c   :  { %6646 = vmatprep.subr.mxu1 %v8655_v20  ;;  %6730 = vmatpush1.msra.mxu0 %v8656_v11  ;;  %v8703_v20 = vld [vmem:[#allocation13 + $0xc98] sm:$0xff]  ;;  %v8704_v11 = vld [vmem:[#allocation13 + $0xfb0] sm:$0xff] }
 0x89d   :  { %6647 = vmatpush1.msra.mxu1 %v8657_v14  ;;  %6731 = vmatprep.subr.mxu0 %v8658_v15  ;;  %v8705_v14 = vld [vmem:[#allocation13 + $0xc90] sm:$0xff]  ;;  %v8706_v15 = vld [vmem:[#allocation13 + $0xfa8] sm:$0xff] }
 0x89e   :  { %6648 = vmatprep.subr.mxu1 %v8659_v53  ;;  %6732 = vmatpush1.msra.mxu0 %v8660_v16  ;;  %v8707_v53 = vld [vmem:[#allocation13 + $0xc88] sm:$0xff]  ;;  %v8708_v16 = vld [vmem:[#allocation13 + $0xfa0] sm:$0xff] }
 0x89f   :  { %6649 = vmatpush1.msra.mxu1 %v8661_v2  ;;  %6733 = vmatprep.subr.mxu0 %v8662_v3  ;;  %v8709_v2 = vld [vmem:[#allocation13 + $0xc80] sm:$0xff]  ;;  %v8710_v3 = vld [vmem:[#allocation13 + $0xf98] sm:$0xff] }
 0x8a0   :  { %6650 = vmatprep.subr.mxu1 %v8663_v55  ;;  %6734 = vmatpush1.msra.mxu0 %v8664_v6  ;;  %v8711_v55 = vld [vmem:[#allocation13 + $0xe78] sm:$0xff]  ;;  %v8712_v6 = vld [vmem:[#allocation13 + $0xf90] sm:$0xff] }
 0x8a1   :  { %6651 = vmatpush1.msra.mxu1 %v8665_v62  ;;  %6735 = vmatprep.subr.mxu0 %v8666_v25  ;;  %v8713_v62 = vld [vmem:[#allocation13 + $0xe70] sm:$0xff]  ;;  %v8714_v25 = vld [vmem:[#allocation13 + $0xf88] sm:$0xff] }
 0x8a2   :  { %6652 = vmatprep.subr.mxu1 %v8667_v12  ;;  %6736 = vmatpush1.msra.mxu0 %v8668_v52  ;;  %v8715_v12 = vld [vmem:[#allocation13 + $0xe68] sm:$0xff]  ;;  %v8716_v52 = vld [vmem:[#allocation13 + $0xf80] sm:$0xff] }
 0x8a3   :  { %6653 = vmatpush1.msra.mxu1 %v8669_v50  ;;  %6737 = vmatprep.subr.mxu0 %v8670_v13  ;;  %v8717_v50 = vld [vmem:[#allocation13 + $0xe60] sm:$0xff]  ;;  %v8718_v13 = vld [vmem:[#allocation13 + $0xf78] sm:$0xff] }
 0x8a4   :  { %6654 = vmatprep.subr.mxu1 %v8671_v4  ;;  %6738 = vmatpush1.msra.mxu0 %v8672_v5  ;;  %v8719_v4 = vld [vmem:[#allocation13 + $0xe58] sm:$0xff]  ;;  %v8720_v5 = vld [vmem:[#allocation13 + $0xf70] sm:$0xff] }
 0x8a5   :  { %6655 = vmatpush1.msra.mxu1 %v8673_v9  ;;  %6739 = vmatprep.subr.mxu0 %v8674_v28  ;;  %v8721_v9 = vld [vmem:[#allocation13 + $0xe50] sm:$0xff]  ;;  %v8722_v28 = vld [vmem:[#allocation13 + $0xf68] sm:$0xff] }
 0x8a6   :  { %6656 = vmatprep.subr.mxu1 %v8675_v57  ;;  %6740 = vmatpush1.msra.mxu0 %v8676_v24  ;;  %v8723_v57 = vld [vmem:[#allocation13 + $0xe48] sm:$0xff]  ;;  %v8724_v24 = vld [vmem:[#allocation13 + $0xf60] sm:$0xff] }
 0x8a7   :  { %6657 = vmatpush1.msra.mxu1 %v8677_v29  ;;  %6741 = vmatprep.subr.mxu0 %v8678_v30  ;;  %v8725_v29 = vld [vmem:[#allocation13 + $0xe40] sm:$0xff]  ;;  %v8726_v30 = vld [vmem:[#allocation13 + $0xf58] sm:$0xff] }
 0x8a8   :  { %6658 = vmatprep.subr.mxu1 %v8679_v18  ;;  %6742 = vmatpush1.msra.mxu0 %v8680_v31  ;;  %v8727_v18 = vld [vmem:[#allocation13 + $0xe38] sm:$0xff]  ;;  %v8728_v31 = vld [vmem:[#allocation13 + $0xf50] sm:$0xff] }
 0x8a9   :  { %6659 = vmatpush1.msra.mxu1 %v8681_v32  ;;  %6743 = vmatprep.subr.mxu0 %v8682_v33  ;;  %v8729_v32 = vld [vmem:[#allocation13 + $0xe30] sm:$0xff]  ;;  %v8730_v33 = vld [vmem:[#allocation13 + $0xf48] sm:$0xff] }
 0x8aa   :  { %6660 = vmatprep.subr.mxu1 %v8683_v49  ;;  %6744 = vmatpush1.msra.mxu0 %v8684_v23  ;;  %v8731_v49 = vld [vmem:[#allocation13 + $0xe28] sm:$0xff]  ;;  %v8732_v23 = vld [vmem:[#allocation13 + $0xf40] sm:$0xff] }
 0x8ab   :  { %6777 = vmatprep.mubr.f32.mxu0 %v9277_v35  ;;  %6661 = vmatpush1.msra.mxu1 %v8685_v34  ;;  %v8734_v34 = vld [vmem:[#allocation13 + $0xf38] sm:$0xff] }
 0x8ac   :  { %7675 = vmatmul.mubr.msk.f32.vlgmr.msra.gmra.mxu0 %vm1461_vm4, %v6637_v63  ;;  %6793 = vmatprep.subr.mxu0 %v8686_v36  ;;  %v8733_v63 = vld [vmem:[#allocation13 + $0xe20] sm:$0xff]  ;;  %v8735_v36 = vld [vmem:[#allocation13 + $0xe18] sm:$0xff] }
 0x8ad   :  { %6662 = vmatprep.subr.mxu1 %v8687_v38  ;;  %6794 = vmatpush1.msra.mxu0 %v8688_v39  ;;  %v8737_v38 = vld [vmem:[#allocation13 + $0xe10] sm:$0xff]  ;;  %v8738_v39 = vld [vmem:[#allocation13 + $0xf28] sm:$0xff] }
 0x8ae   :  { %6857 = vmatprep.mubr.f32.mxu0 %v6787_v37  ;;  %6663 = vmatpush1.msra.mxu1 %v8689_v1  ;;  %v8736_v37 = vld [vmem:[#allocation13 + $0xf30] sm:$0xff]  ;;  %v8739_v1 = vld [vmem:[#allocation13 + $0xe08] sm:$0xff] }
 0x8af   :  { %6795 = vmatprep.subr.mxu0 %v8690_v40  ;;  %6664 = vmatprep.subr.mxu1 %v8691_v42  ;;  %v8740_v40 = vld [vmem:[#allocation13 + $0xf20] sm:$0xff] }
 0x8b0   :  { %6796 = vmatpush1.msra.mxu0 %v8692_v43  ;;  %6665 = vmatpush1.msra.mxu1 %v8693_v44  ;;  %v8741_v42 = vld [vmem:[#allocation13 + $0xe00] sm:$0xff]  ;;  %v8742_v43 = vld [vmem:[#allocation13 + $0xf18] sm:$0xff] }
 0x8b1   :  { %6797 = vmatprep.subr.mxu0 %v8694_v45  ;;  %6666 = vmatprep.subr.mxu1 %v8695_v46  ;;  %v8743_v44 = vld [vmem:[#allocation13 + $0xdf8] sm:$0xff]  ;;  %v8744_v45 = vld [vmem:[#allocation13 + $0xf10] sm:$0xff] }
 0x8b2   :  { %6798 = vmatpush1.msra.mxu0 %v8696_v47  ;;  %6667 = vmatpush1.msra.mxu1 %v8697_v54  ;;  %v8745_v46 = vld [vmem:[#allocation13 + $0xdf0] sm:$0xff]  ;;  %v8746_v47 = vld [vmem:[#allocation13 + $0xf08] sm:$0xff] }
 0x8b3   :  { %6799 = vmatprep.subr.mxu0 %v8698_v56  ;;  %6668 = vmatprep.subr.mxu1 %v8699_v7  ;;  %v8747_v54 = vld [vmem:[#allocation13 + $0xde8] sm:$0xff]  ;;  %v8748_v56 = vld [vmem:[#allocation13 + $0xf00] sm:$0xff] }
 0x8b4   :  { %6800 = vmatpush1.msra.mxu0 %v8700_v51  ;;  %6669 = vmatpush1.msra.mxu1 %v8701_v59  ;;  %v8749_v7 = vld [vmem:[#allocation13 + $0xde0] sm:$0xff]  ;;  %v8750_v51 = vld [vmem:[#allocation13 + $0x10f8] sm:$0xff] }
 0x8b5   :  { %6801 = vmatprep.subr.mxu0 %v8702_v61  ;;  %6670 = vmatprep.subr.mxu1 %v8703_v20  ;;  %v8751_v59 = vld [vmem:[#allocation13 + $0xdd8] sm:$0xff]  ;;  %v8752_v61 = vld [vmem:[#allocation13 + $0x10f0] sm:$0xff] }
 0x8b6   :  { %6802 = vmatpush1.msra.mxu0 %v8704_v11  ;;  %6671 = vmatpush1.msra.mxu1 %v8705_v14  ;;  %v8753_v20 = vld [vmem:[#allocation13 + $0xdd0] sm:$0xff]  ;;  %v8754_v11 = vld [vmem:[#allocation13 + $0x10e8] sm:$0xff] }
 0x8b7   :  { %6803 = vmatprep.subr.mxu0 %v8706_v15  ;;  %6672 = vmatprep.subr.mxu1 %v8707_v53  ;;  %v8755_v14 = vld [vmem:[#allocation13 + $0xdc8] sm:$0xff]  ;;  %v8756_v15 = vld [vmem:[#allocation13 + $0x10e0] sm:$0xff] }
 0x8b8   :  { %6804 = vmatpush1.msra.mxu0 %v8708_v16  ;;  %6673 = vmatpush1.msra.mxu1 %v8709_v2  ;;  %v8757_v53 = vld [vmem:[#allocation13 + $0xdc0] sm:$0xff]  ;;  %v8758_v16 = vld [vmem:[#allocation13 + $0x10d8] sm:$0xff] }
 0x8b9   :  { %6805 = vmatprep.subr.mxu0 %v8710_v3  ;;  %6674 = vmatprep.subr.mxu1 %v8711_v55  ;;  %v8759_v2 = vld [vmem:[#allocation13 + $0xdb8] sm:$0xff]  ;;  %v8760_v3 = vld [vmem:[#allocation13 + $0x10d0] sm:$0xff] }
 0x8ba   :  { %6806 = vmatpush1.msra.mxu0 %v8712_v6  ;;  %6675 = vmatpush2.msra.mxu1 %v8713_v62  ;;  %v8761_v55 = vld [vmem:[#allocation13 + $0xdb0] sm:$0xff]  ;;  %v8762_v6 = vld [vmem:[#allocation13 + $0x10c8] sm:$0xff] }
 0x8bb   :  { %6807 = vmatprep.subr.mxu0 %v8714_v25  ;;  %6676 = vmatprep.subr.mxu1 %v8715_v12  ;;  %v8763_v62 = vld [vmem:[#allocation13 + $0xda8] sm:$0xff]  ;;  %v8764_v25 = vld [vmem:[#allocation13 + $0x10c0] sm:$0xff] }
 0x8bc   :  { %6808 = vmatpush1.msra.mxu0 %v8716_v52  ;;  %6677 = vmatpush2.msra.mxu1 %v8717_v50  ;;  %v8765_v12 = vld [vmem:[#allocation13 + $0xda0] sm:$0xff]  ;;  %v8766_v52 = vld [vmem:[#allocation13 + $0x10b8] sm:$0xff] }
 0x8bd   :  { %6809 = vmatprep.subr.mxu0 %v8718_v13  ;;  %6678 = vmatprep.subr.mxu1 %v8719_v4  ;;  %v8767_v50 = vld [vmem:[#allocation13 + $0xd98] sm:$0xff]  ;;  %v8768_v13 = vld [vmem:[#allocation13 + $0x10b0] sm:$0xff] }
 0x8be   :  { %6810 = vmatpush1.msra.mxu0 %v8720_v5  ;;  %6679 = vmatpush2.msra.mxu1 %v8721_v9  ;;  %v8769_v4 = vld [vmem:[#allocation13 + $0xd90] sm:$0xff]  ;;  %v8770_v5 = vld [vmem:[#allocation13 + $0x10a8] sm:$0xff] }
 0x8bf   :  { %6811 = vmatprep.subr.mxu0 %v8722_v28  ;;  %6680 = vmatprep.subr.mxu1 %v8723_v57  ;;  %v8771_v9 = vld [vmem:[#allocation13 + $0xd88] sm:$0xff]  ;;  %v6635_v28 = vrot.slane %v10391_v10, 5  ;;  %v8772_v57 = vld [vmem:[#allocation13 + $0x10a0] sm:$0xff] }
 0x8c0   :  { %6812 = vmatpush1.msra.mxu0 %v8724_v24  ;;  %6681 = vmatpush2.msra.mxu1 %v8725_v29  ;;  %v8773_v24 = vld [vmem:[#allocation13 + $0xd80] sm:$0xff]  ;;  %v8774_v29 = vld [vmem:[#allocation13 + $0x1098] sm:$0xff] }
 0x8c1   :  { %6813 = vmatprep.subr.mxu0 %v8726_v30  ;;  %6682 = vmatprep.subr.mxu1 %v8727_v18  ;;  %v8775_v30 = vld [vmem:[#allocation13 + $0x1090] sm:$0xff]  ;;  %v8776_v18 = vld [vmem:[#allocation13 + $0x1178] sm:$0xff] }
 0x8c2   :  { %6814 = vmatpush1.msra.mxu0 %v8728_v31  ;;  %6683 = vmatpush2.msra.mxu1 %v8729_v32  ;;  %v8777_v31 = vld [vmem:[#allocation13 + $0x1088] sm:$0xff]  ;;  %v8778_v32 = vld [vmem:[#allocation13 + $0x1170] sm:$0xff] }
 0x8c3   :  { %6815 = vmatprep.subr.mxu0 %v8730_v33  ;;  %6684 = vmatprep.subr.mxu1 %v8731_v49  ;;  %v8779_v33 = vld [vmem:[#allocation13 + $0x1080] sm:$0xff]  ;;  %v8780_v49 = vld [vmem:[#allocation13 + $0x1168] sm:$0xff] }
 0x8c4   :  { %6816 = vmatpush1.msra.mxu0 %v8732_v23  ;;  %6685 = vmatpush2.msra.mxu1 %v8733_v63  ;;  %v8781_v23 = vld [vmem:[#allocation13 + $0x1078] sm:$0xff]  ;;  %v8782_v63 = vld [vmem:[#allocation13 + $0x1160] sm:$0xff] }
 0x8c5   :  { %6817 = vmatprep.subr.mxu0 %v8734_v34  ;;  %6686 = vmatprep.subr.mxu1 %v8735_v36  ;;  %v8783_v34 = vld [vmem:[#allocation13 + $0x1070] sm:$0xff]  ;;  %v8784_v36 = vld [vmem:[#allocation13 + $0x1158] sm:$0xff] }
 0x8c6   :  { %6818 = vmatpush1.msra.mxu0 %v8736_v37  ;;  %6687 = vmatpush2.msra.mxu1 %v8737_v38  ;;  %v8785_v37 = vld [vmem:[#allocation13 + $0x1068] sm:$0xff]  ;;  %v8786_v38 = vld [vmem:[#allocation13 + $0x1150] sm:$0xff] }
 0x8c7   :  { %6819 = vmatprep.subr.mxu0 %v8738_v39  ;;  %6688 = vmatprep.subr.mxu1 %v8739_v1  ;;  %v8787_v39 = vld [vmem:[#allocation13 + $0x1060] sm:$0xff]  ;;  %v8788_v1 = vld [vmem:[#allocation13 + $0x1148] sm:$0xff] }
 0x8c8   :  { %6820 = vmatpush1.msra.mxu0 %v8740_v40  ;;  %6689 = vmatpush2.msra.mxu1 %v8741_v42  ;;  %v8789_v40 = vld [vmem:[#allocation13 + $0x1058] sm:$0xff]  ;;  %v8790_v42 = vld [vmem:[#allocation13 + $0x1140] sm:$0xff] }
 0x8c9   :  { %6821 = vmatprep.subr.mxu0 %v8742_v43  ;;  %6690 = vmatprep.subr.mxu1 %v8743_v44  ;;  %v8791_v43 = vld [vmem:[#allocation13 + $0x1050] sm:$0xff]  ;;  %v8792_v44 = vld [vmem:[#allocation13 + $0x1138] sm:$0xff] }
 0x8ca   :  { %6822 = vmatpush1.msra.mxu0 %v8744_v45  ;;  %6691 = vmatpush2.msra.mxu1 %v8745_v46  ;;  %v8793_v45 = vld [vmem:[#allocation13 + $0x1048] sm:$0xff]  ;;  %v8794_v46 = vld [vmem:[#allocation13 + $0x1130] sm:$0xff] }
 0x8cb   :  { %6823 = vmatprep.subr.mxu0 %v8746_v47  ;;  %6692 = vmatprep.subr.mxu1 %v8747_v54  ;;  %v8795_v47 = vld [vmem:[#allocation13 + $0x1040] sm:$0xff]  ;;  %v8796_v54 = vld [vmem:[#allocation13 + $0x1128] sm:$0xff] }
 0x8cc   :  { %6824 = vmatpush1.msra.mxu0 %v8748_v56  ;;  %6693 = vmatpush2.msra.mxu1 %v8749_v7  ;;  %v8797_v56 = vld [vmem:[#allocation13 + $0x1038] sm:$0xff]  ;;  %v8798_v7 = vld [vmem:[#allocation13 + $0x1120] sm:$0xff] }
 0x8cd   :  { %6825 = vmatprep.subr.mxu0 %v8750_v51  ;;  %6694 = vmatprep.subr.mxu1 %v8751_v59  ;;  %v8799_v51 = vld [vmem:[#allocation13 + $0x1030] sm:$0xff]  ;;  %v8800_v59 = vld [vmem:[#allocation13 + $0x1118] sm:$0xff] }
 0x8ce   :  { %6826 = vmatpush2.msra.mxu0 %v8752_v61  ;;  %6695 = vmatpush2.msra.mxu1 %v8753_v20  ;;  %v8801_v61 = vld [vmem:[#allocation13 + $0x1028] sm:$0xff]  ;;  %v8802_v20 = vld [vmem:[#allocation13 + $0x1110] sm:$0xff] }
 0x8cf   :  { %6827 = vmatprep.subr.mxu0 %v8754_v11  ;;  %6696 = vmatprep.subr.mxu1 %v8755_v14  ;;  %v8803_v11 = vld [vmem:[#allocation13 + $0x1020] sm:$0xff]  ;;  %v8804_v14 = vld [vmem:[#allocation13 + $0x1108] sm:$0xff] }
 0x8d0   :  { %6828 = vmatpush2.msra.mxu0 %v8756_v15  ;;  %6697 = vmatpush2.msra.mxu1 %v8757_v53  ;;  %v8805_v15 = vld [vmem:[#allocation13 + $0x1018] sm:$0xff]  ;;  %v8806_v53 = vld [vmem:[#allocation13 + $0x1100] sm:$0xff] }
 0x8d1   :  { %6829 = vmatprep.subr.mxu0 %v8758_v16  ;;  %6698 = vmatprep.subr.mxu1 %v8759_v2  ;;  %v6788_v16 = vrot.slane %v10388_v26, 6  ;;  %v8807_v2 = vld [vmem:[#allocation13 + $0x1010] sm:$0xff] }
 0x8d2   :  { %6830 = vmatpush2.msra.mxu0 %v8760_v3  ;;  %6699 = vmatpush2.msra.mxu1 %v8761_v55  ;;  %v8808_v3 = vld [vmem:[#allocation13 + $0x1278] sm:$0xff]  ;;  %v6938_v55 = vrot.slane %v10394_v21, 7  ;;  %v8817_v21 = vld [vmem:[#allocation13 + $0x1250] sm:$0xff] }
 0x8d3   :  { %6831 = vmatprep.subr.mxu0 %v8762_v6  ;;  %6700 = vmatprep.subr.mxu1 %v8763_v62  ;;  %v8809_v6 = vld [vmem:[#allocation13 + $0x1008] sm:$0xff]  ;;  %v8810_v62 = vld [vmem:[#allocation13 + $0x1270] sm:$0xff] }
 0x8d4   :  { %6832 = vmatpush2.msra.mxu0 %v8764_v25  ;;  %6701 = vmatpush2.msra.mxu1 %v8765_v12  ;;  %v6786_v25 = vrot.slane %v10391_v10, 6  ;;  %v8811_v12 = vld [vmem:[#allocation13 + $0x1000] sm:$0xff] }
 0x8d5   :  { %6833 = vmatprep.subr.mxu0 %v8766_v52  ;;  %6702 = vmatprep.subr.mxu1 %v8767_v50  ;;  %v8812_v52 = vld [vmem:[#allocation13 + $0x1268] sm:$0xff]  ;;  %v8813_v50 = vld [vmem:[#allocation13 + $0x1260] sm:$0xff] }
 0x8d6   :  { %6834 = vmatpush2.msra.mxu0 %v8768_v13  ;;  %6703 = vmatpush2.msra.mxu1 %v8769_v4  ;;  %v8814_v13 = vld [vmem:[#allocation13 + $0x13f8] sm:$0xff] }
 0x8d7   :  { %6835 = vmatprep.subr.mxu0 %v8770_v5  ;;  %6704 = vmatprep.subr.mxu1 %v8771_v9  ;;  %v8815_v4 = vld [vmem:[#allocation13 + $0x1258] sm:$0xff]  ;;  %v8816_v5 = vld [vmem:[#allocation13 + $0x13f0] sm:$0xff]  ;;  %v8818_v9 = vld [vmem:[#allocation13 + $0x13e8] sm:$0xff] }
 0x8d8   :  { %6836 = vmatpush2.msra.mxu0 %v8772_v57  ;;  %6705 = vmatpush2.msra.mxu1 %v8773_v24  ;;  %v8820_v57 = vld [vmem:[#allocation13 + $0x13e0] sm:$0xff] }
 0x8d9   :  { %6837 = vmatprep.subr.mxu0 %v8774_v29  ;;  %6707 = vmatmul.mubr.f32.vlgmr.msra.gmra.mxu1 %v6635_v28  ;;  %v8819_v28 = vld [vmem:[#allocation13 + $0x1248] sm:$0xff]  ;;  %v8821_v24 = vld [vmem:[#allocation13 + $0x1240] sm:$0xff]  ;;  %v8822_v29 = vld [vmem:[#allocation13 + $0x13d8] sm:$0xff] }
 0x8da   :  { %6838 = vmatpush2.msra.mxu0 %v8775_v30  ;;  %6880 = vmatprep.subr.mxu1 %v8776_v18  ;;  %v8823_v30 = vld [vmem:[#allocation13 + $0x1238] sm:$0xff]  ;;  %v8824_v18 = vld [vmem:[#allocation13 + $0x13d0] sm:$0xff] }
 0x8db   :  { %6839 = vmatprep.subr.mxu0 %v8777_v31  ;;  %6881 = vmatpush1.msra.mxu1 %v8778_v32  ;;  %v8825_v31 = vld [vmem:[#allocation13 + $0x1230] sm:$0xff]  ;;  %v8826_v32 = vld [vmem:[#allocation13 + $0x13c8] sm:$0xff] }
 0x8dc   :  { %6840 = vmatpush2.msra.mxu0 %v8779_v33  ;;  %6882 = vmatprep.subr.mxu1 %v8780_v49  ;;  %v8827_v33 = vld [vmem:[#allocation13 + $0x1228] sm:$0xff]  ;;  %v8828_v49 = vld [vmem:[#allocation13 + $0x13c0] sm:$0xff] }
 0x8dd   :  { %6841 = vmatprep.subr.mxu0 %v8781_v23  ;;  %6883 = vmatpush1.msra.mxu1 %v8782_v63  ;;  %v8829_v23 = vld [vmem:[#allocation13 + $0x1220] sm:$0xff]  ;;  %v8830_v63 = vld [vmem:[#allocation13 + $0x13b8] sm:$0xff] }
 0x8de   :  { %6842 = vmatpush2.msra.mxu0 %v8783_v34  ;;  %6884 = vmatprep.subr.mxu1 %v8784_v36  ;;  %v8831_v34 = vld [vmem:[#allocation13 + $0x1218] sm:$0xff]  ;;  %v8832_v36 = vld [vmem:[#allocation13 + $0x13b0] sm:$0xff] }
 0x8df   :  { %6843 = vmatprep.subr.mxu0 %v8785_v37  ;;  %6885 = vmatpush1.msra.mxu1 %v8786_v38  ;;  %v5796_v37 = vpop.f32.mrf.mxu0  ;;  %v8833_v38 = vld [vmem:[#allocation13 + $0x1210] sm:$0xff] }
 0x8e0   :  { %6844 = vmatpush2.msra.mxu0 %v8787_v39  ;;  %6886 = vmatprep.subr.mxu1 %v8788_v1  ;;  %v8834_v39 = vld [vmem:[#allocation13 + $0x13a8] sm:$0xff] }
 0x8e1   :  { %6845 = vmatprep.subr.mxu0 %v8789_v40  ;;  %6887 = vmatpush1.msra.mxu1 %v8790_v42  ;;  %v8835_v1 = vld [vmem:[#allocation13 + $0x1208] sm:$0xff]  ;;  %v8836_v40 = vld [vmem:[#allocation13 + $0x13a0] sm:$0xff] }
 0x8e2   :  { %6846 = vmatpush2.msra.mxu0 %v8791_v43  ;;  %6888 = vmatprep.subr.mxu1 %v8792_v44  ;;  %v8837_v42 = vld [vmem:[#allocation13 + $0x1200] sm:$0xff]  ;;  %v8838_v43 = vld [vmem:[#allocation13 + $0x1398] sm:$0xff]  ;;  %v5878_v44 = vadd.f32 %v5796_v37, %v10385_v48  ;;  %v8883_v37 = vld [vmem:[#allocation13 + $0x1348] sm:$0xff] }
 0x8e3   :  { %6847 = vmatprep.subr.mxu0 %v8793_v45  ;;  %6889 = vmatpush1.msra.mxu1 %v8794_v46  ;;  %v8839_v45 = vld [vmem:[#allocation13 + $0x11f8] sm:$0xff]  ;;  %v8840_v46 = vld [vmem:[#allocation13 + $0x1390] sm:$0xff] }
 0x8e4   :  { %6848 = vmatpush2.msra.mxu0 %v8795_v47  ;;  %6890 = vmatprep.subr.mxu1 %v8796_v54  ;;  %v8841_v47 = vld [vmem:[#allocation13 + $0x11f0] sm:$0xff]  ;;  %v8842_v54 = vld [vmem:[#allocation13 + $0x1388] sm:$0xff]  ;;  %v10439_v48 = vadd.f32 %v5878_v44, %v9826_v17  ;;  %v8853_v17 = vld [vmem:[#allocation13 + $0x11c0] sm:$0xff] }
 0x8e5   :  { %6849 = vmatprep.subr.mxu0 %v8797_v56  ;;  %6891 = vmatpush1.msra.mxu1 %v8798_v7  ;;  %v8843_v56 = vld [vmem:[#allocation13 + $0x11e8] sm:$0xff]  ;;  %v8844_v7 = vld [vmem:[#allocation13 + $0x1380] sm:$0xff] }
 0x8e6   :  { %6850 = vmatpush2.msra.mxu0 %v8799_v51  ;;  %6892 = vmatprep.subr.mxu1 %v8800_v59  ;;  %v6939_v51 = vrot.slane %v10388_v26, 7  ;;  %v8845_v59 = vld [vmem:[#allocation13 + $0x11e0] sm:$0xff]  ;;  %v8850_v26 = vld [vmem:[#allocation13 + $0x14e8] sm:$0xff] }
 0x8e7   :  { %6851 = vmatprep.subr.mxu0 %v8801_v61  ;;  %6893 = vmatpush1.msra.mxu1 %v8802_v20  ;;  %v8846_v61 = vld [vmem:[#allocation13 + $0x14f8] sm:$0xff]  ;;  %v8890_v44 = vld [vmem:[#allocation13 + $0x1448] sm:$0xff] }
 0x8e8   :  { %6852 = vmatpush2.msra.mxu0 %v8803_v11  ;;  %6894 = vmatprep.subr.mxu1 %v8804_v14  ;;  %v8847_v20 = vld [vmem:[#allocation13 + $0x11d8] sm:$0xff]  ;;  %v8848_v11 = vld [vmem:[#allocation13 + $0x14f0] sm:$0xff] }
 0x8e9   :  { %6853 = vmatprep.subr.mxu0 %v8805_v15  ;;  %6895 = vmatpush1.msra.mxu1 %v8806_v53  ;;  %v8849_v14 = vld [vmem:[#allocation13 + $0x11d0] sm:$0xff]  ;;  %v8851_v15 = vld [vmem:[#allocation13 + $0x11c8] sm:$0xff]  ;;  %v8852_v53 = vld [vmem:[#allocation13 + $0x14e0] sm:$0xff] }
 0x8ea   :  { %6928 = vmatprep.mubr.f32.mxu1 %v9277_v35  ;;  %6854 = vmatpush2.msra.mxu0 %v8807_v2  ;;  %v8855_v2 = vld [vmem:[#allocation13 + $0x11b8] sm:$0xff] }
 0x8eb   :  { %7676 = vmatmul.mubr.msk.f32.vlgmr.msra.gmra.mxu1 %vm1461_vm4, %v6788_v16  ;;  %6944 = vmatprep.subr.mxu1 %v8808_v3  ;;  %v8854_v16 = vld [vmem:[#allocation13 + $0x14d8] sm:$0xff]  ;;  %v8856_v3 = vld [vmem:[#allocation13 + $0x14d0] sm:$0xff] }
 0x8ec   :  { %6855 = vmatprep.subr.mxu0 %v8809_v6  ;;  %6945 = vmatpush1.msra.mxu1 %v8810_v62  ;;  %v8858_v6 = vld [vmem:[#allocation13 + $0x14c8] sm:$0xff] }
 0x8ed   :  { %7008 = vmatprep.mubr.f32.mxu1 %v6938_v55  ;;  %6856 = vmatpush2.msra.mxu0 %v8811_v12  ;;  %v8857_v55 = vld [vmem:[#allocation13 + $0x11b0] sm:$0xff]  ;;  %v8859_v62 = vld [vmem:[#allocation13 + $0x11a8] sm:$0xff]  ;;  %v8861_v12 = vld [vmem:[#allocation13 + $0x11a0] sm:$0xff] }
 0x8ee   :  { %6946 = vmatprep.subr.mxu1 %v8812_v52  ;;  %6858 = vmatmul.mubr.f32.vlgmr.msra.gmra.mxu0 %v6786_v25  ;;  %v8860_v25 = vld [vmem:[#allocation13 + $0x14c0] sm:$0xff]  ;;  %v8862_v52 = vld [vmem:[#allocation13 + $0x14b8] sm:$0xff] }
 0x8ef   :  { %6947 = vmatpush1.msra.mxu1 %v8813_v50  ;;  %7031 = vmatprep.subr.mxu0 %v8814_v13  ;;  %v8863_v50 = vld [vmem:[#allocation13 + $0x1198] sm:$0xff]  ;;  %v8864_v13 = vld [vmem:[#allocation13 + $0x14b0] sm:$0xff] }
 0x8f0   :  { %6948 = vmatprep.subr.mxu1 %v8815_v4  ;;  %7032 = vmatpush1.msra.mxu0 %v8816_v5  ;;  %v8865_v4 = vld [vmem:[#allocation13 + $0x1190] sm:$0xff]  ;;  %v8866_v5 = vld [vmem:[#allocation13 + $0x14a8] sm:$0xff] }
 0x8f1   :  { %6949 = vmatpush1.msra.mxu1 %v8817_v21  ;;  %7033 = vmatprep.subr.mxu0 %v8818_v9  ;;  %v8867_v21 = vld [vmem:[#allocation13 + $0x1188] sm:$0xff]  ;;  %v8868_v9 = vld [vmem:[#allocation13 + $0x14a0] sm:$0xff] }
 0x8f2   :  { %6950 = vmatprep.subr.mxu1 %v8819_v28  ;;  %7034 = vmatpush1.msra.mxu0 %v8820_v57  ;;  %v8869_v28 = vld [vmem:[#allocation13 + $0x1180] sm:$0xff]  ;;  %v8870_v57 = vld [vmem:[#allocation13 + $0x1498] sm:$0xff] }
 0x8f3   :  { %6951 = vmatpush1.msra.mxu1 %v8821_v24  ;;  %7035 = vmatprep.subr.mxu0 %v8822_v29  ;;  %v8871_v24 = vld [vmem:[#allocation13 + $0x1378] sm:$0xff]  ;;  %v8872_v29 = vld [vmem:[#allocation13 + $0x1490] sm:$0xff] }
 0x8f4   :  { %6952 = vmatprep.subr.mxu1 %v8823_v30  ;;  %7036 = vmatpush1.msra.mxu0 %v8824_v18  ;;  %v8873_v30 = vld [vmem:[#allocation13 + $0x1370] sm:$0xff]  ;;  %v8874_v18 = vld [vmem:[#allocation13 + $0x1488] sm:$0xff] }
 0x8f5   :  { %6953 = vmatpush1.msra.mxu1 %v8825_v31  ;;  %7037 = vmatprep.subr.mxu0 %v8826_v32  ;;  %v8875_v31 = vld [vmem:[#allocation13 + $0x1368] sm:$0xff]  ;;  %v8876_v32 = vld [vmem:[#allocation13 + $0x1480] sm:$0xff] }
 0x8f6   :  { %6954 = vmatprep.subr.mxu1 %v8827_v33  ;;  %7038 = vmatpush1.msra.mxu0 %v8828_v49  ;;  %v8877_v33 = vld [vmem:[#allocation13 + $0x1360] sm:$0xff]  ;;  %v8878_v49 = vld [vmem:[#allocation13 + $0x1478] sm:$0xff] }
 0x8f7   :  { %6955 = vmatpush1.msra.mxu1 %v8829_v23  ;;  %7039 = vmatprep.subr.mxu0 %v8830_v63  ;;  %v8879_v23 = vld [vmem:[#allocation13 + $0x1358] sm:$0xff]  ;;  %v8880_v63 = vld [vmem:[#allocation13 + $0x1470] sm:$0xff] }
 0x8f8   :  { %6956 = vmatprep.subr.mxu1 %v8831_v34  ;;  %7040 = vmatpush1.msra.mxu0 %v8832_v36  ;;  %v8881_v34 = vld [vmem:[#allocation13 + $0x1350] sm:$0xff]  ;;  %v8882_v36 = vld [vmem:[#allocation13 + $0x1468] sm:$0xff] }
 0x8f9   :  { %6957 = vmatpush1.msra.mxu1 %v8833_v38  ;;  %7041 = vmatprep.subr.mxu0 %v8834_v39  ;;  %v8884_v38 = vld [vmem:[#allocation13 + $0x1460] sm:$0xff] }
 0x8fa   :  { %6958 = vmatprep.subr.mxu1 %v8835_v1  ;;  %7042 = vmatpush1.msra.mxu0 %v8836_v40  ;;  %v8885_v39 = vld [vmem:[#allocation13 + $0x1340] sm:$0xff]  ;;  %v8886_v1 = vld [vmem:[#allocation13 + $0x1458] sm:$0xff] }
 0x8fb   :  { %6959 = vmatpush1.msra.mxu1 %v8837_v42  ;;  %7043 = vmatprep.subr.mxu0 %v8838_v43  ;;  %v8887_v40 = vld [vmem:[#allocation13 + $0x1338] sm:$0xff]  ;;  %v8888_v42 = vld [vmem:[#allocation13 + $0x1450] sm:$0xff] }
 0x8fc   :  { %6960 = vmatprep.subr.mxu1 %v8839_v45  ;;  %7044 = vmatpush1.msra.mxu0 %v8840_v46  ;;  %v8889_v43 = vld [vmem:[#allocation13 + $0x1330] sm:$0xff]  ;;  %v8891_v45 = vld [vmem:[#allocation13 + $0x1328] sm:$0xff]  ;;  %v8892_v46 = vld [vmem:[#allocation13 + $0x1440] sm:$0xff] }
 0x8fd   :  { %6961 = vmatpush1.msra.mxu1 %v8841_v47  ;;  %7045 = vmatprep.subr.mxu0 %v8842_v54  ;;  %v8893_v47 = vld [vmem:[#allocation13 + $0x1320] sm:$0xff]  ;;  %v8894_v54 = vld [vmem:[#allocation13 + $0x1438] sm:$0xff] }
 0x8fe   :  { %6962 = vmatprep.subr.mxu1 %v8843_v56  ;;  %7046 = vmatpush1.msra.mxu0 %v8844_v7  ;;  %v8895_v56 = vld [vmem:[#allocation13 + $0x1318] sm:$0xff]  ;;  %v8896_v7 = vld [vmem:[#allocation13 + $0x1430] sm:$0xff] }
 0x8ff   :  { %7079 = vmatprep.mubr.f32.mxu0 %v9277_v35  ;;  %6963 = vmatpush1.msra.mxu1 %v8845_v59  ;;  %v8898_v59 = vld [vmem:[#allocation13 + $0x1428] sm:$0xff] }
 0x900   :  { %7677 = vmatmul.mubr.msk.f32.vlgmr.msra.gmra.mxu0 %vm1461_vm4, %v6939_v51  ;;  %7091 = vmatprep.subr.mxu0 %v8846_v61  ;;  %v8897_v51 = vld [vmem:[#allocation13 + $0x1310] sm:$0xff]  ;;  %v8899_v61 = vld [vmem:[#allocation13 + $0x1308] sm:$0xff] }
 0x901   :  { %6964 = vmatprep.subr.mxu1 %v8847_v20  ;;  %7092 = vmatpush1.msra.mxu0 %v8848_v11  ;;  %v8900_v20 = vld [vmem:[#allocation13 + $0x1420] sm:$0xff] }
 0x902   :  { %7155 = vmatprep.mubr.f32.mxu0 %v10439_v48  ;;  %6965 = vmatpush1.msra.mxu1 %v8849_v14  ;;  %v8901_v11 = vld [vmem:[#allocation13 + $0x1300] sm:$0xff]  ;;  %v8902_v14 = vld [vmem:[#allocation13 + $0x1418] sm:$0xff] }
 0x903   :  { %7093 = vmatprep.subr.mxu0 %v8850_v26  ;;  %6966 = vmatprep.subr.mxu1 %v8851_v15  ;;  %v8903_v26 = vld [vmem:[#allocation13 + $0x12f8] sm:$0xff]  ;;  %v8904_v15 = vld [vmem:[#allocation13 + $0x1410] sm:$0xff] }
 0x904   :  { %7094 = vmatpush1.msra.mxu0 %v8852_v53  ;;  %6967 = vmatpush1.msra.mxu1 %v8853_v17  ;;  %v8905_v53 = vld [vmem:[#allocation13 + $0x12f0] sm:$0xff]  ;;  %v8906_v17 = vld [vmem:[#allocation13 + $0x1408] sm:$0xff] }
 0x905   :  { %7095 = vmatprep.subr.mxu0 %v8854_v16  ;;  %6968 = vmatprep.subr.mxu1 %v8855_v2  ;;  %v8907_v16 = vld [vmem:[#allocation13 + $0x12e8] sm:$0xff]  ;;  %v8908_v2 = vld [vmem:[#allocation13 + $0x1400] sm:$0xff] }
 0x906   :  { %7096 = vmatpush1.msra.mxu0 %v8856_v3  ;;  %6969 = vmatpush1.msra.mxu1 %v8857_v55  ;;  %v8909_v3 = vld [vmem:[#allocation13 + $0x12e0] sm:$0xff]  ;;  %v8910_v55 = vld [vmem:[#allocation13 + $0x15f8] sm:$0xff] }
 0x907   :  { %7097 = vmatprep.subr.mxu0 %v8858_v6  ;;  %6970 = vmatprep.subr.mxu1 %v8859_v62  ;;  %v8911_v6 = vld [vmem:[#allocation13 + $0x12d8] sm:$0xff]  ;;  %v8912_v62 = vld [vmem:[#allocation13 + $0x15f0] sm:$0xff] }
 0x908   :  { %7098 = vmatpush1.msra.mxu0 %v8860_v25  ;;  %6971 = vmatpush1.msra.mxu1 %v8861_v12  ;;  %v8913_v25 = vld [vmem:[#allocation13 + $0x12d0] sm:$0xff]  ;;  %v8914_v12 = vld [vmem:[#allocation13 + $0x15e8] sm:$0xff] }
 0x909   :  { %7099 = vmatprep.subr.mxu0 %v8862_v52  ;;  %6972 = vmatprep.subr.mxu1 %v8863_v50  ;;  %v8915_v52 = vld [vmem:[#allocation13 + $0x12c8] sm:$0xff]  ;;  %v8916_v50 = vld [vmem:[#allocation13 + $0x15e0] sm:$0xff] }
 0x90a   :  { %7100 = vmatpush1.msra.mxu0 %v8864_v13  ;;  %6973 = vmatpush1.msra.mxu1 %v8865_v4  ;;  %v8917_v13 = vld [vmem:[#allocation13 + $0x12c0] sm:$0xff]  ;;  %v8918_v4 = vld [vmem:[#allocation13 + $0x15d8] sm:$0xff] }
 0x90b   :  { %7101 = vmatprep.subr.mxu0 %v8866_v5  ;;  %6974 = vmatprep.subr.mxu1 %v8867_v21  ;;  %v8919_v5 = vld [vmem:[#allocation13 + $0x12b8] sm:$0xff]  ;;  %v8920_v21 = vld [vmem:[#allocation13 + $0x15d0] sm:$0xff] }
 0x90c   :  { %7102 = vmatpush1.msra.mxu0 %v8868_v9  ;;  %6975 = vmatpush1.msra.mxu1 %v8869_v28  ;;  %v8921_v9 = vld [vmem:[#allocation13 + $0x12b0] sm:$0xff]  ;;  %v8922_v28 = vld [vmem:[#allocation13 + $0x15c8] sm:$0xff] }
 0x90d   :  { %7103 = vmatprep.subr.mxu0 %v8870_v57  ;;  %6976 = vmatprep.subr.mxu1 %v8871_v24  ;;  %v8923_v57 = vld [vmem:[#allocation13 + $0x12a8] sm:$0xff]  ;;  %v8924_v24 = vld [vmem:[#allocation13 + $0x15c0] sm:$0xff] }
 0x90e   :  { %7104 = vmatpush1.msra.mxu0 %v8872_v29  ;;  %6977 = vmatpush2.msra.mxu1 %v8873_v30  ;;  %v8925_v29 = vld [vmem:[#allocation13 + $0x12a0] sm:$0xff]  ;;  %v8926_v30 = vld [vmem:[#allocation13 + $0x15b8] sm:$0xff] }
 0x90f   :  { %7105 = vmatprep.subr.mxu0 %v8874_v18  ;;  %6978 = vmatprep.subr.mxu1 %v8875_v31  ;;  %v8927_v18 = vld [vmem:[#allocation13 + $0x1298] sm:$0xff]  ;;  %v8928_v31 = vld [vmem:[#allocation13 + $0x15b0] sm:$0xff] }
 0x910   :  { %7106 = vmatpush1.msra.mxu0 %v8876_v32  ;;  %6979 = vmatpush2.msra.mxu1 %v8877_v33  ;;  %v8929_v32 = vld [vmem:[#allocation13 + $0x1290] sm:$0xff]  ;;  %v8930_v33 = vld [vmem:[#allocation13 + $0x15a8] sm:$0xff] }
 0x911   :  { %7107 = vmatprep.subr.mxu0 %v8878_v49  ;;  %6980 = vmatprep.subr.mxu1 %v8879_v23  ;;  %v8931_v49 = vld [vmem:[#allocation13 + $0x1288] sm:$0xff]  ;;  %v6937_v23 = vrot.slane %v10391_v10, 7  ;;  %v8941_v10 = vld [vmem:[#allocation13 + $0x1578] sm:$0xff] }
 0x912   :  { %7108 = vmatpush1.msra.mxu0 %v8880_v63  ;;  %6981 = vmatpush2.msra.mxu1 %v8881_v34  ;;  %v8932_v63 = vld [vmem:[#allocation13 + $0x15a0] sm:$0xff] }
 0x913   :  { %7109 = vmatprep.subr.mxu0 %v8882_v36  ;;  %6982 = vmatprep.subr.mxu1 %v8883_v37  ;;  %v8933_v34 = vld [vmem:[#allocation13 + $0x1280] sm:$0xff]  ;;  %v8934_v36 = vld [vmem:[#allocation13 + $0x1598] sm:$0xff]  ;;  %v8935_v37 = vld [vmem:[#allocation13 + $0x1590] sm:$0xff] }
 0x914   :  { %7110 = vmatpush1.msra.mxu0 %v8884_v38  ;;  %6983 = vmatpush2.msra.mxu1 %v8885_v39  ;;  %v8936_v38 = vld [vmem:[#allocation13 + $0x1678] sm:$0xff]  ;;  %v8937_v39 = vld [vmem:[#allocation13 + $0x1588] sm:$0xff] }
 0x915   :  { %7111 = vmatprep.subr.mxu0 %v8886_v1  ;;  %6984 = vmatprep.subr.mxu1 %v8887_v40  ;;  %v8938_v1 = vld [vmem:[#allocation13 + $0x1670] sm:$0xff]  ;;  %v8939_v40 = vld [vmem:[#allocation13 + $0x1580] sm:$0xff] }
 0x916   :  { %7112 = vmatpush1.msra.mxu0 %v8888_v42  ;;  %6985 = vmatpush2.msra.mxu1 %v8889_v43  ;;  %v8940_v42 = vld [vmem:[#allocation13 + $0x1668] sm:$0xff]  ;;  %v8942_v43 = vld [vmem:[#allocation13 + $0x1660] sm:$0xff] }
 0x917   :  { %7113 = vmatprep.subr.mxu0 %v8890_v44  ;;  %6986 = vmatprep.subr.mxu1 %v8891_v45  ;;  %v8943_v44 = vld [vmem:[#allocation13 + $0x1570] sm:$0xff]  ;;  %v8944_v45 = vld [vmem:[#allocation13 + $0x1658] sm:$0xff] }
 0x918   :  { %7114 = vmatpush1.msra.mxu0 %v8892_v46  ;;  %6987 = vmatpush2.msra.mxu1 %v8893_v47  ;;  %v8945_v46 = vld [vmem:[#allocation13 + $0x1568] sm:$0xff]  ;;  %v8946_v47 = vld [vmem:[#allocation13 + $0x1650] sm:$0xff] }
 0x919   :  { %7115 = vmatprep.subr.mxu0 %v8894_v54  ;;  %6988 = vmatprep.subr.mxu1 %v8895_v56  ;;  %v8947_v54 = vld [vmem:[#allocation13 + $0x1560] sm:$0xff]  ;;  %v8948_v56 = vld [vmem:[#allocation13 + $0x1648] sm:$0xff] }
 0x91a   :  { %7116 = vmatpush1.msra.mxu0 %v8896_v7  ;;  %6989 = vmatpush2.msra.mxu1 %v8897_v51  ;;  %v8949_v7 = vld [vmem:[#allocation13 + $0x1558] sm:$0xff]  ;;  %v8950_v51 = vld [vmem:[#allocation13 + $0x1640] sm:$0xff] }
 0x91b   :  { %7117 = vmatprep.subr.mxu0 %v8898_v59  ;;  %6990 = vmatprep.subr.mxu1 %v8899_v61  ;;  %v8951_v59 = vld [vmem:[#allocation13 + $0x1550] sm:$0xff]  ;;  %v8952_v61 = vld [vmem:[#allocation13 + $0x1638] sm:$0xff] }
 0x91c   :  { %7118 = vmatpush1.msra.mxu0 %v8900_v20  ;;  %6991 = vmatpush2.msra.mxu1 %v8901_v11  ;;  %v8953_v20 = vld [vmem:[#allocation13 + $0x1548] sm:$0xff]  ;;  %v8954_v11 = vld [vmem:[#allocation13 + $0x1630] sm:$0xff] }
 0x91d   :  { %7119 = vmatprep.subr.mxu0 %v8902_v14  ;;  %6992 = vmatprep.subr.mxu1 %v8903_v26  ;;  %v8955_v14 = vld [vmem:[#allocation13 + $0x1540] sm:$0xff]  ;;  %v8956_v26 = vld [vmem:[#allocation13 + $0x1628] sm:$0xff] }
 0x91e   :  { %7120 = vmatpush1.msra.mxu0 %v8904_v15  ;;  %6993 = vmatpush2.msra.mxu1 %v8905_v53  ;;  %v8957_v15 = vld [vmem:[#allocation13 + $0x1538] sm:$0xff]  ;;  %v8958_v53 = vld [vmem:[#allocation13 + $0x1620] sm:$0xff] }
 0x91f   :  { %7121 = vmatprep.subr.mxu0 %v8906_v17  ;;  %6994 = vmatprep.subr.mxu1 %v8907_v16  ;;  %v8959_v17 = vld [vmem:[#allocation13 + $0x1530] sm:$0xff]  ;;  %v8960_v16 = vld [vmem:[#allocation13 + $0x1618] sm:$0xff] }
 0x920   :  { %7122 = vmatpush1.msra.mxu0 %v8908_v2  ;;  %6995 = vmatpush2.msra.mxu1 %v8909_v3  ;;  %v8961_v2 = vld [vmem:[#allocation13 + $0x1528] sm:$0xff]  ;;  %v8962_v3 = vld [vmem:[#allocation13 + $0x1610] sm:$0xff] }
 0x921   :  { %7123 = vmatprep.subr.mxu0 %v8910_v55  ;;  %6996 = vmatprep.subr.mxu1 %v8911_v6  ;;  %v8963_v55 = vld [vmem:[#allocation13 + $0x1520] sm:$0xff]  ;;  %v8964_v6 = vld [vmem:[#allocation13 + $0x1608] sm:$0xff] }
 0x922   :  { %7124 = vmatpush2.msra.mxu0 %v8912_v62  ;;  %6997 = vmatpush2.msra.mxu1 %v8913_v25  ;;  %v10446_v62 = vadd.f32 %v10398_v27, %v9820_v58  ;;  %v8965_v25 = vld [vmem:[#allocation13 + $0x1518] sm:$0xff]  ;;  %v8969_v58 = vld [vmem:[#allocation13 + $0x1508] sm:$0xff]  ;;  %v8970_v27 = vld [vmem:[#allocation13 + $0x1770] sm:$0xff] }
 0x923   :  { %7125 = vmatprep.subr.mxu0 %v8914_v12  ;;  %6998 = vmatprep.subr.mxu1 %v8915_v52  ;;  %v8966_v12 = vld [vmem:[#allocation13 + $0x1600] sm:$0xff]  ;;  %v8967_v52 = vld [vmem:[#allocation13 + $0x1510] sm:$0xff] }
 0x924   :  { %7126 = vmatpush2.msra.mxu0 %v8916_v50  ;;  %6999 = vmatpush2.msra.mxu1 %v8917_v13  ;;  %v8968_v50 = vld [vmem:[#allocation13 + $0x1778] sm:$0xff]  ;;  %v7238_v13 = vrot.slane %v10439_v48, 1 }
 0x925   :  { %7127 = vmatprep.subr.mxu0 %v8918_v4  ;;  %7000 = vmatprep.subr.mxu1 %v8919_v5  ;;  %v10454_v4 = vadd.f32 %v10396_v22, %v9823_v19  ;;  %v8971_v5 = vld [vmem:[#allocation13 + $0x1500] sm:$0xff]  ;;  %v8975_v48 = vld [vmem:[#allocation13 + $0x1758] sm:$0xff]  ;;  %v8977_v19 = vld [vmem:[#allocation13 + $0x1750] sm:$0xff] }
 0x926   :  { %7128 = vmatpush2.msra.mxu0 %v8920_v21  ;;  %7001 = vmatpush2.msra.mxu1 %v8921_v9  ;;  %v8972_v21 = vld [vmem:[#allocation13 + $0x1768] sm:$0xff]  ;;  %v8973_v9 = vld [vmem:[#allocation13 + $0x1760] sm:$0xff] }
 0x927   :  { %7129 = vmatprep.subr.mxu0 %v8922_v28  ;;  %7002 = vmatprep.subr.mxu1 %v8923_v57  ;;  %v8974_v28 = vld [vmem:[#allocation13 + $0x18f8] sm:$0xff]  ;;  %v8976_v57 = vld [vmem:[#allocation13 + $0x18f0] sm:$0xff]  ;;  %v8978_v22 = vld [vmem:[#allocation13 + $0x18e8] sm:$0xff] }
 0x928   :  { %7130 = vmatpush2.msra.mxu0 %v8924_v24  ;;  %7003 = vmatpush2.msra.mxu1 %v8925_v29  ;;  %v8979_v24 = vld [vmem:[#allocation13 + $0x1748] sm:$0xff]  ;;  %v8980_v29 = vld [vmem:[#allocation13 + $0x18e0] sm:$0xff] }
 0x929   :  { %7131 = vmatprep.subr.mxu0 %v8926_v30  ;;  %7004 = vmatprep.subr.mxu1 %v8927_v18  ;;  %v8981_v30 = vld [vmem:[#allocation13 + $0x1740] sm:$0xff]  ;;  %v8982_v18 = vld [vmem:[#allocation13 + $0x18d8] sm:$0xff] }
 0x92a   :  { %7132 = vmatpush2.msra.mxu0 %v8928_v31  ;;  %7005 = vmatpush2.msra.mxu1 %v8929_v32  ;;  %v8983_v31 = vld [vmem:[#allocation13 + $0x1738] sm:$0xff]  ;;  %v8984_v32 = vld [vmem:[#allocation13 + $0x18d0] sm:$0xff] }
 0x92b   :  { %7133 = vmatprep.subr.mxu0 %v8930_v33  ;;  %7006 = vmatprep.subr.mxu1 %v8931_v49  ;;  %v8985_v33 = vld [vmem:[#allocation13 + $0x1730] sm:$0xff]  ;;  %v8986_v49 = vld [vmem:[#allocation13 + $0x18c8] sm:$0xff] }
 0x92c   :  { %7134 = vmatpush2.msra.mxu0 %v8932_v63  ;;  %7007 = vmatpush2.msra.mxu1 %v8933_v34  ;;  %v8988_v63 = vld [vmem:[#allocation13 + $0x18c0] sm:$0xff] }
 0x92d   :  { %7135 = vmatprep.subr.mxu0 %v8934_v36  ;;  %7009 = vmatmul.mubr.f32.vlgmr.msra.gmra.mxu1 %v6937_v23  ;;  %v8987_v23 = vld [vmem:[#allocation13 + $0x1728] sm:$0xff]  ;;  %v8989_v34 = vld [vmem:[#allocation13 + $0x1720] sm:$0xff]  ;;  %v8990_v36 = vld [vmem:[#allocation13 + $0x18b8] sm:$0xff] }
 0x92e   :  { %7136 = vmatpush2.msra.mxu0 %v8935_v37  ;;  %7178 = vmatprep.subr.mxu1 %v8936_v38  ;;  %v8991_v37 = vld [vmem:[#allocation13 + $0x1718] sm:$0xff]  ;;  %v8992_v38 = vld [vmem:[#allocation13 + $0x18b0] sm:$0xff] }
 0x92f   :  { %7137 = vmatprep.subr.mxu0 %v8937_v39  ;;  %7179 = vmatpush1.msra.mxu1 %v8938_v1  ;;  %v8993_v39 = vld [vmem:[#allocation13 + $0x1710] sm:$0xff]  ;;  %v8994_v1 = vld [vmem:[#allocation13 + $0x18a8] sm:$0xff] }
 0x930   :  { %7138 = vmatpush2.msra.mxu0 %v8939_v40  ;;  %7180 = vmatprep.subr.mxu1 %v8940_v42  ;;  %v8995_v40 = vld [vmem:[#allocation13 + $0x1708] sm:$0xff]  ;;  %v8996_v42 = vld [vmem:[#allocation13 + $0x18a0] sm:$0xff] }
 0x931   :  { %7139 = vmatprep.subr.mxu0 %v8941_v10  ;;  %7181 = vmatpush1.msra.mxu1 %v8942_v43  ;;  %v8997_v10 = vld [vmem:[#allocation13 + $0x1700] sm:$0xff]  ;;  %v8998_v43 = vld [vmem:[#allocation13 + $0x1898] sm:$0xff] }
 0x932   :  { %7140 = vmatpush2.msra.mxu0 %v8943_v44  ;;  %7182 = vmatprep.subr.mxu1 %v8944_v45  ;;  %v8999_v44 = vld [vmem:[#allocation13 + $0x16f8] sm:$0xff]  ;;  %v9000_v45 = vld [vmem:[#allocation13 + $0x1890] sm:$0xff] }
 0x933   :  { %7141 = vmatprep.subr.mxu0 %v8945_v46  ;;  %7183 = vmatpush1.msra.mxu1 %v8946_v47  ;;  %v9001_v46 = vld [vmem:[#allocation13 + $0x16f0] sm:$0xff]  ;;  %v9002_v47 = vld [vmem:[#allocation13 + $0x1888] sm:$0xff] }
 0x934   :  { %7142 = vmatpush2.msra.mxu0 %v8947_v54  ;;  %7184 = vmatprep.subr.mxu1 %v8948_v56  ;;  %v7239_v54 = vrot.slane %v10446_v62, 1  ;;  %v9003_v56 = vld [vmem:[#allocation13 + $0x16e8] sm:$0xff] }
 0x935   :  { %7143 = vmatprep.subr.mxu0 %v8949_v7  ;;  %7185 = vmatpush1.msra.mxu1 %v8950_v51  ;;  %v9004_v7 = vld [vmem:[#allocation13 + $0x1880] sm:$0xff] }
 0x936   :  { %7144 = vmatpush2.msra.mxu0 %v8951_v59  ;;  %7186 = vmatprep.subr.mxu1 %v8952_v61  ;;  %v9005_v51 = vld [vmem:[#allocation13 + $0x16e0] sm:$0xff]  ;;  %v9006_v59 = vld [vmem:[#allocation13 + $0x16d8] sm:$0xff]  ;;  %v9007_v61 = vld [vmem:[#allocation13 + $0x16d0] sm:$0xff] }
 0x937   :  { %7145 = vmatprep.subr.mxu0 %v8953_v20  ;;  %7187 = vmatpush1.msra.mxu1 %v8954_v11  ;;  %v9008_v20 = vld [vmem:[#allocation13 + $0x16c8] sm:$0xff]  ;;  %v9009_v11 = vld [vmem:[#allocation13 + $0x16c0] sm:$0xff] }
 0x938   :  { %7146 = vmatpush2.msra.mxu0 %v8955_v14  ;;  %7188 = vmatprep.subr.mxu1 %v8956_v26  ;;  %v9010_v14 = vld [vmem:[#allocation13 + $0x16b8] sm:$0xff]  ;;  %v9011_v26 = vld [vmem:[#allocation13 + $0x16b0] sm:$0xff] }
 0x939   :  { %7147 = vmatprep.subr.mxu0 %v8957_v15  ;;  %7189 = vmatpush1.msra.mxu1 %v8958_v53  ;;  %v9012_v15 = vld [vmem:[#allocation13 + $0x16a8] sm:$0xff]  ;;  %v9013_v53 = vld [vmem:[#allocation13 + $0x16a0] sm:$0xff] }
 0x93a   :  { %7148 = vmatpush2.msra.mxu0 %v8959_v17  ;;  %7190 = vmatprep.subr.mxu1 %v8960_v16  ;;  %v9015_v17 = vld [vmem:[#allocation13 + $0x1690] sm:$0xff]  ;;  %v9016_v16 = vld [vmem:[#allocation13 + $0x1688] sm:$0xff] }
 0x93b   :  { %7149 = vmatprep.subr.mxu0 %v8961_v2  ;;  %7191 = vmatpush1.msra.mxu1 %v8962_v3  ;;  %v9017_v2 = vld [vmem:[#allocation13 + $0x1680] sm:$0xff]  ;;  %v9018_v3 = vld [vmem:[#allocation13 + $0x1878] sm:$0xff] }
 0x93c   :  { %7150 = vmatpush2.msra.mxu0 %v8963_v55  ;;  %7192 = vmatprep.subr.mxu1 %v8964_v6  ;;  %v9019_v55 = vld [vmem:[#allocation13 + $0x1870] sm:$0xff]  ;;  %v9020_v6 = vld [vmem:[#allocation13 + $0x1868] sm:$0xff] }
 0x93d   :  { %7151 = vmatprep.subr.mxu0 %v8965_v25  ;;  %7193 = vmatpush1.msra.mxu1 %v8966_v12  ;;  %v9022_v25 = vld [vmem:[#allocation13 + $0x1858] sm:$0xff]  ;;  %v9023_v12 = vld [vmem:[#allocation13 + $0x1850] sm:$0xff] }
 0x93e   :  { %7226 = vmatprep.mubr.f32.mxu1 %v9277_v35  ;;  %7152 = vmatpush2.msra.mxu0 %v8967_v52  ;;  %v9024_v52 = vld [vmem:[#allocation13 + $0x1848] sm:$0xff] }
 0x93f   :  { %7678 = vmatmul.mubr.msk.f32.vlgmr.msra.gmra.mxu1 %vm1461_vm4, %v10446_v62  ;;  %7244 = vmatprep.subr.mxu1 %v8968_v50  ;;  %v9021_v62 = vld [vmem:[#allocation13 + $0x1860] sm:$0xff] }
 0x940   :  { %7153 = vmatprep.subr.mxu0 %v8969_v58  ;;  %7245 = vmatpush1.msra.mxu1 %v8970_v27  ;;  %v9025_v50 = vld [vmem:[#allocation13 + $0x1840] sm:$0xff]  ;;  %v9027_v58 = vld [vmem:[#allocation13 + $0x1830] sm:$0xff]  ;;  %v9028_v27 = vld [vmem:[#allocation13 + $0x1828] sm:$0xff] }
 0x941   :  { %7308 = vmatprep.mubr.f32.mxu1 %v7238_v13  ;;  %7154 = vmatpush2.msra.mxu0 %v8971_v5  ;;  %v9026_v13 = vld [vmem:[#allocation13 + $0x1838] sm:$0xff]  ;;  %v9029_v5 = vld [vmem:[#allocation13 + $0x1820] sm:$0xff] }
 0x942   :  { %7246 = vmatprep.subr.mxu1 %v8972_v21  ;;  %7156 = vmatmul.mubr.f32.vlgmr.msra.gmra.mxu0 %v10454_v4  ;;  %v9030_v21 = vld [vmem:[#allocation13 + $0x1818] sm:$0xff] }
 0x943   :  { %7247 = vmatpush1.msra.mxu1 %v8973_v9  ;;  %7331 = vmatprep.subr.mxu0 %v8974_v28  ;;  %v9031_v9 = vld [vmem:[#allocation13 + $0x1810] sm:$0xff]  ;;  %v9032_v28 = vld [vmem:[#allocation13 + $0x1808] sm:$0xff] }
 0x944   :  { %7248 = vmatprep.subr.mxu1 %v8975_v48  ;;  %7332 = vmatpush1.msra.mxu0 %v8976_v57  ;;  %v9033_v48 = vld [vmem:[#allocation13 + $0x1800] sm:$0xff]  ;;  %v9034_v57 = vld [vmem:[#allocation13 + $0x17f8] sm:$0xff] }
 0x945   :  { %7249 = vmatpush1.msra.mxu1 %v8977_v19  ;;  %7333 = vmatprep.subr.mxu0 %v8978_v22  ;;  %v9035_v19 = vld [vmem:[#allocation13 + $0x17f0] sm:$0xff]  ;;  %v9036_v22 = vld [vmem:[#allocation13 + $0x17e8] sm:$0xff] }
 0x946   :  { %7250 = vmatprep.subr.mxu1 %v8979_v24  ;;  %7334 = vmatpush1.msra.mxu0 %v8980_v29  ;;  %v9037_v24 = vld [vmem:[#allocation13 + $0x17e0] sm:$0xff]  ;;  %v9038_v29 = vld [vmem:[#allocation13 + $0x17d8] sm:$0xff] }
 0x947   :  { %7251 = vmatpush1.msra.mxu1 %v8981_v30  ;;  %7335 = vmatprep.subr.mxu0 %v8982_v18  ;;  %v9039_v30 = vld [vmem:[#allocation13 + $0x17d0] sm:$0xff]  ;;  %v9040_v18 = vld [vmem:[#allocation13 + $0x17c8] sm:$0xff] }
 0x948   :  { %7252 = vmatprep.subr.mxu1 %v8983_v31  ;;  %7336 = vmatpush1.msra.mxu0 %v8984_v32  ;;  %v9041_v31 = vld [vmem:[#allocation13 + $0x17c0] sm:$0xff]  ;;  %v9042_v32 = vld [vmem:[#allocation13 + $0x17b8] sm:$0xff] }
 0x949   :  { %7253 = vmatpush1.msra.mxu1 %v8985_v33  ;;  %7337 = vmatprep.subr.mxu0 %v8986_v49  ;;  %v9043_v33 = vld [vmem:[#allocation13 + $0x17b0] sm:$0xff]  ;;  %v9044_v49 = vld [vmem:[#allocation13 + $0x17a8] sm:$0xff] }
 0x94a   :  { %7254 = vmatprep.subr.mxu1 %v8987_v23  ;;  %7338 = vmatpush1.msra.mxu0 %v8988_v63  ;;  %v9045_v23 = vld [vmem:[#allocation13 + $0x17a0] sm:$0xff]  ;;  %v9046_v63 = vld [vmem:[#allocation13 + $0x1798] sm:$0xff] }
 0x94b   :  { %7255 = vmatpush1.msra.mxu1 %v8989_v34  ;;  %7339 = vmatprep.subr.mxu0 %v8990_v36  ;;  %v9047_v34 = vld [vmem:[#allocation13 + $0x1790] sm:$0xff]  ;;  %v7237_v36 = vrot.slane %v10454_v4, 1  ;;  %v7415_v4 = vld [vmem:[%s10573_s9 + $0x70] sm:$0xff] }
 0x94c   :  { %7256 = vmatprep.subr.mxu1 %v8991_v37  ;;  %7340 = vmatpush1.msra.mxu0 %v8992_v38  ;;  %v9048_v37 = vld [vmem:[#allocation13 + $0x1788] sm:$0xff]  ;;  %v9049_v38 = vld [vmem:[#allocation13 + $0x1780] sm:$0xff] }
 0x94d   :  { %7257 = vmatpush1.msra.mxu1 %v8993_v39  ;;  %7341 = vmatprep.subr.mxu0 %v8994_v1  ;;  %v7432_v39 = vld [vmem:[%s10573_s9 + $0xf8] sm:$0xff] }
 0x94e   :  { %7258 = vmatprep.subr.mxu1 %v8995_v40  ;;  %7342 = vmatpush1.msra.mxu0 %v8996_v42  ;;  %v7416_v1 = vld [vmem:[%s10573_s9 + $0x78] sm:$0xff]  ;;  %v7431_v40 = vld [vmem:[%s10573_s9 + $0xf0] sm:$0xff]  ;;  %v7430_v42 = vld [vmem:[%s10573_s9 + $0xe8] sm:$0xff] }
 0x94f   :  { %7259 = vmatpush1.msra.mxu1 %v8997_v10  ;;  %7343 = vmatprep.subr.mxu0 %v8998_v43  ;;  %v7414_v10 = vld [vmem:[%s10573_s9 + $0x68] sm:$0xff]  ;;  %v7429_v43 = vld [vmem:[%s10573_s9 + $0xe0] sm:$0xff] }
 0x950   :  { %7260 = vmatprep.subr.mxu1 %v8999_v44  ;;  %7344 = vmatpush1.msra.mxu0 %v9000_v45  ;;  %v7413_v44 = vld [vmem:[%s10573_s9 + $0x60] sm:$0xff]  ;;  %v7428_v45 = vld [vmem:[%s10573_s9 + $0xd8] sm:$0xff] }
 0x951   :  { %7261 = vmatpush1.msra.mxu1 %v9001_v46  ;;  %7345 = vmatprep.subr.mxu0 %v9002_v47  ;;  %v7412_v46 = vld [vmem:[%s10573_s9 + $0x58] sm:$0xff]  ;;  %v7427_v47 = vld [vmem:[%s10573_s9 + $0xd0] sm:$0xff] }
 0x952   :  { %7262 = vmatprep.subr.mxu1 %v9003_v56  ;;  %7346 = vmatpush1.msra.mxu0 %v9004_v7  ;;  %v7426_v56 = vld [vmem:[%s10573_s9 + $0xc8] sm:$0xff] }
 0x953   :  { %7379 = vmatprep.mubr.f32.mxu0 %v9277_v35  ;;  %7263 = vmatpush1.msra.mxu1 %v9005_v51  ;;  %v9014_v35 = vld [vmem:[#allocation13 + $0x1698] sm:$0xff]  ;;  %v7410_v7 = vld [vmem:[%s10573_s9 + $0x48] sm:$0xff]  ;;  %v7425_v51 = vld [vmem:[%s10573_s9 + $0xc0] sm:$0xff] }
 0x954   :  { %7679 = vmatmul.mubr.msk.f32.vlgmr.msra.gmra.mxu0 %vm1461_vm4, %v7239_v54  ;;  %7264 = vmatprep.subr.mxu1 %v9006_v59  ;;  %v7411_v54 = vld [vmem:[%s10573_s9 + $0x50] sm:$0xff]  ;;  %v7409_v59 = vld [vmem:[%s10573_s9 + $0x40] sm:$0xff] }
 0x955   :  { %7265 = vmatpush1.msra.mxu1 %v9007_v61  ;;  %7753 = vmatprep.subr.mxu0 %v7432_v39  ;;  %v7424_v61 = vld [vmem:[%s10573_s9 + $0xb8] sm:$0xff] }
 0x956   :  { %7266 = vmatprep.subr.mxu1 %v9008_v20  ;;  %7754 = vmatpush3.msra.mxu0 %v7416_v1  ;;  %v7408_v20 = vld [vmem:[%s10573_s9 + $0x38] sm:$0xff] }
 0x957   :  { %7267 = vmatpush1.msra.mxu1 %v9009_v11  ;;  %7755 = vmatprep.subr.mxu0 %v7431_v40  ;;  %v7423_v11 = vld [vmem:[%s10573_s9 + $0xb0] sm:$0xff] }
 0x958   :  { %7268 = vmatprep.subr.mxu1 %v9010_v14  ;;  %7756 = vmatpush3.msra.mxu0 %v7415_v4  ;;  %v7407_v14 = vld [vmem:[%s10573_s9 + $0x30] sm:$0xff] }
 0x959   :  { %7269 = vmatpush1.msra.mxu1 %v9011_v26  ;;  %7757 = vmatprep.subr.mxu0 %v7430_v42  ;;  %v7422_v26 = vld [vmem:[%s10573_s9 + $0xa8] sm:$0xff] }
 0x95a   :  { %7270 = vmatprep.subr.mxu1 %v9012_v15  ;;  %7758 = vmatpush3.msra.mxu0 %v7414_v10  ;;  %v7406_v15 = vld [vmem:[%s10573_s9 + $0x28] sm:$0xff] }
 0x95b   :  { %7271 = vmatpush1.msra.mxu1 %v9013_v53  ;;  %7759 = vmatprep.subr.mxu0 %v7429_v43  ;;  %v7421_v53 = vld [vmem:[%s10573_s9 + $0xa0] sm:$0xff] }
 0x95c   :  { %7272 = vmatprep.subr.mxu1 %v9014_v35  ;;  %7760 = vmatpush3.msra.mxu0 %v7413_v44  ;;  %v7405_v35 = vld [vmem:[%s10573_s9 + $0x20] sm:$0xff] }
 0x95d   :  { %7273 = vmatpush1.msra.mxu1 %v9015_v17  ;;  %7761 = vmatprep.subr.mxu0 %v7428_v45  ;;  %v7420_v17 = vld [vmem:[%s10573_s9 + $0x98] sm:$0xff] }
 0x95e   :  { %7274 = vmatprep.subr.mxu1 %v9016_v16  ;;  %7762 = vmatpush3.msra.mxu0 %v7412_v46  ;;  %v7404_v16 = vld [vmem:[%s10573_s9 + $0x18] sm:$0xff] }
 0x95f   :  { %7275 = vmatpush1.msra.mxu1 %v9017_v2  ;;  %7763 = vmatprep.subr.mxu0 %v7427_v47  ;;  %v7419_v2 = vld [vmem:[%s10573_s9 + $0x90] sm:$0xff] }
 0x960   :  { %7276 = vmatprep.subr.mxu1 %v9018_v3  ;;  %7764 = vmatpush3.msra.mxu0 %v7411_v54  ;;  %v7403_v3 = vld [vmem:[%s10573_s9 + $0x10] sm:$0xff] }
 0x961   :  { %7277 = vmatpush2.msra.mxu1 %v9019_v55  ;;  %7765 = vmatprep.subr.mxu0 %v7426_v56  ;;  %v7418_v55 = vld [vmem:[%s10573_s9 + $0x88] sm:$0xff] }
 0x962   :  { %7278 = vmatprep.subr.mxu1 %v9020_v6  ;;  %7766 = vmatpush3.msra.mxu0 %v7410_v7  ;;  %v7402_v6 = vld [vmem:[%s10573_s9 + $0x8] sm:$0xff] }
 0x963   :  { %7279 = vmatpush2.msra.mxu1 %v9021_v62  ;;  %7767 = vmatprep.subr.mxu0 %v7425_v51  ;;  %v7417_v62 = vld [vmem:[%s10573_s9 + $0x80] sm:$0xff] }
 0x964   :  { %7280 = vmatprep.subr.mxu1 %v9022_v25  ;;  %7768 = vmatpush3.msra.mxu0 %v7409_v59  ;;  %v7401_v25 = vld [vmem:[%s10573_s9] sm:$0xff]  ;;  %s9278_s9 = smov [#allocation17]  }
 0x965   :  { %7281 = vmatpush2.msra.mxu1 %v9023_v12  ;;  %7769 = vmatprep.subr.mxu0 %v7424_v61  ;;  %v5962_v12 = vpop.f32.mrf.mxu0  ;;  %s7518_s27 = sshll.u32 %s9278_s9, 4  ;;  %s7519_s27 = int_to_ptr.vmem [resolvable:$true] %s7518_s27 }
 0x966   :  { %7282 = vmatprep.subr.mxu1 %v9024_v52  ;;  %7770 = vmatpush3.msra.mxu0 %v7408_v20  ;;  %v6033_v52 = vpop.f32.mrf.mxu1  ;;  %s9230_s28 = scalar_lea.vmem %s7519_s27, 32  ;;  %p9235_p4 = scmp.lt.s32.totalorder %s7519_s27, %s7519_s27 }
 0x967   :  { %7283 = vmatpush2.msra.mxu1 %v9025_v50  ;;  %7771 = vmatprep.subr.mxu0 %v7423_v11  ;;  %v5964_v50 = vpop.f32.mrf.mxu0  ;;  %p9231_p3 = scmp.ne.s32.totalorder %s7519_s27, %s9230_s28  ;;  %p9236_p5 = scmp.lt.s32.totalorder %s9230_s28, %s9230_s28 }
 0x968   :  { %7284 = vmatprep.subr.mxu1 %v9026_v13  ;;  %7772 = vmatpush3.msra.mxu0 %v7407_v14  ;;  %v6035_v13 = vpop.f32.mrf.mxu1 }
 0x969   :  { %7285 = vmatpush2.msra.mxu1 %v9027_v58  ;;  %7773 = vmatprep.subr.mxu0 %v7422_v26  ;;  %v6177_v58 = vpop.f32.mrf.mxu0  ;;  %p9237_p6 = por %p9236_p5, %p9235_p4 }
 0x96a   :  { %7286 = vmatprep.subr.mxu1 %v9028_v27  ;;  %7774 = vmatpush3.msra.mxu0 %v7406_v15  ;;  %v6106_v27 = vpop.f32.mrf.mxu1 }
 0x96b   :  { %7287 = vmatpush2.msra.mxu1 %v9029_v5  ;;  %7775 = vmatprep.subr.mxu0 %v7421_v53  ;;  %v6179_v5 = vpop.f32.mrf.mxu0  ;;  %p9238_p7 = pnand %p9237_p6, %p9231_p3 }
 0x96c   :  { %7288 = vmatprep.subr.mxu1 %v9030_v21  ;;  %7776 = vmatpush3.msra.mxu0 %v7405_v35  ;;  %v6108_v21 = vpop.f32.mrf.mxu1 }
 0x96d   :  { %7289 = vmatpush2.msra.mxu1 %v9031_v9  ;;  %7777 = vmatprep.subr.mxu0 %v7420_v17  ;;  %v6255_v9 = vpop.f32.mrf.mxu0 }
 0x96e   :  { %7290 = vmatprep.subr.mxu1 %v9032_v28  ;;  %7778 = vmatpush3.msra.mxu0 %v7404_v16  ;;  %v6326_v28 = vpop.f32.mrf.mxu1 }
 0x96f   :  { %7291 = vmatpush2.msra.mxu1 %v9033_v48  ;;  %7779 = vmatprep.subr.mxu0 %v7419_v2  ;;  %v6257_v48 = vpop.f32.mrf.mxu0  ;;  %v6327_v4 = vadd.f32 %v6326_v28, %v6255_v9 }
 0x970   :  { %7292 = vmatprep.subr.mxu1 %v9034_v57  ;;  %7780 = vmatpush3.msra.mxu0 %v7403_v3  ;;  %v6328_v57 = vpop.f32.mrf.mxu1 }
 0x971   :  { %7293 = vmatpush2.msra.mxu1 %v9035_v19  ;;  %7781 = vmatprep.subr.mxu0 %v7418_v55  ;;  %v6477_v19 = vpop.f32.mrf.mxu0  ;;  %v6329_v44 = vadd.f32 %v6328_v57, %v6257_v48 }
 0x972   :  { %7294 = vmatprep.subr.mxu1 %v9036_v22  ;;  %7782 = vmatpush3.msra.mxu0 %v7402_v6  ;;  %v6406_v22 = vpop.f32.mrf.mxu1 }
 0x973   :  { %7295 = vmatpush2.msra.mxu1 %v9037_v24  ;;  %7783 = vmatprep.subr.mxu0 %v7417_v62  ;;  %v6479_v24 = vpop.f32.mrf.mxu0  ;;  %v6478_v45 = vadd.f32 %v6477_v19, %v6406_v22 }
 0x974   :  { %7296 = vmatprep.subr.mxu1 %v9038_v29  ;;  %7784 = vmatpush3.msra.mxu0 %v7401_v25  ;;  %v6408_v29 = vpop.f32.mrf.mxu1 }
 0x975   :  { %7297 = vmatpush2.msra.mxu1 %v9039_v30  ;;  %v6557_v30 = vpop.f32.mrf.mxu0  ;;  %v6480_v56 = vadd.f32 %v6479_v24, %v6408_v29 }
 0x976   :  { %7298 = vmatprep.subr.mxu1 %v9040_v18  ;;  %v6628_v18 = vpop.f32.mrf.mxu1 }
 0x977   :  { %7299 = vmatpush2.msra.mxu1 %v9041_v31  ;;  %v6559_v31 = vpop.f32.mrf.mxu0  ;;  %v6629_v7 = vadd.f32 %v6628_v18, %v6557_v30 }
 0x978   :  { %7300 = vmatprep.subr.mxu1 %v9042_v32  ;;  %v6630_v32 = vpop.f32.mrf.mxu1 }
 0x979   :  { %7301 = vmatpush2.msra.mxu1 %v9043_v33  ;;  %v6779_v33 = vpop.f32.mrf.mxu0  ;;  %v6631_v20 = vadd.f32 %v6630_v32, %v6559_v31 }
 0x97a   :  { %7302 = vmatprep.subr.mxu1 %v9044_v49 }
 0x97b   :  { %7303 = vmatpush2.msra.mxu1 %v9045_v23  ;;  %v6781_v23 = vpop.f32.mrf.mxu0 }
 0x97c   :  { %7304 = vmatprep.subr.mxu1 %v9046_v63 }
 0x97d   :  { %7305 = vmatpush2.msra.mxu1 %v9047_v34 }
 0x97e   :  { %7306 = vmatprep.subr.mxu1 %v9048_v37 }
 0x97f   :  { %7307 = vmatpush2.msra.mxu1 %v9049_v38  ;;  %v6036_v38 = vadd.f32 %v6035_v13, %v5964_v50 }
 0x980   :  { %7309 = vmatmul.mubr.f32.vlgmr.msra.gmra.mxu1 %v7237_v36  ;;  %v6034_v36 = vadd.f32 %v6033_v52, %v5962_v12 }
 0x981   :  { %v6109_v40 = vadd.f32 %v6108_v21, %v6036_v38 }
 0x982   :  { %v6107_v39 = vadd.f32 %v6106_v27, %v6034_v36  ;;  %v4351_v27 = vld [vmem:[#allocation14] sm:$0x3] }
 0x983   :  { %v6180_v47 = vadd.f32 %v6179_v5, %v6109_v40  ;;  %v4356_v22 = vrot.slane %v4351_v27, %v9700_v60  ;;  %v4360_v30 = vrot.slane %v4351_v27, %v9703_v0 }
 0x984   :  { %v6178_v43 = vadd.f32 %v6177_v58, %v6107_v39 }
 0x985   :  { %v6332_v59 = vadd.f32 %v6329_v44, %v6180_v47  ;;  %v4363_v36 = vadd.f32 %v4356_v22, %v10147_v8 }
 0x986   :  { %v6331_v54 = vadd.f32 %v6327_v4, %v6178_v43 }
 0x987   :  { %v6483_v15 = vadd.f32 %v6480_v56, %v6332_v59  ;;  %v4365_v60 = vmax.f32 %v4363_v36, 0.0 }
 0x988   :  { %v6482_v61 = vadd.f32 %v6478_v45, %v6331_v54 }
 0x989   :  { %v6634_v2 = vadd.f32 %v6631_v20, %v6483_v15 }
 0x98a   :  { %v6633_v53 = vadd.f32 %v6629_v7, %v6482_v61 }
 0x999   :  { %v6708_v49 = vpop.f32.mrf.mxu1 }
 0x99a   :  { %v6780_v11 = vadd.f32 %v6779_v33, %v6708_v49 }
 0x99b   :  { %v6710_v63 = vpop.f32.mrf.mxu1 }
 0x99c   :  { %v6782_v35 = vadd.f32 %v6781_v23, %v6710_v63  ;;  %v6784_v3 = vadd.f32 %v6780_v11, %v6633_v53  ;;  %v4364_v23 = vadd.f32 %v4360_v30, %v10149_v41 }
 0x99e   :  { %v6785_v25 = vadd.f32 %v6782_v35, %v6634_v2  ;;  %v4366_v39 = vmax.f32 %v4364_v23, 0.0 }
 0x9ab   :  { %v6930_v37 = vpop.f32.mrf.mxu1 }
 0x9ad   :  { %v6932_v42 = vpop.f32.mrf.mxu1 }
 0x9ae   :  { %v6859_v34 = vpop.f32.mrf.mxu0 }
 0x9af   :  { %v6931_v17 = vadd.f32 %v6930_v37, %v6859_v34 }
 0x9b0   :  { %v6861_v1 = vpop.f32.mrf.mxu0 }
 0x9b1   :  { %v6933_v55 = vadd.f32 %v6932_v42, %v6861_v1  ;;  %v6935_v12 = vadd.f32 %v6931_v17, %v6784_v3  ;;  %v7680_v42 = vld [vmem:[#allocation16] ss:$0 sm:$0xff] }
 0x9b3   :  { %v6936_v5 = vadd.f32 %v6933_v55, %v6785_v25 }
 0x9c0   :  { %v7081_v10 = vpop.f32.mrf.mxu0 }
 0x9c2   :  { %v7083_v51 = vpop.f32.mrf.mxu0 }
 0x9ed   :  { %v7010_v46 = vpop.f32.mrf.mxu1 }
 0x9ee   :  { %v7082_v6 = vadd.f32 %v7081_v10, %v7010_v46 }
 0x9ef   :  { %v7012_v14 = vpop.f32.mrf.mxu1 }
 0x9f0   :  { %v7084_v52 = vadd.f32 %v7083_v51, %v7012_v14  ;;  %v7086_v21 = vadd.f32 %v7082_v6, %v6935_v12 }
 0x9f2   :  { %v7087_v48 = vadd.f32 %v7084_v52, %v6936_v5 }
 0x9ff   :  { %v7228_v16 = vpop.f32.mrf.mxu1 }
 0xa01   :  { %v7230_v13 = vpop.f32.mrf.mxu1 }
 0xa02   :  { %v7157_v26 = vpop.f32.mrf.mxu0 }
 0xa03   :  { %v7229_v50 = vadd.f32 %v7228_v16, %v7157_v26 }
 0xa04   :  { %v7159_v62 = vpop.f32.mrf.mxu0 }
 0xa05   :  { %v7231_v9 = vadd.f32 %v7230_v13, %v7159_v62  ;;  %v7233_v57 = vadd.f32 %v7229_v50, %v7086_v21 }
 0xa07   :  { %v7234_v18 = vadd.f32 %v7231_v9, %v7087_v48 }
 0xa14   :  { %v7381_v58 = vpop.f32.mrf.mxu0 }
 0xa16   :  { %v7383_v24 = vpop.f32.mrf.mxu0 }
 0xa40   :  { %v7310_v28 = vpop.f32.mrf.mxu1 }
 0xa41   :  { %v7382_v19 = vadd.f32 %v7381_v58, %v7310_v28 }
 0xa42   :  { %v7312_v29 = vpop.f32.mrf.mxu1 }
 0xa43   :  { %v7386_v31 = vadd.f32 %v7382_v19, %v7233_v57  ;;  %v7384_v32 = vadd.f32 %v7383_v24, %v7312_v29 }
 0xa45   :  { %v7388_v33 = vadd.f32 %v7386_v31, %v4356_v22  ;;  %v7387_v49 = vadd.f32 %v7384_v32, %v7234_v18 }
 0xa47   :  { %v7390_v63 = vmax.f32 %v7388_v33, 0.0  ;;  %v7389_v34 = vadd.f32 %v7387_v49, %v4360_v30 }
 0xa49   :  { %v7391_v37 = vmax.f32 %v7389_v34, 0.0  ;;  %v7394_v38 = vrot.slane %v7390_v63, 7 }
 0xa4b   :  { %v7395_v1 = vrot.slane %v7391_v37, 7  ;;  %v7399_v0 = vsel %vm7398_vm5, %v4365_v60, %v7394_v38 }
 0xa4d   :  { %v7400_v40 = vsel %vm7398_vm5, %v4366_v39, %v7395_v1 }
 0xa4e   :  { %7504 = vmatprep.mubr.f32.mxu0 %v7400_v40 }
 0xa4f   :  { %7505 = vmatmul.mubr.f32.vlgmr.msra.gmra.mxu0 %v7399_v0 }
 0xb0f   :  { %v7785_v4 = vpop.f32.mrf.mxu0 }
 0xb11   :  { %v7786_v10 = vpop.f32.mrf.mxu0 }
 0xb12   :  { %v7787_v41 = vadd.f32 %v7786_v10, %v7785_v4 }
 0xb14   :  { %v7507_v43 = vadd.f32 %v7787_v41, %v7680_v42 }
 0xb16   :  { %7511 = vst.msk [vmem:[#allocation17] sm:$0x3] %vm7510_vm6, %v7507_v43 }
 0xb17   :  { %9241 = shalt.err (!%p9238_p7)
}
 0xb18   :  { %7521 = dma.vmem_to_hbm [thread:$0]  %s7519_s27, 32, %s10575_s11, [#allocation4]  }
 0xb19   :  { %9260 = dma.done.wait [#allocation4], 32  }
 0xb1a   :  { %9261 = vsyncadd [#allocation4], 4294967264 }
 0xb1b   :  { %7525 = vsyncpa [#allocation3], 1 }
 0xb1c   :  { %7526 = vsyncpa [#allocation6], 1 }
 0xb1d   :  { %7527 = vsyncpa [#allocation9], 1 }
 0xb1e   :  { %7528 = vsyncpa [#allocation12], 1 }
 0xb1f   :  { %7529 = vsyncpa [#allocation15], 1 }
 0xb20   :  { %7530 = vsyncpa [#allocation4], 1 }

</bundles_post_ra>
